<compile_context>
chip_gen: v7x
topology: tpu7x:2x2x1
jax: 0.10.0
libtpu: 0.0.40
codegen_flags: <defaults>
</compile_context>

<pallas_src>
import numpy as np

import jax
import jax.numpy as jnp
from jax.experimental import pallas as pl
from jax.experimental.pallas import tpu as pltpu


def _make_ffn_kernel(t_tile, d_in, d_hid, k1, pad1, eps):
    win = t_tile + 2 * pad1

    def kernel(x_ref, halo_ref, w1_ref, b1_ref, w2_ref, b2_ref, g_ref, beta_ref,
               o_ref, xbuf_ref, col_ref):
        x_f32 = x_ref[0, :, :]                          # (t_tile, d_in) f32
        hal = halo_ref[0, 0, :, :]                      # (2*pad1, d_in) bf16

        # ---- assemble the halo'd window in bf16 VMEM scratch ----
        xbuf_ref[0:pad1, :] = hal[0:pad1, :]
        xbuf_ref[pad1:pad1 + t_tile, :] = x_f32.astype(jnp.bfloat16)
        xbuf_ref[pad1 + t_tile:win, :] = hal[pad1:, :]

        # ---- im2col: col[tau, j*d_in + c] = window[tau + j, c] ----
        for j in range(k1):
            col_ref[:, j * d_in:(j + 1) * d_in] = xbuf_ref[j:j + t_tile, :]

        # ---- Conv1d #1 (k=9, "same") as ONE bf16 MXU dot + bias + ReLU ----
        h = jnp.dot(col_ref[...], w1_ref[...],
                    preferred_element_type=jnp.float32)     # (t_tile, d_hid) f32
        h = jnp.maximum(h + b1_ref[...], 0.0)

        # ---- Conv1d #2 (k=1) == pointwise bf16 matmul ----
        y = jnp.dot(h.astype(jnp.bfloat16), w2_ref[...],
                    preferred_element_type=jnp.float32) + b2_ref[...]

        # ---- dropout (identity at inference) + residual (full-precision x) ----
        z = y + x_f32

        # ---- LayerNorm over the channel (last) axis, f32 ----
        mean = jnp.mean(z, axis=-1, keepdims=True)
        var = jnp.mean(jnp.square(z - mean), axis=-1, keepdims=True)
        zn = (z - mean) * jax.lax.rsqrt(var + eps)
        o_ref[0] = (zn * g_ref[...] + beta_ref[...]).astype(o_ref.dtype)

    return kernel


def _pick_t_tile(T, B):
    # Largest tile <= 512 that divides T (amortizes ~0.35us/step overhead);
    # the full T when the sequence is short.
    if T <= 1024:
        t = T
    else:
        t = T
        for cand in (512, 448, 384, 320, 256, 192, 128, 96, 64, 32, 16, 8):
            if T % cand == 0:
                t = cand
                break
    # v7x has 2 TensorCores: keep >= 2 programs along a parallel grid axis.
    if B == 1 and t == T:
        for k in range(2, T + 1):
            if T % k == 0 and (T // k) % 8 == 0:
                t = T // k
                break
    return t


def positionwise_ffn(x, w1, b1, w2, b2, gamma, beta,
                     *, k1=9, pad1=4, eps=1e-5, t_tile=None,
                     out_dtype=jnp.float32):
    """x: (B, T, d_in) f32.
    w1: PyTorch Conv1d weight (d_hid, d_in, k1); b1: (d_hid,)
    w2: PyTorch Conv1d weight (d_in, d_hid, 1);  b2: (d_in,)
    gamma, beta: LayerNorm affine params, (d_in,)
    out_dtype: keep f32 by default; pass bf16 to halve the output HBM stream
               if the consumer accepts it.
    """
    B, T, d_in = x.shape
    d_hid = w1.shape[0]
    assert w1.shape == (d_hid, d_in, k1)
    assert w2.shape == (d_in, d_hid, 1)
    assert k1 == 2 * pad1 + 1 and pad1 >= 1, "conv1 must be 'same' with k = 2*pad + 1"

    if t_tile is None:
        t_tile = _pick_t_tile(T, B)
    if T % t_tile != 0:
        # TODO(synk): ragged/padded sequences need masking downstream.
        raise ValueError("T must be divisible by t_tile")
    n_t = T // t_tile
    halo = 2 * pad1
    win = t_tile + halo

    # ---- tiny per-tile halo slabs (no full-x pad / copy in HBM) ----
    # halo_slab[b, t, :pad1]  = x[b, t*t_tile - pad1 : t*t_tile]   (zeros at t=0)
    # halo_slab[b, t, pad1:]  = x[b, (t+1)*t_tile : +pad1]         (zeros at t=n_t-1)
    zero_rows = jnp.zeros((B, pad1, d_in), x.dtype)
    slabs = []
    for t in range(n_t):
        lo = zero_rows if t == 0 else x[:, t * t_tile - pad1:t * t_tile, :]
        hi = zero_rows if t == n_t - 1 else x[:, (t + 1) * t_tile:(t + 1) * t_tile + pad1, :]
        slabs.append(jnp.concatenate([lo, hi], axis=1))
    halo_slab = jnp.stack(slabs, axis=1).astype(jnp.bfloat16)   # (B, n_t, 2*pad1, d_in)

    # ---- weights: im2col layout for w1, pointwise for w2, f32 epilogue params ----
    w1_mat = jnp.transpose(w1, (2, 1, 0)).reshape(k1 * d_in, d_hid).astype(jnp.bfloat16)
    w2_mat = jnp.transpose(w2[:, :, 0], (1, 0)).astype(jnp.bfloat16)   # (d_hid, d_in)
    b1_2d = b1.reshape(1, d_hid).astype(jnp.float32)
    b2_2d = b2.reshape(1, d_in).astype(jnp.float32)
    g_2d = gamma.reshape(1, d_in).astype(jnp.float32)
    be_2d = beta.reshape(1, d_in).astype(jnp.float32)

    kernel = _make_ffn_kernel(t_tile, d_in, d_hid, k1, pad1, eps)

    flops = 2 * B * T * (k1 * d_in * d_hid + d_hid * d_in)
    bytes_accessed = (x.size * 4 + halo_slab.size * 2 + w1_mat.size * 2 + w2_mat.size * 2
                      + (b1_2d.size + b2_2d.size + g_2d.size + be_2d.size) * 4
                      + B * T * d_in * np.dtype(out_dtype).itemsize)
    cost = pl.CostEstimate(flops=flops, transcendentals=B * T,
                           bytes_accessed=bytes_accessed)

    def _call(single_buffer_weights):
        resident = ({"pipeline_mode": pl.Buffered(1)} if single_buffer_weights else {})
        grid_spec = pltpu.PrefetchScalarGridSpec(
            num_scalar_prefetch=0,
            grid=(B, n_t),
            in_specs=[
                pl.BlockSpec((1, t_tile, d_in), lambda b, t: (b, t, 0)),       # x tile
                pl.BlockSpec((1, 1, halo, d_in), lambda b, t: (b, t, 0, 0)),   # halo slab
                pl.BlockSpec((k1 * d_in, d_hid), lambda b, t: (0, 0), **resident),  # w1 im2col
                pl.BlockSpec((1, d_hid), lambda b, t: (0, 0), **resident),          # b1
                pl.BlockSpec((d_hid, d_in), lambda b, t: (0, 0), **resident),        # w2
                pl.BlockSpec((1, d_in), lambda b, t: (0, 0), **resident),            # b2
                pl.BlockSpec((1, d_in), lambda b, t: (0, 0), **resident),            # gamma
                pl.BlockSpec((1, d_in), lambda b, t: (0, 0), **resident),            # beta
            ],
            out_specs=pl.BlockSpec((1, t_tile, d_in), lambda b, t: (b, t, 0)),
            scratch_shapes=[
                pltpu.VMEM((win, d_in), jnp.bfloat16),           # halo'd x window
                pltpu.VMEM((t_tile, k1 * d_in), jnp.bfloat16),   # im2col slab
            ],
        )
        return pl.pallas_call(
            kernel,
            out_shape=jax.ShapeDtypeStruct((B, T, d_in), out_dtype),
            grid_spec=grid_spec,
            compiler_params=pltpu.CompilerParams(
                dimension_semantics=("parallel", "parallel"),
                vmem_limit_bytes=32 * 1024 * 1024),
            cost_estimate=cost,
        )(x, halo_slab, w1_mat, b1_2d, w2_mat, b2_2d, g_2d, be_2d)

    try:
        return _call(single_buffer_weights=True)
    except Exception:
        # Fallback if this JAX build rejects pl.Buffered(1) on resident blocks;
        # numerically identical, weights merely stay double-buffered.
        return _call(single_buffer_weights=False)


def _reference(x, w1, b1, w2, b2, gamma, beta, *, k1=9, pad1=4, eps=1e-5):
    """Pure-JAX reference mirroring the PyTorch forward (eval mode) with the
    kernel's precision choices: bf16 matmul operands, f32 accumulation,
    f32 residual + LayerNorm."""
    B, T, d_in = x.shape
    xb = x.astype(jnp.bfloat16).astype(jnp.float32)
    w1b = w1.astype(jnp.bfloat16).astype(jnp.float32)
    w2b = w2.astype(jnp.bfloat16).astype(jnp.float32)
    xpad = jnp.pad(xb, ((0, 0), (pad1, pad1), (0, 0)))
    h = jnp.zeros((B, T, w1.shape[0]), jnp.float32)
    for j in range(k1):
        h = h + jnp.einsum("btc,oc->bto", xpad[:, j:j + T, :], w1b[:, :, j],
                           preferred_element_type=jnp.float32)
    h = jax.nn.relu(h + b1)
    hb = h.astype(jnp.bfloat16).astype(jnp.float32)
    y = jnp.einsum("bth,oh->bto", hb, w2b[:, :, 0],
                   preferred_element_type=jnp.float32) + b2
    z = y + x                      # f32 residual, matching kernel & PyTorch
    mean = jnp.mean(z, axis=-1, keepdims=True)
    var = jnp.mean((z - mean) ** 2, axis=-1, keepdims=True)
    return (z - mean) * jax.lax.rsqrt(var + eps) * gamma + beta


if __name__ == "__main__":
    # Small but lane-dense shapes: x (B=2, T=256, d_in=128), d_hid=256, k=9.
    B, T, d_in, d_hid = 2, 256, 128, 256
    K1, PAD1 = 9, 4

    key = jax.random.PRNGKey(0)
    kx, kw1, kb1, kw2, kb2 = jax.random.split(key, 5)

    x = jax.random.normal(kx, (B, T, d_in), dtype=jnp.float32)
    # Conv1d parameter shapes follow PyTorch: (out_ch, in_ch, kernel)
    w1 = jax.random.normal(kw1, (d_hid, d_in, K1), dtype=jnp.float32) * 0.05
    b1 = jax.random.normal(kb1, (d_hid,), dtype=jnp.float32) * 0.05
    w2 = jax.random.normal(kw2, (d_in, d_hid, 1), dtype=jnp.float32) * 0.05
    b2 = jax.random.normal(kb2, (d_in,), dtype=jnp.float32) * 0.05
    gamma = jnp.ones((d_in,), dtype=jnp.float32)
    beta = jnp.zeros((d_in,), dtype=jnp.float32)

    ref = _reference(x, w1, b1, w2, b2, gamma, beta, k1=K1, pad1=PAD1)

    # Default tiling path (T <= 1024 -> single time tile per batch element).
    out = positionwise_ffn(x, w1, b1, w2, b2, gamma, beta, k1=K1, pad1=PAD1)
    out = jax.block_until_ready(out)
    assert out.shape == (B, T, d_in)
    assert jnp.allclose(out, ref, atol=2e-2, rtol=2e-2), "mismatch (default tiling)"

    # Explicit t_tile=128 exercises the multi-tile halo-stitching path.
    out_tiled = positionwise_ffn(x, w1, b1, w2, b2, gamma, beta,
                                 k1=K1, pad1=PAD1, t_tile=128)
    out_tiled = jax.block_until_ready(out_tiled)
    assert jnp.allclose(out_tiled, ref, atol=2e-2, rtol=2e-2), "mismatch (t_tile=128)"

    print("KERNEL_OK")
</pallas_src>

<mosaic_0001>
module attributes {stable_mosaic.version = 11 : i64} {
  func.func @kernel(%arg0: i32, %arg1: i32, %arg2: memref<1x256x128xf32, #tpu.memory_space<vmem>>, %arg3: memref<1x1x8x128xbf16, #tpu.memory_space<vmem>>, %arg4: memref<1152x256xbf16, #tpu.memory_space<vmem>>, %arg5: memref<1x256xf32, #tpu.memory_space<vmem>>, %arg6: memref<256x128xbf16, #tpu.memory_space<vmem>>, %arg7: memref<1x128xf32, #tpu.memory_space<vmem>>, %arg8: memref<1x128xf32, #tpu.memory_space<vmem>>, %arg9: memref<1x128xf32, #tpu.memory_space<vmem>>, %arg10: memref<1x256x128xf32, #tpu.memory_space<vmem>>, %arg11: memref<264x128xbf16, #tpu.memory_space<vmem>>, %arg12: memref<256x1152xbf16, #tpu.memory_space<vmem>>) attributes {dimension_semantics = [#tpu.dimension_semantics<parallel>, #tpu.dimension_semantics<parallel>], iteration_bounds = array<i64: 2, 1>, scalar_prefetch = 0 : i64, scratch_operands = 2 : i64, tpu.core_type = #tpu.core_type<tc>, window_params = [{transform_indices = @transform_0, window_bounds = array<i64: 1, 256, 128>}, {transform_indices = @transform_1, window_bounds = array<i64: 1, 1, 8, 128>}, {pipeline_mode = #tpu.pipeline_mode<synchronous>, transform_indices = @transform_2, window_bounds = array<i64: 1152, 256>}, {pipeline_mode = #tpu.pipeline_mode<synchronous>, transform_indices = @transform_3, window_bounds = array<i64: 1, 256>}, {pipeline_mode = #tpu.pipeline_mode<synchronous>, transform_indices = @transform_4, window_bounds = array<i64: 256, 128>}, {pipeline_mode = #tpu.pipeline_mode<synchronous>, transform_indices = @transform_5, window_bounds = array<i64: 1, 128>}, {pipeline_mode = #tpu.pipeline_mode<synchronous>, transform_indices = @transform_6, window_bounds = array<i64: 1, 128>}, {pipeline_mode = #tpu.pipeline_mode<synchronous>, transform_indices = @transform_7, window_bounds = array<i64: 1, 128>}, {transform_indices = @transform_8, window_bounds = array<i64: 1, 256, 128>}]} {
    %c0 = arith.constant 0 : index
    %c0_0 = arith.constant 0 : index
    %c0_1 = arith.constant 0 : index
    %0 = vector.load %arg2[%c0, %c0_0, %c0_1] : memref<1x256x128xf32, #tpu.memory_space<vmem>>, vector<1x256x128xf32>
    %1 = vector.shape_cast %0 : vector<1x256x128xf32> to vector<256x128xf32>
    %c0_2 = arith.constant 0 : index
    %c0_3 = arith.constant 0 : index
    %c0_4 = arith.constant 0 : index
    %c0_5 = arith.constant 0 : index
    %2 = vector.load %arg3[%c0_2, %c0_3, %c0_4, %c0_5] : memref<1x1x8x128xbf16, #tpu.memory_space<vmem>>, vector<1x1x8x128xbf16>
    %3 = vector.shape_cast %2 : vector<1x1x8x128xbf16> to vector<8x128xbf16>
    %4 = vector.extract_strided_slice %3 {offsets = [0, 0], sizes = [4, 128], strides = [1, 1]} : vector<8x128xbf16> to vector<4x128xbf16>
    %c0_6 = arith.constant 0 : index
    %c0_7 = arith.constant 0 : index
    %5 = vector.load %arg11[%c0_6, %c0_7] : memref<264x128xbf16, #tpu.memory_space<vmem>>, vector<4x128xbf16>
    tpu.vector_store %arg11[%c0_6, %c0_7], %4 {strides = array<i32>} : memref<264x128xbf16, #tpu.memory_space<vmem>>, vector<4x128xbf16>,
    %6 = arith.truncf %1 : vector<256x128xf32> to vector<256x128xbf16>
    %c4 = arith.constant 4 : index
    %c0_8 = arith.constant 0 : index
    %7 = vector.load %arg11[%c4, %c0_8] : memref<264x128xbf16, #tpu.memory_space<vmem>>, vector<256x128xbf16>
    tpu.vector_store %arg11[%c4, %c0_8], %6 {strides = array<i32>} : memref<264x128xbf16, #tpu.memory_space<vmem>>, vector<256x128xbf16>,
    %8 = vector.extract_strided_slice %3 {offsets = [4, 0], sizes = [4, 128], strides = [1, 1]} : vector<8x128xbf16> to vector<4x128xbf16>
    %c260 = arith.constant 260 : index
    %c0_9 = arith.constant 0 : index
    %9 = vector.load %arg11[%c260, %c0_9] : memref<264x128xbf16, #tpu.memory_space<vmem>>, vector<4x128xbf16>
    tpu.vector_store %arg11[%c260, %c0_9], %8 {strides = array<i32>} : memref<264x128xbf16, #tpu.memory_space<vmem>>, vector<4x128xbf16>,
    %c0_10 = arith.constant 0 : index
    %c0_11 = arith.constant 0 : index
    %10 = vector.load %arg11[%c0_10, %c0_11] : memref<264x128xbf16, #tpu.memory_space<vmem>>, vector<256x128xbf16>
    %c0_12 = arith.constant 0 : index
    %c0_13 = arith.constant 0 : index
    %11 = vector.load %arg12[%c0_12, %c0_13] : memref<256x1152xbf16, #tpu.memory_space<vmem>>, vector<256x128xbf16>
    tpu.vector_store %arg12[%c0_12, %c0_13], %10 {strides = array<i32>} : memref<256x1152xbf16, #tpu.memory_space<vmem>>, vector<256x128xbf16>,
    %c1 = arith.constant 1 : index
    %c0_14 = arith.constant 0 : index
    %12 = vector.load %arg11[%c1, %c0_14] : memref<264x128xbf16, #tpu.memory_space<vmem>>, vector<256x128xbf16>
    %c0_15 = arith.constant 0 : index
    %c128 = arith.constant 128 : index
    %13 = vector.load %arg12[%c0_15, %c128] : memref<256x1152xbf16, #tpu.memory_space<vmem>>, vector<256x128xbf16>
    tpu.vector_store %arg12[%c0_15, %c128], %12 {strides = array<i32>} : memref<256x1152xbf16, #tpu.memory_space<vmem>>, vector<256x128xbf16>,
    %c2 = arith.constant 2 : index
    %c0_16 = arith.constant 0 : index
    %14 = vector.load %arg11[%c2, %c0_16] : memref<264x128xbf16, #tpu.memory_space<vmem>>, vector<256x128xbf16>
    %c0_17 = arith.constant 0 : index
    %c256 = arith.constant 256 : index
    %15 = vector.load %arg12[%c0_17, %c256] : memref<256x1152xbf16, #tpu.memory_space<vmem>>, vector<256x128xbf16>
    tpu.vector_store %arg12[%c0_17, %c256], %14 {strides = array<i32>} : memref<256x1152xbf16, #tpu.memory_space<vmem>>, vector<256x128xbf16>,
    %c3 = arith.constant 3 : index
    %c0_18 = arith.constant 0 : index
    %16 = vector.load %arg11[%c3, %c0_18] : memref<264x128xbf16, #tpu.memory_space<vmem>>, vector<256x128xbf16>
    %c0_19 = arith.constant 0 : index
    %c384 = arith.constant 384 : index
    %17 = vector.load %arg12[%c0_19, %c384] : memref<256x1152xbf16, #tpu.memory_space<vmem>>, vector<256x128xbf16>
    tpu.vector_store %arg12[%c0_19, %c384], %16 {strides = array<i32>} : memref<256x1152xbf16, #tpu.memory_space<vmem>>, vector<256x128xbf16>,
    %c4_20 = arith.constant 4 : index
    %c0_21 = arith.constant 0 : index
    %18 = vector.load %arg11[%c4_20, %c0_21] : memref<264x128xbf16, #tpu.memory_space<vmem>>, vector<256x128xbf16>
    %c0_22 = arith.constant 0 : index
    %c512 = arith.constant 512 : index
    %19 = vector.load %arg12[%c0_22, %c512] : memref<256x1152xbf16, #tpu.memory_space<vmem>>, vector<256x128xbf16>
    tpu.vector_store %arg12[%c0_22, %c512], %18 {strides = array<i32>} : memref<256x1152xbf16, #tpu.memory_space<vmem>>, vector<256x128xbf16>,
    %c5 = arith.constant 5 : index
    %c0_23 = arith.constant 0 : index
    %20 = vector.load %arg11[%c5, %c0_23] : memref<264x128xbf16, #tpu.memory_space<vmem>>, vector<256x128xbf16>
    %c0_24 = arith.constant 0 : index
    %c640 = arith.constant 640 : index
    %21 = vector.load %arg12[%c0_24, %c640] : memref<256x1152xbf16, #tpu.memory_space<vmem>>, vector<256x128xbf16>
    tpu.vector_store %arg12[%c0_24, %c640], %20 {strides = array<i32>} : memref<256x1152xbf16, #tpu.memory_space<vmem>>, vector<256x128xbf16>,
    %c6 = arith.constant 6 : index
    %c0_25 = arith.constant 0 : index
    %22 = vector.load %arg11[%c6, %c0_25] : memref<264x128xbf16, #tpu.memory_space<vmem>>, vector<256x128xbf16>
    %c0_26 = arith.constant 0 : index
    %c768 = arith.constant 768 : index
    %23 = vector.load %arg12[%c0_26, %c768] : memref<256x1152xbf16, #tpu.memory_space<vmem>>, vector<256x128xbf16>
    tpu.vector_store %arg12[%c0_26, %c768], %22 {strides = array<i32>} : memref<256x1152xbf16, #tpu.memory_space<vmem>>, vector<256x128xbf16>,
    %c7 = arith.constant 7 : index
    %c0_27 = arith.constant 0 : index
    %24 = vector.load %arg11[%c7, %c0_27] : memref<264x128xbf16, #tpu.memory_space<vmem>>, vector<256x128xbf16>
    %c0_28 = arith.constant 0 : index
    %c896 = arith.constant 896 : index
    %25 = vector.load %arg12[%c0_28, %c896] : memref<256x1152xbf16, #tpu.memory_space<vmem>>, vector<256x128xbf16>
    tpu.vector_store %arg12[%c0_28, %c896], %24 {strides = array<i32>} : memref<256x1152xbf16, #tpu.memory_space<vmem>>, vector<256x128xbf16>,
    %c8 = arith.constant 8 : index
    %c0_29 = arith.constant 0 : index
    %26 = vector.load %arg11[%c8, %c0_29] : memref<264x128xbf16, #tpu.memory_space<vmem>>, vector<256x128xbf16>
    %c0_30 = arith.constant 0 : index
    %c1024 = arith.constant 1024 : index
    %27 = vector.load %arg12[%c0_30, %c1024] : memref<256x1152xbf16, #tpu.memory_space<vmem>>, vector<256x128xbf16>
    tpu.vector_store %arg12[%c0_30, %c1024], %26 {strides = array<i32>} : memref<256x1152xbf16, #tpu.memory_space<vmem>>, vector<256x128xbf16>,
    %c0_31 = arith.constant 0 : index
    %c0_32 = arith.constant 0 : index
    %28 = vector.load %arg12[%c0_31, %c0_32] : memref<256x1152xbf16, #tpu.memory_space<vmem>>, vector<256x1152xbf16>
    %c0_33 = arith.constant 0 : index
    %c0_34 = arith.constant 0 : index
    %29 = vector.load %arg4[%c0_33, %c0_34] : memref<1152x256xbf16, #tpu.memory_space<vmem>>, vector<1152x256xbf16>
    %cst = arith.constant dense<0.000000e+00> : vector<256x256xf32>
    %30 = tpu.matmul %28, %29, %cst {dimension_numbers = #tpu.dot_dimension_numbers<[1], [0], [0], [1], [0, 0, 1, 1], [], []>} : vector<256x1152xbf16>, vector<1152x256xbf16>, vector<256x256xf32> -> vector<256x256xf32>
    %c0_35 = arith.constant 0 : index
    %c0_36 = arith.constant 0 : index
    %31 = vector.load %arg5[%c0_35, %c0_36] : memref<1x256xf32, #tpu.memory_space<vmem>>, vector<1x256xf32>
    %32 = vector.broadcast %31 : vector<1x256xf32> to vector<256x256xf32>
    %33 = arith.addf %30, %32 : vector<256x256xf32>
    %cst_37 = arith.constant 0.000000e+00 : f32
    %34 = vector.broadcast %cst_37 : f32 to vector<256x256xf32>
    %35 = arith.maximumf %33, %34 : vector<256x256xf32>
    %36 = arith.truncf %35 : vector<256x256xf32> to vector<256x256xbf16>
    %c0_38 = arith.constant 0 : index
    %c0_39 = arith.constant 0 : index
    %37 = vector.load %arg6[%c0_38, %c0_39] : memref<256x128xbf16, #tpu.memory_space<vmem>>, vector<256x128xbf16>
    %cst_40 = arith.constant dense<0.000000e+00> : vector<256x128xf32>
    %38 = tpu.matmul %36, %37, %cst_40 {dimension_numbers = #tpu.dot_dimension_numbers<[1], [0], [0], [1], [0, 0, 1, 1], [], []>} : vector<256x256xbf16>, vector<256x128xbf16>, vector<256x128xf32> -> vector<256x128xf32>
    %c0_41 = arith.constant 0 : index
    %c0_42 = arith.constant 0 : index
    %39 = vector.load %arg7[%c0_41, %c0_42] : memref<1x128xf32, #tpu.memory_space<vmem>>, vector<1x128xf32>
    %40 = vector.broadcast %39 : vector<1x128xf32> to vector<256x128xf32>
    %41 = arith.addf %38, %40 : vector<256x128xf32>
    %42 = arith.addf %41, %1 : vector<256x128xf32>
    %cst_43 = arith.constant dense<0.000000e+00> : vector<256xf32>
    %43 = vector.multi_reduction <add>, %42, %cst_43 [1] : vector<256x128xf32> to vector<256xf32>
    %44 = vector.shape_cast %43 : vector<256xf32> to vector<256x1xf32>
    %cst_44 = arith.constant 1.280000e+02 : f32
    %45 = vector.broadcast %cst_44 : f32 to vector<256x1xf32>
    %46 = arith.divf %44, %45 : vector<256x1xf32>
    %47 = vector.broadcast %46 : vector<256x1xf32> to vector<256x128xf32>
    %48 = arith.subf %42, %47 : vector<256x128xf32>
    %49 = arith.mulf %48, %48 : vector<256x128xf32>
    %cst_45 = arith.constant dense<0.000000e+00> : vector<256xf32>
    %50 = vector.multi_reduction <add>, %49, %cst_45 [1] : vector<256x128xf32> to vector<256xf32>
    %51 = vector.shape_cast %50 : vector<256xf32> to vector<256x1xf32>
    %cst_46 = arith.constant 1.280000e+02 : f32
    %52 = vector.broadcast %cst_46 : f32 to vector<256x1xf32>
    %53 = arith.divf %51, %52 : vector<256x1xf32>
    %54 = vector.broadcast %46 : vector<256x1xf32> to vector<256x128xf32>
    %55 = arith.subf %42, %54 : vector<256x128xf32>
    %cst_47 = arith.constant 9.99999974E-6 : f32
    %56 = vector.broadcast %cst_47 : f32 to vector<256x1xf32>
    %57 = arith.addf %53, %56 : vector<256x1xf32>
    %58 = math.rsqrt %57 : vector<256x1xf32>
    %59 = vector.broadcast %58 : vector<256x1xf32> to vector<256x128xf32>
    %60 = arith.mulf %55, %59 : vector<256x128xf32>
    %c0_48 = arith.constant 0 : index
    %c0_49 = arith.constant 0 : index
    %61 = vector.load %arg8[%c0_48, %c0_49] : memref<1x128xf32, #tpu.memory_space<vmem>>, vector<1x128xf32>
    %62 = vector.broadcast %61 : vector<1x128xf32> to vector<256x128xf32>
    %63 = arith.mulf %60, %62 : vector<256x128xf32>
    %c0_50 = arith.constant 0 : index
    %c0_51 = arith.constant 0 : index
    %64 = vector.load %arg9[%c0_50, %c0_51] : memref<1x128xf32, #tpu.memory_space<vmem>>, vector<1x128xf32>
    %65 = vector.broadcast %64 : vector<1x128xf32> to vector<256x128xf32>
    %66 = arith.addf %63, %65 : vector<256x128xf32>
    %c0_52 = arith.constant 0 : index
    %c0_53 = arith.constant 0 : index
    %c0_54 = arith.constant 0 : index
    %67 = vector.load %arg10[%c0_52, %c0_53, %c0_54] : memref<1x256x128xf32, #tpu.memory_space<vmem>>, vector<1x256x128xf32>
    %68 = vector.shape_cast %67 : vector<1x256x128xf32> to vector<256x128xf32>
    %69 = vector.shape_cast %66 : vector<256x128xf32> to vector<1x256x128xf32>
    tpu.vector_store %arg10[%c0_52, %c0_53, %c0_54], %69 {strides = array<i32>} : memref<1x256x128xf32, #tpu.memory_space<vmem>>, vector<1x256x128xf32>,
    return
  }
  func.func @transform_0(%arg0: i32, %arg1: i32) -> (i32, i32, i32) {
    %c0_i32 = arith.constant 0 : i32
    %c0_i32_0 = arith.constant 0 : i32
    return %arg0, %arg1, %c0_i32 : i32, i32, i32
  }
  func.func @transform_1(%arg0: i32, %arg1: i32) -> (i32, i32, i32, i32) {
    %c0_i32 = arith.constant 0 : i32
    %c0_i32_0 = arith.constant 0 : i32
    %c0_i32_1 = arith.constant 0 : i32
    return %arg0, %arg1, %c0_i32, %c0_i32_0 : i32, i32, i32, i32
  }
  func.func @transform_2(%arg0: i32, %arg1: i32) -> (i32, i32) {
    %c0_i32 = arith.constant 0 : i32
    %c0_i32_0 = arith.constant 0 : i32
    %c0_i32_1 = arith.constant 0 : i32
    return %c0_i32, %c0_i32_0 : i32, i32
  }
  func.func @transform_3(%arg0: i32, %arg1: i32) -> (i32, i32) {
    %c0_i32 = arith.constant 0 : i32
    %c0_i32_0 = arith.constant 0 : i32
    %c0_i32_1 = arith.constant 0 : i32
    return %c0_i32, %c0_i32_0 : i32, i32
  }
  func.func @transform_4(%arg0: i32, %arg1: i32) -> (i32, i32) {
    %c0_i32 = arith.constant 0 : i32
    %c0_i32_0 = arith.constant 0 : i32
    %c0_i32_1 = arith.constant 0 : i32
    return %c0_i32, %c0_i32_0 : i32, i32
  }
  func.func @transform_5(%arg0: i32, %arg1: i32) -> (i32, i32) {
    %c0_i32 = arith.constant 0 : i32
    %c0_i32_0 = arith.constant 0 : i32
    %c0_i32_1 = arith.constant 0 : i32
    return %c0_i32, %c0_i32_0 : i32, i32
  }
  func.func @transform_6(%arg0: i32, %arg1: i32) -> (i32, i32) {
    %c0_i32 = arith.constant 0 : i32
    %c0_i32_0 = arith.constant 0 : i32
    %c0_i32_1 = arith.constant 0 : i32
    return %c0_i32, %c0_i32_0 : i32, i32
  }
  func.func @transform_7(%arg0: i32, %arg1: i32) -> (i32, i32) {
    %c0_i32 = arith.constant 0 : i32
    %c0_i32_0 = arith.constant 0 : i32
    %c0_i32_1 = arith.constant 0 : i32
    return %c0_i32, %c0_i32_0 : i32, i32
  }
  func.func @transform_8(%arg0: i32, %arg1: i32) -> (i32, i32, i32) {
    %c0_i32 = arith.constant 0 : i32
    %c0_i32_0 = arith.constant 0 : i32
    return %arg0, %arg1, %c0_i32 : i32, i32, i32
  }
}

module attributes {stable_mosaic.version = 11 : i64} {
  func.func @kernel(%arg0: i32, %arg1: i32, %arg2: memref<1x256x128xf32, #tpu.memory_space<vmem>>, %arg3: memref<1x1x8x128xbf16, #tpu.memory_space<vmem>>, %arg4: memref<1152x256xbf16, #tpu.memory_space<vmem>>, %arg5: memref<1x256xf32, #tpu.memory_space<vmem>>, %arg6: memref<256x128xbf16, #tpu.memory_space<vmem>>, %arg7: memref<1x128xf32, #tpu.memory_space<vmem>>, %arg8: memref<1x128xf32, #tpu.memory_space<vmem>>, %arg9: memref<1x128xf32, #tpu.memory_space<vmem>>, %arg10: memref<1x256x128xf32, #tpu.memory_space<vmem>>, %arg11: memref<264x128xbf16, #tpu.memory_space<vmem>>, %arg12: memref<256x1152xbf16, #tpu.memory_space<vmem>>) attributes {dimension_semantics = [#tpu.dimension_semantics<parallel>, #tpu.dimension_semantics<parallel>], iteration_bounds = array<i64: 2, 1>, scalar_prefetch = 0 : i64, scratch_operands = 2 : i64, tpu.core_type = #tpu.core_type<tc>, window_params = [{transform_indices = @transform_0, window_bounds = array<i64: 1, 256, 128>}, {transform_indices = @transform_1, window_bounds = array<i64: 1, 1, 8, 128>}, {pipeline_mode = #tpu.pipeline_mode<synchronous>, transform_indices = @transform_2, window_bounds = array<i64: 1152, 256>}, {pipeline_mode = #tpu.pipeline_mode<synchronous>, transform_indices = @transform_3, window_bounds = array<i64: 1, 256>}, {pipeline_mode = #tpu.pipeline_mode<synchronous>, transform_indices = @transform_4, window_bounds = array<i64: 256, 128>}, {pipeline_mode = #tpu.pipeline_mode<synchronous>, transform_indices = @transform_5, window_bounds = array<i64: 1, 128>}, {pipeline_mode = #tpu.pipeline_mode<synchronous>, transform_indices = @transform_6, window_bounds = array<i64: 1, 128>}, {pipeline_mode = #tpu.pipeline_mode<synchronous>, transform_indices = @transform_7, window_bounds = array<i64: 1, 128>}, {transform_indices = @transform_8, window_bounds = array<i64: 1, 256, 128>}]} {
    %c0 = arith.constant 0 : index
    %c0_0 = arith.constant 0 : index
    %c0_1 = arith.constant 0 : index
    %0 = vector.load %arg2[%c0, %c0_0, %c0_1] : memref<1x256x128xf32, #tpu.memory_space<vmem>>, vector<1x256x128xf32>
    %1 = vector.shape_cast %0 : vector<1x256x128xf32> to vector<256x128xf32>
    %c0_2 = arith.constant 0 : index
    %c0_3 = arith.constant 0 : index
    %c0_4 = arith.constant 0 : index
    %c0_5 = arith.constant 0 : index
    %2 = vector.load %arg3[%c0_2, %c0_3, %c0_4, %c0_5] : memref<1x1x8x128xbf16, #tpu.memory_space<vmem>>, vector<1x1x8x128xbf16>
    %3 = vector.shape_cast %2 : vector<1x1x8x128xbf16> to vector<8x128xbf16>
    %4 = vector.extract_strided_slice %3 {offsets = [0, 0], sizes = [4, 128], strides = [1, 1]} : vector<8x128xbf16> to vector<4x128xbf16>
    %c0_6 = arith.constant 0 : index
    %c0_7 = arith.constant 0 : index
    %5 = vector.load %arg11[%c0_6, %c0_7] : memref<264x128xbf16, #tpu.memory_space<vmem>>, vector<4x128xbf16>
    tpu.vector_store %arg11[%c0_6, %c0_7], %4 {strides = array<i32>} : memref<264x128xbf16, #tpu.memory_space<vmem>>, vector<4x128xbf16>,
    %6 = arith.truncf %1 : vector<256x128xf32> to vector<256x128xbf16>
    %c4 = arith.constant 4 : index
    %c0_8 = arith.constant 0 : index
    %7 = vector.load %arg11[%c4, %c0_8] : memref<264x128xbf16, #tpu.memory_space<vmem>>, vector<256x128xbf16>
    tpu.vector_store %arg11[%c4, %c0_8], %6 {strides = array<i32>} : memref<264x128xbf16, #tpu.memory_space<vmem>>, vector<256x128xbf16>,
    %8 = vector.extract_strided_slice %3 {offsets = [4, 0], sizes = [4, 128], strides = [1, 1]} : vector<8x128xbf16> to vector<4x128xbf16>
    %c260 = arith.constant 260 : index
    %c0_9 = arith.constant 0 : index
    %9 = vector.load %arg11[%c260, %c0_9] : memref<264x128xbf16, #tpu.memory_space<vmem>>, vector<4x128xbf16>
    tpu.vector_store %arg11[%c260, %c0_9], %8 {strides = array<i32>} : memref<264x128xbf16, #tpu.memory_space<vmem>>, vector<4x128xbf16>,
    %c0_10 = arith.constant 0 : index
    %c0_11 = arith.constant 0 : index
    %10 = vector.load %arg11[%c0_10, %c0_11] : memref<264x128xbf16, #tpu.memory_space<vmem>>, vector<256x128xbf16>
    %c0_12 = arith.constant 0 : index
    %c0_13 = arith.constant 0 : index
    %11 = vector.load %arg12[%c0_12, %c0_13] : memref<256x1152xbf16, #tpu.memory_space<vmem>>, vector<256x128xbf16>
    tpu.vector_store %arg12[%c0_12, %c0_13], %10 {strides = array<i32>} : memref<256x1152xbf16, #tpu.memory_space<vmem>>, vector<256x128xbf16>,
    %c1 = arith.constant 1 : index
    %c0_14 = arith.constant 0 : index
    %12 = vector.load %arg11[%c1, %c0_14] : memref<264x128xbf16, #tpu.memory_space<vmem>>, vector<256x128xbf16>
    %c0_15 = arith.constant 0 : index
    %c128 = arith.constant 128 : index
    %13 = vector.load %arg12[%c0_15, %c128] : memref<256x1152xbf16, #tpu.memory_space<vmem>>, vector<256x128xbf16>
    tpu.vector_store %arg12[%c0_15, %c128], %12 {strides = array<i32>} : memref<256x1152xbf16, #tpu.memory_space<vmem>>, vector<256x128xbf16>,
    %c2 = arith.constant 2 : index
    %c0_16 = arith.constant 0 : index
    %14 = vector.load %arg11[%c2, %c0_16] : memref<264x128xbf16, #tpu.memory_space<vmem>>, vector<256x128xbf16>
    %c0_17 = arith.constant 0 : index
    %c256 = arith.constant 256 : index
    %15 = vector.load %arg12[%c0_17, %c256] : memref<256x1152xbf16, #tpu.memory_space<vmem>>, vector<256x128xbf16>
    tpu.vector_store %arg12[%c0_17, %c256], %14 {strides = array<i32>} : memref<256x1152xbf16, #tpu.memory_space<vmem>>, vector<256x128xbf16>,
    %c3 = arith.constant 3 : index
    %c0_18 = arith.constant 0 : index
    %16 = vector.load %arg11[%c3, %c0_18] : memref<264x128xbf16, #tpu.memory_space<vmem>>, vector<256x128xbf16>
    %c0_19 = arith.constant 0 : index
    %c384 = arith.constant 384 : index
    %17 = vector.load %arg12[%c0_19, %c384] : memref<256x1152xbf16, #tpu.memory_space<vmem>>, vector<256x128xbf16>
    tpu.vector_store %arg12[%c0_19, %c384], %16 {strides = array<i32>} : memref<256x1152xbf16, #tpu.memory_space<vmem>>, vector<256x128xbf16>,
    %c4_20 = arith.constant 4 : index
    %c0_21 = arith.constant 0 : index
    %18 = vector.load %arg11[%c4_20, %c0_21] : memref<264x128xbf16, #tpu.memory_space<vmem>>, vector<256x128xbf16>
    %c0_22 = arith.constant 0 : index
    %c512 = arith.constant 512 : index
    %19 = vector.load %arg12[%c0_22, %c512] : memref<256x1152xbf16, #tpu.memory_space<vmem>>, vector<256x128xbf16>
    tpu.vector_store %arg12[%c0_22, %c512], %18 {strides = array<i32>} : memref<256x1152xbf16, #tpu.memory_space<vmem>>, vector<256x128xbf16>,
    %c5 = arith.constant 5 : index
    %c0_23 = arith.constant 0 : index
    %20 = vector.load %arg11[%c5, %c0_23] : memref<264x128xbf16, #tpu.memory_space<vmem>>, vector<256x128xbf16>
    %c0_24 = arith.constant 0 : index
    %c640 = arith.constant 640 : index
    %21 = vector.load %arg12[%c0_24, %c640] : memref<256x1152xbf16, #tpu.memory_space<vmem>>, vector<256x128xbf16>
    tpu.vector_store %arg12[%c0_24, %c640], %20 {strides = array<i32>} : memref<256x1152xbf16, #tpu.memory_space<vmem>>, vector<256x128xbf16>,
    %c6 = arith.constant 6 : index
    %c0_25 = arith.constant 0 : index
    %22 = vector.load %arg11[%c6, %c0_25] : memref<264x128xbf16, #tpu.memory_space<vmem>>, vector<256x128xbf16>
    %c0_26 = arith.constant 0 : index
    %c768 = arith.constant 768 : index
    %23 = vector.load %arg12[%c0_26, %c768] : memref<256x1152xbf16, #tpu.memory_space<vmem>>, vector<256x128xbf16>
    tpu.vector_store %arg12[%c0_26, %c768], %22 {strides = array<i32>} : memref<256x1152xbf16, #tpu.memory_space<vmem>>, vector<256x128xbf16>,
    %c7 = arith.constant 7 : index
    %c0_27 = arith.constant 0 : index
    %24 = vector.load %arg11[%c7, %c0_27] : memref<264x128xbf16, #tpu.memory_space<vmem>>, vector<256x128xbf16>
    %c0_28 = arith.constant 0 : index
    %c896 = arith.constant 896 : index
    %25 = vector.load %arg12[%c0_28, %c896] : memref<256x1152xbf16, #tpu.memory_space<vmem>>, vector<256x128xbf16>
    tpu.vector_store %arg12[%c0_28, %c896], %24 {strides = array<i32>} : memref<256x1152xbf16, #tpu.memory_space<vmem>>, vector<256x128xbf16>,
    %c8 = arith.constant 8 : index
    %c0_29 = arith.constant 0 : index
    %26 = vector.load %arg11[%c8, %c0_29] : memref<264x128xbf16, #tpu.memory_space<vmem>>, vector<256x128xbf16>
    %c0_30 = arith.constant 0 : index
    %c1024 = arith.constant 1024 : index
    %27 = vector.load %arg12[%c0_30, %c1024] : memref<256x1152xbf16, #tpu.memory_space<vmem>>, vector<256x128xbf16>
    tpu.vector_store %arg12[%c0_30, %c1024], %26 {strides = array<i32>} : memref<256x1152xbf16, #tpu.memory_space<vmem>>, vector<256x128xbf16>,
    %c0_31 = arith.constant 0 : index
    %c0_32 = arith.constant 0 : index
    %28 = vector.load %arg12[%c0_31, %c0_32] : memref<256x1152xbf16, #tpu.memory_space<vmem>>, vector<256x1152xbf16>
    %c0_33 = arith.constant 0 : index
    %c0_34 = arith.constant 0 : index
    %29 = vector.load %arg4[%c0_33, %c0_34] : memref<1152x256xbf16, #tpu.memory_space<vmem>>, vector<1152x256xbf16>
    %cst = arith.constant dense<0.000000e+00> : vector<256x256xf32>
    %30 = tpu.matmul %28, %29, %cst {dimension_numbers = #tpu.dot_dimension_numbers<[1], [0], [0], [1], [0, 0, 1, 1], [], []>} : vector<256x1152xbf16>, vector<1152x256xbf16>, vector<256x256xf32> -> vector<256x256xf32>
    %c0_35 = arith.constant 0 : index
    %c0_36 = arith.constant 0 : index
    %31 = vector.load %arg5[%c0_35, %c0_36] : memref<1x256xf32, #tpu.memory_space<vmem>>, vector<1x256xf32>
    %32 = vector.broadcast %31 : vector<1x256xf32> to vector<256x256xf32>
    %33 = arith.addf %30, %32 : vector<256x256xf32>
    %cst_37 = arith.constant 0.000000e+00 : f32
    %34 = vector.broadcast %cst_37 : f32 to vector<256x256xf32>
    %35 = arith.maximumf %33, %34 : vector<256x256xf32>
    %36 = arith.truncf %35 : vector<256x256xf32> to vector<256x256xbf16>
    %c0_38 = arith.constant 0 : index
    %c0_39 = arith.constant 0 : index
    %37 = vector.load %arg6[%c0_38, %c0_39] : memref<256x128xbf16, #tpu.memory_space<vmem>>, vector<256x128xbf16>
    %cst_40 = arith.constant dense<0.000000e+00> : vector<256x128xf32>
    %38 = tpu.matmul %36, %37, %cst_40 {dimension_numbers = #tpu.dot_dimension_numbers<[1], [0], [0], [1], [0, 0, 1, 1], [], []>} : vector<256x256xbf16>, vector<256x128xbf16>, vector<256x128xf32> -> vector<256x128xf32>
    %c0_41 = arith.constant 0 : index
    %c0_42 = arith.constant 0 : index
    %39 = vector.load %arg7[%c0_41, %c0_42] : memref<1x128xf32, #tpu.memory_space<vmem>>, vector<1x128xf32>
    %40 = vector.broadcast %39 : vector<1x128xf32> to vector<256x128xf32>
    %41 = arith.addf %38, %40 : vector<256x128xf32>
    %42 = arith.addf %41, %1 : vector<256x128xf32>
    %cst_43 = arith.constant dense<0.000000e+00> : vector<256xf32>
    %43 = vector.multi_reduction <add>, %42, %cst_43 [1] : vector<256x128xf32> to vector<256xf32>
    %44 = vector.shape_cast %43 : vector<256xf32> to vector<256x1xf32>
    %cst_44 = arith.constant 1.280000e+02 : f32
    %45 = vector.broadcast %cst_44 : f32 to vector<256x1xf32>
    %46 = arith.divf %44, %45 : vector<256x1xf32>
    %47 = vector.broadcast %46 : vector<256x1xf32> to vector<256x128xf32>
    %48 = arith.subf %42, %47 : vector<256x128xf32>
    %49 = arith.mulf %48, %48 : vector<256x128xf32>
    %cst_45 = arith.constant dense<0.000000e+00> : vector<256xf32>
    %50 = vector.multi_reduction <add>, %49, %cst_45 [1] : vector<256x128xf32> to vector<256xf32>
    %51 = vector.shape_cast %50 : vector<256xf32> to vector<256x1xf32>
    %cst_46 = arith.constant 1.280000e+02 : f32
    %52 = vector.broadcast %cst_46 : f32 to vector<256x1xf32>
    %53 = arith.divf %51, %52 : vector<256x1xf32>
    %54 = vector.broadcast %46 : vector<256x1xf32> to vector<256x128xf32>
    %55 = arith.subf %42, %54 : vector<256x128xf32>
    %cst_47 = arith.constant 9.99999974E-6 : f32
    %56 = vector.broadcast %cst_47 : f32 to vector<256x1xf32>
    %57 = arith.addf %53, %56 : vector<256x1xf32>
    %58 = math.rsqrt %57 : vector<256x1xf32>
    %59 = vector.broadcast %58 : vector<256x1xf32> to vector<256x128xf32>
    %60 = arith.mulf %55, %59 : vector<256x128xf32>
    %c0_48 = arith.constant 0 : index
    %c0_49 = arith.constant 0 : index
    %61 = vector.load %arg8[%c0_48, %c0_49] : memref<1x128xf32, #tpu.memory_space<vmem>>, vector<1x128xf32>
    %62 = vector.broadcast %61 : vector<1x128xf32> to vector<256x128xf32>
    %63 = arith.mulf %60, %62 : vector<256x128xf32>
    %c0_50 = arith.constant 0 : index
    %c0_51 = arith.constant 0 : index
    %64 = vector.load %arg9[%c0_50, %c0_51] : memref<1x128xf32, #tpu.memory_space<vmem>>, vector<1x128xf32>
    %65 = vector.broadcast %64 : vector<1x128xf32> to vector<256x128xf32>
    %66 = arith.addf %63, %65 : vector<256x128xf32>
    %c0_52 = arith.constant 0 : index
    %c0_53 = arith.constant 0 : index
    %c0_54 = arith.constant 0 : index
    %67 = vector.load %arg10[%c0_52, %c0_53, %c0_54] : memref<1x256x128xf32, #tpu.memory_space<vmem>>, vector<1x256x128xf32>
    %68 = vector.shape_cast %67 : vector<1x256x128xf32> to vector<256x128xf32>
    %69 = vector.shape_cast %66 : vector<256x128xf32> to vector<1x256x128xf32>
    tpu.vector_store %arg10[%c0_52, %c0_53, %c0_54], %69 {strides = array<i32>} : memref<1x256x128xf32, #tpu.memory_space<vmem>>, vector<1x256x128xf32>,
    return
  }
  func.func @transform_0(%arg0: i32, %arg1: i32) -> (i32, i32, i32) {
    %c0_i32 = arith.constant 0 : i32
    %c0_i32_0 = arith.constant 0 : i32
    return %arg0, %arg1, %c0_i32 : i32, i32, i32
  }
  func.func @transform_1(%arg0: i32, %arg1: i32) -> (i32, i32, i32, i32) {
    %c0_i32 = arith.constant 0 : i32
    %c0_i32_0 = arith.constant 0 : i32
    %c0_i32_1 = arith.constant 0 : i32
    return %arg0, %arg1, %c0_i32, %c0_i32_0 : i32, i32, i32, i32
  }
  func.func @transform_2(%arg0: i32, %arg1: i32) -> (i32, i32) {
    %c0_i32 = arith.constant 0 : i32
    %c0_i32_0 = arith.constant 0 : i32
    %c0_i32_1 = arith.constant 0 : i32
    return %c0_i32, %c0_i32_0 : i32, i32
  }
  func.func @transform_3(%arg0: i32, %arg1: i32) -> (i32, i32) {
    %c0_i32 = arith.constant 0 : i32
    %c0_i32_0 = arith.constant 0 : i32
    %c0_i32_1 = arith.constant 0 : i32
    return %c0_i32, %c0_i32_0 : i32, i32
  }
  func.func @transform_4(%arg0: i32, %arg1: i32) -> (i32, i32) {
    %c0_i32 = arith.constant 0 : i32
    %c0_i32_0 = arith.constant 0 : i32
    %c0_i32_1 = arith.constant 0 : i32
    return %c0_i32, %c0_i32_0 : i32, i32
  }
  func.func @transform_5(%arg0: i32, %arg1: i32) -> (i32, i32) {
    %c0_i32 = arith.constant 0 : i32
    %c0_i32_0 = arith.constant 0 : i32
    %c0_i32_1 = arith.constant 0 : i32
    return %c0_i32, %c0_i32_0 : i32, i32
  }
  func.func @transform_6(%arg0: i32, %arg1: i32) -> (i32, i32) {
    %c0_i32 = arith.constant 0 : i32
    %c0_i32_0 = arith.constant 0 : i32
    %c0_i32_1 = arith.constant 0 : i32
    return %c0_i32, %c0_i32_0 : i32, i32
  }
  func.func @transform_7(%arg0: i32, %arg1: i32) -> (i32, i32) {
    %c0_i32 = arith.constant 0 : i32
    %c0_i32_0 = arith.constant 0 : i32
    %c0_i32_1 = arith.constant 0 : i32
    return %c0_i32, %c0_i32_0 : i32, i32
  }
  func.func @transform_8(%arg0: i32, %arg1: i32) -> (i32, i32, i32) {
    %c0_i32 = arith.constant 0 : i32
    %c0_i32_0 = arith.constant 0 : i32
    return %arg0, %arg1, %c0_i32 : i32, i32, i32
  }
}

</mosaic_0001>

<bundles_post_ra>
// kernel: tpu_custom_call.1
= control target key start
LH: loop header
LB: loop body
LE: loop exit
PB: predicated region body
PF: predicated region fallthrough
CT: control target
= control target key end

     0   :  { %s8870_s0 = inlined_call_operand.hbm [shape: f32[2,256,128], index: 0, kind: input, shape index: {}]   ;;  %s8871_s1 = inlined_call_operand.hbm [shape: bf16[2,1,8,128], index: 1, kind: input, shape index: {}]   ;;  %s8872_s2 = inlined_call_operand.hbm [shape: bf16[1152,256], index: 2, kind: input, shape index: {}]   ;;  %s8873_s3 = inlined_call_operand.vmem [shape: f32[1,256], index: 3, kind: input, shape index: {}]   ;;  %s8874_s4 = inlined_call_operand.hbm [shape: bf16[256,128], index: 4, kind: input, shape index: {}]   ;;  %s8875_s5 = inlined_call_operand.vmem [shape: f32[1,128], index: 5, kind: input, shape index: {}]   ;;  %s8876_s6 = inlined_call_operand.vmem [shape: f32[1,128], index: 6, kind: input, shape index: {}]   ;;  %s8877_s7 = inlined_call_operand.vmem [shape: f32[1,128], index: 7, kind: input, shape index: {}]   ;;  %s8878_s8 = inlined_call_operand.hbm [shape: f32[2,256,128], index: 8, kind: output, shape index: {}]  }
   0x1   :  { %8889 = sst [smem:[#allocation41_spill]] %s8870_s0 }
   0x2   :  { %8890 = sst [smem:[#allocation42_spill]] %s8872_s2 }
   0x3   :  { %8891 = sst [smem:[#allocation43_spill]] %s8874_s4 }
   0x4   :  { %13 = vsyncpa [#allocation5], 0 }
   0x5   :  { %15 = vsyncpa [#allocation5 + $0x1], 0 }
   0x6   :  { %16 = vsyncpa [#allocation8], 0 }
   0x7   :  { %18 = vsyncpa [#allocation8 + $0x1], 0 }
   0x8   :  { %19 = vsyncpa [#allocation11], 0 }
   0x9   :  { %20 = vsyncpa [#allocation6], 0 }
   0xa   :  { %22 = vsyncpa [#allocation6 + $0x1], 0  ;;  %s7422_s27 = smov 0   ;;  %s7424_s28 = smov 0  }
   0xb   :  { %s7426_s29 = smov 0   ;;  %s7428_s30 = smov 0  }
   0xc   :  { %s7430_s9 = smov 0   ;;  %s7432_s10 = smov 0  }
   0xd LB: > { %8892 = sst [smem:[#allocation18_spill]] %s7343_s27  ;;  %s7453_s11 = sadd.s32 4294967295, %s7363_s10   ;;  %s7363_s10 = sphi %s7432_s10, %s28_s10   ;;  %s7359_s9 = sphi %s7430_s9, %s8965_s9   ;;  %s7355_s30 = sphi %s7428_s30, %s8964_s30   ;;  %s7351_s29 = sphi %s7426_s29, %s8960_s29   ;;  %s7347_s28 = sphi %s7424_s28, %s8963_s28   ;;  %s7343_s27 = sphi %s7422_s27, %s8962_s27  }
   0xe   : > { %8893 = sst [smem:[#allocation19_spill]] %s7351_s29  ;;  %s5746_s12 = sadd.s32 4294967294, %s7363_s10  }
   0xf   : > { %p62_p0 = scmp.ne.s32.totalorder %s7347_s28, %s7343_s27  ;;  %p8879_p1 = scmp.eq.s32.totalorder %s7453_s11, 0 }
  0x10   : > { %p248_p3 = scmp.eq.s32.totalorder %s5746_s12, 1  ;;  %p5747_p5 = scmp.ge.s32.totalorder %s7363_s10, 1 }
  0x11   : > { %p7462_p4 = por %p8879_p1, %p62_p0  ;;  %p255_p7 = scmp.lt.s32.totalorder %s7363_s10, 3 }
  0x12   : > { %p7467_p6 = por %p248_p3, %p62_p0  ;;  %s7365_s16 = smov [#allocation9]  }
  0x13   : > { %s8894_s13 = scalar_select %p7462_p4, 1, 0 }
  0x14   : > { %s8895_s14 = scalar_select %p7467_p6, 1, 0 }
  0x15   : > { %p7472_p8 = pnand %p5747_p5, %p255_p7  ;;  %s267_s17 = sshll.u32 %s7365_s16, 4  ;;  %s7476_s17 = int_to_ptr.vmem [resolvable:$true] %s267_s17 }
  0x16   : > { %8896 = sst [smem:[#allocation20_spill]] %s8895_s14  ;;  %s7366_s19 = smov [#allocation10]  }
  0x17   : > { %s8897_s15 = scalar_select %p7472_p8, 1, 0 }
  0x18   : > { %p6593_p9 = pneg %p7472_p8  ;;  %s283_s20 = sshll.u32 %s7366_s19, 4  ;;  %s7487_s20 = int_to_ptr.vmem [resolvable:$true] %s283_s20 }
  0x19   : > { %s8899_s2 = sld [smem:[#allocation42_spill]] }
  0x1a   : > { %p7483_p11 = pnand %p6593_p9, %p8879_p1 }
  0x1c   : > { %p7155_p13 = pneg %p7483_p11 }
  0x1f   : > { %s7153_s23 = scalar_lea.hbm %s8899_s2, 18432 }
  0x20   : > { %p7154_p12 = scmp.ne.s32.totalorder %s8899_s2, %s7153_s23  ;;  %p7160_p5 = scmp.lt.u32.totalorder %s7153_s23, %s8899_s2 }
  0x22   : > { %p7156_p0 = pnand %p7155_p13, %p7154_p12 }
  0x24   : > { %p7157_p3 = pneg %p7156_p0 }
  0x26   : > { %p7162_p7 = pnand %p7160_p5, %p7157_p3 }
  0x28   : > { %7165 = shalt.err (!%p7162_p7)
}
  0x29   : > { %s7166_s16 = scalar_lea.vmem %s7476_s17, 18432  ;;  %p7174_p2 = scmp.lt.s32.totalorder %s7476_s17, %s7476_s17 }
  0x2a   : > { %p7167_p9 = scmp.ne.s32.totalorder %s7476_s17, %s7166_s16  ;;  %p7175_p12 = scmp.lt.s32.totalorder %s7166_s16, %s7166_s16 }
  0x2c   : > { %p7169_p10 = pnand %p7167_p9, %p7155_p13  ;;  %p7176_p0 = por %p7175_p12, %p7174_p2 }
  0x2e   : > { %p7170_p1 = pneg %p7169_p10 }
  0x30   : > { %p7177_p6 = pnand %p7176_p0, %p7170_p1 }
  0x32   : > { %7180 = shalt.err (!%p7177_p6)
}
  0x33   : > { %s8882_s19 = smov 128   ;;  %s8883_s21 = smov 8  }
  0x34   : > { %6596 = dma.hbm_to_vmem [thread:$0]  (!%p7483_p11), %s8899_s2, 18432, %s7476_s17, [#allocation8], %s8882_s19, %s8882_s19, %s8883_s21  }
  0x35   : > { %s8900_s4 = sld [smem:[#allocation43_spill]] }
  0x3b   : > { %s7181_s26 = scalar_lea.hbm %s8900_s4, 2048 }
  0x3c   : > { %p7182_p1 = scmp.ne.s32.totalorder %s8900_s4, %s7181_s26  ;;  %p7188_p10 = scmp.lt.u32.totalorder %s7181_s26, %s8900_s4 }
  0x3e   : > { %p7184_p2 = pnand %p7182_p1, %p7155_p13 }
  0x40   : > { %p7185_p6 = pneg %p7184_p2 }
  0x42   : > { %p7190_p3 = pnand %p7188_p10, %p7185_p6 }
  0x44   : > { %7193 = shalt.err (!%p7190_p3)
}
  0x45   : > { %s7194_s17 = scalar_lea.vmem %s7487_s20, 2048  ;;  %p7202_p12 = scmp.lt.s32.totalorder %s7487_s20, %s7487_s20 }
  0x46   : > { %p7195_p5 = scmp.ne.s32.totalorder %s7487_s20, %s7194_s17  ;;  %p7203_p0 = scmp.lt.s32.totalorder %s7194_s17, %s7194_s17 }
  0x48   : > { %p7197_p7 = pnand %p7195_p5, %p7155_p13  ;;  %p7204_p1 = por %p7203_p0, %p7202_p12 }
  0x4a   : > { %p7198_p9 = pneg %p7197_p7 }
  0x4c   : > { %p7205_p2 = pnand %p7204_p1, %p7198_p9 }
  0x4e   : > { %7208 = shalt.err (!%p7205_p2)
}
  0x4f   : > { %s7369_s27 = smov 64   ;;  %s7370_s14 = smov 4  }
  0x50   : > { %6599 = dma.hbm_to_vmem [thread:$0]  (!%p7483_p11), %s8900_s4, 2048, %s7487_s20, [#allocation11], %s7369_s27, %s7369_s27, %s7370_s14  }
  0x51   : > { %s40_s24 = sadd.s32 1, %s7359_s9  ;;  %s49_s25 = sadd.s32 1, %s7351_s29 }
  0x52   : > { %p42_p13 = scmp.ge.s32.totalorder %s40_s24, 2  ;;  %p56_p6 = scmp.ne.s32.totalorder %s7351_s29, %s7347_s28 }
  0x53   : > { %p57_p10 = scmp.eq.s32.totalorder %s7363_s10, 0  ;;  %p6613_p3 = scmp.lt.s32.totalorder %s7363_s10, 2 }
  0x54   : > { %s8967_s24 = smov (%p42_p13, %s40_s24), 0  ;;  %p8902_p7 = scmp.eq.s32.totalorder %s7453_s11, 1 }
  0x55   : > { %8901 = sst [smem:[#allocation21_spill]] %s8967_s24  ;;  %p58_p5 = por %p57_p10, %p56_p6 }
  0x56   : > { %p7554_p9 = por %p8902_p7, %p56_p6  ;;  %s44_s26 = ssub.s32 %s7359_s9, %s8967_s24 }
  0x57   : > { %s7561_s12 = sand.u32 1, %s7351_s29   ;;  %p47_p11 = scmp.eq.s32.totalorder %s44_s26, 0 }
  0x58   : > { %s8903_s18 = scalar_select %p7554_p9, 1, 0 }
  0x59   : > { %s5751_s20 = sshll.u32 %s7561_s12, 8  ;;  %s6113_s16 = sshll.u32 %s7359_s9, 12 }
  0x5a   : > { %s7566_s17 = scalar_select %p47_p11, %s7351_s29, %s49_s25  }
  0x5b   : > { %s8905_s0 = sld [smem:[#allocation41_spill]]  ;;  %s310_s23 = scalar_lea.vmem [#allocation4], %s5751_s20 }
  0x5c   : > { %8904 = sst [smem:[#allocation22_spill]] %s7566_s17  ;;  %s319_s19 = sshll.u32 %s310_s23, 4  ;;  %s7579_s19 = int_to_ptr.vmem [resolvable:$true] %s319_s19 }
  0x5d   : > { %p7575_p12 = pnand %p6613_p3, %p58_p5  ;;  %s307_s26 = scalar_lea.sflag [#allocation5], %s7561_s12 }
  0x5f   : > { %p7211_p1 = pneg %p7575_p12 }
  0x61   : > { %s7571_s22 = scalar_lea.hbm %s8905_s0, %s6113_s16  ;;  %s7214_s14 = scalar_lea.hbm %s8905_s0, 8192 }
  0x62   : > { %s7209_s27 = scalar_lea.hbm %s7571_s22, 4096  ;;  %p7215_p6 = scmp.lt.u32.totalorder %s7571_s22, %s8905_s0 }
  0x63   : > { %p7210_p0 = scmp.ne.s32.totalorder %s7571_s22, %s7209_s27  ;;  %p7216_p10 = scmp.lt.u32.totalorder %s7214_s14, %s7209_s27 }
  0x64   : > { %p7218_p5 = scmp.lt.u32.totalorder %s7209_s27, %s7571_s22 }
  0x65   : > { %p7212_p2 = pnand %p7211_p1, %p7210_p0  ;;  %p7217_p3 = por %p7216_p10, %p7215_p6 }
  0x67   : > { %p7213_p13 = pneg %p7212_p2  ;;  %p7219_p7 = por %p7218_p5, %p7217_p3 }
  0x69   : > { %p7220_p11 = pnand %p7219_p7, %p7213_p13 }
  0x6b   : > { %7223 = shalt.err (!%p7220_p11)
}
  0x6c   : > { %s7224_s25 = scalar_lea.vmem %s7579_s19, 4096  ;;  %s7371_s20 = smov [#allocation4]  }
  0x6d   : > { %p7225_p0 = scmp.ne.s32.totalorder %s7579_s19, %s7224_s25  ;;  %s7229_s16 = sshll.u32 %s7371_s20, 4  ;;  %s7230_s16 = int_to_ptr.vmem [resolvable:$false] %s7229_s16 }
  0x6e   : > { %s7231_s2 = scalar_lea.vmem %s7230_s16, 8192  ;;  %p7232_p4 = scmp.lt.s32.totalorder %s7579_s19, %s7230_s16 }
  0x6f   : > { %p7227_p2 = pnand %p7225_p0, %p7211_p1  ;;  %p7233_p6 = scmp.lt.s32.totalorder %s7231_s2, %s7224_s25 }
  0x71   : > { %p7228_p9 = pneg %p7227_p2  ;;  %p7234_p10 = por %p7233_p6, %p7232_p4 }
  0x73   : > { %p7235_p3 = pnand %p7234_p10, %p7228_p9 }
  0x75   : > { %7238 = shalt.err (!%p7235_p3)
}
  0x76   : > { %s8907_s27 = smov 8   ;;  %s8908_s14 = smov 128  }
  0x77   : > { %6603 = dma.hbm_to_vmem [thread:$0]  (!%p7575_p12), %s7571_s22, 4096, %s7579_s19, %s307_s26, %s8908_s14, %s8908_s14, %s8907_s27  }
  0x78   : > { %s5754_s23 = sshll.u32 %s7561_s12, 2  ;;  %s5755_s20 = sshll.u32 %s7359_s9, 6 }
  0x79   : > { %s7618_s2 = scalar_lea.hbm %s8871_s1, %s5755_s20  ;;  %s333_s0 = scalar_lea.vmem [#allocation7], %s5754_s23 }
  0x7a   : > { %s341_s4 = sshll.u32 %s333_s0, 4  ;;  %s8909_s24 = sand.u32 1, %s7363_s10   ;;  %s342_s4 = int_to_ptr.vmem [resolvable:$true] %s341_s4 }
  0x7b   : > { %s330_s17 = scalar_lea.sflag [#allocation8], %s8909_s24  ;;  %s7239_s29 = scalar_lea.hbm %s7618_s2, 64 }
  0x7c   : > { %p7240_p4 = scmp.ne.s32.totalorder %s7618_s2, %s7239_s29  ;;  %s7244_s22 = scalar_lea.hbm %s8871_s1, 128 }
  0x7d   : > { %p7245_p5 = scmp.lt.u32.totalorder %s7618_s2, %s8871_s1  ;;  %p7246_p7 = scmp.lt.u32.totalorder %s7244_s22, %s7239_s29 }
  0x7e   : > { %p7242_p9 = pnand %p7240_p4, %p7211_p1  ;;  %p7248_p0 = scmp.lt.u32.totalorder %s7239_s29, %s7618_s2 }
  0x7f   : > { %p7247_p11 = por %p7246_p7, %p7245_p5 }
  0x80   : > { %p7243_p13 = pneg %p7242_p9 }
  0x81   : > { %p7249_p2 = por %p7248_p0, %p7247_p11 }
  0x83   : > { %p7250_p6 = pnand %p7249_p2, %p7243_p13 }
  0x85   : > { %7253 = shalt.err (!%p7250_p6)
}
  0x86   : > { %s7254_s0 = scalar_lea.vmem %s342_s4, 64  ;;  %s7372_s24 = smov [#allocation7]  }
  0x87   : > { %p7255_p10 = scmp.ne.s32.totalorder %s342_s4, %s7254_s0  ;;  %s7259_s14 = sshll.u32 %s7372_s24, 4  ;;  %s7260_s14 = int_to_ptr.vmem [resolvable:$false] %s7259_s14 }
  0x88   : > { %s7261_s23 = scalar_lea.vmem %s7260_s14, 128  ;;  %p7262_p9 = scmp.lt.s32.totalorder %s342_s4, %s7260_s14 }
  0x89   : > { %p7257_p3 = pnand %p7255_p10, %p7211_p1  ;;  %p7263_p8 = scmp.lt.s32.totalorder %s7261_s23, %s7254_s0 }
  0x8b   : > { %p7258_p4 = pneg %p7257_p3  ;;  %p7264_p5 = por %p7263_p8, %p7262_p9 }
  0x8d   : > { %p7265_p7 = pnand %p7264_p5, %p7258_p4 }
  0x8f   : > { %7268 = shalt.err (!%p7265_p7)
}
  0x90   : > { %6606 = dma.hbm_to_vmem [thread:$0]  (!%p7575_p12), %s7618_s2, 64, %s342_s4, %s330_s17  }
  0x91   : > { %p8910_p13 = scmp.ne.s32.totalorder %s8897_s15, 0 }
  0x93   : > { %350 = sbr.rel (%p8910_p13) target bundleno = 1379 (0x563), region = 52 }
  0x9a   : > { %s7644_s29 = sand.u32 1, %s7347_s28   ;;  %p8911_p8 = scmp.ne.s32.totalorder %s8894_s13, 0 }
  0x9b   : > { %s5757_s20 = sshll.u32 %s7644_s29, 8  ;;  %s353_s25 = scalar_lea.sflag [#allocation5], %s7644_s29 }
  0x9c   : > { %s7650_s16 = scalar_lea.vmem [#allocation4], %s5757_s20 }
  0x9d   : > { %7322 = dma.done.wait (%p8911_p8), %s353_s25, 4096  }
  0x9e   : > { %7324 = vsyncadd (%p8911_p8), %s353_s25, 4294963200  ;;  %s361_s4 = sand.u32 1, %s7453_s11   ;;  %s5758_s15 = sshll.u32 %s7644_s29, 2 }
  0x9f   : > { %s362_s21 = scalar_lea.sflag [#allocation8], %s361_s4  ;;  %s7658_s17 = scalar_lea.vmem [#allocation7], %s5758_s15 }
  0xa0   : > { %7326 = dma.done.wait (%p8911_p8), %s362_s21, 64  }
  0xa1   : > { %7328 = vsyncadd (%p8911_p8), %s362_s21, 4294967232  ;;  %p8912_p12 = scmp.eq.s32.totalorder %s7453_s11, 0 }
  0xa3   : > { %7330 = dma.done.wait (%p8912_p12), [#allocation8], 18432   ;;  %p8913_p1 = pmov %p8912_p12 }
  0xa5   : > { %7332 = vsyncadd (%p8913_p1), [#allocation8], 4294948864  ;;  %p8914_p11 = pmov %p8913_p1 }
  0xa6   : > { %p8915_p0 = pmov %p8913_p1 }
  0xa7   : > { %7334 = dma.done.wait (%p8914_p11), [#allocation11], 2048  }
  0xa8   : > { %7336 = vsyncadd (%p8915_p0), [#allocation11], 4294965248  ;;  %v6674_v0 = vld [vmem:[#allocation9 + $0x4] ss:$8 sps:$4 sm:$0xff]   ;;  %v6678_v2 = vld [vmem:[#allocation9] ss:$8 sps:$4 sm:$0xff]  }
  0xa9   : > { %v6676_v1 = vld [vmem:[#allocation9 + $0x204] ss:$8 sps:$4 sm:$0xff]   ;;  %3747 = vmatprep.subr.bf16.mxu1 %v6674_v0  ;;  %v6679_v3 = vld [vmem:[#allocation9 + $0x200] ss:$8 sps:$4 sm:$0xff]   ;;  %v6680_v4 = vld [vmem:[#allocation9 + $0x14] ss:$8 sps:$4 sm:$0xff]  }
  0xaa   : > { %4133 = vmatprep.subr.bf16.mxu0 %v6676_v1  ;;  %3748 = vmatpush1.bf16.msra.mxu1 %v6678_v2  ;;  %v6682_v5 = vld [vmem:[#allocation9 + $0x214] ss:$8 sps:$4 sm:$0xff]   ;;  %v6684_v6 = vld [vmem:[#allocation9 + $0x10] ss:$8 sps:$4 sm:$0xff]   ;;  %v6686_v8 = vld [vmem:[#allocation9 + $0x24] ss:$8 sps:$4 sm:$0xff]  }
  0xab   : > { %4134 = vmatpush1.bf16.msra.mxu0 %v6679_v3  ;;  %3749 = vmatprep.subr.bf16.mxu1 %v6680_v4  ;;  %v6685_v7 = vld [vmem:[#allocation9 + $0x210] ss:$8 sps:$4 sm:$0xff]   ;;  %v6688_v9 = vld [vmem:[#allocation9 + $0x224] ss:$8 sps:$4 sm:$0xff]   ;;  %v6690_v10 = vld [vmem:[#allocation9 + $0x20] ss:$8 sps:$4 sm:$0xff]  }
  0xac   : > { %4135 = vmatprep.subr.bf16.mxu0 %v6682_v5  ;;  %v6691_v11 = vld [vmem:[#allocation9 + $0x220] ss:$8 sps:$4 sm:$0xff]   ;;  %v6692_v12 = vld [vmem:[#allocation9 + $0x34] ss:$8 sps:$4 sm:$0xff]   ;;  %v6696_v14 = vld [vmem:[#allocation9 + $0x30] ss:$8 sps:$4 sm:$0xff]  }
  0xad   : > { %v6694_v13 = vld [vmem:[#allocation9 + $0x234] ss:$8 sps:$4 sm:$0xff]   ;;  %v6697_v15 = vld [vmem:[#allocation9 + $0x230] ss:$8 sps:$4 sm:$0xff]   ;;  %v6698_v16 = vld [vmem:[#allocation9 + $0x44] ss:$8 sps:$4 sm:$0xff]  }
  0xae   : > { %3750 = vmatpush1.bf16.msra.mxu1 %v6684_v6  ;;  %v6700_v17 = vld [vmem:[#allocation9 + $0x244] ss:$8 sps:$4 sm:$0xff]   ;;  %v6702_v18 = vld [vmem:[#allocation9 + $0x40] ss:$8 sps:$4 sm:$0xff]   ;;  %v6704_v20 = vld [vmem:[#allocation9 + $0x54] ss:$8 sps:$4 sm:$0xff]  }
  0xaf   : > { %4136 = vmatpush1.bf16.msra.mxu0 %v6685_v7  ;;  %3751 = vmatprep.subr.bf16.mxu1 %v6686_v8  ;;  %v6703_v19 = vld [vmem:[#allocation9 + $0x240] ss:$8 sps:$4 sm:$0xff]   ;;  %v6706_v21 = vld [vmem:[#allocation9 + $0x254] ss:$8 sps:$4 sm:$0xff]   ;;  %v6708_v22 = vld [vmem:[#allocation9 + $0x50] ss:$8 sps:$4 sm:$0xff]  }
  0xb0   : > { %4137 = vmatprep.subr.bf16.mxu0 %v6688_v9  ;;  %v6709_v23 = vld [vmem:[#allocation9 + $0x250] ss:$8 sps:$4 sm:$0xff]   ;;  %v6710_v24 = vld [vmem:[#allocation9 + $0x64] ss:$8 sps:$4 sm:$0xff]   ;;  %v6714_v26 = vld [vmem:[#allocation9 + $0x60] ss:$8 sps:$4 sm:$0xff]  }
  0xb1   : > { %v6712_v25 = vld [vmem:[#allocation9 + $0x264] ss:$8 sps:$4 sm:$0xff]   ;;  %v6715_v27 = vld [vmem:[#allocation9 + $0x260] ss:$8 sps:$4 sm:$0xff]   ;;  %v6716_v28 = vld [vmem:[#allocation9 + $0x74] ss:$8 sps:$4 sm:$0xff]  }
  0xb2   : > { %3752 = vmatpush1.bf16.msra.mxu1 %v6690_v10  ;;  %v6718_v29 = vld [vmem:[#allocation9 + $0x274] ss:$8 sps:$4 sm:$0xff]   ;;  %v6720_v30 = vld [vmem:[#allocation9 + $0x70] ss:$8 sps:$4 sm:$0xff]   ;;  %v6722_v32 = vld [vmem:[#allocation9 + $0x84] ss:$8 sps:$4 sm:$0xff]  }
  0xb3   : > { %4138 = vmatpush1.bf16.msra.mxu0 %v6691_v11  ;;  %3753 = vmatprep.subr.bf16.mxu1 %v6692_v12  ;;  %v6721_v31 = vld [vmem:[#allocation9 + $0x270] ss:$8 sps:$4 sm:$0xff]   ;;  %v6724_v33 = vld [vmem:[#allocation9 + $0x284] ss:$8 sps:$4 sm:$0xff]   ;;  %v6726_v34 = vld [vmem:[#allocation9 + $0x80] ss:$8 sps:$4 sm:$0xff]  }
  0xb4   : > { %4139 = vmatprep.subr.bf16.mxu0 %v6694_v13  ;;  %v6727_v35 = vld [vmem:[#allocation9 + $0x280] ss:$8 sps:$4 sm:$0xff]   ;;  %v6728_v36 = vld [vmem:[#allocation9 + $0x94] ss:$8 sps:$4 sm:$0xff]   ;;  %v6732_v38 = vld [vmem:[#allocation9 + $0x90] ss:$8 sps:$4 sm:$0xff]  }
  0xb5   : > { %v6730_v37 = vld [vmem:[#allocation9 + $0x294] ss:$8 sps:$4 sm:$0xff]   ;;  %vm544_vm0 = vcmask 1041408   ;;  %v6733_v39 = vld [vmem:[#allocation9 + $0x290] ss:$8 sps:$4 sm:$0xff]   ;;  %vm545_vm1 = vcmask 1045508  }
  0xb6   : > { %3754 = vmatpush1.bf16.msra.mxu1 %v6696_v14  ;;  %v6734_v40 = vld [vmem:[#allocation9 + $0xa4] ss:$8 sps:$4 sm:$0xff]   ;;  %v6738_v42 = vld [vmem:[#allocation9 + $0xa0] ss:$8 sps:$4 sm:$0xff]   ;;  %vm7672_vm2 = vmor %vm544_vm0, %vm545_vm1  ;;  %vm969_vm3 = vsmask.f32 7424 }
  0xb7   : > { %4140 = vmatpush1.bf16.msra.mxu0 %v6697_v15  ;;  %3755 = vmatprep.subr.bf16.mxu1 %v6698_v16  ;;  %v6736_v41 = vld [vmem:[#allocation9 + $0x2a4] ss:$8 sps:$4 sm:$0xff]   ;;  %v6739_v43 = vld [vmem:[#allocation9 + $0x2a0] ss:$8 sps:$4 sm:$0xff]   ;;  %v6740_v45 = vld [vmem:[#allocation9 + $0xb4] ss:$8 sps:$4 sm:$0xff]  }
  0xb8   : > { %4141 = vmatprep.subr.bf16.mxu0 %v6700_v17  ;;  %v6742_v46 = vld [vmem:[#allocation9 + $0x2b4] ss:$8 sps:$4 sm:$0xff]   ;;  %v6744_v47 = vld [vmem:[#allocation9 + $0xb0] ss:$8 sps:$4 sm:$0xff]   ;;  %v415_v50 = vld [vmem:[%s7650_s16 + $0x8] sm:$0xff]  ;;  %vm1733_vm4 = vcmask 1045504  }
  0xb9   : > { %v6745_v48 = vld [vmem:[#allocation9 + $0x2b0] ss:$8 sps:$4 sm:$0xff]   ;;  %v416_v51 = vld [vmem:[%s7650_s16 + $0x10] sm:$0xff]  ;;  %v6115_v55 = vpack.c.bf16 %v415_v50, %v415_v50  ;;  %v419_v1 = vld [vmem:[%s7650_s16 + $0x28] sm:$0xff]  ;;  %vm1915_vm5 = vsmask.f32 5376 }
  0xba   : > { %3756 = vmatpush1.bf16.msra.mxu1 %v6702_v18  ;;  %v414_v49 = vld [vmem:[%s7650_s16] sm:$0xff]  ;;  %v417_v52 = vld [vmem:[%s7650_s16 + $0x18] sm:$0xff]  ;;  %v6116_v56 = vpack.c.bf16 %v416_v51, %v416_v51  ;;  %v6746_v58 = vld [vmem:[#allocation9 + $0xc4] ss:$8 sps:$4 sm:$0xff]   ;;  %v6119_v6 = vpack.c.bf16 %v419_v1, %v419_v1  ;;  %vm1432_vm6 = vsmask.f32 6400 }
  0xbb   : > { %4142 = vmatpush1.bf16.msra.mxu0 %v6703_v19  ;;  %3757 = vmatprep.subr.bf16.mxu1 %v6704_v20  ;;  %v6114_v53 = vpack.c.bf16 %v414_v49, %v414_v49  ;;  %v446_v54 = vld [vmem:[%s7658_s17] sm:$0xf]  ;;  %v6117_v57 = vpack.c.bf16 %v417_v52, %v417_v52  ;;  %v6748_v59 = vld [vmem:[#allocation9 + $0x2c4] ss:$8 sps:$4 sm:$0xff]   ;;  %v549_v62 = vrot.slane %v6115_v55, 6  ;;  %v421_v12 = vld [vmem:[%s7650_s16 + $0x38] sm:$0xff] }
  0xbc   : > { %4143 = vmatprep.subr.bf16.mxu0 %v6706_v21  ;;  %447 = vst [vmem:[#allocation2] sm:$0x3] %v446_v54  ;;  %708 = vst [vmem:[#allocation2 + $0x80] sm:$0xc] %v446_v54  ;;  %v418_v61 = vld [vmem:[%s7650_s16 + $0x20] sm:$0xff]  ;;  %v552_v63 = vrot.slane %v6116_v56, 6  ;;  %v6121_v18 = vpack.c.bf16 %v421_v12, %v421_v12 }
  0xbd   : > { %v547_v60 = vrot.slane %v6114_v53, 6  ;;  %v555_v0 = vrot.slane %v6117_v57, 6  ;;  %v6118_v2 = vpack.c.bf16 %v418_v61, %v418_v61  ;;  %v6750_v3 = vld [vmem:[#allocation9 + $0xc0] ss:$8 sps:$4 sm:$0xff]   ;;  %v551_v8 = vrot.slane %v549_v62, 4  ;;  %s8688_s0 = scalar_lea.vmem [#allocation12], %s5757_s20 }
  0xbe   : > { %3758 = vmatpush1.bf16.msra.mxu1 %v6708_v22  ;;  %v6751_v4 = vld [vmem:[#allocation9 + $0x2c0] ss:$8 sps:$4 sm:$0xff]   ;;  %v554_v9 = vrot.slane %v552_v63, 4  ;;  %v6752_v13 = vld [vmem:[#allocation9 + $0xd4] ss:$8 sps:$4 sm:$0xff]   ;;  %v561_v16 = vrot.slane %v6119_v6, 6 }
  0xbf   : > { %4144 = vmatpush1.bf16.msra.mxu0 %v6709_v23  ;;  %3759 = vmatprep.subr.bf16.mxu1 %v6710_v24  ;;  %v548_v5 = vrot.slane %v547_v60, 4  ;;  %675 = vst [vmem:[#allocation2] sm:$0xc] %v547_v60  ;;  %v420_v7 = vld [vmem:[%s7650_s16 + $0x30] sm:$0xff]  ;;  %v557_v10 = vrot.slane %v555_v0, 4  ;;  %v558_v11 = vrot.slane %v6118_v2, 6  ;;  %v553_v21 = vsel %vm7672_vm2, %v551_v8, %v552_v63 }
  0xc0   : > { %4145 = vmatprep.subr.bf16.mxu0 %v6712_v25  ;;  %v6754_v14 = vld [vmem:[#allocation9 + $0x2d4] ss:$8 sps:$4 sm:$0xff]   ;;  %v6120_v17 = vpack.c.bf16 %v420_v7, %v420_v7  ;;  %v6756_v19 = vld [vmem:[#allocation9 + $0xd0] ss:$8 sps:$4 sm:$0xff]   ;;  %v556_v22 = vsel %vm7672_vm2, %v554_v9, %v555_v0  ;;  %677 = vst [vmem:[#allocation2 + $0x8] sm:$0xf] %v553_v21 }
  0xc1   : > { %v550_v15 = vsel %vm7672_vm2, %v548_v5, %v549_v62  ;;  %v6757_v20 = vld [vmem:[#allocation9 + $0x2d0] ss:$8 sps:$4 sm:$0xff]   ;;  %v559_v23 = vsel %vm7672_vm2, %v557_v10, %v558_v11  ;;  %v560_v24 = vrot.slane %v558_v11, 4  ;;  %678 = vst [vmem:[#allocation2 + $0xc] sm:$0xf] %v556_v22  ;;  %vm1250_vm8 = vcmask 1046528  }
  0xc2   : > { %3760 = vmatpush1.bf16.msra.mxu1 %v6714_v26  ;;  %676 = vst [vmem:[#allocation2 + $0x4] sm:$0xf] %v550_v15  ;;  %v422_v25 = vld [vmem:[%s7650_s16 + $0x40] sm:$0xff]  ;;  %v423_v26 = vld [vmem:[%s7650_s16 + $0x48] sm:$0xff]  ;;  %679 = vst [vmem:[#allocation2 + $0x10] sm:$0xf] %v559_v23 }
  0xc3   : > { %4146 = vmatpush1.bf16.msra.mxu0 %v6715_v27  ;;  %3761 = vmatprep.subr.bf16.mxu1 %v6716_v28  ;;  %v6758_v27 = vld [vmem:[#allocation9 + $0xe4] ss:$8 sps:$4 sm:$0xff]   ;;  %v563_v28 = vrot.slane %v561_v16, 4  ;;  %v6764_v50 = vld [vmem:[#allocation9 + $0xf4] ss:$8 sps:$4 sm:$0xff]   ;;  %vm2216_vm9 = vcmask 1044480  }
  0xc4   : > { %4147 = vmatprep.subr.bf16.mxu0 %v6718_v29  ;;  %v564_v29 = vrot.slane %v6120_v17, 6  ;;  %v6766_v51 = vld [vmem:[#allocation9 + $0x2f4] ss:$8 sps:$4 sm:$0xff]   ;;  %v6768_v57 = vld [vmem:[#allocation9 + $0xf0] ss:$8 sps:$4 sm:$0xff]   ;;  %s6146_s24 = sshll.u32 %s7355_s30, 12 }
  0xc5   : > { %v6779_v63 = vld [vmem:[#allocation9 + $0x304] ss:$8 sps:$4 sm:$0xff]   ;;  %vm2398_vm7 = vsmask.f32 4352  ;;  %s5615_s14 = sshll.u32 %s8688_s0, 4  ;;  %s8816_s25 = scalar_lea.hbm %s8878_s8, %s6146_s24  ;;  %s8818_s14 = int_to_ptr.vmem [resolvable:$true] %s5615_s14 }
  0xc6   : > { %3762 = vmatpush1.bf16.msra.mxu1 %v6720_v30  ;;  %v567_v30 = vrot.slane %v6121_v18, 6  ;;  %s5600_s30 = scalar_lea.sflag [#allocation6], %s7644_s29  ;;  %p8954_p6 = scmp.ne.s32.totalorder %s8903_s18, 0 }
  0xc7   : > { %4148 = vmatpush1.bf16.msra.mxu0 %v6721_v31  ;;  %3763 = vmatprep.subr.bf16.mxu1 %v6722_v32  ;;  %v6122_v31 = vpack.c.bf16 %v422_v25, %v422_v25  ;;  %v6760_v32 = vld [vmem:[#allocation9 + $0x2e4] ss:$8 sps:$4 sm:$0xff]   ;;  %v6777_v25 = vld [vmem:[#allocation9 + $0x300] ss:$8 sps:$4 sm:$0xff]   ;;  %s7374_s4 = smov [#allocation12]  }
  0xc8   : > { %4149 = vmatprep.subr.bf16.mxu0 %v6724_v33  ;;  %v562_v33 = vsel %vm7672_vm2, %v560_v24, %v561_v16  ;;  %s7273_s15 = sshll.u32 %s7374_s4, 4  ;;  %s7274_s15 = int_to_ptr.vmem [resolvable:$false] %s7273_s15 }
  0xc9   : > { %680 = vst [vmem:[#allocation2 + $0x14] sm:$0xf] %v562_v33  ;;  %v6770_v54 = vld [vmem:[#allocation2] sm:$0xff]   ;;  %s7275_s21 = scalar_lea.vmem %s7274_s15, 8192  ;;  %p7276_p4 = scmp.lt.s32.totalorder %s8818_s14, %s7274_s15 }
  0xca   : > { %3764 = vmatpush1.bf16.msra.mxu1 %v6726_v34  ;;  %v6123_v34 = vpack.c.bf16 %v423_v26, %v423_v26  ;;  %v971_v61 = vshrl.u32 %v6770_v54, 16  ;;  %v973_v62 = vshll.u32 %v6770_v54, 16  ;;  %v6772_v2 = vld [vmem:[#allocation2] sm:$0xfc]  }
  0xcb   : > { %4150 = vmatpush1.bf16.msra.mxu0 %v6727_v35  ;;  %3765 = vmatprep.subr.bf16.mxu1 %v6728_v36  ;;  %v424_v35 = vld [vmem:[%s7650_s16 + $0x50] sm:$0xff]  ;;  %v425_v36 = vld [vmem:[%s7650_s16 + $0x58] sm:$0xff]  ;;  %v1917_v8 = vshrl.u32 %v6772_v2, 16  ;;  %v1920_v9 = vshll.u32 %v6772_v2, 16  ;;  %v426_v33 = vld [vmem:[%s7650_s16 + $0x60] sm:$0xff] }
  0xcc   : > { %4151 = vmatprep.subr.bf16.mxu0 %v6730_v37  ;;  %v565_v37 = vsel %vm7672_vm2, %v563_v28, %v564_v29  ;;  %v573_v49 = vrot.slane %v6123_v34, 6  ;;  %v975_v5 = vrot.slane %v973_v62, 1  ;;  %v6774_v6 = vld [vmem:[#allocation2] sm:$0xff]  }
  0xcd   : > { %681 = vst [vmem:[#allocation2 + $0x18] sm:$0xf] %v565_v37  ;;  %v1919_v15 = vrot.slane %v1917_v8, 2  ;;  %v1922_v16 = vrot.slane %v1920_v9, 3 }
  0xce   : > { %3766 = vmatpush1.bf16.msra.mxu1 %v6732_v38  ;;  %v566_v38 = vrot.slane %v564_v29, 4  ;;  %v575_v56 = vrot.slane %v573_v49, 4  ;;  %v976_v11 = vor.u32 %v975_v5, %v971_v61  ;;  %v427_v5 = vld [vmem:[%s7650_s16 + $0x68] sm:$0xff] }
  0xcf   : > { %4152 = vmatpush1.bf16.msra.mxu0 %v6733_v39  ;;  %3767 = vmatprep.subr.bf16.mxu1 %v6734_v40  ;;  %v569_v39 = vrot.slane %v567_v30, 4  ;;  %v570_v40 = vrot.slane %v6122_v31, 6  ;;  %v1923_v24 = vor.u32 %v1922_v16, %v1919_v15 }
  0xd0   : > { %4153 = vmatprep.subr.bf16.mxu0 %v6736_v41  ;;  %v6762_v41 = vld [vmem:[#allocation9 + $0xe0] ss:$8 sps:$4 sm:$0xff]  }
  0xd1   : > { %v6780_v18 = vld [vmem:[#allocation2 + $0x10] sm:$0xff]  }
  0xd2   : > { %3768 = vmatpush1.bf16.msra.mxu1 %v6738_v42  ;;  %v6124_v42 = vpack.c.bf16 %v424_v35, %v424_v35  ;;  %v6781_v23 = vld [vmem:[#allocation2 + $0x10] sm:$0xff]  }
  0xd3   : > { %4154 = vmatpush1.bf16.msra.mxu0 %v6739_v43  ;;  %3769 = vmatprep.subr.bf16.mxu1 %v6740_v45  ;;  %v6125_v43 = vpack.c.bf16 %v425_v36, %v425_v36  ;;  %v6763_v45 = vld [vmem:[#allocation9 + $0x2e0] ss:$8 sps:$4 sm:$0xff]   ;;  %v1934_v29 = vshrl.u32 %v6781_v23, 16 }
  0xd4   : > { %4155 = vmatprep.subr.bf16.mxu0 %v6742_v46  ;;  %v568_v46 = vsel %vm7672_vm2, %v566_v38, %v567_v30  ;;  %v576_v52 = vrot.slane %v6124_v42, 6  ;;  %v1937_v30 = vshll.u32 %v6781_v23, 16  ;;  %v7718_v31 = vld [vmem:[#allocation2 + $0x10] sm:$0xff]  }
  0xd5   : > { %682 = vst [vmem:[#allocation2 + $0x1c] sm:$0xf] %v568_v46  ;;  %v7705_v53 = vrot.slane %v6125_v43, 6  ;;  %v990_v46 = vshrl.u32 %v6780_v18, 16  ;;  %v1737_v54 = vrot.slane %v7718_v31, 2 }
  0xd6   : > { %3770 = vmatpush1.bf16.msra.mxu1 %v6744_v47  ;;  %v571_v47 = vsel %vm7672_vm2, %v569_v39, %v570_v40  ;;  %v578_v60 = vrot.slane %v576_v52, 4  ;;  %v577_v0 = vsel %vm7672_vm2, %v575_v56, %v576_v52  ;;  %v1936_v39 = vrot.slane %v1934_v29, 2 }
  0xd7   : > { %4156 = vmatpush1.bf16.msra.mxu0 %v6745_v48  ;;  %3771 = vmatprep.subr.bf16.mxu1 %v6746_v58  ;;  %v572_v48 = vrot.slane %v570_v40, 4  ;;  %683 = vst [vmem:[#allocation2 + $0x20] sm:$0xf] %v571_v47  ;;  %v6769_v58 = vld [vmem:[#allocation9 + $0x2f0] ss:$8 sps:$4 sm:$0xff]   ;;  %v1939_v40 = vrot.slane %v1937_v30, 3  ;;  %v6126_v52 = vpack.c.bf16 %v426_v33, %v426_v33 }
  0xd8   : > { %4157 = vmatprep.subr.bf16.mxu0 %v6748_v59  ;;  %v6771_v59 = vld [vmem:[#allocation2 + $0x8] sm:$0xff]   ;;  %685 = vst [vmem:[#allocation2 + $0x28] sm:$0xf] %v577_v0  ;;  %v581_v29 = vrot.slane %v7705_v53, 4 }
  0xd9   : > { %v574_v55 = vsel %vm7672_vm2, %v572_v48, %v573_v49  ;;  %v978_v1 = vshll.u32 %v6771_v59, 16  ;;  %v982_v26 = vshrl.u32 %v6771_v59, 16  ;;  %v1940_v48 = vor.u32 %v1939_v40, %v1936_v39  ;;  %v6814_v39 = vld [vmem:[#allocation9 + $0x354] ss:$8 sps:$4 sm:$0xff]  }
  0xda   : > { %3772 = vmatpush1.bf16.msra.mxu1 %v6750_v3  ;;  %684 = vst [vmem:[#allocation2 + $0x24] sm:$0xf] %v574_v55  ;;  %v6773_v3 = vld [vmem:[#allocation2 + $0x8] sm:$0xff]  }
  0xdb   : > { %4158 = vmatpush1.bf16.msra.mxu0 %v6751_v4  ;;  %3773 = vmatprep.subr.bf16.mxu1 %v6752_v13  ;;  %v580_v4 = vsel %vm7672_vm2, %v578_v60, %v7705_v53  ;;  %v980_v7 = vrot.slane %v978_v1, 1  ;;  %v1925_v10 = vshrl.u32 %v6773_v3, 16  ;;  %v1928_v12 = vshll.u32 %v6773_v3, 16  ;;  %v6775_v13 = vld [vmem:[#allocation2] sm:$0xfc]  }
  0xdc   : > { %4159 = vmatprep.subr.bf16.mxu0 %v6754_v14  ;;  %686 = vst [vmem:[#allocation2 + $0x2c] sm:$0xf] %v580_v4  ;;  %v7714_v14 = vld [vmem:[#allocation2 + $0x8] sm:$0xff]   ;;  %v1734_v21 = vrot.slane %v6775_v13, 2  ;;  %v6787_v37 = vld [vmem:[#allocation2 + $0x18] sm:$0xff]  }
  0xdd   : > { %v1927_v17 = vrot.slane %v1925_v10, 2  ;;  %v1735_v22 = vrot.slane %v7714_v14, 2  ;;  %v984_v35 = vor.u32 %v982_v26, %v980_v7  ;;  %v6788_v42 = vld [vmem:[#allocation2 + $0x18] sm:$0xff]   ;;  %v994_v47 = vshll.u32 %v6787_v37, 16  ;;  %v6800_v4 = vld [vmem:[#allocation9 + $0x334] ss:$8 sps:$4 sm:$0xff]  }
  0xde   : > { %3774 = vmatpush1.bf16.msra.mxu1 %v6756_v19  ;;  %v981_v19 = vsel %vm969_vm3, %v976_v11, %v980_v7  ;;  %v1943_v49 = vshrl.u32 %v6788_v42, 16  ;;  %v7726_v60 = vld [vmem:[#allocation2 + $0x18] sm:$0xff]   ;;  %v998_v0 = vshrl.u32 %v6787_v37, 16  ;;  %v6789_v11 = vld [vmem:[#allocation2 + $0x10] sm:$0xff]  }
  0xdf   : > { %4160 = vmatpush1.bf16.msra.mxu0 %v6757_v20  ;;  %3775 = vmatprep.subr.bf16.mxu1 %v6758_v27  ;;  %v1930_v20 = vrot.slane %v1928_v12, 3  ;;  %v986_v27 = vshll.u32 %v6780_v18, 16  ;;  %v1736_v34 = vsel %vm1733_vm4, %v1734_v21, %v1735_v22  ;;  %v996_v56 = vrot.slane %v994_v47, 1 }
  0xe0   : > { %4161 = vmatprep.subr.bf16.mxu0 %v6760_v32  ;;  %3779 = vmatprep.mubr.bf16.mxu1 %v981_v19  ;;  %v6786_v32 = vld [vmem:[#allocation9 + $0x314] ss:$8 sps:$4 sm:$0xff]   ;;  %v1738_v7 = vsel %vm1733_vm4, %v1735_v22, %v1737_v54  ;;  %v1739_v14 = vrot.slane %v7726_v60, 2  ;;  %v6127_v22 = vpack.c.bf16 %v427_v5, %v427_v5  ;;  %v6834_v60 = vld [vmem:[#allocation9 + $0x104] ss:$8 sps:$4 sm:$0xff]  }
  0xe1   : > { %v1931_v28 = vor.u32 %v1930_v20, %v1927_v17  ;;  %v988_v36 = vrot.slane %v986_v27, 1  ;;  %v6794_v61 = vld [vmem:[#allocation2 + $0x20] sm:$0xff]   ;;  %v1000_v12 = vor.u32 %v998_v0, %v996_v56  ;;  %v6807_v27 = vld [vmem:[#allocation9 + $0x344] ss:$8 sps:$4 sm:$0xff]   ;;  %v6819_v0 = vld [vmem:[#allocation9 + $0x360] ss:$8 sps:$4 sm:$0xff]  }
  0xe2   : > { %3776 = vmatpush1.bf16.msra.mxu1 %v6762_v41  ;;  %v6782_v41 = vld [vmem:[#allocation2 + $0x8] sm:$0xff]   ;;  %v6795_v1 = vld [vmem:[#allocation2 + $0x20] sm:$0xff]   ;;  %v1002_v3 = vshll.u32 %v6794_v61, 16  ;;  %v1006_v19 = vshrl.u32 %v6794_v61, 16  ;;  %v1740_v30 = vsel %vm1733_vm4, %v1737_v54, %v1739_v14  ;;  %v585_v37 = vrot.slane %v6127_v22, 6 }
  0xe3   : > { %4162 = vmatpush1.bf16.msra.mxu0 %v6763_v45  ;;  %3777 = vmatprep.subr.bf16.mxu1 %v6764_v50  ;;  %v1932_v38 = vsel %vm1915_vm5, %v1923_v24, %v1931_v28  ;;  %v989_v43 = vsel %vm969_vm3, %v984_v35, %v988_v36  ;;  %v6784_v45 = vld [vmem:[#allocation9 + $0x310] ss:$8 sps:$4 sm:$0xff]   ;;  %v1946_v50 = vshll.u32 %v6788_v42, 16  ;;  %v992_v55 = vor.u32 %v990_v46, %v988_v36  ;;  %v7733_v18 = vld [vmem:[#allocation2 + $0x28] sm:$0xff]  }
  0xe4   : > { %4163 = vmatprep.subr.bf16.mxu0 %v6766_v51  ;;  %4165 = vmatprep.mubr.bf16.mxu0 %v1932_v38  ;;  %v6793_v51 = vld [vmem:[#allocation9 + $0x324] ss:$8 sps:$4 sm:$0xff]   ;;  %v1952_v8 = vshrl.u32 %v6795_v1, 16  ;;  %v1955_v9 = vshll.u32 %v6795_v1, 16  ;;  %v1004_v13 = vrot.slane %v1002_v3, 1  ;;  %v6802_v20 = vld [vmem:[#allocation2 + $0x28] sm:$0xff]  }
  0xe5   : > { %v1948_v59 = vrot.slane %v1946_v50, 3  ;;  %v997_v62 = vsel %vm969_vm3, %v992_v55, %v996_v56  ;;  %v6798_v17 = vld [vmem:[#allocation9 + $0x330] ss:$8 sps:$4 sm:$0xff]   ;;  %v1010_v21 = vshll.u32 %v7733_v18, 16  ;;  %v1964_v26 = vshll.u32 %v6802_v20, 16  ;;  %v431_v54 = vld [vmem:[%s7650_s16 + $0x88] sm:$0xff] }
  0xe6   : > { %3778 = vmatpush1.bf16.msra.mxu1 %v6768_v57  ;;  %v1941_v57 = vsel %vm1915_vm5, %v1931_v28, %v1940_v48  ;;  %v1954_v15 = vrot.slane %v1952_v8, 2  ;;  %v1957_v16 = vrot.slane %v1955_v9, 3  ;;  %v1005_v23 = vsel %vm969_vm3, %v1000_v12, %v1004_v13  ;;  %v6805_v28 = vld [vmem:[#allocation9 + $0x340] ss:$8 sps:$4 sm:$0xff]   ;;  %v7741_v31 = vld [vmem:[#allocation2 + $0x20] sm:$0xff]  }
  0xe7   : > { %4164 = vmatpush1.bf16.msra.mxu0 %v6769_v58  ;;  %v1945_v58 = vrot.slane %v1943_v49, 2  ;;  %v7743_v33 = vrot.slane %v1010_v21, 1  ;;  %v1966_v36 = vrot.slane %v1964_v26, 3  ;;  %v429_v42 = vld [vmem:[%s7650_s16 + $0x78] sm:$0xff]  ;;  %v1741_v49 = vrot.slane %v7741_v31, 2  ;;  %v7759_v55 = vld [vmem:[#allocation2 + $0x28] sm:$0xff]   ;;  %3940 = vmatprep.subr.bf16.mxu1 %v6834_v60 }
  0xe8   : > { %4326 = vmatprep.subr.bf16.mxu0 %v6779_v63  ;;  %v6791_v63 = vld [vmem:[#allocation9 + $0x320] ss:$8 sps:$4 sm:$0xff]   ;;  %v1958_v24 = vor.u32 %v1957_v16, %v1954_v15  ;;  %v6129_v47 = vpack.c.bf16 %v429_v42, %v429_v42  ;;  %v6131_v61 = vpack.c.bf16 %v431_v54, %v431_v54  ;;  %v433_v1 = vld [vmem:[%s7650_s16 + $0x98] sm:$0xff] }
  0xe9   : > { %3780 = vmatmul.mubr.bf16.vlgmr.msra.gmra.mrb[0].mxu1 %v6774_v6  ;;  %v1949_v2 = vor.u32 %v1948_v59, %v1945_v58  ;;  %v582_v6 = vrot.slane %v6126_v52, 6  ;;  %v430_v52 = vld [vmem:[%s7650_s16 + $0x80] sm:$0xff]  ;;  %v6821_v58 = vld [vmem:[#allocation9 + $0x364] ss:$8 sps:$4 sm:$0xff]   ;;  %v6832_v8 = vld [vmem:[#allocation9 + $0x100] ss:$8 sps:$4 sm:$0xff]   ;;  %v1742_v9 = vsel %vm1733_vm4, %v1739_v14, %v1741_v49 }
  0xea   : > { %4166 = vmatmul.mubr.bf16.vlgmr.msra.gmra.mrb[0].mxu0 %v1736_v34  ;;  %3789 = vmatprep.mubr.bf16.mxu1 %v989_v43  ;;  %v6796_v43 = vld [vmem:[#allocation2 + $0x18] sm:$0xff]   ;;  %v6130_v59 = vpack.c.bf16 %v430_v52, %v430_v52  ;;  %v6803_v12 = vld [vmem:[#allocation2 + $0x20] sm:$0xff]  }
  0xeb   : > { %4327 = vmatpush1.bf16.msra.mxu0 %v6777_v25  ;;  %4175 = vmatprep.mubr.bf16.mxu0 %v1941_v57  ;;  %v1950_v10 = vsel %vm1915_vm5, %v1940_v48, %v1949_v2  ;;  %v1961_v25 = vshrl.u32 %v6802_v20, 16  ;;  %v584_v34 = vrot.slane %v582_v6, 4  ;;  %v583_v53 = vsel %vm7672_vm2, %v581_v29, %v582_v6  ;;  %v6826_v26 = vld [vmem:[#allocation9 + $0x370] ss:$8 sps:$4 sm:$0xff]  }
  0xec   : > { %4328 = vmatprep.subr.bf16.mxu0 %v6786_v32  ;;  %v1008_v32 = vor.u32 %v1006_v19, %v1004_v13  ;;  %v1959_v38 = vsel %vm1915_vm5, %v1949_v2, %v1958_v24  ;;  %687 = vst [vmem:[#allocation2 + $0x30] sm:$0xf] %v583_v53  ;;  %v587_v48 = vrot.slane %v585_v37, 4  ;;  %v591_v57 = vrot.slane %v6129_v47, 6  ;;  %3941 = vmatpush1.bf16.msra.mxu1 %v6832_v8 }
  0xed   : > { %v1963_v35 = vrot.slane %v1961_v25, 2  ;;  %v586_v40 = vsel %vm7672_vm2, %v584_v34, %v585_v37  ;;  %v594_v6 = vrot.slane %v6130_v59, 6  ;;  %v1743_v19 = vrot.slane %v7759_v55, 2 }
  0xee   : > { %688 = vst [vmem:[#allocation2 + $0x34] sm:$0xf] %v586_v40  ;;  %v1013_v50 = vsel %vm969_vm3, %v1008_v32, %v7743_v33  ;;  %v593_v5 = vrot.slane %v591_v57, 4  ;;  %v6836_v40 = vld [vmem:[#allocation9 + $0x380] ss:$8 sps:$4 sm:$0xff]  }
  0xef   : > { %4329 = vmatpush1.bf16.msra.mxu0 %v6784_v45  ;;  %v6812_v45 = vld [vmem:[#allocation9 + $0x350] ss:$8 sps:$4 sm:$0xff]   ;;  %v596_v16 = vrot.slane %v594_v6, 4 }
  0xf0   : > { %4330 = vmatprep.subr.bf16.mxu0 %v6793_v51  ;;  %v7755_v51 = vor.u32 %v1966_v36, %v1963_v35  ;;  %v595_v15 = vsel %vm7672_vm2, %v593_v5, %v594_v6  ;;  %v6838_v36 = vld [vmem:[#allocation9 + $0x384] ss:$8 sps:$4 sm:$0xff]  }
  0xf1   : > { %3790 = vmatmul.mubr.bf16.gmra.mrb[4].mxu1 %v6782_v41  ;;  %v428_v41 = vld [vmem:[%s7650_s16 + $0x70] sm:$0xff]  ;;  %691 = vst [vmem:[#allocation2 + $0x40] sm:$0xf] %v595_v15  ;;  %v6841_v15 = vld [vmem:[#allocation9 + $0x114] ss:$8 sps:$4 sm:$0xff]  }
  0xf2   : > { %3799 = vmatprep.mubr.bf16.mxu1 %v997_v62  ;;  %4176 = vmatmul.mubr.bf16.gmra.mrb[4].mxu0 %v1738_v7  ;;  %v6128_v46 = vpack.c.bf16 %v428_v41, %v428_v41  ;;  %v432_v62 = vld [vmem:[%s7650_s16 + $0x90] sm:$0xff]  ;;  %v6828_v7 = vld [vmem:[#allocation9 + $0x374] ss:$8 sps:$4 sm:$0xff]  }
  0xf3   : > { %4185 = vmatprep.mubr.bf16.mxu0 %v1950_v10  ;;  %4331 = vmatpush1.bf16.msra.mxu0 %v6791_v63  ;;  %v1014_v63 = vshrl.u32 %v7733_v18, 16  ;;  %v6132_v2 = vpack.c.bf16 %v432_v62, %v432_v62  ;;  %v1968_v10 = vsel %vm1915_vm5, %v1958_v24, %v7755_v51 }
  0xf4   : > { %4332 = vmatprep.subr.bf16.mxu0 %v6800_v4  ;;  %v588_v56 = vrot.slane %v6128_v46, 6  ;;  %3942 = vmatprep.subr.bf16.mxu1 %v6841_v15 }
  0xf5   : > { %v6808_v18 = vld [vmem:[#allocation2 + $0x30] sm:$0xff]   ;;  %v600_v14 = vrot.slane %v6132_v2, 6  ;;  %v1016_v24 = vor.u32 %v1014_v63, %v7743_v33 }
  0xf6   : > { %v589_v3 = vsel %vm7672_vm2, %v587_v48, %v588_v56  ;;  %v590_v4 = vrot.slane %v588_v56, 4  ;;  %v6809_v20 = vld [vmem:[#allocation2 + $0x30] sm:$0xff]   ;;  %v1018_v25 = vshll.u32 %v6808_v18, 16  ;;  %v1022_v35 = vshrl.u32 %v6808_v18, 16 }
  0xf7   : > { %4333 = vmatpush1.bf16.msra.mxu0 %v6798_v17  ;;  %689 = vst [vmem:[#allocation2 + $0x38] sm:$0xf] %v589_v3  ;;  %v597_v17 = vrot.slane %v6131_v61, 6  ;;  %v1973_v29 = vshll.u32 %v6809_v20, 16  ;;  %v7785_v34 = vld [vmem:[#allocation2 + $0x30] sm:$0xff]  }
  0xf8   : > { %4334 = vmatprep.subr.bf16.mxu0 %v6807_v27  ;;  %v592_v13 = vsel %vm7672_vm2, %v590_v4, %v591_v57  ;;  %v602_v27 = vrot.slane %v600_v14, 4  ;;  %v1020_v32 = vrot.slane %v1018_v25, 1  ;;  %v1745_v31 = vrot.slane %v7785_v34, 2 }
  0xf9   : > { %3800 = vmatmul.mubr.bf16.gmra.mrb[8].mxu1 %v6789_v11  ;;  %v6133_v11 = vpack.c.bf16 %v433_v1, %v433_v1  ;;  %690 = vst [vmem:[#allocation2 + $0x3c] sm:$0xf] %v592_v13  ;;  %v598_v21 = vsel %vm7672_vm2, %v596_v16, %v597_v17  ;;  %v599_v22 = vrot.slane %v597_v17, 4  ;;  %v1975_v37 = vrot.slane %v1973_v29, 3 }
  0xfa   : > { %3809 = vmatprep.mubr.bf16.mxu1 %v1005_v23  ;;  %4186 = vmatmul.mubr.bf16.gmra.mrb[8].mxu0 %v1740_v30  ;;  %692 = vst [vmem:[#allocation2 + $0x44] sm:$0xf] %v598_v21  ;;  %v1024_v47 = vor.u32 %v1022_v35, %v1020_v32 }
  0xfb   : > { %4195 = vmatprep.mubr.bf16.mxu0 %v1959_v38  ;;  %4335 = vmatpush1.bf16.msra.mxu0 %v6805_v28  ;;  %v7780_v23 = vrot.slane %v6133_v11, 6  ;;  %v1970_v28 = vshrl.u32 %v6809_v20, 16  ;;  %v601_v30 = vsel %vm7672_vm2, %v599_v22, %v600_v14  ;;  %v1744_v38 = vsel %vm1733_vm4, %v1741_v49, %v1743_v19  ;;  %v434_v14 = vld [vmem:[%s7650_s16 + $0xa0] sm:$0xff] }
  0xfc   : > { %4336 = vmatprep.subr.bf16.mxu0 %v6814_v39  ;;  %693 = vst [vmem:[#allocation2 + $0x48] sm:$0xf] %v601_v30  ;;  %v1021_v39 = vsel %vm969_vm3, %v1016_v24, %v1020_v32  ;;  %v6134_v21 = vpack.c.bf16 %v434_v14, %v434_v14  ;;  %v6849_v32 = vld [vmem:[#allocation9 + $0x390] ss:$8 sps:$4 sm:$0xff]  }
  0xfd   : > { %v604_v33 = vsel %vm7672_vm2, %v602_v27, %v7780_v23  ;;  %v1972_v53 = vrot.slane %v1970_v28, 2  ;;  %v605_v24 = vrot.slane %v7780_v23, 4  ;;  %v6847_v27 = vld [vmem:[#allocation9 + $0x124] ss:$8 sps:$4 sm:$0xff]  }
  0xfe   : > { %694 = vst [vmem:[#allocation2 + $0x4c] sm:$0xf] %v604_v33  ;;  %v606_v29 = vrot.slane %v6134_v21, 6 }
  0xff   : > { %4337 = vmatpush1.bf16.msra.mxu0 %v6812_v45  ;;  %v1976_v41 = vor.u32 %v1975_v37, %v1972_v53 }
 0x100   : > { %4338 = vmatprep.subr.bf16.mxu0 %v6821_v58  ;;  %v6815_v42 = vld [vmem:[#allocation2 + $0x38] sm:$0xff]   ;;  %v607_v37 = vsel %vm7672_vm2, %v605_v24, %v606_v29 }
 0x101   : > { %3810 = vmatmul.mubr.bf16.gmra.mrb[12].mxu1 %v6796_v43  ;;  %v6810_v43 = vld [vmem:[#allocation2 + $0x28] sm:$0xff]   ;;  %v6816_v45 = vld [vmem:[#allocation2 + $0x38] sm:$0xff]   ;;  %v1977_v46 = vsel %vm1915_vm5, %v7755_v51, %v1976_v41  ;;  %v1026_v48 = vshll.u32 %v6815_v42, 16  ;;  %v1030_v55 = vshrl.u32 %v6815_v42, 16  ;;  %v6823_v57 = vld [vmem:[#allocation2 + $0x40] sm:$0xff]  }
 0x102   : > { %3819 = vmatprep.mubr.bf16.mxu1 %v1013_v50  ;;  %4196 = vmatmul.mubr.bf16.gmra.mrb[12].mxu0 %v1742_v9  ;;  %v6822_v50 = vld [vmem:[#allocation2 + $0x40] sm:$0xff]   ;;  %v1979_v49 = vshrl.u32 %v6816_v45, 16  ;;  %v1982_v52 = vshll.u32 %v6816_v45, 16  ;;  %v7798_v62 = vld [vmem:[#allocation2 + $0x38] sm:$0xff]   ;;  %v1988_v51 = vshrl.u32 %v6823_v57, 16  ;;  %v1991_v2 = vshll.u32 %v6823_v57, 16 }
 0x103   : > { %4205 = vmatprep.mubr.bf16.mxu0 %v1968_v10  ;;  %4339 = vmatpush1.bf16.msra.mxu0 %v6819_v0  ;;  %v1028_v54 = vrot.slane %v1026_v48, 1  ;;  %v1034_v56 = vshll.u32 %v6822_v50, 16  ;;  %v1746_v0 = vsel %vm1733_vm4, %v1743_v19, %v1745_v31  ;;  %v6839_v9 = vld [vmem:[#allocation9 + $0x110] ss:$8 sps:$4 sm:$0xff]   ;;  %v6817_v10 = vld [vmem:[#allocation2 + $0x30] sm:$0xff]   ;;  %v1747_v11 = vrot.slane %v7798_v62, 2 }
 0x104   : > { %4340 = vmatprep.subr.bf16.mxu0 %v6828_v7  ;;  %v1981_v58 = vrot.slane %v1979_v49, 2  ;;  %v1984_v59 = vrot.slane %v1982_v52, 3  ;;  %v1990_v5 = vrot.slane %v1988_v51, 2  ;;  %v1993_v8 = vrot.slane %v1991_v2, 3  ;;  %v435_v19 = vld [vmem:[%s7650_s16 + $0xa8] sm:$0xff]  ;;  %v7811_v20 = vld [vmem:[#allocation2 + $0x40] sm:$0xff]   ;;  %3943 = vmatpush1.bf16.msra.mxu1 %v6839_v9 }
 0x105   : > { %v1029_v61 = vsel %vm969_vm3, %v1024_v47, %v1028_v54  ;;  %v7800_v63 = vld [vmem:[#allocation2 + $0x48] sm:$0xff]   ;;  %v1032_v3 = vor.u32 %v1030_v55, %v1028_v54  ;;  %v1036_v4 = vrot.slane %v1034_v56, 1  ;;  %v6135_v22 = vpack.c.bf16 %v435_v19, %v435_v19  ;;  %3944 = vmatprep.subr.bf16.mxu1 %v6847_v27  ;;  %v6824_v53 = vld [vmem:[#allocation2 + $0x38] sm:$0xff]   ;;  %695 = vst [vmem:[#allocation2 + $0x50] sm:$0xf] %v607_v37 }
 0x106   : > { %v1985_v1 = vor.u32 %v1984_v59, %v1981_v58  ;;  %v6830_v6 = vld [vmem:[#allocation2 + $0x48] sm:$0xff]   ;;  %v1042_v13 = vshll.u32 %v7800_v63, 16  ;;  %v7807_v17 = vor.u32 %v1993_v8, %v1990_v5  ;;  %v1748_v28 = vsel %vm1733_vm4, %v1745_v31, %v1747_v11  ;;  %v6852_v47 = vld [vmem:[#allocation9 + $0x130] ss:$8 sps:$4 sm:$0xff]   ;;  %v6864_v55 = vld [vmem:[#allocation9 + $0x3a4] ss:$8 sps:$4 sm:$0xff]  }
 0x107   : > { %4341 = vmatpush1.bf16.msra.mxu0 %v6826_v26  ;;  %v1037_v16 = vsel %vm969_vm3, %v1032_v3, %v1036_v4  ;;  %v1997_v60 = vshrl.u32 %v6830_v6, 16  ;;  %v2000_v18 = vshll.u32 %v6830_v6, 16  ;;  %v6845_v26 = vld [vmem:[#allocation9 + $0x120] ss:$8 sps:$4 sm:$0xff]   ;;  %v609_v30 = vrot.slane %v6135_v22, 6  ;;  %v6831_v5 = vld [vmem:[#allocation2 + $0x40] sm:$0xff]  }
 0x108   : > { %4342 = vmatprep.subr.bf16.mxu0 %v6838_v36  ;;  %v1986_v7 = vsel %vm1915_vm5, %v1976_v41, %v1985_v1  ;;  %v7814_v25 = vrot.slane %v1042_v13, 1  ;;  %v1995_v34 = vsel %vm1915_vm5, %v1985_v1, %v7807_v17  ;;  %v6851_v36 = vld [vmem:[#allocation9 + $0x394] ss:$8 sps:$4 sm:$0xff]   ;;  %v1749_v45 = vrot.slane %v7811_v20, 2  ;;  %3945 = vmatpush1.bf16.msra.mxu1 %v6845_v26  ;;  %v6862_v54 = vld [vmem:[#allocation9 + $0x3a0] ss:$8 sps:$4 sm:$0xff]  }
 0x109   : > { %3820 = vmatmul.mubr.bf16.gmra.mrb[16].mxu1 %v6803_v12  ;;  %v1038_v12 = vshrl.u32 %v6822_v50, 16  ;;  %v1999_v35 = vrot.slane %v1997_v60, 2  ;;  %v2002_v33 = vrot.slane %v2000_v18, 3  ;;  %v437_v41 = vld [vmem:[%s7650_s16 + $0xb8] sm:$0xff]  ;;  %v6860_v50 = vld [vmem:[#allocation9 + $0x144] ss:$8 sps:$4 sm:$0xff]  }
 0x10a   : > { %3829 = vmatprep.mubr.bf16.mxu1 %v1021_v39  ;;  %4206 = vmatmul.mubr.bf16.gmra.mrb[16].mxu0 %v1744_v38  ;;  %v608_v38 = vrot.slane %v606_v29, 4  ;;  %v6854_v39 = vld [vmem:[#allocation9 + $0x134] ss:$8 sps:$4 sm:$0xff]   ;;  %v6137_v48 = vpack.c.bf16 %v437_v41, %v437_v41  ;;  %v439_v51 = vld [vmem:[%s7650_s16 + $0xc8] sm:$0xff]  ;;  %v1046_v6 = vshrl.u32 %v7800_v63, 16 }
 0x10b   : > { %4215 = vmatprep.mubr.bf16.mxu0 %v1977_v46  ;;  %4343 = vmatpush1.bf16.msra.mxu0 %v6836_v40  ;;  %v1040_v23 = vor.u32 %v1038_v12, %v1036_v4  ;;  %v436_v40 = vld [vmem:[%s7650_s16 + $0xb0] sm:$0xff]  ;;  %v7830_v49 = vor.u32 %v2002_v33, %v1999_v35  ;;  %v7832_v57 = vld [vmem:[#allocation2 + $0x48] sm:$0xff]   ;;  %v6139_v3 = vpack.c.bf16 %v439_v51, %v439_v51  ;;  %v6865_v9 = vld [vmem:[#allocation9 + $0x150] ss:$8 sps:$4 sm:$0xff]  }
 0x10c   : > { %4344 = vmatprep.subr.bf16.mxu0 %v6851_v36  ;;  %v6136_v42 = vpack.c.bf16 %v436_v40, %v436_v40  ;;  %v610_v46 = vsel %vm7672_vm2, %v608_v38, %v609_v30  ;;  %3946 = vmatprep.subr.bf16.mxu1 %v6854_v39  ;;  %v615_v56 = vrot.slane %v6137_v48, 6  ;;  %v6858_v1 = vld [vmem:[#allocation9 + $0x140] ss:$8 sps:$4 sm:$0xff]   ;;  %v6867_v62 = vld [vmem:[#allocation9 + $0x154] ss:$8 sps:$4 sm:$0xff]   ;;  %v1751_v12 = vrot.slane %v7832_v57, 2 }
 0x10d   : > { %v1045_v31 = vsel %vm969_vm3, %v1040_v23, %v7814_v25  ;;  %696 = vst [vmem:[#allocation2 + $0x54] sm:$0xf] %v610_v46  ;;  %3947 = vmatpush1.bf16.msra.mxu1 %v6852_v47  ;;  %v2004_v4 = vsel %vm1915_vm5, %v7807_v17, %v7830_v49  ;;  %v6873_v17 = vld [vmem:[#allocation9 + $0x164] ss:$8 sps:$4 sm:$0xff]   ;;  %v1048_v60 = vor.u32 %v1046_v6, %v7814_v25  ;;  %v6871_v19 = vld [vmem:[#allocation9 + $0x160] ss:$8 sps:$4 sm:$0xff]  }
 0x10e   : > { %v612_v52 = vrot.slane %v6136_v42, 6  ;;  %3948 = vmatprep.subr.bf16.mxu1 %v6860_v50  ;;  %v617_v8 = vrot.slane %v615_v56, 4  ;;  %v1752_v26 = vsel %vm1733_vm4, %v1749_v45, %v1751_v12  ;;  %v6844_v37 = vld [vmem:[#allocation2 + $0x48] sm:$0xff]   ;;  %v441_v50 = vld [vmem:[%s7650_s16 + $0xd8] sm:$0xff] }
 0x10f   : > { %4345 = vmatpush1.bf16.msra.mxu0 %v6849_v32 }
 0x110   : > { %v614_v59 = vrot.slane %v612_v52, 4  ;;  %4346 = vmatprep.subr.bf16.mxu0 %v6864_v55 }
 0x111   : > { %3830 = vmatmul.mubr.bf16.gmra.mrb[20].mxu1 %v6810_v43  ;;  %v611_v43 = vrot.slane %v609_v30, 4 }
 0x112   : > { %3839 = vmatprep.mubr.bf16.mxu1 %v1029_v61  ;;  %4216 = vmatmul.mubr.bf16.gmra.mrb[20].mxu0 %v1746_v0  ;;  %v438_v61 = vld [vmem:[%s7650_s16 + $0xc0] sm:$0xff]  ;;  %v1750_v0 = vsel %vm1733_vm4, %v1747_v11, %v1749_v45  ;;  %v7847_v11 = vrot.slane %v6139_v3, 6 }
 0x113   : > { %4225 = vmatprep.mubr.bf16.mxu0 %v1986_v7  ;;  %v613_v58 = vsel %vm7672_vm2, %v611_v43, %v612_v52  ;;  %v6138_v2 = vpack.c.bf16 %v438_v61, %v438_v61  ;;  %v616_v7 = vsel %vm7672_vm2, %v614_v59, %v615_v56  ;;  %4347 = vmatpush1.bf16.msra.mxu0 %v6862_v54  ;;  %v6877_v43 = vld [vmem:[#allocation9 + $0x3b4] ss:$8 sps:$4 sm:$0xff]   ;;  %v6878_v61 = vld [vmem:[#allocation9 + $0x170] ss:$8 sps:$4 sm:$0xff]  }
 0x114   : > { %697 = vst [vmem:[#allocation2 + $0x58] sm:$0xf] %v613_v58  ;;  %698 = vst [vmem:[#allocation2 + $0x5c] sm:$0xf] %v616_v7  ;;  %v6842_v13 = vld [vmem:[#allocation2 + $0x50] sm:$0xff]   ;;  %3949 = vmatpush1.bf16.msra.mxu1 %v6858_v1  ;;  %v623_v36 = vrot.slane %v7847_v11, 4  ;;  %4348 = vmatprep.subr.bf16.mxu0 %v6877_v43  ;;  %v6141_v52 = vpack.c.bf16 %v441_v50, %v441_v50 }
 0x115   : > { %v6843_v15 = vld [vmem:[#allocation2 + $0x50] sm:$0xff]   ;;  %3950 = vmatprep.subr.bf16.mxu1 %v6867_v62  ;;  %v1050_v18 = vshll.u32 %v6842_v13, 16  ;;  %v1054_v14 = vshrl.u32 %v6842_v13, 16 }
 0x116   : > { %v2006_v20 = vshrl.u32 %v6843_v15, 16  ;;  %v2009_v21 = vshll.u32 %v6843_v15, 16  ;;  %v7853_v22 = vld [vmem:[#allocation2 + $0x50] sm:$0xff]   ;;  %v627_v51 = vrot.slane %v6141_v52, 6  ;;  %v6906_v52 = vld [vmem:[#allocation9 + $0x1b4] ss:$8 sps:$4 sm:$0xff]  }
 0x117   : > { %v1052_v27 = vrot.slane %v1050_v18, 1  ;;  %v1753_v41 = vrot.slane %v7853_v22, 2  ;;  %v6857_v7 = vld [vmem:[#allocation2 + $0x50] sm:$0xff]   ;;  %v6891_v18 = vld [vmem:[#allocation9 + $0x190] ss:$8 sps:$4 sm:$0xff]  }
 0x118   : > { %3951 = vmatpush1.bf16.msra.mxu1 %v6865_v9  ;;  %v2008_v25 = vrot.slane %v2006_v20, 2  ;;  %v2011_v29 = vrot.slane %v2009_v21, 3  ;;  %v6886_v13 = vld [vmem:[#allocation9 + $0x184] ss:$8 sps:$4 sm:$0xff]  }
 0x119   : > { %3840 = vmatmul.mubr.bf16.gmra.mrb[24].mxu1 %v6817_v10  ;;  %v618_v10 = vrot.slane %v6138_v2, 6  ;;  %3952 = vmatprep.subr.bf16.mxu1 %v6873_v17  ;;  %v1053_v23 = vsel %vm969_vm3, %v1048_v60, %v1052_v27  ;;  %v1056_v35 = vor.u32 %v1054_v14, %v1052_v27  ;;  %v1754_v58 = vsel %vm1733_vm4, %v1751_v12, %v1753_v41  ;;  %v6880_v2 = vld [vmem:[#allocation9 + $0x174] ss:$8 sps:$4 sm:$0xff]   ;;  %v6884_v12 = vld [vmem:[#allocation9 + $0x180] ss:$8 sps:$4 sm:$0xff]  }
 0x11a   : > { %3849 = vmatprep.mubr.bf16.mxu1 %v1037_v16  ;;  %4226 = vmatmul.mubr.bf16.gmra.mrb[24].mxu0 %v1748_v28  ;;  %v440_v28 = vld [vmem:[%s7650_s16 + $0xd0] sm:$0xff]  ;;  %v6893_v14 = vld [vmem:[#allocation9 + $0x194] ss:$8 sps:$4 sm:$0xff]   ;;  %v443_v22 = vld [vmem:[%s7650_s16 + $0xe8] sm:$0xff] }
 0x11b   : > { %4235 = vmatprep.mubr.bf16.mxu0 %v1995_v34  ;;  %v619_v63 = vsel %vm7672_vm2, %v617_v8, %v618_v10  ;;  %v620_v16 = vrot.slane %v618_v10, 4  ;;  %v6855_v30 = vld [vmem:[#allocation2 + $0x58] sm:$0xff]   ;;  %v6140_v33 = vpack.c.bf16 %v440_v28, %v440_v28  ;;  %v6143_v28 = vpack.c.bf16 %v443_v22, %v443_v22 }
 0x11c   : > { %699 = vst [vmem:[#allocation2 + $0x60] sm:$0xf] %v619_v63  ;;  %v6856_v32 = vld [vmem:[#allocation2 + $0x58] sm:$0xff]   ;;  %v1058_v38 = vshll.u32 %v6855_v30, 16  ;;  %v1062_v42 = vshrl.u32 %v6855_v30, 16  ;;  %3953 = vmatpush1.bf16.msra.mxu1 %v6871_v19  ;;  %v442_v19 = vld [vmem:[%s7650_s16 + $0xe0] sm:$0xff] }
 0x11d   : > { %v622_v24 = vsel %vm7672_vm2, %v620_v16, %v7847_v11  ;;  %v6875_v34 = vld [vmem:[#allocation9 + $0x3b0] ss:$8 sps:$4 sm:$0xff]   ;;  %v2015_v39 = vshrl.u32 %v6856_v32, 16  ;;  %v2018_v40 = vshll.u32 %v6856_v32, 16  ;;  %v624_v57 = vrot.slane %v6140_v33, 6  ;;  %3954 = vmatprep.subr.bf16.mxu1 %v6880_v2 }
 0x11e   : > { %700 = vst [vmem:[#allocation2 + $0x64] sm:$0xf] %v622_v24  ;;  %v1060_v46 = vrot.slane %v1058_v38, 1  ;;  %4349 = vmatpush1.bf16.msra.mxu0 %v6875_v34  ;;  %v6888_v63 = vld [vmem:[#allocation9 + $0x3c0] ss:$8 sps:$4 sm:$0xff]   ;;  %v6142_v24 = vpack.c.bf16 %v442_v19, %v442_v19  ;;  %v633_v32 = vrot.slane %v6143_v28, 6 }
 0x11f   : > { %v2017_v47 = vrot.slane %v2015_v39, 2  ;;  %v2020_v48 = vrot.slane %v2018_v40, 3  ;;  %v625_v3 = vsel %vm7672_vm2, %v623_v36, %v624_v57  ;;  %v6890_v60 = vld [vmem:[#allocation9 + $0x3c4] ss:$8 sps:$4 sm:$0xff]   ;;  %v6910_v2 = vld [vmem:[#allocation9 + $0x1c0] ss:$8 sps:$4 sm:$0xff]  }
 0x120   : > { %v1061_v54 = vsel %vm969_vm3, %v1056_v35, %v1060_v46  ;;  %701 = vst [vmem:[#allocation2 + $0x68] sm:$0xf] %v625_v3  ;;  %3955 = vmatpush1.bf16.msra.mxu1 %v6878_v61  ;;  %4350 = vmatprep.subr.bf16.mxu0 %v6890_v60  ;;  %v6914_v3 = vld [vmem:[#allocation9 + $0x3e0] ss:$8 sps:$4 sm:$0xff]  }
 0x121   : > { %3850 = vmatmul.mubr.bf16.gmra.mrb[28].mxu1 %v6824_v53  ;;  %v2012_v53 = vor.u32 %v2011_v29, %v2008_v25  ;;  %v2021_v55 = vor.u32 %v2020_v48, %v2017_v47  ;;  %3956 = vmatprep.subr.bf16.mxu1 %v6886_v13  ;;  %v6870_v25 = vld [vmem:[#allocation2 + $0x58] sm:$0xff]   ;;  %v630_v29 = vrot.slane %v6142_v24, 6  ;;  %v6923_v24 = vld [vmem:[#allocation9 + $0x1e0] ss:$8 sps:$4 sm:$0xff]  }
 0x122   : > { %3859 = vmatprep.mubr.bf16.mxu1 %v1045_v31  ;;  %4236 = vmatmul.mubr.bf16.gmra.mrb[28].mxu0 %v1750_v0  ;;  %v7866_v31 = vld [vmem:[#allocation2 + $0x58] sm:$0xff]  }
 0x123   : > { %4245 = vmatprep.mubr.bf16.mxu0 %v2004_v4  ;;  %v2013_v45 = vsel %vm1915_vm5, %v7830_v49, %v2012_v53  ;;  %v1064_v49 = vor.u32 %v1062_v42, %v1060_v46  ;;  %v2022_v0 = vsel %vm1915_vm5, %v2012_v53, %v2021_v55  ;;  %v626_v4 = vrot.slane %v624_v57, 4  ;;  %4351 = vmatpush1.bf16.msra.mxu0 %v6888_v63  ;;  %v6899_v42 = vld [vmem:[#allocation9 + $0x1a4] ss:$8 sps:$4 sm:$0xff]   ;;  %v6903_v46 = vld [vmem:[#allocation9 + $0x3d4] ss:$8 sps:$4 sm:$0xff]  }
 0x124   : > { %v1755_v62 = vrot.slane %v7866_v31, 2  ;;  %3957 = vmatpush1.bf16.msra.mxu1 %v6884_v12  ;;  %v632_v33 = vrot.slane %v630_v29, 4  ;;  %v6904_v31 = vld [vmem:[#allocation9 + $0x1b0] ss:$8 sps:$4 sm:$0xff]   ;;  %4352 = vmatprep.subr.bf16.mxu0 %v6903_v46 }
 0x125   : > { %v7869_v56 = vld [vmem:[#allocation2 + $0x60] sm:$0xff]   ;;  %v628_v9 = vsel %vm7672_vm2, %v626_v4, %v627_v51  ;;  %3958 = vmatprep.subr.bf16.mxu1 %v6893_v14 }
 0x126   : > { %v6869_v59 = vld [vmem:[#allocation2 + $0x60] sm:$0xff]   ;;  %v1066_v1 = vshll.u32 %v7869_v56, 16  ;;  %702 = vst [vmem:[#allocation2 + $0x6c] sm:$0xf] %v628_v9  ;;  %v1756_v20 = vsel %vm1733_vm4, %v1753_v41, %v1755_v62  ;;  %v1070_v21 = vshrl.u32 %v7869_v56, 16  ;;  %v634_v41 = vsel %vm7672_vm2, %v632_v33, %v633_v32 }
 0x127   : > { %v2027_v6 = vshll.u32 %v6869_v59, 16  ;;  %v7882_v17 = vld [vmem:[#allocation2 + $0x60] sm:$0xff]   ;;  %704 = vst [vmem:[#allocation2 + $0x74] sm:$0xf] %v634_v41 }
 0x128   : > { %v1068_v8 = vrot.slane %v1066_v1, 1  ;;  %v1757_v34 = vrot.slane %v7882_v17, 2  ;;  %3959 = vmatpush1.bf16.msra.mxu1 %v6891_v18  ;;  %v445_v56 = vld [vmem:[%s7650_s16 + $0xf8] sm:$0xff]  ;;  %v635_v1 = vrot.slane %v633_v32, 4 }
 0x129   : > { %3860 = vmatmul.mubr.bf16.gmra.mrb[32].mxu1 %v6831_v5  ;;  %v2024_v5 = vshrl.u32 %v6869_v59, 16  ;;  %v2029_v11 = vrot.slane %v2027_v6, 3  ;;  %3960 = vmatprep.subr.bf16.mxu1 %v6899_v42  ;;  %v6145_v61 = vpack.c.bf16 %v445_v56, %v445_v56  ;;  %v6917_v14 = vld [vmem:[#allocation9 + $0x1d0] ss:$8 sps:$4 sm:$0xff]   ;;  %v6932_v32 = vld [vmem:[#allocation9 + $0x1f4] ss:$8 sps:$4 sm:$0xff]  }
 0x12a   : > { %4246 = vmatmul.mubr.bf16.gmra.mrb[32].mxu0 %v1752_v26  ;;  %3869 = vmatprep.mubr.bf16.mxu1 %v1053_v23  ;;  %v1069_v15 = vsel %vm969_vm3, %v1064_v49, %v1068_v8  ;;  %v629_v26 = vrot.slane %v627_v51, 4  ;;  %v1072_v36 = vor.u32 %v1070_v21, %v1068_v8  ;;  %v1758_v47 = vsel %vm1733_vm4, %v1755_v62, %v1757_v34  ;;  %v6912_v51 = vld [vmem:[#allocation9 + $0x1c4] ss:$8 sps:$4 sm:$0xff]  }
 0x12b   : > { %4255 = vmatprep.mubr.bf16.mxu0 %v2013_v45  ;;  %v2026_v10 = vrot.slane %v2024_v5, 2  ;;  %v6901_v45 = vld [vmem:[#allocation9 + $0x3d0] ss:$8 sps:$4 sm:$0xff]   ;;  %v639_v6 = vrot.slane %v6145_v61, 6 }
 0x12c   : > { %v631_v35 = vsel %vm7672_vm2, %v629_v26, %v630_v29  ;;  %4353 = vmatpush1.bf16.msra.mxu0 %v6901_v45  ;;  %v6925_v26 = vld [vmem:[#allocation9 + $0x1e4] ss:$8 sps:$4 sm:$0xff]   ;;  %v6929_v29 = vld [vmem:[#allocation9 + $0x3f4] ss:$8 sps:$4 sm:$0xff]  }
 0x12d   : > { %v7880_v16 = vor.u32 %v2029_v11, %v2026_v10  ;;  %v7890_v30 = vld [vmem:[#allocation2 + $0x68] sm:$0xff]   ;;  %703 = vst [vmem:[#allocation2 + $0x70] sm:$0xf] %v631_v35  ;;  %v641_v11 = vrot.slane %v639_v6, 4 }
 0x12e   : > { %v6882_v23 = vld [vmem:[#allocation2 + $0x68] sm:$0xff]   ;;  %v1074_v53 = vshll.u32 %v7890_v30, 16  ;;  %v1078_v49 = vshrl.u32 %v7890_v30, 16 }
 0x12f   : > { %v2031_v27 = vsel %vm1915_vm5, %v2021_v55, %v7880_v16  ;;  %v2033_v38 = vshrl.u32 %v6882_v23, 16  ;;  %v2036_v39 = vshll.u32 %v6882_v23, 16  ;;  %v7896_v40 = vld [vmem:[#allocation2 + $0x68] sm:$0xff]   ;;  %v444_v55 = vld [vmem:[%s7650_s16 + $0xf0] sm:$0xff]  ;;  %707 = vst [vmem:[#allocation2 + $0x80] sm:$0x3] %v641_v11 }
 0x130   : > { %v1076_v43 = vrot.slane %v1074_v53, 1  ;;  %v6144_v59 = vpack.c.bf16 %v444_v55, %v444_v55  ;;  %v6896_v60 = vld [vmem:[#allocation2 + $0x68] sm:$0xff]   ;;  %v6930_v23 = vld [vmem:[#allocation9 + $0x1f0] ss:$8 sps:$4 sm:$0xff]  }
 0x131   : > { %3870 = vmatmul.mubr.bf16.gmra.mrb[36].mxu1 %v6844_v37  ;;  %v6897_v37 = vld [vmem:[#allocation9 + $0x1a0] ss:$8 sps:$4 sm:$0xff]   ;;  %v2035_v48 = vrot.slane %v2033_v38, 2  ;;  %v2038_v50 = vrot.slane %v2036_v39, 3 }
 0x132   : > { %3879 = vmatprep.mubr.bf16.mxu1 %v1061_v54  ;;  %4256 = vmatmul.mubr.bf16.gmra.mrb[36].mxu0 %v1754_v58  ;;  %v1077_v54 = vsel %vm969_vm3, %v1072_v36, %v1076_v43  ;;  %v6883_v58 = vld [vmem:[#allocation2 + $0x60] sm:$0xff]   ;;  %v636_v5 = vrot.slane %v6144_v59, 6  ;;  %v1080_v13 = vor.u32 %v1078_v49, %v1076_v43  ;;  %v6934_v36 = vld [vmem:[#allocation2 + $0x8] sm:$0xff]  }
 0x133   : > { %4265 = vmatprep.mubr.bf16.mxu0 %v2022_v0  ;;  %3961 = vmatpush1.bf16.msra.mxu1 %v6897_v37  ;;  %v2039_v57 = vor.u32 %v2038_v50, %v2035_v48  ;;  %v1759_v0 = vrot.slane %v7896_v40, 2  ;;  %v1442_v40 = vshrl.u32 %v6934_v36, 16 }
 0x134   : > { %3962 = vmatprep.subr.bf16.mxu1 %v6906_v52  ;;  %v6894_v62 = vld [vmem:[#allocation2 + $0x70] sm:$0xff]   ;;  %v637_v9 = vsel %vm7672_vm2, %v635_v1, %v636_v5  ;;  %v638_v10 = vrot.slane %v636_v5, 4 }
 0x135   : > { %v2040_v4 = vsel %vm1915_vm5, %v7880_v16, %v2039_v57  ;;  %v6895_v8 = vld [vmem:[#allocation2 + $0x70] sm:$0xff]   ;;  %v1760_v12 = vsel %vm1733_vm4, %v1757_v34, %v1759_v0  ;;  %705 = vst [vmem:[#allocation2 + $0x78] sm:$0xf] %v637_v9  ;;  %v1086_v30 = vshrl.u32 %v6894_v62, 16  ;;  %v1445_v9 = vshll.u32 %v6934_v36, 16 }
 0x136   : > { %v7911_v63 = vld [vmem:[#allocation2 + $0x70] sm:$0xff]   ;;  %v2042_v16 = vshrl.u32 %v6895_v8, 16  ;;  %v2045_v17 = vshll.u32 %v6895_v8, 16  ;;  %v640_v18 = vsel %vm7672_vm2, %v638_v10, %v639_v6  ;;  %v6920_v33 = vld [vmem:[#allocation2 + $0x80] ss:$0 sps:$4 sm:$0x11]  }
 0x137   : > { %3963 = vmatpush1.bf16.msra.mxu1 %v6904_v31  ;;  %706 = vst [vmem:[#allocation2 + $0x7c] sm:$0xf] %v640_v18  ;;  %v1761_v28 = vrot.slane %v7911_v63, 2  ;;  %v1098_v39 = vshll.u32 %v6920_v33, 16  ;;  %v1447_v63 = vrot.slane %v1445_v9, 2  ;;  %v7946_v9 = vld [vmem:[#allocation2 + $0x18] sm:$0xff]  }
 0x138   : > { %3964 = vmatprep.subr.bf16.mxu1 %v6912_v51  ;;  %v2044_v21 = vrot.slane %v2042_v16, 2  ;;  %v2047_v22 = vrot.slane %v2045_v17, 3  ;;  %v6921_v52 = vld [vmem:[#allocation2 + $0x80] ss:$0 sps:$4 sm:$0x77]   ;;  %v6936_v51 = vld [vmem:[#allocation2 + $0x8] sm:$0xff]  }
 0x139   : > { %3880 = vmatmul.mubr.bf16.gmra.mrb[40].mxu1 %v6857_v7  ;;  %v6916_v7 = vld [vmem:[#allocation9 + $0x3e4] ss:$8 sps:$4 sm:$0xff]   ;;  %v1762_v35 = vsel %vm1733_vm4, %v1759_v0, %v1761_v28  ;;  %v1100_v31 = vrot.slane %v1098_v39, 1  ;;  %v2060_v49 = vshrl.u32 %v6921_v52, 16  ;;  %v2063_v59 = vshll.u32 %v6921_v52, 16 }
 0x13a   : > { %3889 = vmatprep.mubr.bf16.mxu1 %v1069_v15  ;;  %4266 = vmatmul.mubr.bf16.gmra.mrb[40].mxu0 %v1756_v20  ;;  %v1082_v15 = vshll.u32 %v6894_v62, 16  ;;  %v6919_v20 = vld [vmem:[#allocation9 + $0x1d4] ss:$8 sps:$4 sm:$0xff]   ;;  %v2048_v44 = vor.u32 %v2047_v22, %v2044_v21  ;;  %v2408_v16 = vshrl.u32 %v6936_v51, 16  ;;  %v6943_v33 = vld [vmem:[#allocation9 + $0x404] ss:$8 sps:$4 sm:$0xff]  }
 0x13b   : > { %4275 = vmatprep.mubr.bf16.mxu0 %v2031_v27  ;;  %4354 = vmatprep.subr.bf16.mxu0 %v6916_v7  ;;  %v6926_v61 = vld [vmem:[#allocation2 + $0x80] ss:$0 sps:$4 sm:$0x33]   ;;  %v2065_v5 = vrot.slane %v2063_v59, 3  ;;  %v7927_v22 = vld [vmem:[#allocation2 + $0x8] sm:$0xff]   ;;  %v7940_v52 = vld [vmem:[#allocation2 + $0x10] sm:$0xff]  }
 0x13c   : > { %4355 = vmatpush1.bf16.msra.mxu0 %v6914_v3  ;;  %3965 = vmatpush1.bf16.msra.mxu1 %v6910_v2  ;;  %v1084_v19 = vrot.slane %v1082_v15, 1  ;;  %v2049_v34 = vsel %vm1915_vm5, %v2039_v57, %v2048_v44  ;;  %v6933_v2 = vld [vmem:[#allocation2] sm:$0xfe]   ;;  %v1765_v6 = vrot.slane %v6926_v61, 2  ;;  %v2410_v21 = vrot.slane %v2408_v16, 3 }
 0x13d   : > { %3966 = vmatprep.subr.bf16.mxu1 %v6919_v20  ;;  %4356 = vmatprep.subr.bf16.mxu0 %v6929_v29  ;;  %v1434_v62 = vshrl.u32 %v6933_v2, 16  ;;  %v1437_v8 = vshll.u32 %v6933_v2, 16 }
 0x13e   : > { %v1085_v27 = vsel %vm969_vm3, %v1080_v13, %v1084_v19  ;;  %v6907_v53 = vld [vmem:[#allocation2 + $0x78] sm:$0xff]   ;;  %v1088_v41 = vor.u32 %v1086_v30, %v1084_v19 }
 0x13f   : > { %v6908_v37 = vld [vmem:[#allocation2 + $0x78] sm:$0xff]   ;;  %v1090_v42 = vshll.u32 %v6907_v53, 16  ;;  %v1094_v43 = vshrl.u32 %v6907_v53, 16  ;;  %v1436_v13 = vrot.slane %v1434_v62, 1  ;;  %v1439_v15 = vrot.slane %v1437_v8, 2  ;;  %v6944_v53 = vld [vmem:[#allocation2 + $0x10] sm:$0xff]  }
 0x140   : > { %3967 = vmatpush1.bf16.msra.mxu1 %v6917_v14  ;;  %v7919_v38 = vld [vmem:[#allocation2 + $0x78] sm:$0xff]   ;;  %v2051_v45 = vshrl.u32 %v6908_v37, 16  ;;  %v2054_v46 = vshll.u32 %v6908_v37, 16  ;;  %v2411_v14 = vshll.u32 %v6936_v51, 16  ;;  %v2220_v62 = vrot.slane %v7940_v52, 3  ;;  %v6967_v52 = vld [vmem:[#allocation2 + $0x30] sm:$0xff]  }
 0x141   : > { %3890 = vmatmul.mubr.bf16.gmra.mrb[44].mxu1 %v6870_v25  ;;  %v6927_v25 = vld [vmem:[#allocation9 + $0x3f0] ss:$8 sps:$4 sm:$0xff]   ;;  %3968 = vmatprep.subr.bf16.mxu1 %v6925_v26  ;;  %v1763_v48 = vrot.slane %v7919_v38, 2  ;;  %v1092_v50 = vrot.slane %v1090_v42, 1  ;;  %v1440_v19 = vor.u32 %v1439_v15, %v1436_v13  ;;  %v6945_v38 = vld [vmem:[#allocation2 + $0x10] sm:$0xff]  }
 0x142   : > { %3899 = vmatprep.mubr.bf16.mxu1 %v1077_v54  ;;  %4276 = vmatmul.mubr.bf16.gmra.mrb[44].mxu0 %v1758_v47  ;;  %v6909_v47 = vld [vmem:[#allocation2 + $0x70] sm:$0xff]   ;;  %v1444_v54 = vrot.slane %v1442_v40, 1  ;;  %v2053_v55 = vrot.slane %v2051_v45, 2  ;;  %v2056_v56 = vrot.slane %v2054_v46, 3  ;;  %v6922_v11 = vld [vmem:[#allocation2 + $0x78] sm:$0xff]   ;;  %v1451_v40 = vshrl.u32 %v6944_v53, 16 }
 0x143   : > { %4285 = vmatprep.mubr.bf16.mxu0 %v2040_v4  ;;  %4357 = vmatpush1.bf16.msra.mxu0 %v6927_v25  ;;  %v1093_v57 = vsel %vm969_vm3, %v1088_v41, %v1092_v50  ;;  %v1764_v1 = vsel %vm1733_vm4, %v1761_v28, %v1763_v48  ;;  %v2062_v4 = vrot.slane %v2060_v49, 2  ;;  %v6937_v28 = vld [vmem:[#allocation2] sm:$0xfe]   ;;  %v7929_v25 = vld [vmem:[#allocation2 + $0x8] sm:$0xff]   ;;  %v1766_v29 = vsel %vm1733_vm4, %v1763_v48, %v1765_v6  ;;  %v7936_v42 = vld [vmem:[#allocation2 + $0x10] sm:$0xff]  }
 0x144   : > { %3969 = vmatpush1.bf16.msra.mxu1 %v6923_v24  ;;  %v2057_v0 = vor.u32 %v2056_v56, %v2053_v55  ;;  %v1448_v20 = vor.u32 %v1447_v63, %v1444_v54  ;;  %v2218_v37 = vrot.slane %v7929_v25, 3  ;;  %4519 = vmatprep.subr.bf16.mxu0 %v6943_v33  ;;  %v1454_v41 = vshll.u32 %v6944_v53, 16  ;;  %v6948_v56 = vld [vmem:[#allocation2 + $0x18] sm:$0xff]   ;;  %v6954_v15 = vld [vmem:[#allocation9 + $0x414] ss:$8 sps:$4 sm:$0xff]  }
 0x145   : > { %3970 = vmatprep.subr.bf16.mxu1 %v6932_v32  ;;  %v2066_v10 = vor.u32 %v2065_v5, %v2062_v4  ;;  %v2417_v45 = vshrl.u32 %v6945_v38, 16  ;;  %v2420_v46 = vshll.u32 %v6945_v38, 16  ;;  %v1453_v48 = vrot.slane %v1451_v40, 1  ;;  %v7955_v25 = vld [vmem:[#allocation2 + $0x20] sm:$0xff]  }
 0x146   : > { %v2058_v7 = vsel %vm1915_vm5, %v2048_v44, %v2057_v0  ;;  %v1449_v44 = vsel %vm1432_vm6, %v1440_v19, %v1448_v20  ;;  %v1460_v61 = vshrl.u32 %v6948_v56, 16  ;;  %v1463_v51 = vshll.u32 %v6948_v56, 16 }
 0x147   : > { %v2067_v17 = vsel %vm1915_vm5, %v2057_v0, %v2066_v10  ;;  %v2419_v54 = vrot.slane %v2417_v45, 3  ;;  %v2422_v55 = vrot.slane %v2420_v46, 4  ;;  %v6952_v10 = vld [vmem:[#allocation9 + $0x410] ss:$8 sps:$4 sm:$0xff]   ;;  %v1258_v40 = vrot.slane %v7955_v25, 1 }
 0x148   : > { %3971 = vmatpush1.bf16.msra.mxu1 %v6930_v23  ;;  %v1251_v23 = vrot.slane %v6937_v28, 1  ;;  %v1462_v4 = vrot.slane %v1460_v61, 1  ;;  %v1465_v5 = vrot.slane %v1463_v51, 2  ;;  %v6965_v46 = vld [vmem:[#allocation9 + $0x424] ss:$8 sps:$4 sm:$0xff]   ;;  %v2453_v61 = vshrl.u32 %v6967_v52, 16 }
 0x149   : > { %3900 = vmatmul.mubr.bf16.gmra.mrb[48].mxu1 %v6883_v58  ;;  %v1096_v58 = vor.u32 %v1094_v43, %v1092_v50  ;;  %v1456_v50 = vrot.slane %v1454_v41, 2  ;;  %v2423_v59 = vor.u32 %v2422_v55, %v2419_v54  ;;  %v6958_v41 = vld [vmem:[#allocation2 + $0x20] sm:$0xff]   ;;  %v2456_v51 = vshll.u32 %v6967_v52, 16 }
 0x14a   : > { %4286 = vmatmul.mubr.bf16.gmra.mrb[48].mxu0 %v1760_v12  ;;  %3909 = vmatprep.mubr.bf16.mxu1 %v1085_v27  ;;  %v6935_v12 = vld [vmem:[#allocation2] sm:$0xf8]   ;;  %v2413_v27 = vrot.slane %v2411_v14, 4  ;;  %v1466_v13 = vor.u32 %v1465_v5, %v1462_v4  ;;  %v2224_v56 = vrot.slane %v6958_v41, 3  ;;  %v6971_v4 = vld [vmem:[#allocation2 + $0x38] sm:$0xff]  }
 0x14b   : > { %4295 = vmatprep.mubr.bf16.mxu0 %v2049_v34  ;;  %v1101_v3 = vsel %vm969_vm3, %v1096_v58, %v1100_v31  ;;  %v2403_v18 = vshll.u32 %v6935_v12, 16  ;;  %v6939_v34 = vld [vmem:[#allocation2] sm:$0xf8]   ;;  %v1254_v31 = vrot.slane %v7936_v42, 1  ;;  %v1457_v49 = vor.u32 %v1456_v50, %v1453_v48  ;;  %v6966_v50 = vld [vmem:[#allocation2 + $0x30] sm:$0xff]  }
 0x14c   : > { %v2414_v32 = vor.u32 %v2413_v27, %v2410_v21  ;;  %v2217_v39 = vrot.slane %v6939_v34, 3  ;;  %v1256_v21 = vrot.slane %v7946_v9, 1  ;;  %v1487_v54 = vshrl.u32 %v6966_v50, 16 }
 0x14d   : > { %v2405_v26 = vrot.slane %v2403_v18, 4  ;;  %v1490_v55 = vshll.u32 %v6966_v50, 16 }
 0x14e   : > { %v2219_v58 = vsel %vm2216_vm9, %v2217_v39, %v2218_v37 }
 0x151   : > { %3910 = vmatmul.mubr.bf16.gmra.mrb[52].mxu1 %v6896_v60  ;;  %v2400_v60 = vshrl.u32 %v6935_v12, 16 }
 0x152   : > { %4296 = vmatmul.mubr.bf16.gmra.mrb[52].mxu0 %v1762_v35  ;;  %3919 = vmatprep.mubr.bf16.mxu1 %v1093_v57  ;;  %v1252_v35 = vrot.slane %v7927_v22, 1  ;;  %v6949_v57 = vld [vmem:[#allocation2 + $0x18] sm:$0xff]  }
 0x153   : > { %4305 = vmatprep.mubr.bf16.mxu0 %v2058_v7  ;;  %v2402_v24 = vrot.slane %v2400_v60, 3  ;;  %v2426_v0 = vshrl.u32 %v6949_v57, 16  ;;  %v2429_v2 = vshll.u32 %v6949_v57, 16  ;;  %v6955_v7 = vld [vmem:[#allocation2 + $0x20] sm:$0xff]   ;;  %v7950_v60 = vld [vmem:[#allocation2 + $0x18] sm:$0xff]   ;;  %v6961_v57 = vld [vmem:[#allocation2 + $0x28] sm:$0xff]  }
 0x154   : > { %v1253_v43 = vsel %vm1250_vm8, %v1251_v23, %v1252_v35  ;;  %v1255_v12 = vsel %vm1250_vm8, %v1252_v35, %v1254_v31  ;;  %v1469_v16 = vshrl.u32 %v6955_v7, 16  ;;  %v1472_v18 = vshll.u32 %v6955_v7, 16 }
 0x155   : > { %v2406_v30 = vor.u32 %v2405_v26, %v2402_v24  ;;  %v2428_v6 = vrot.slane %v2426_v0, 3  ;;  %v2431_v8 = vrot.slane %v2429_v2, 4  ;;  %v1257_v35 = vsel %vm1250_vm8, %v1254_v31, %v1256_v21 }
 0x156   : > { %v1471_v22 = vrot.slane %v1469_v16, 1  ;;  %v1474_v26 = vrot.slane %v1472_v18, 2  ;;  %v1492_v2 = vrot.slane %v1490_v55, 2  ;;  %v6976_v16 = vld [vmem:[#allocation9 + $0x434] ss:$8 sps:$4 sm:$0xff]  }
 0x157   : > { %v2415_v36 = vsel %vm2398_vm7, %v2406_v30, %v2414_v32  ;;  %v2432_v63 = vor.u32 %v2431_v8, %v2428_v6  ;;  %v1260_v6 = vrot.slane %v6961_v57, 1  ;;  %v2458_v8 = vrot.slane %v2456_v51, 4  ;;  %v6979_v57 = vld [vmem:[#allocation2 + $0x40] sm:$0xff]  }
 0x158   : > { %v1475_v30 = vor.u32 %v1474_v26, %v1471_v22  ;;  %v6969_v26 = vld [vmem:[#allocation2 + $0x30] sm:$0xff]  }
 0x159   : > { %3920 = vmatmul.mubr.bf16.gmra.mrb[56].mxu1 %v6909_v47  ;;  %v6941_v47 = vld [vmem:[#allocation9 + $0x400] ss:$8 sps:$4 sm:$0xff]   ;;  %v2433_v24 = vsel %vm2398_vm7, %v2423_v59, %v2432_v63 }
 0x15a   : > { %3929 = vmatprep.mubr.bf16.mxu1 %v1101_v3  ;;  %4306 = vmatmul.mubr.bf16.gmra.mrb[56].mxu0 %v1764_v1  ;;  %v1458_v1 = vsel %vm1432_vm6, %v1448_v20, %v1457_v49  ;;  %v2424_v3 = vsel %vm2398_vm7, %v2414_v32, %v2423_v59  ;;  %v2221_v20 = vsel %vm2216_vm9, %v2218_v37, %v2220_v62  ;;  %v6960_v32 = vld [vmem:[#allocation2 + $0x28] sm:$0xff]  }
 0x15b   : > { %4315 = vmatprep.mubr.bf16.mxu0 %v2067_v17  ;;  %v1467_v17 = vsel %vm1432_vm6, %v1457_v49, %v1466_v13  ;;  %v2447_v53 = vshll.u32 %v6960_v32, 16  ;;  %v1476_v37 = vsel %vm1432_vm6, %v1466_v13, %v1475_v30  ;;  %v7964_v59 = vld [vmem:[#allocation2 + $0x28] sm:$0xff]  }
 0x15c   : > { %v2226_v13 = vrot.slane %v7964_v59, 3 }
 0x15d   : > { %v2449_v48 = vrot.slane %v2447_v53, 4 }
 0x15e   : > { %v2227_v22 = vsel %vm2216_vm9, %v2224_v56, %v2226_v13 }
 0x161   : > { %3930 = vmatmul.mubr.bf16.gmra.mrb[60].mxu1 %v6922_v11  ;;  %v6956_v11 = vld [vmem:[#allocation2 + $0x20] sm:$0xff]  }
 0x162   : > { %3972 = vmatprep.mubr.bf16.mxu1 %v1449_v44  ;;  %4316 = vmatmul.mubr.bf16.gmra.mrb[60].mxu0 %v1766_v29  ;;  %v2435_v14 = vshrl.u32 %v6956_v11, 16  ;;  %v2438_v19 = vshll.u32 %v6956_v11, 16  ;;  %v6959_v44 = vld [vmem:[#allocation2 + $0x28] sm:$0xff]   ;;  %v2222_v29 = vrot.slane %v7950_v60, 3 }
 0x163   : > { %4358 = vmatprep.mubr.bf16.mxu0 %v2415_v36  ;;  %v1478_v34 = vshrl.u32 %v6959_v44, 16  ;;  %v1481_v23 = vshll.u32 %v6959_v44, 16  ;;  %v2444_v36 = vshrl.u32 %v6960_v32, 16  ;;  %v7974_v44 = vld [vmem:[#allocation2 + $0x38] sm:$0xff]  }
 0x164   : > { %v2437_v27 = vrot.slane %v2435_v14, 3  ;;  %v2440_v28 = vrot.slane %v2438_v19, 4  ;;  %v2223_v45 = vsel %vm2216_vm9, %v2220_v62, %v2222_v29  ;;  %v2225_v5 = vsel %vm2216_vm9, %v2222_v29, %v2224_v56  ;;  %v6978_v29 = vld [vmem:[#allocation2 + $0x40] sm:$0xff]  }
 0x165   : > { %v1480_v38 = vrot.slane %v1478_v34, 1  ;;  %v1483_v39 = vrot.slane %v1481_v23, 2  ;;  %v2446_v42 = vrot.slane %v2444_v36, 3  ;;  %v2455_v62 = vrot.slane %v2453_v61, 3 }
 0x166   : > { %v2441_v33 = vor.u32 %v2440_v28, %v2437_v27  ;;  %v2465_v14 = vshll.u32 %v6971_v4, 16  ;;  %v2228_v23 = vrot.slane %v6969_v26, 3  ;;  %v2471_v53 = vshrl.u32 %v6978_v29, 16 }
 0x167   : > { %v1484_v31 = vor.u32 %v1483_v39, %v1480_v38  ;;  %v2450_v49 = vor.u32 %v2449_v48, %v2446_v42  ;;  %v2459_v60 = vor.u32 %v2458_v8, %v2455_v62  ;;  %v1264_v39 = vrot.slane %v7974_v44, 1  ;;  %v6982_v48 = vld [vmem:[#allocation2 + $0x48] sm:$0xff]  }
 0x168   : > { %v2467_v25 = vrot.slane %v2465_v14, 4  ;;  %v2483_v59 = vshll.u32 %v6982_v48, 16  ;;  %v1266_v62 = vrot.slane %v6979_v57, 1  ;;  %v6992_v14 = vld [vmem:[#allocation2 + $0x58] sm:$0xff]  }
 0x169   : > { %3973 = vmatmul.mubr.bf16.vlgmr.msra.gmra.mrb[0].mxu1 %v1253_v43  ;;  %v6963_v43 = vld [vmem:[#allocation9 + $0x420] ss:$8 sps:$4 sm:$0xff]   ;;  %v1485_v0 = vsel %vm1432_vm6, %v1475_v30, %v1484_v31  ;;  %v2451_v7 = vsel %vm2398_vm7, %v2441_v33, %v2450_v49  ;;  %v2460_v27 = vsel %vm2398_vm7, %v2450_v49, %v2459_v60  ;;  %v2480_v49 = vshrl.u32 %v6982_v48, 16 }
 0x16a   : > { %4359 = vmatmul.mubr.bf16.vlgmr.msra.gmra.mrb[0].mxu0 %v2219_v58  ;;  %3982 = vmatprep.mubr.bf16.mxu1 %v1458_v1  ;;  %v1259_v58 = vsel %vm1250_vm8, %v1256_v21, %v1258_v40  ;;  %v1489_v1 = vrot.slane %v1487_v54, 1  ;;  %v6977_v21 = vld [vmem:[#allocation2 + $0x40] sm:$0xff]  }
 0x16b   : > { %4520 = vmatpush1.bf16.msra.mxu0 %v6941_v47  ;;  %4368 = vmatprep.mubr.bf16.mxu0 %v2424_v3  ;;  %v2442_v47 = vsel %vm2398_vm7, %v2432_v63, %v2441_v33  ;;  %v6970_v3 = vld [vmem:[#allocation2 + $0x38] sm:$0xff]   ;;  %v2462_v63 = vshrl.u32 %v6971_v4, 16  ;;  %v1505_v32 = vshrl.u32 %v6977_v21, 16  ;;  %v1508_v34 = vshll.u32 %v6977_v21, 16  ;;  %v6989_v4 = vld [vmem:[#allocation2 + $0x50] sm:$0xff]  }
 0x16c   : > { %4521 = vmatprep.subr.bf16.mxu0 %v6954_v15  ;;  %v1496_v9 = vshrl.u32 %v6970_v3, 16  ;;  %v1499_v11 = vshll.u32 %v6970_v3, 16  ;;  %v6968_v15 = vld [vmem:[#allocation2 + $0x30] sm:$0xff]   ;;  %v6980_v3 = vld [vmem:[#allocation2 + $0x40] sm:$0xff]   ;;  %v2482_v8 = vrot.slane %v2480_v49, 3 }
 0x16d   : > { %v2464_v28 = vrot.slane %v2462_v63, 3  ;;  %v1507_v41 = vrot.slane %v1505_v32, 1  ;;  %v1510_v42 = vrot.slane %v1508_v34, 2  ;;  %v2232_v63 = vrot.slane %v6980_v3, 3  ;;  %v6999_v34 = vld [vmem:[#allocation2 + $0x60] sm:$0xff]  }
 0x16e   : > { %v1498_v18 = vrot.slane %v1496_v9, 1  ;;  %v2485_v9 = vrot.slane %v2483_v59, 4  ;;  %v1535_v32 = vshll.u32 %v6992_v14, 16 }
 0x16f   : > { %4522 = vmatpush1.bf16.msra.mxu0 %v6952_v10  ;;  %v1493_v10 = vor.u32 %v1492_v2, %v1489_v1  ;;  %v2468_v36 = vor.u32 %v2467_v25, %v2464_v28  ;;  %v1511_v54 = vor.u32 %v1510_v42, %v1507_v41  ;;  %v6988_v2 = vld [vmem:[#allocation2 + $0x50] sm:$0xff]   ;;  %v6993_v28 = vld [vmem:[#allocation2 + $0x58] sm:$0xff]  }
 0x170   : > { %4523 = vmatprep.subr.bf16.mxu0 %v6965_v46  ;;  %v2229_v46 = vsel %vm2216_vm9, %v2226_v13, %v2228_v23  ;;  %v1526_v13 = vshll.u32 %v6988_v2, 16  ;;  %v7009_v41 = vld [vmem:[#allocation9 + $0x464] ss:$8 sps:$4 sm:$0xff]  }
 0x171   : > { %3983 = vmatmul.mubr.bf16.gmra.mrb[4].mxu1 %v1255_v12  ;;  %v6974_v12 = vld [vmem:[#allocation9 + $0x430] ss:$8 sps:$4 sm:$0xff]   ;;  %v1494_v19 = vsel %vm1432_vm6, %v1484_v31, %v1493_v10  ;;  %v2469_v50 = vsel %vm2398_vm7, %v2459_v60, %v2468_v36  ;;  %v2473_v31 = vrot.slane %v2471_v53, 3  ;;  %v2486_v60 = vor.u32 %v2485_v9, %v2482_v8  ;;  %v7007_v53 = vld [vmem:[#allocation9 + $0x460] ss:$8 sps:$4 sm:$0xff]  }
 0x172   : > { %3992 = vmatprep.mubr.bf16.mxu1 %v1467_v17  ;;  %4369 = vmatmul.mubr.bf16.gmra.mrb[4].mxu0 %v2221_v20  ;;  %v1261_v17 = vsel %vm1250_vm8, %v1258_v40, %v1260_v6  ;;  %v1501_v20 = vrot.slane %v1499_v11, 2  ;;  %v6973_v40 = vld [vmem:[#allocation2 + $0x38] sm:$0xff]   ;;  %v1528_v21 = vrot.slane %v1526_v13, 2 }
 0x173   : > { %4378 = vmatprep.mubr.bf16.mxu0 %v2433_v24  ;;  %4524 = vmatpush1.bf16.msra.mxu0 %v6963_v43  ;;  %v1262_v24 = vrot.slane %v6968_v15, 1  ;;  %v6985_v43 = vld [vmem:[#allocation9 + $0x440] ss:$8 sps:$4 sm:$0xff]   ;;  %v2230_v56 = vrot.slane %v6973_v40, 3  ;;  %v2501_v40 = vshll.u32 %v6993_v28, 16 }
 0x174   : > { %4525 = vmatprep.subr.bf16.mxu0 %v6976_v16  ;;  %v1502_v30 = vor.u32 %v1501_v20, %v1498_v18  ;;  %v7985_v15 = vld [vmem:[#allocation2 + $0x48] sm:$0xff]   ;;  %v2489_v16 = vshrl.u32 %v6989_v4, 16  ;;  %v2492_v18 = vshll.u32 %v6989_v4, 16  ;;  %v8006_v4 = vld [vmem:[#allocation2 + $0x58] sm:$0xff]  }
 0x175   : > { %v1263_v33 = vsel %vm1250_vm8, %v1260_v6, %v1262_v24  ;;  %v1265_v61 = vsel %vm1250_vm8, %v1262_v24, %v1264_v39  ;;  %v6996_v6 = vld [vmem:[#allocation9 + $0x450] ss:$8 sps:$4 sm:$0xff]   ;;  %v7990_v24 = vld [vmem:[#allocation2 + $0x48] sm:$0xff]   ;;  %v2233_v26 = vsel %vm2216_vm9, %v2230_v56, %v2232_v63 }
 0x176   : > { %v1503_v38 = vsel %vm1432_vm6, %v1493_v10, %v1502_v30  ;;  %v6998_v10 = vld [vmem:[#allocation9 + $0x454] ss:$8 sps:$4 sm:$0xff]   ;;  %v2494_v44 = vrot.slane %v2492_v18, 4 }
 0x177   : > { %4526 = vmatpush1.bf16.msra.mxu0 %v6974_v12  ;;  %v1523_v12 = vshrl.u32 %v6988_v2, 16 }
 0x179   : > { %3993 = vmatmul.mubr.bf16.gmra.mrb[8].mxu1 %v1257_v35  ;;  %v6981_v35 = vld [vmem:[#allocation2 + $0x48] sm:$0xff]   ;;  %v1525_v20 = vrot.slane %v1523_v12, 1 }
 0x17a   : > { %4002 = vmatprep.mubr.bf16.mxu1 %v1476_v37  ;;  %4379 = vmatmul.mubr.bf16.gmra.mrb[8].mxu0 %v2223_v45  ;;  %v2474_v37 = vshll.u32 %v6978_v29, 16  ;;  %v6987_v45 = vld [vmem:[#allocation9 + $0x444] ss:$8 sps:$4 sm:$0xff]   ;;  %v1517_v55 = vshll.u32 %v6981_v35, 16  ;;  %v1532_v29 = vshrl.u32 %v6992_v14, 16  ;;  %v8013_v12 = vld [vmem:[#allocation2 + $0x68] sm:$0xff]  }
 0x17b   : > { %4388 = vmatprep.mubr.bf16.mxu0 %v2442_v47  ;;  %v1514_v47 = vshrl.u32 %v6981_v35, 16  ;;  %4527 = vmatprep.subr.bf16.mxu0 %v6987_v45  ;;  %v6990_v35 = vld [vmem:[#allocation2 + $0x50] sm:$0xff]   ;;  %v7000_v45 = vld [vmem:[#allocation2 + $0x60] sm:$0xff]  }
 0x17c   : > { %v2476_v52 = vrot.slane %v2474_v37, 4  ;;  %4528 = vmatpush1.bf16.msra.mxu0 %v6985_v43  ;;  %v1519_v1 = vrot.slane %v1517_v55, 2  ;;  %v1537_v43 = vrot.slane %v1535_v32, 2  ;;  %v2503_v55 = vrot.slane %v2501_v40, 4  ;;  %v7020_v14 = vld [vmem:[#allocation9 + $0x474] ss:$8 sps:$4 sm:$0xff]  }
 0x17d   : > { %4529 = vmatprep.subr.bf16.mxu0 %v6998_v10  ;;  %v2510_v49 = vshll.u32 %v7000_v45, 16  ;;  %v8028_v40 = vld [vmem:[#allocation2 + $0x70] sm:$0xff]  }
 0x17e   : > { %v2477_v51 = vor.u32 %v2476_v52, %v2473_v31  ;;  %v8000_v31 = vld [vmem:[#allocation2 + $0x58] sm:$0xff]  }
 0x17f   : > { %v1272_v3 = vrot.slane %v8000_v31, 1  ;;  %v2512_v9 = vrot.slane %v2510_v49, 4 }
 0x180   : > { %4530 = vmatpush1.bf16.msra.mxu0 %v6996_v6  ;;  %v2487_v25 = vsel %vm2398_vm7, %v2477_v51, %v2486_v60 }
 0x181   : > { %4003 = vmatmul.mubr.bf16.gmra.mrb[12].mxu1 %v1259_v58  ;;  %v1516_v58 = vrot.slane %v1514_v47, 1  ;;  %v1544_v47 = vshll.u32 %v6999_v34, 16  ;;  %4531 = vmatprep.subr.bf16.mxu0 %v7009_v41  ;;  %v8030_v41 = vld [vmem:[#allocation2 + $0x70] sm:$0xff]  }
 0x182   : > { %4012 = vmatprep.mubr.bf16.mxu1 %v1485_v0  ;;  %4389 = vmatmul.mubr.bf16.gmra.mrb[12].mxu0 %v2225_v5  ;;  %v1512_v0 = vsel %vm1432_vm6, %v1502_v30, %v1511_v54  ;;  %v2231_v5 = vsel %vm2216_vm9, %v2228_v23, %v2230_v56  ;;  %v1529_v30 = vor.u32 %v1528_v21, %v1525_v20  ;;  %v2234_v23 = vrot.slane %v7990_v24, 3  ;;  %v7011_v21 = vld [vmem:[#allocation2 + $0x70] sm:$0xff]  }
 0x183   : > { %4398 = vmatprep.mubr.bf16.mxu0 %v2451_v7  ;;  %v2478_v7 = vsel %vm2398_vm7, %v2468_v36, %v2477_v51  ;;  %v1520_v11 = vor.u32 %v1519_v1, %v1516_v58  ;;  %v2498_v36 = vshrl.u32 %v6993_v28, 16  ;;  %v2507_v58 = vshrl.u32 %v7000_v45, 16  ;;  %v7003_v51 = vld [vmem:[#allocation2 + $0x68] sm:$0xff]  }
 0x184   : > { %v2235_v48 = vsel %vm2216_vm9, %v2232_v63, %v2234_v23  ;;  %4532 = vmatpush1.bf16.msra.mxu0 %v7007_v53  ;;  %v1550_v10 = vshrl.u32 %v7003_v51, 16  ;;  %v2238_v20 = vrot.slane %v8006_v4, 3  ;;  %v2525_v53 = vshrl.u32 %v7011_v21, 16  ;;  %v7022_v4 = vld [vmem:[#allocation2 + $0x80] ss:$0 sps:$4 sm:$0xff]  }
 0x185   : > { %v1530_v42 = vsel %vm1432_vm6, %v1520_v11, %v1529_v30  ;;  %4533 = vmatprep.subr.bf16.mxu0 %v7020_v14  ;;  %v7016_v14 = vld [vmem:[#allocation2 + $0x78] sm:$0xff]  }
 0x189   : > { %4013 = vmatmul.mubr.bf16.gmra.mrb[16].mxu1 %v1261_v17  ;;  %v1267_v17 = vsel %vm1250_vm8, %v1264_v39, %v1266_v62  ;;  %v1534_v39 = vrot.slane %v1532_v29, 1 }
 0x18a   : > { %4022 = vmatprep.mubr.bf16.mxu1 %v1494_v19  ;;  %4399 = vmatmul.mubr.bf16.gmra.mrb[16].mxu0 %v2227_v22  ;;  %v1521_v19 = vsel %vm1432_vm6, %v1511_v54, %v1520_v11  ;;  %v1268_v22 = vrot.slane %v7985_v15, 1  ;;  %v2500_v54 = vrot.slane %v2498_v36, 3  ;;  %v1553_v11 = vshll.u32 %v7003_v51, 16 }
 0x18b   : > { %4408 = vmatprep.mubr.bf16.mxu0 %v2460_v27  ;;  %v2491_v27 = vrot.slane %v2489_v16, 3  ;;  %v1538_v57 = vor.u32 %v1537_v43, %v1534_v39  ;;  %v8018_v16 = vld [vmem:[#allocation2 + $0x68] sm:$0xff]  }
 0x18c   : > { %v1269_v37 = vsel %vm1250_vm8, %v1266_v62, %v1268_v22  ;;  %v2504_v2 = vor.u32 %v2503_v55, %v2500_v54  ;;  %v8011_v62 = vld [vmem:[#allocation2 + $0x60] sm:$0xff]   ;;  %v1555_v29 = vrot.slane %v1553_v11, 2  ;;  %v2242_v32 = vrot.slane %v8018_v16, 3  ;;  %v7041_v16 = vld [vmem:[#allocation10 + $0x48] sm:$0xff]  }
 0x18d   : > { %v1539_v6 = vsel %vm1432_vm6, %v1529_v30, %v1538_v57  ;;  %v2240_v28 = vrot.slane %v8011_v62, 3  ;;  %v1276_v30 = vrot.slane %v8013_v12, 1  ;;  %v1278_v55 = vrot.slane %v8028_v40, 1 }
 0x18e   : > { %v2543_v11 = vshrl.u32 %v7022_v4, 16  ;;  %v7373_v40 = vmov 0  }
 0x191   : > { %4023 = vmatmul.mubr.bf16.gmra.mrb[20].mxu1 %v1263_v33  ;;  %v7995_v33 = vld [vmem:[#allocation2 + $0x50] sm:$0xff]  }
 0x192   : > { %4032 = vmatprep.mubr.bf16.mxu1 %v1503_v38  ;;  %4409 = vmatmul.mubr.bf16.gmra.mrb[20].mxu0 %v2229_v46  ;;  %v2495_v38 = vor.u32 %v2494_v44, %v2491_v27  ;;  %v1541_v46 = vshrl.u32 %v6999_v34, 16  ;;  %v2236_v56 = vrot.slane %v7995_v33, 3  ;;  %v1552_v44 = vrot.slane %v1550_v10, 1 }
 0x193   : > { %4418 = vmatprep.mubr.bf16.mxu0 %v2469_v50  ;;  %v1270_v50 = vrot.slane %v6990_v35, 1 }
 0x194   : > { %v2496_v52 = vsel %vm2398_vm7, %v2486_v60, %v2495_v38  ;;  %v1543_v59 = vrot.slane %v1541_v46, 1  ;;  %v2237_v13 = vsel %vm2216_vm9, %v2234_v23, %v2236_v56  ;;  %v7018_v60 = vld [vmem:[#allocation9 + $0x470] ss:$8 sps:$4 sm:$0xff]   ;;  %v2505_v18 = vsel %vm2398_vm7, %v2495_v38, %v2504_v2 }
 0x195   : > { %v1271_v1 = vsel %vm1250_vm8, %v1268_v22, %v1270_v50  ;;  %v7014_v22 = vld [vmem:[#allocation2 + $0x78] sm:$0xff]   ;;  %4534 = vmatpush1.bf16.msra.mxu0 %v7018_v60  ;;  %v2239_v45 = vsel %vm2216_vm9, %v2236_v56, %v2238_v20 }
 0x196   : > { %v1568_v38 = vshrl.u32 %v7014_v22, 16  ;;  %v1571_v39 = vshll.u32 %v7014_v22, 16  ;;  %v7017_v22 = vld [vmem:[#allocation2 + $0x78] sm:$0xff]  }
 0x197   : > { %v2246_v12 = vrot.slane %v7017_v22, 3 }
 0x198   : > { %v1570_v49 = vrot.slane %v1568_v38, 1 }
 0x199   : > { %4033 = vmatmul.mubr.bf16.gmra.mrb[24].mxu1 %v1265_v61  ;;  %v1546_v61 = vrot.slane %v1544_v47, 2  ;;  %v1556_v47 = vor.u32 %v1555_v29, %v1552_v44 }
 0x19a   : > { %4042 = vmatprep.mubr.bf16.mxu1 %v1512_v0  ;;  %4419 = vmatmul.mubr.bf16.gmra.mrb[24].mxu0 %v2231_v5  ;;  %v7004_v0 = vld [vmem:[#allocation2 + $0x68] sm:$0xff]   ;;  %v8008_v5 = vld [vmem:[#allocation2 + $0x60] sm:$0xff]  }
 0x19b   : > { %4428 = vmatprep.mubr.bf16.mxu0 %v2478_v7  ;;  %v2509_v7 = vrot.slane %v2507_v58, 3  ;;  %v1547_v8 = vor.u32 %v1546_v61, %v1543_v59  ;;  %v2516_v15 = vshrl.u32 %v7004_v0, 16  ;;  %v2519_v63 = vshll.u32 %v7004_v0, 16 }
 0x19c   : > { %v1274_v27 = vrot.slane %v8008_v5, 1  ;;  %v2527_v58 = vrot.slane %v2525_v53, 3  ;;  %v1573_v59 = vrot.slane %v1571_v39, 2  ;;  %v2241_v0 = vsel %vm2216_vm9, %v2238_v20, %v2240_v28 }
 0x19d   : > { %v1548_v24 = vsel %vm1432_vm6, %v1538_v57, %v1547_v8  ;;  %v2518_v34 = vrot.slane %v2516_v15, 3  ;;  %v2521_v23 = vrot.slane %v2519_v63, 4  ;;  %v2244_v57 = vrot.slane %v8030_v41, 3  ;;  %v7037_v15 = vld [vmem:[#allocation10 + $0x40] sm:$0xff]   ;;  %v7025_v41 = vld [vmem:[#allocation2 + $0x4] sm:$0xff]  }
 0x19e   : > { %v1557_v33 = vsel %vm1432_vm6, %v1547_v8, %v1556_v47  ;;  %v7038_v63 = vld [vmem:[#allocation10] sm:$0xff]   ;;  %6147 = vmatprep.subr.bf16.mxu1 %v7037_v15 }
 0x19f   : > { %v2522_v54 = vor.u32 %v2521_v23, %v2518_v34  ;;  %6148 = vmatpush3.bf16.msra.mxu1 %v7038_v63  ;;  %v2245_v62 = vsel %vm2216_vm9, %v2242_v32, %v2244_v57  ;;  %v7042_v23 = vld [vmem:[#allocation10 + $0x8] sm:$0xff]  }
 0x1a0   : > { %6149 = vmatprep.subr.bf16.mxu1 %v7041_v16 }
 0x1a1   : > { %4043 = vmatmul.mubr.bf16.gmra.mrb[28].mxu1 %v1267_v17  ;;  %v7010_v17 = vld [vmem:[#allocation2 + $0x70] sm:$0xff]  }
 0x1a2   : > { %4052 = vmatprep.mubr.bf16.mxu1 %v1521_v19  ;;  %4429 = vmatmul.mubr.bf16.gmra.mrb[28].mxu0 %v2233_v26  ;;  %v1273_v19 = vsel %vm1250_vm8, %v1270_v50, %v1272_v3  ;;  %v2513_v26 = vor.u32 %v2512_v9, %v2509_v7  ;;  %v1559_v35 = vshrl.u32 %v7010_v17, 16  ;;  %v1562_v36 = vshll.u32 %v7010_v17, 16 }
 0x1a3   : > { %4438 = vmatprep.mubr.bf16.mxu0 %v2487_v25  ;;  %v7015_v25 = vld [vmem:[#allocation2 + $0x78] sm:$0xff]   ;;  %v2243_v17 = vsel %vm2216_vm9, %v2240_v28, %v2242_v32  ;;  %v2247_v32 = vsel %vm2216_vm9, %v2244_v57, %v2246_v12  ;;  %6150 = vmatpush3.bf16.msra.mxu1 %v7042_v23 }
 0x1a4   : > { %v2537_v43 = vshll.u32 %v7015_v25, 16  ;;  %v2514_v46 = vsel %vm2398_vm7, %v2504_v2, %v2513_v26  ;;  %v1561_v50 = vrot.slane %v1559_v35, 1  ;;  %v1564_v31 = vrot.slane %v1562_v36, 2  ;;  %v7024_v35 = vld [vmem:[#allocation2 + $0x80] ss:$0 sps:$4 sm:$0x77]  }
 0x1a5   : > { %v7031_v57 = vld [vmem:[#allocation2 + $0x34] sm:$0xff]  }
 0x1a6   : > { %v2539_v51 = vrot.slane %v2537_v43, 4  ;;  %v1565_v5 = vor.u32 %v1564_v31, %v1561_v50  ;;  %v7046_v43 = vld [vmem:[#allocation10 + $0x10] sm:$0xff]   ;;  %v7029_v31 = vld [vmem:[#allocation2 + $0x24] sm:$0xff]  }
 0x1a7   : > { %v7028_v50 = vld [vmem:[#allocation2 + $0x1c] sm:$0xff]  }
 0x1a8   : > { %v1566_v8 = vsel %vm1432_vm6, %v1556_v47, %v1565_v5  ;;  %v7047_v47 = vld [vmem:[#allocation10 + $0x58] sm:$0xff]  }
 0x1a9   : > { %4053 = vmatmul.mubr.bf16.gmra.mrb[32].mxu1 %v1269_v37  ;;  %v2528_v37 = vshll.u32 %v7011_v21, 16 }
 0x1aa   : > { %4062 = vmatprep.mubr.bf16.mxu1 %v1530_v42  ;;  %4439 = vmatmul.mubr.bf16.gmra.mrb[32].mxu0 %v2235_v48  ;;  %v2534_v42 = vshrl.u32 %v7015_v25, 16  ;;  %v7021_v48 = vld [vmem:[#allocation2 + $0x80] ss:$0 sps:$4 sm:$0x33]  }
 0x1ab   : > { %4448 = vmatprep.mubr.bf16.mxu0 %v2496_v52  ;;  %v1275_v52 = vsel %vm1250_vm8, %v1272_v3, %v1274_v27  ;;  %v2530_v56 = vrot.slane %v2528_v37, 4  ;;  %v1580_v2 = vshll.u32 %v7021_v48, 16  ;;  %v2523_v3 = vsel %vm2398_vm7, %v2513_v26, %v2522_v54 }
 0x1ac   : > { %v2536_v61 = vrot.slane %v2534_v42, 3  ;;  %v1280_v26 = vrot.slane %v7016_v14, 1  ;;  %v2248_v37 = vrot.slane %v7024_v35, 3  ;;  %v7045_v42 = vld [vmem:[#allocation10 + $0x50] sm:$0xff]  }
 0x1ad   : > { %v2531_v7 = vor.u32 %v2530_v56, %v2527_v58  ;;  %v1582_v10 = vrot.slane %v1580_v2, 2  ;;  %6151 = vmatprep.subr.bf16.mxu1 %v7045_v42  ;;  %v7052_v58 = vld [vmem:[#allocation10 + $0x28] sm:$0xff]   ;;  %v7032_v56 = vld [vmem:[#allocation2 + $0x3c] sm:$0xff]   ;;  %v7056_v2 = vld [vmem:[#allocation10 + $0x38] sm:$0xff]  }
 0x1ae   : > { %v2540_v20 = vor.u32 %v2539_v51, %v2536_v61  ;;  %v1281_v44 = vsel %vm1250_vm8, %v1278_v55, %v1280_v26  ;;  %v2249_v39 = vsel %vm2216_vm9, %v2246_v12, %v2248_v37  ;;  %6152 = vmatpush3.bf16.msra.mxu1 %v7046_v43  ;;  %v7054_v61 = vld [vmem:[#allocation10 + $0x30] sm:$0xff]   ;;  %v7034_v51 = vld [vmem:[#allocation2 + $0x4c] sm:$0xff]  }
 0x1af   : > { %v2532_v60 = vsel %vm2398_vm7, %v2522_v54, %v2531_v7  ;;  %6153 = vmatprep.subr.bf16.mxu1 %v7047_v47  ;;  %v7050_v54 = vld [vmem:[#allocation10 + $0x20] sm:$0xff]  }
 0x1b1   : > { %4063 = vmatmul.mubr.bf16.gmra.mrb[36].mxu1 %v1271_v1  ;;  %v1577_v1 = vshrl.u32 %v7021_v48, 16  ;;  %v7048_v48 = vld [vmem:[#allocation10 + $0x18] sm:$0xff]  }
 0x1b2   : > { %4072 = vmatprep.mubr.bf16.mxu1 %v1539_v6  ;;  %4449 = vmatmul.mubr.bf16.gmra.mrb[36].mxu0 %v2237_v13  ;;  %v1277_v6 = vsel %vm1250_vm8, %v1274_v27, %v1276_v30  ;;  %v2546_v13 = vshll.u32 %v7022_v4, 16  ;;  %v2545_v27 = vrot.slane %v2543_v11, 3 }
 0x1b3   : > { %4458 = vmatprep.mubr.bf16.mxu0 %v2505_v18  ;;  %v1579_v9 = vrot.slane %v1577_v1, 1  ;;  %v1574_v18 = vor.u32 %v1573_v59, %v1570_v49  ;;  %6154 = vmatpush3.bf16.msra.mxu1 %v7048_v48  ;;  %v7033_v49 = vld [vmem:[#allocation2 + $0x44] sm:$0xff]   ;;  %v7053_v59 = vld [vmem:[#allocation10 + $0x70] sm:$0xff]  }
 0x1b4   : > { %v2548_v28 = vrot.slane %v2546_v13, 4  ;;  %v7055_v1 = vld [vmem:[#allocation10 + $0x78] sm:$0xff]  }
 0x1b5   : > { %v1575_v21 = vsel %vm1432_vm6, %v1565_v5, %v1574_v18  ;;  %v1583_v25 = vor.u32 %v1582_v10, %v1579_v9  ;;  %v7039_v13 = vld [vmem:[#allocation2 + $0x64] sm:$0xff]  }
 0x1b6   : > { %v2549_v29 = vor.u32 %v2548_v28, %v2545_v27  ;;  %v7044_v28 = vld [vmem:[#allocation2 + $0x7c] sm:$0xff]  }
 0x1b7   : > { %v1584_v34 = vsel %vm1432_vm6, %v1574_v18, %v1583_v25  ;;  %v7040_v18 = vld [vmem:[#allocation2 + $0x6c] sm:$0xff]  }
 0x1b8   : > { %v2550_v36 = vsel %vm2398_vm7, %v2540_v20, %v2549_v29 }
 0x1b9   : > { %4073 = vmatmul.mubr.bf16.gmra.mrb[40].mxu1 %v1273_v19  ;;  %v1279_v19 = vsel %vm1250_vm8, %v1276_v30, %v1278_v55  ;;  %v7023_v30 = vld [vmem:[#allocation2 + $0x80] ss:$0 sps:$4 sm:$0x11]   ;;  %v7030_v55 = vld [vmem:[#allocation2 + $0x2c] sm:$0xff]  }
 0x1ba   : > { %4082 = vmatprep.mubr.bf16.mxu1 %v1548_v24  ;;  %4459 = vmatmul.mubr.bf16.gmra.mrb[40].mxu0 %v2239_v45  ;;  %v2541_v24 = vsel %vm2398_vm7, %v2531_v7, %v2540_v20  ;;  %v1282_v53 = vrot.slane %v7023_v30, 1  ;;  %v7026_v45 = vld [vmem:[#allocation2 + $0xc] sm:$0xff]   ;;  %v7036_v7 = vld [vmem:[#allocation2 + $0x5c] sm:$0xff]  }
 0x1bb   : > { %4468 = vmatprep.mubr.bf16.mxu0 %v2514_v46  ;;  %v7027_v46 = vld [vmem:[#allocation2 + $0x14] sm:$0xff]  }
 0x1bc   : > { %v1283_v38 = vsel %vm1250_vm8, %v1280_v26, %v1282_v53 }
 0x1c1   : > { %4083 = vmatmul.mubr.bf16.gmra.mrb[44].mxu1 %v1275_v52  ;;  %v7049_v52 = vld [vmem:[#allocation10 + $0x60] sm:$0xff]  }
 0x1c2   : > { %4092 = vmatprep.mubr.bf16.mxu1 %v1557_v33  ;;  %4469 = vmatmul.mubr.bf16.gmra.mrb[44].mxu0 %v2241_v0  ;;  %v7051_v33 = vld [vmem:[#allocation10 + $0x68] sm:$0xff]  }
 0x1c3   : > { %4478 = vmatprep.mubr.bf16.mxu0 %v2523_v3  ;;  %6155 = vmatprep.subr.bf16.mxu1 %v7049_v52  ;;  %v7035_v0 = vld [vmem:[#allocation2 + $0x54] sm:$0xff]  }
 0x1c4   : > { %6156 = vmatpush3.bf16.msra.mxu1 %v7050_v54 }
 0x1c5   : > { %6157 = vmatprep.subr.bf16.mxu1 %v7051_v33 }
 0x1c8   : > { %6158 = vmatpush3.bf16.msra.mxu1 %v7052_v58 }
 0x1c9   : > { %4093 = vmatmul.mubr.bf16.gmra.mrb[48].mxu1 %v1277_v6  ;;  %6159 = vmatprep.subr.bf16.mxu1 %v7053_v59 }
 0x1ca   : > { %4102 = vmatprep.mubr.bf16.mxu1 %v1566_v8  ;;  %4479 = vmatmul.mubr.bf16.gmra.mrb[48].mxu0 %v2243_v17 }
 0x1cb   : > { %4488 = vmatprep.mubr.bf16.mxu0 %v2532_v60 }
 0x1cc   : > { %6160 = vmatpush3.bf16.msra.mxu1 %v7054_v61 }
 0x1cd   : > { %6161 = vmatprep.subr.bf16.mxu1 %v7055_v1 }
 0x1d0   : > { %6162 = vmatpush3.bf16.msra.mxu1 %v7056_v2  ;;  %v3017_v2 = vlaneseq }
 0x1d1   : > { %4103 = vmatmul.mubr.bf16.gmra.mrb[52].mxu1 %v1279_v19 }
 0x1d2   : > { %4112 = vmatprep.mubr.bf16.mxu1 %v1575_v21  ;;  %4489 = vmatmul.mubr.bf16.gmra.mrb[52].mxu0 %v2245_v62  ;;  %v7043_v62 = vld [vmem:[#allocation2 + $0x74] sm:$0xff]  }
 0x1d3   : > { %4498 = vmatprep.mubr.bf16.mxu0 %v2541_v24 }
 0x1d9   : > { %4113 = vmatmul.mubr.bf16.gmra.mrb[56].mxu1 %v1281_v44 }
 0x1da   : > { %4122 = vmatprep.mubr.bf16.mxu1 %v1584_v34  ;;  %4499 = vmatmul.mubr.bf16.gmra.mrb[56].mxu0 %v2247_v32 }
 0x1db   : > { %4508 = vmatprep.mubr.bf16.mxu0 %v2550_v36 }
 0x1e1   : > { %4123 = vmatmul.mubr.bf16.gmra.mrb[60].mxu1 %v1283_v38 }
 0x1e2   : > { %4509 = vmatmul.mubr.bf16.gmra.mrb[60].mxu0 %v2249_v39 }
 0x1e3   : > { %4551 = vmatprep.mubr.bf16.mxu0 %v7373_v40 }
 0x1ea   : > { %4552 = vmatmul.mubr.bf16.vlgmr.msra.gmra.mrb[0].mxu0 %v7025_v41 }
 0x1eb   : > { %4561 = vmatprep.mubr.bf16.mxu0 %v7373_v40 }
 0x1f2   : > { %4562 = vmatmul.mubr.bf16.gmra.mrb[4].mxu0 %v7026_v45 }
 0x1f3   : > { %4571 = vmatprep.mubr.bf16.mxu0 %v7373_v40 }
 0x1fa   : > { %4572 = vmatmul.mubr.bf16.gmra.mrb[8].mxu0 %v7027_v46 }
 0x1fb   : > { %4581 = vmatprep.mubr.bf16.mxu0 %v7373_v40 }
 0x202   : > { %4582 = vmatmul.mubr.bf16.gmra.mrb[12].mxu0 %v7028_v50 }
 0x203   : > { %4591 = vmatprep.mubr.bf16.mxu0 %v7373_v40 }
 0x20a   : > { %4592 = vmatmul.mubr.bf16.gmra.mrb[16].mxu0 %v7029_v31 }
 0x20b   : > { %4601 = vmatprep.mubr.bf16.mxu0 %v7373_v40 }
 0x212   : > { %4602 = vmatmul.mubr.bf16.gmra.mrb[20].mxu0 %v7030_v55 }
 0x213   : > { %4611 = vmatprep.mubr.bf16.mxu0 %v7373_v40 }
 0x21a   : > { %4612 = vmatmul.mubr.bf16.gmra.mrb[24].mxu0 %v7031_v57 }
 0x21b   : > { %4621 = vmatprep.mubr.bf16.mxu0 %v7373_v40 }
 0x222   : > { %4622 = vmatmul.mubr.bf16.gmra.mrb[28].mxu0 %v7032_v56 }
 0x223   : > { %4631 = vmatprep.mubr.bf16.mxu0 %v7373_v40 }
 0x22a   : > { %4632 = vmatmul.mubr.bf16.gmra.mrb[32].mxu0 %v7033_v49 }
 0x22b   : > { %4641 = vmatprep.mubr.bf16.mxu0 %v7373_v40 }
 0x232   : > { %4642 = vmatmul.mubr.bf16.gmra.mrb[36].mxu0 %v7034_v51 }
 0x233   : > { %4651 = vmatprep.mubr.bf16.mxu0 %v7373_v40 }
 0x23a   : > { %4652 = vmatmul.mubr.bf16.gmra.mrb[40].mxu0 %v7035_v0 }
 0x23b   : > { %4661 = vmatprep.mubr.bf16.mxu0 %v7373_v40 }
 0x23c   : > { %v8079_v3 = vpop.f32.mrb[0].mxu1 }
 0x23d   : > { %v8081_v4 = vpop.f32.mrb[1].mxu1 }
 0x23e   : > { %v8084_v5 = vpop.f32.mrb[2].mxu1 }
 0x23f   : > { %v8086_v6 = vpop.f32.mrb[3].mxu1 }
 0x242   : > { %4662 = vmatmul.mubr.bf16.gmra.mrb[44].mxu0 %v7036_v7 }
 0x243   : > { %4671 = vmatprep.mubr.bf16.mxu0 %v7373_v40 }
 0x244   : > { %v8088_v8 = vpop.f32.mrb[4].mxu1 }
 0x245   : > { %v8090_v9 = vpop.f32.mrb[5].mxu1 }
 0x246   : > { %v8093_v10 = vpop.f32.mrb[6].mxu1 }
 0x247   : > { %v8095_v11 = vpop.f32.mrb[7].mxu1 }
 0x24a   : > { %4672 = vmatmul.mubr.bf16.gmra.mrb[48].mxu0 %v7039_v13 }
 0x24b   : > { %4681 = vmatprep.mubr.bf16.mxu0 %v7373_v40 }
 0x24c   : > { %v8097_v15 = vpop.f32.mrb[8].mxu1 }
 0x24d   : > { %v8099_v63 = vpop.f32.mrb[9].mxu1 }
 0x24e   : > { %v8102_v17 = vpop.f32.mrb[10].mxu1 }
 0x24f   : > { %v8104_v60 = vpop.f32.mrb[11].mxu1 }
 0x252   : > { %4682 = vmatmul.mubr.bf16.gmra.mrb[52].mxu0 %v7040_v18  ;;  %v3018_v18 = vshrl.u32 %v3017_v2, 7 }
 0x253   : > { %4691 = vmatprep.mubr.bf16.mxu0 %v7373_v40 }
 0x254   : > { %v8106_v14 = vpop.f32.mrb[12].mxu1 }
 0x255   : > { %v8108_v19 = vpop.f32.mrb[13].mxu1 }
 0x256   : > { %v8111_v20 = vpop.f32.mrb[14].mxu1 }
 0x257   : > { %v8113_v21 = vpop.f32.mrb[15].mxu1 }
 0x25a   : > { %4692 = vmatmul.mubr.bf16.gmra.mrb[56].mxu0 %v7043_v62 }
 0x25b   : > { %4701 = vmatprep.mubr.bf16.mxu0 %v7373_v40 }
 0x25c   : > { %v8115_v22 = vpop.f32.mrb[16].mxu1 }
 0x25d   : > { %v8117_v24 = vpop.f32.mrb[17].mxu1 }
 0x25e   : > { %v8120_v26 = vpop.f32.mrb[18].mxu1 }
 0x25f   : > { %v8122_v27 = vpop.f32.mrb[19].mxu1 }
 0x262   : > { %4702 = vmatmul.mubr.bf16.gmra.mrb[60].mxu0 %v7044_v28 }
 0x264   : > { %v8124_v25 = vpop.f32.mrb[20].mxu1 }
 0x265   : > { %v8126_v12 = vpop.f32.mrb[21].mxu1 }
 0x266   : > { %v8128_v44 = vpop.f32.mrb[22].mxu1 }
 0x267   : > { %v8130_v29 = vpop.f32.mrb[23].mxu1 }
 0x26c   : > { %v8132_v30 = vpop.f32.mrb[24].mxu1 }
 0x26d   : > { %v8134_v34 = vpop.f32.mrb[25].mxu1 }
 0x26e   : > { %v8136_v16 = vpop.f32.mrb[26].mxu1 }
 0x26f   : > { %v8138_v23 = vpop.f32.mrb[27].mxu1 }
 0x274   : > { %v8140_v32 = vpop.f32.mrb[28].mxu1 }
 0x275   : > { %v8142_v35 = vpop.f32.mrb[29].mxu1 }
 0x276   : > { %v8144_v36 = vpop.f32.mrb[30].mxu1 }
 0x277   : > { %v8146_v53 = vpop.f32.mrb[31].mxu1 }
 0x27c   : > { %v8148_v37 = vpop.f32.mrb[32].mxu1 }
 0x27d   : > { %v8150_v38 = vpop.f32.mrb[33].mxu1 }
 0x27e   : > { %v8152_v39 = vpop.f32.mrb[34].mxu1 }
 0x27f   : > { %v8154_v40 = vpop.f32.mrb[35].mxu1 }
 0x284   : > { %v8156_v41 = vpop.f32.mrb[36].mxu1 }
 0x285   : > { %v8158_v42 = vpop.f32.mrb[37].mxu1 }
 0x286   : > { %v8160_v43 = vpop.f32.mrb[38].mxu1 }
 0x287   : > { %v8162_v45 = vpop.f32.mrb[39].mxu1 }
 0x28c   : > { %v8164_v46 = vpop.f32.mrb[40].mxu1 }
 0x28d   : > { %v8166_v47 = vpop.f32.mrb[41].mxu1 }
 0x28e   : > { %v8168_v48 = vpop.f32.mrb[42].mxu1 }
 0x28f   : > { %v8170_v50 = vpop.f32.mrb[43].mxu1 }
 0x294   : > { %v8172_v31 = vpop.f32.mrb[44].mxu1 }
 0x295   : > { %v8174_v52 = vpop.f32.mrb[45].mxu1 }
 0x296   : > { %v8176_v54 = vpop.f32.mrb[46].mxu1 }
 0x297   : > { %8918 = vst [vmem:[#allocation23_spill] sm:$0xff] %v8176_v54  ;;  %v8178_v55 = vpop.f32.mrb[47].mxu1 }
 0x298   : > { %8919 = vst [vmem:[#allocation24_spill] sm:$0xff] %v8178_v55 }
 0x29c   : > { %v8180_v57 = vpop.f32.mrb[48].mxu1 }
 0x29d   : > { %8920 = vst [vmem:[#allocation25_spill] sm:$0xff] %v8180_v57  ;;  %v8182_v33 = vpop.f32.mrb[49].mxu1 }
 0x29e   : > { %8921 = vst [vmem:[#allocation26_spill] sm:$0xff] %v8182_v33  ;;  %v8184_v58 = vpop.f32.mrb[50].mxu1 }
 0x29f   : > { %8922 = vst [vmem:[#allocation27_spill] sm:$0xff] %v8184_v58  ;;  %v8186_v56 = vpop.f32.mrb[51].mxu1 }
 0x2a0   : > { %8923 = vst [vmem:[#allocation28_spill] sm:$0xff] %v8186_v56 }
 0x2a4   : > { %v8188_v49 = vpop.f32.mrb[52].mxu1 }
 0x2a5   : > { %8924 = vst [vmem:[#allocation29_spill] sm:$0xff] %v8188_v49  ;;  %v8190_v59 = vpop.f32.mrb[53].mxu1  ;;  %v3019_v49 = vsub.s32 0, %v3018_v18 }
 0x2a6   : > { %8925 = vst [vmem:[#allocation30_spill] sm:$0xff] %v8190_v59  ;;  %v8192_v61 = vpop.f32.mrb[54].mxu1 }
 0x2a7   : > { %8926 = vst [vmem:[#allocation31_spill] sm:$0xff] %v8192_v61  ;;  %v8194_v51 = vpop.f32.mrb[55].mxu1 }
 0x2a8   : > { %8927 = vst [vmem:[#allocation32_spill] sm:$0xff] %v8194_v51  ;;  %v3015_v51 = vld [vmem:[%s8873_s3] sm:$0x3] }
 0x2ac   : > { %v8196_v0 = vpop.f32.mrb[56].mxu1 }
 0x2ad   : > { %8928 = vst [vmem:[#allocation33_spill] sm:$0xff] %v8196_v0  ;;  %v8198_v1 = vpop.f32.mrb[57].mxu1  ;;  %v3023_v0 = vsub.s32 1, %v3018_v18 }
 0x2ae   : > { %8929 = vst [vmem:[#allocation34_spill] sm:$0xff] %v8198_v1  ;;  %v8200_v7 = vpop.f32.mrb[58].mxu1  ;;  %v8215_v1 = vrot.slane %v3015_v51, %v3019_v49 }
 0x2af   : > { %8930 = vst [vmem:[#allocation35_spill] sm:$0xff] %v8200_v7  ;;  %v8202_v13 = vpop.f32.mrb[59].mxu1  ;;  %v8217_v7 = vrot.slane %v3015_v51, %v3023_v0 }
 0x2b0   : > { %8931 = vst [vmem:[#allocation36_spill] sm:$0xff] %v8202_v13  ;;  %v6259_v2 = vadd.f32 %v8079_v3, %v8215_v1 }
 0x2b1   : > { %v6265_v18 = vadd.f32 %v8086_v6, %v8217_v7  ;;  %v6271_v6 = vadd.f32 %v8093_v10, %v8215_v1 }
 0x2b4   : > { %v8204_v62 = vpop.f32.mrb[60].mxu1 }
 0x2b5   : > { %8932 = vst [vmem:[#allocation37_spill] sm:$0xff] %v8204_v62  ;;  %v8206_v28 = vpop.f32.mrb[61].mxu1 }
 0x2b6   : > { %8933 = vst [vmem:[#allocation38_spill] sm:$0xff] %v8206_v28  ;;  %v8208_v59 = vpop.f32.mrb[62].mxu1  ;;  %v6261_v28 = vadd.f32 %v8081_v4, %v8217_v7  ;;  %v6267_v4 = vadd.f32 %v8088_v8, %v8215_v1 }
 0x2b7   : > { %8934 = vst [vmem:[#allocation39_spill] sm:$0xff] %v8208_v59  ;;  %v8213_v61 = vpop.f32.mrb[63].mxu1  ;;  %v6263_v59 = vadd.f32 %v8084_v5, %v8215_v1  ;;  %v6269_v5 = vadd.f32 %v8090_v9, %v8217_v7 }
 0x2b8   : > { %8935 = vst [vmem:[#allocation40_spill] sm:$0xff] %v8213_v61 }
 0x2bd   : > { %v4553_v62 = vpop.f32.mrb[0].mxu0 }
 0x2be   : > { %v6260_v13 = vadd.f32 %v6259_v2, %v4553_v62  ;;  %v4555_v56 = vpop.f32.mrb[1].mxu0 }
 0x2bf   : > { %v6262_v61 = vadd.f32 %v6261_v28, %v4555_v56  ;;  %v4557_v49 = vpop.f32.mrb[2].mxu0 }
 0x2c0   : > { %v6264_v58 = vadd.f32 %v6263_v59, %v4557_v49  ;;  %v4559_v51 = vpop.f32.mrb[3].mxu0  ;;  %v4712_v33 = vmax.f32 %v6260_v13, 0.0  ;;  %v6273_v13 = vadd.f32 %v8095_v11, %v8217_v7  ;;  %v6275_v49 = vadd.f32 %v8097_v15, %v8215_v1 }
 0x2c1   : > { %v6266_v0 = vadd.f32 %v6265_v18, %v4559_v51  ;;  %v4713_v3 = vmax.f32 %v6262_v61, 0.0  ;;  %v6277_v51 = vadd.f32 %v8099_v63, %v8217_v7 }
 0x2c2   : > { %v4714_v57 = vmax.f32 %v6264_v58, 0.0 }
 0x2c3   : > { %v4715_v55 = vmax.f32 %v6266_v0, 0.0 }
 0x2c4   : > { %v4776_v54 = vpack.c.bf16 %v4714_v57, %v4712_v33 }
 0x2c5   : > { %v4777_v62 = vpack.c.bf16 %v4715_v55, %v4713_v3  ;;  %v4563_v2 = vpop.f32.mrb[4].mxu0  ;;  %v6279_v3 = vadd.f32 %v8102_v17, %v8215_v1 }
 0x2c6   : > { %v6268_v56 = vadd.f32 %v6267_v4, %v4563_v2  ;;  %v4565_v59 = vpop.f32.mrb[5].mxu0 }
 0x2c7   : > { %v6270_v58 = vadd.f32 %v6269_v5, %v4565_v59  ;;  %v4567_v61 = vpop.f32.mrb[6].mxu0  ;;  %4975 = vmatprep.mubr.bf16.mxu1 %v4777_v62 }
 0x2c8   : > { %v6272_v28 = vadd.f32 %v6271_v6, %v4567_v61  ;;  %v4569_v18 = vpop.f32.mrb[7].mxu0  ;;  %4976 = vmatmul.mubr.bf16.vlgmr.msra.gmra.mrb[64].mxu1 %v4776_v54  ;;  %v4716_v57 = vmax.f32 %v6268_v56, 0.0  ;;  %v6281_v54 = vadd.f32 %v8104_v60, %v8217_v7  ;;  %v6283_v61 = vadd.f32 %v8106_v14, %v8215_v1 }
 0x2c9   : > { %v6274_v8 = vadd.f32 %v6273_v13, %v4569_v18  ;;  %v4717_v9 = vmax.f32 %v6270_v58, 0.0 }
 0x2ca   : > { %v4718_v33 = vmax.f32 %v6272_v28, 0.0  ;;  %v6285_v28 = vadd.f32 %v8108_v19, %v8217_v7 }
 0x2cb   : > { %v4719_v55 = vmax.f32 %v6274_v8, 0.0  ;;  %v6287_v8 = vadd.f32 %v8111_v20, %v8215_v1 }
 0x2cc   : > { %v4778_v10 = vpack.c.bf16 %v4718_v33, %v4716_v57 }
 0x2cd   : > { %v4779_v0 = vpack.c.bf16 %v4719_v55, %v4717_v9  ;;  %v4573_v11 = vpop.f32.mrb[8].mxu0  ;;  %v6289_v9 = vadd.f32 %v8113_v21, %v8217_v7 }
 0x2ce   : > { %v6276_v4 = vadd.f32 %v6275_v49, %v4573_v11  ;;  %v4575_v5 = vpop.f32.mrb[9].mxu0 }
 0x2cf   : > { %v6278_v62 = vadd.f32 %v6277_v51, %v4575_v5  ;;  %v4577_v2 = vpop.f32.mrb[10].mxu0  ;;  %4983 = vmatprep.mubr.bf16.mxu1 %v4779_v0  ;;  %v6293_v5 = vadd.f32 %v8117_v24, %v8217_v7 }
 0x2d0   : > { %v6280_v6 = vadd.f32 %v6279_v3, %v4577_v2  ;;  %v4579_v56 = vpop.f32.mrb[11].mxu0  ;;  %4984 = vmatmul.mubr.bf16.gmra.mrb[68].mxu1 %v4778_v10  ;;  %v4720_v59 = vmax.f32 %v6276_v4, 0.0  ;;  %v6291_v4 = vadd.f32 %v8115_v22, %v8215_v1 }
 0x2d1   : > { %v6282_v15 = vadd.f32 %v6281_v54, %v4579_v56  ;;  %v4721_v63 = vmax.f32 %v6278_v62, 0.0  ;;  %v6295_v62 = vadd.f32 %v8120_v26, %v8215_v1  ;;  %v6297_v56 = vadd.f32 %v8122_v27, %v8217_v7 }
 0x2d2   : > { %v4722_v13 = vmax.f32 %v6280_v6, 0.0 }
 0x2d3   : > { %v4723_v58 = vmax.f32 %v6282_v15, 0.0 }
 0x2d4   : > { %v4780_v17 = vpack.c.bf16 %v4722_v13, %v4720_v59 }
 0x2d5   : > { %v4781_v18 = vpack.c.bf16 %v4723_v58, %v4721_v63  ;;  %v4583_v60 = vpop.f32.mrb[12].mxu0 }
 0x2d6   : > { %v6284_v57 = vadd.f32 %v6283_v61, %v4583_v60  ;;  %v4585_v33 = vpop.f32.mrb[13].mxu0 }
 0x2d7   : > { %v6286_v55 = vadd.f32 %v6285_v28, %v4585_v33  ;;  %v4587_v49 = vpop.f32.mrb[14].mxu0  ;;  %4991 = vmatprep.mubr.bf16.mxu1 %v4781_v18  ;;  %v6299_v28 = vadd.f32 %v8124_v25, %v8215_v1  ;;  %v6301_v18 = vadd.f32 %v8126_v12, %v8217_v7 }
 0x2d8   : > { %v6288_v10 = vadd.f32 %v6287_v8, %v4587_v49  ;;  %v4589_v51 = vpop.f32.mrb[15].mxu0  ;;  %4992 = vmatmul.mubr.bf16.gmra.mrb[72].mxu1 %v4780_v17  ;;  %v4724_v0 = vmax.f32 %v6284_v57, 0.0  ;;  %v6303_v8 = vadd.f32 %v8128_v44, %v8215_v1 }
 0x2d9   : > { %v6290_v14 = vadd.f32 %v6289_v9, %v4589_v51  ;;  %v4725_v19 = vmax.f32 %v6286_v55, 0.0  ;;  %v6305_v9 = vadd.f32 %v8130_v29, %v8217_v7 }
 0x2da   : > { %v4726_v11 = vmax.f32 %v6288_v10, 0.0 }
 0x2db   : > { %v4727_v3 = vmax.f32 %v6290_v14, 0.0 }
 0x2dc   : > { %v4782_v20 = vpack.c.bf16 %v4726_v11, %v4724_v0 }
 0x2dd   : > { %v4783_v54 = vpack.c.bf16 %v4727_v3, %v4725_v19  ;;  %v4593_v21 = vpop.f32.mrb[16].mxu0  ;;  %v6307_v19 = vadd.f32 %v8132_v30, %v8215_v1  ;;  %v6309_v3 = vadd.f32 %v8134_v34, %v8217_v7 }
 0x2de   : > { %v6292_v2 = vadd.f32 %v6291_v4, %v4593_v21  ;;  %v4595_v6 = vpop.f32.mrb[17].mxu0  ;;  %v6313_v21 = vadd.f32 %v8138_v23, %v8217_v7 }
 0x2df   : > { %v6294_v15 = vadd.f32 %v6293_v5, %v4595_v6  ;;  %v4597_v59 = vpop.f32.mrb[18].mxu0  ;;  %4999 = vmatprep.mubr.bf16.mxu1 %v4783_v54 }
 0x2e0   : > { %v6296_v13 = vadd.f32 %v6295_v62, %v4597_v59  ;;  %v4599_v63 = vpop.f32.mrb[19].mxu0  ;;  %5000 = vmatmul.mubr.bf16.gmra.mrb[76].mxu1 %v4782_v20  ;;  %v4728_v58 = vmax.f32 %v6292_v2, 0.0  ;;  %v6311_v20 = vadd.f32 %v8136_v16, %v8215_v1 }
 0x2e1   : > { %v6298_v22 = vadd.f32 %v6297_v56, %v4599_v63  ;;  %v4729_v24 = vmax.f32 %v6294_v15, 0.0  ;;  %v6315_v63 = vadd.f32 %v8140_v32, %v8215_v1 }
 0x2e2   : > { %v4730_v61 = vmax.f32 %v6296_v13, 0.0 }
 0x2e3   : > { %v4731_v17 = vmax.f32 %v6298_v22, 0.0  ;;  %v6317_v22 = vadd.f32 %v8142_v35, %v8217_v7 }
 0x2e4   : > { %v4784_v26 = vpack.c.bf16 %v4730_v61, %v4728_v58  ;;  %v6319_v61 = vadd.f32 %v8144_v36, %v8215_v1 }
 0x2e5   : > { %v4785_v60 = vpack.c.bf16 %v4731_v17, %v4729_v24  ;;  %v4603_v27 = vpop.f32.mrb[20].mxu0 }
 0x2e6   : > { %v6300_v57 = vadd.f32 %v6299_v28, %v4603_v27  ;;  %v4605_v33 = vpop.f32.mrb[21].mxu0  ;;  %v6321_v28 = vadd.f32 %v8146_v53, %v8217_v7 }
 0x2e7   : > { %v6302_v55 = vadd.f32 %v6301_v18, %v4605_v33  ;;  %v4607_v49 = vpop.f32.mrb[22].mxu0  ;;  %5007 = vmatprep.mubr.bf16.mxu1 %v4785_v60 }
 0x2e8   : > { %v6304_v10 = vadd.f32 %v6303_v8, %v4607_v49  ;;  %v4609_v51 = vpop.f32.mrb[23].mxu0  ;;  %5008 = vmatmul.mubr.bf16.gmra.mrb[80].mxu1 %v4784_v26  ;;  %v4732_v14 = vmax.f32 %v6300_v57, 0.0 }
 0x2e9   : > { %v6306_v25 = vadd.f32 %v6305_v9, %v4609_v51  ;;  %v4733_v12 = vmax.f32 %v6302_v55, 0.0  ;;  %v6323_v9 = vadd.f32 %v8148_v37, %v8215_v1  ;;  %v6325_v55 = vadd.f32 %v8150_v38, %v8217_v7 }
 0x2ea   : > { %v4734_v0 = vmax.f32 %v6304_v10, 0.0  ;;  %v6327_v10 = vadd.f32 %v8152_v39, %v8215_v1 }
 0x2eb   : > { %v4735_v11 = vmax.f32 %v6306_v25, 0.0 }
 0x2ec   : > { %v4786_v44 = vpack.c.bf16 %v4734_v0, %v4732_v14  ;;  %v6329_v14 = vadd.f32 %v8154_v40, %v8217_v7 }
 0x2ed   : > { %v4787_v4 = vpack.c.bf16 %v4735_v11, %v4733_v12  ;;  %v4613_v29 = vpop.f32.mrb[24].mxu0 }
 0x2ee   : > { %v6308_v5 = vadd.f32 %v6307_v19, %v4613_v29  ;;  %v4615_v54 = vpop.f32.mrb[25].mxu0  ;;  %v6331_v29 = vadd.f32 %v8156_v41, %v8215_v1 }
 0x2ef   : > { %v6310_v62 = vadd.f32 %v6309_v3, %v4615_v54  ;;  %v4617_v2 = vpop.f32.mrb[26].mxu0  ;;  %5015 = vmatprep.mubr.bf16.mxu1 %v4787_v4  ;;  %v6335_v54 = vadd.f32 %v8160_v43, %v8215_v1 }
 0x2f0   : > { %v6312_v6 = vadd.f32 %v6311_v20, %v4617_v2  ;;  %v4619_v56 = vpop.f32.mrb[27].mxu0  ;;  %5016 = vmatmul.mubr.bf16.gmra.mrb[84].mxu1 %v4786_v44  ;;  %v4736_v15 = vmax.f32 %v6308_v5, 0.0  ;;  %v6333_v20 = vadd.f32 %v8158_v42, %v8217_v7  ;;  %v6337_v2 = vadd.f32 %v8162_v45, %v8217_v7 }
 0x2f1   : > { %v6314_v30 = vadd.f32 %v6313_v21, %v4619_v56  ;;  %v4737_v34 = vmax.f32 %v6310_v62, 0.0 }
 0x2f2   : > { %v4738_v59 = vmax.f32 %v6312_v6, 0.0 }
 0x2f3   : > { %v4739_v13 = vmax.f32 %v6314_v30, 0.0 }
 0x2f4   : > { %v4788_v16 = vpack.c.bf16 %v4738_v59, %v4736_v15 }
 0x2f5   : > { %v4789_v58 = vpack.c.bf16 %v4739_v13, %v4737_v34  ;;  %v4623_v23 = vpop.f32.mrb[28].mxu0 }
 0x2f6   : > { %v6316_v24 = vadd.f32 %v6315_v63, %v4623_v23  ;;  %v4625_v17 = vpop.f32.mrb[29].mxu0  ;;  %v6339_v63 = vadd.f32 %v8164_v46, %v8215_v1 }
 0x2f7   : > { %v6318_v26 = vadd.f32 %v6317_v22, %v4625_v17  ;;  %v4627_v18 = vpop.f32.mrb[30].mxu0  ;;  %5023 = vmatprep.mubr.bf16.mxu1 %v4789_v58  ;;  %v6343_v58 = vadd.f32 %v8168_v48, %v8215_v1 }
 0x2f8   : > { %v6320_v60 = vadd.f32 %v6319_v61, %v4627_v18  ;;  %v4629_v27 = vpop.f32.mrb[31].mxu0  ;;  %5024 = vmatmul.mubr.bf16.gmra.mrb[88].mxu1 %v4788_v16  ;;  %v4740_v8 = vmax.f32 %v6316_v24, 0.0  ;;  %v6341_v16 = vadd.f32 %v8166_v47, %v8217_v7  ;;  %v6345_v24 = vadd.f32 %v8170_v50, %v8217_v7 }
 0x2f9   : > { %v6322_v32 = vadd.f32 %v6321_v28, %v4629_v27  ;;  %v4741_v35 = vmax.f32 %v6318_v26, 0.0 }
 0x2fa   : > { %v4742_v57 = vmax.f32 %v6320_v60, 0.0 }
 0x2fb   : > { %v4743_v33 = vmax.f32 %v6322_v32, 0.0 }
 0x2fc   : > { %v4790_v36 = vpack.c.bf16 %v4742_v57, %v4740_v8  ;;  %v6347_v8 = vadd.f32 %v8172_v31, %v8215_v1  ;;  %v6349_v57 = vadd.f32 %v8174_v52, %v8217_v7 }
 0x2fd   : > { %v4791_v49 = vpack.c.bf16 %v4743_v33, %v4741_v35  ;;  %v4633_v53 = vpop.f32.mrb[32].mxu0  ;;  %v8936_v33 = vld [vmem:[#allocation23_spill] sm:$0xff] }
 0x2fe   : > { %v6324_v51 = vadd.f32 %v6323_v9, %v4633_v53  ;;  %v4635_v25 = vpop.f32.mrb[33].mxu0  ;;  %v6351_v9 = vadd.f32 %v8936_v33, %v8215_v1  ;;  %v8947_v33 = vld [vmem:[#allocation34_spill] sm:$0xff] }
 0x2ff   : > { %v6326_v0 = vadd.f32 %v6325_v55, %v4635_v25  ;;  %v4637_v12 = vpop.f32.mrb[34].mxu0  ;;  %5031 = vmatprep.mubr.bf16.mxu1 %v4791_v49  ;;  %v8937_v49 = vld [vmem:[#allocation24_spill] sm:$0xff] }
 0x300   : > { %v6328_v11 = vadd.f32 %v6327_v10, %v4637_v12  ;;  %v4639_v19 = vpop.f32.mrb[35].mxu0  ;;  %5032 = vmatmul.mubr.bf16.gmra.mrb[92].mxu1 %v4790_v36  ;;  %v4744_v44 = vmax.f32 %v6324_v51, 0.0  ;;  %v6353_v53 = vadd.f32 %v8937_v49, %v8217_v7  ;;  %v8948_v49 = vld [vmem:[#allocation35_spill] sm:$0xff] }
 0x301   : > { %v6330_v37 = vadd.f32 %v6329_v14, %v4639_v19  ;;  %v4745_v38 = vmax.f32 %v6326_v0, 0.0  ;;  %v8938_v19 = vld [vmem:[#allocation25_spill] sm:$0xff] }
 0x302   : > { %v4746_v3 = vmax.f32 %v6328_v11, 0.0 }
 0x303   : > { %v4747_v4 = vmax.f32 %v6330_v37, 0.0  ;;  %v6355_v37 = vadd.f32 %v8938_v19, %v8215_v1 }
 0x304   : > { %v4792_v39 = vpack.c.bf16 %v4746_v3, %v4744_v44  ;;  %v8939_v3 = vld [vmem:[#allocation26_spill] sm:$0xff] }
 0x305   : > { %v4793_v5 = vpack.c.bf16 %v4747_v4, %v4745_v38  ;;  %v4643_v40 = vpop.f32.mrb[36].mxu0  ;;  %v6357_v38 = vadd.f32 %v8939_v3, %v8217_v7 }
 0x306   : > { %v6332_v21 = vadd.f32 %v6331_v29, %v4643_v40  ;;  %v4645_v62 = vpop.f32.mrb[37].mxu0 }
 0x307   : > { %v6334_v6 = vadd.f32 %v6333_v20, %v4645_v62  ;;  %v4647_v56 = vpop.f32.mrb[38].mxu0  ;;  %5039 = vmatprep.mubr.bf16.mxu1 %v4793_v5 }
 0x308   : > { %v6336_v30 = vadd.f32 %v6335_v54, %v4647_v56  ;;  %v4649_v15 = vpop.f32.mrb[39].mxu0  ;;  %5040 = vmatmul.mubr.bf16.gmra.mrb[96].mxu1 %v4792_v39  ;;  %v4748_v59 = vmax.f32 %v6332_v21, 0.0  ;;  %v8940_v39 = vld [vmem:[#allocation27_spill] sm:$0xff]  ;;  %v8941_v54 = vld [vmem:[#allocation28_spill] sm:$0xff] }
 0x309   : > { %v6338_v41 = vadd.f32 %v6337_v2, %v4649_v15  ;;  %v4749_v42 = vmax.f32 %v6334_v6, 0.0  ;;  %v6359_v20 = vadd.f32 %v8940_v39, %v8215_v1  ;;  %v6361_v21 = vadd.f32 %v8941_v54, %v8217_v7  ;;  %v8951_v39 = vld [vmem:[#allocation38_spill] sm:$0xff]  ;;  %v8952_v54 = vld [vmem:[#allocation39_spill] sm:$0xff] }
 0x30a   : > { %v4750_v34 = vmax.f32 %v6336_v30, 0.0 }
 0x30b   : > { %v4751_v13 = vmax.f32 %v6338_v41, 0.0 }
 0x30c   : > { %v4794_v43 = vpack.c.bf16 %v4750_v34, %v4748_v59 }
 0x30d   : > { %v4795_v22 = vpack.c.bf16 %v4751_v13, %v4749_v42  ;;  %v4653_v45 = vpop.f32.mrb[40].mxu0  ;;  %v8942_v42 = vld [vmem:[#allocation29_spill] sm:$0xff] }
 0x30e   : > { %v6340_v23 = vadd.f32 %v6339_v63, %v4653_v45  ;;  %v4655_v61 = vpop.f32.mrb[41].mxu0  ;;  %v6363_v13 = vadd.f32 %v8942_v42, %v8215_v1 }
 0x30f   : > { %v6342_v17 = vadd.f32 %v6341_v16, %v4655_v61  ;;  %v4657_v28 = vpop.f32.mrb[42].mxu0  ;;  %5047 = vmatprep.mubr.bf16.mxu1 %v4795_v22 }
 0x310   : > { %v6344_v26 = vadd.f32 %v6343_v58, %v4657_v28  ;;  %v4659_v18 = vpop.f32.mrb[43].mxu0  ;;  %5048 = vmatmul.mubr.bf16.gmra.mrb[100].mxu1 %v4794_v43  ;;  %v4752_v60 = vmax.f32 %v6340_v23, 0.0  ;;  %v8943_v43 = vld [vmem:[#allocation30_spill] sm:$0xff]  ;;  %v8944_v58 = vld [vmem:[#allocation31_spill] sm:$0xff] }
 0x311   : > { %v6346_v46 = vadd.f32 %v6345_v24, %v4659_v18  ;;  %v4753_v47 = vmax.f32 %v6342_v17, 0.0  ;;  %v6365_v16 = vadd.f32 %v8943_v43, %v8217_v7  ;;  %v6367_v23 = vadd.f32 %v8944_v58, %v8215_v1  ;;  %v8945_v17 = vld [vmem:[#allocation32_spill] sm:$0xff] }
 0x312   : > { %v4754_v27 = vmax.f32 %v6344_v26, 0.0  ;;  %v6369_v28 = vadd.f32 %v8945_v17, %v8217_v7 }
 0x313   : > { %v4755_v32 = vmax.f32 %v6346_v46, 0.0 }
 0x314   : > { %v4796_v48 = vpack.c.bf16 %v4754_v27, %v4752_v60 }
 0x315   : > { %v4797_v35 = vpack.c.bf16 %v4755_v32, %v4753_v47  ;;  %v4663_v50 = vpop.f32.mrb[44].mxu0 }
 0x316   : > { %v6348_v36 = vadd.f32 %v6347_v8, %v4663_v50  ;;  %v4665_v55 = vpop.f32.mrb[45].mxu0 }
 0x317   : > { %v6350_v10 = vadd.f32 %v6349_v57, %v4665_v55  ;;  %v4667_v51 = vpop.f32.mrb[46].mxu0  ;;  %5055 = vmatprep.mubr.bf16.mxu1 %v4797_v35  ;;  %v8946_v57 = vld [vmem:[#allocation33_spill] sm:$0xff] }
 0x318   : > { %v6352_v25 = vadd.f32 %v6351_v9, %v4667_v51  ;;  %v4669_v14 = vpop.f32.mrb[47].mxu0  ;;  %5056 = vmatmul.mubr.bf16.gmra.mrb[104].mxu1 %v4796_v48  ;;  %v4756_v0 = vmax.f32 %v6348_v36, 0.0  ;;  %v6371_v35 = vadd.f32 %v8946_v57, %v8215_v1  ;;  %v6373_v9 = vadd.f32 %v8947_v33, %v8217_v7  ;;  %v7123_v33 = vld [vmem:[%s7650_s16 + $0x10] sm:$0xff] }
 0x319   : > { %v6354_v31 = vadd.f32 %v6353_v53, %v4669_v14  ;;  %v4757_v52 = vmax.f32 %v6350_v10, 0.0  ;;  %v6375_v53 = vadd.f32 %v8948_v49, %v8215_v1 }
 0x31a   : > { %v4758_v12 = vmax.f32 %v6352_v25, 0.0  ;;  %v8949_v25 = vld [vmem:[#allocation36_spill] sm:$0xff] }
 0x31b   : > { %v4759_v11 = vmax.f32 %v6354_v31, 0.0  ;;  %v6377_v14 = vadd.f32 %v8949_v25, %v8217_v7 }
 0x31c   : > { %v4798_v44 = vpack.c.bf16 %v4758_v12, %v4756_v0 }
 0x31d   : > { %v4799_v4 = vpack.c.bf16 %v4759_v11, %v4757_v52  ;;  %v4673_v29 = vpop.f32.mrb[48].mxu0 }
 0x31e   : > { %v6356_v5 = vadd.f32 %v6355_v37, %v4673_v29  ;;  %v4675_v40 = vpop.f32.mrb[49].mxu0 }
 0x31f   : > { %v6358_v62 = vadd.f32 %v6357_v38, %v4675_v40  ;;  %v4677_v2 = vpop.f32.mrb[50].mxu0  ;;  %5063 = vmatprep.mubr.bf16.mxu1 %v4799_v4  ;;  %v8950_v38 = vld [vmem:[#allocation37_spill] sm:$0xff] }
 0x320   : > { %v6360_v6 = vadd.f32 %v6359_v20, %v4677_v2  ;;  %v4679_v56 = vpop.f32.mrb[51].mxu0  ;;  %5064 = vmatmul.mubr.bf16.gmra.mrb[108].mxu1 %v4798_v44  ;;  %v4760_v15 = vmax.f32 %v6356_v5, 0.0  ;;  %v6379_v4 = vadd.f32 %v8950_v38, %v8215_v1  ;;  %v6381_v20 = vadd.f32 %v8951_v39, %v8217_v7 }
 0x321   : > { %v6362_v30 = vadd.f32 %v6361_v21, %v4679_v56  ;;  %v4761_v59 = vmax.f32 %v6358_v62, 0.0  ;;  %v6383_v21 = vadd.f32 %v8952_v54, %v8215_v1 }
 0x322   : > { %v4762_v41 = vmax.f32 %v6360_v6, 0.0  ;;  %v8953_v6 = vld [vmem:[#allocation40_spill] sm:$0xff] }
 0x323   : > { %v4763_v34 = vmax.f32 %v6362_v30, 0.0  ;;  %v6385_v56 = vadd.f32 %v8953_v6, %v8217_v7  ;;  %v8350_v7 = vld [vmem:[%s8875_s5] ss:$0 sm:$0xff] }
 0x324   : > { %v4800_v63 = vpack.c.bf16 %v4762_v41, %v4760_v15 }
 0x325   : > { %v4801_v22 = vpack.c.bf16 %v4763_v34, %v4761_v59  ;;  %v4683_v45 = vpop.f32.mrb[52].mxu0 }
 0x326   : > { %v6364_v61 = vadd.f32 %v6363_v13, %v4683_v45  ;;  %v4685_v24 = vpop.f32.mrb[53].mxu0 }
 0x327   : > { %v6366_v26 = vadd.f32 %v6365_v16, %v4685_v24  ;;  %v4687_v18 = vpop.f32.mrb[54].mxu0  ;;  %5071 = vmatprep.mubr.bf16.mxu1 %v4801_v22 }
 0x328   : > { %v6368_v46 = vadd.f32 %v6367_v23, %v4687_v18  ;;  %v4689_v60 = vpop.f32.mrb[55].mxu0  ;;  %5072 = vmatmul.mubr.bf16.gmra.mrb[112].mxu1 %v4800_v63  ;;  %v4764_v47 = vmax.f32 %v6364_v61, 0.0 }
 0x329   : > { %v6370_v27 = vadd.f32 %v6369_v28, %v4689_v60  ;;  %v4765_v8 = vmax.f32 %v6366_v26, 0.0  ;;  %v7121_v26 = vld [vmem:[%s7650_s16] sm:$0xff] }
 0x32a   : > { %v4766_v32 = vmax.f32 %v6368_v46, 0.0 }
 0x32b   : > { %v4767_v48 = vmax.f32 %v6370_v27, 0.0 }
 0x32c   : > { %v4802_v50 = vpack.c.bf16 %v4766_v32, %v4764_v47  ;;  %v7122_v32 = vld [vmem:[%s7650_s16 + $0x8] sm:$0xff] }
 0x32d   : > { %v4803_v36 = vpack.c.bf16 %v4767_v48, %v4765_v8  ;;  %v4693_v55 = vpop.f32.mrb[56].mxu0 }
 0x32e   : > { %v6372_v10 = vadd.f32 %v6371_v35, %v4693_v55  ;;  %v4695_v51 = vpop.f32.mrb[57].mxu0 }
 0x32f   : > { %v6374_v31 = vadd.f32 %v6373_v9, %v4695_v51  ;;  %v4697_v0 = vpop.f32.mrb[58].mxu0  ;;  %5079 = vmatprep.mubr.bf16.mxu1 %v4803_v36 }
 0x330   : > { %v6376_v12 = vadd.f32 %v6375_v53, %v4697_v0  ;;  %v4699_v52 = vpop.f32.mrb[59].mxu0  ;;  %5080 = vmatmul.mubr.bf16.gmra.mrb[116].mxu1 %v4802_v50  ;;  %v4768_v19 = vmax.f32 %v6372_v10, 0.0  ;;  %v7124_v10 = vld [vmem:[%s7650_s16 + $0x18] sm:$0xff] }
 0x331   : > { %v6378_v11 = vadd.f32 %v6377_v14, %v4699_v52  ;;  %v4769_v44 = vmax.f32 %v6374_v31, 0.0 }
 0x332   : > { %v4770_v37 = vmax.f32 %v6376_v12, 0.0  ;;  %v7125_v12 = vld [vmem:[%s7650_s16 + $0x20] sm:$0xff] }
 0x333   : > { %v4771_v3 = vmax.f32 %v6378_v11, 0.0 }
 0x334   : > { %v4804_v29 = vpack.c.bf16 %v4770_v37, %v4768_v19  ;;  %v7126_v19 = vld [vmem:[%s7650_s16 + $0x28] sm:$0xff] }
 0x335   : > { %v4805_v5 = vpack.c.bf16 %v4771_v3, %v4769_v44  ;;  %v4703_v40 = vpop.f32.mrb[60].mxu0 }
 0x336   : > { %v6380_v62 = vadd.f32 %v6379_v4, %v4703_v40  ;;  %v4705_v2 = vpop.f32.mrb[61].mxu0 }
 0x337   : > { %v6382_v30 = vadd.f32 %v6381_v20, %v4705_v2  ;;  %v4707_v15 = vpop.f32.mrb[62].mxu0  ;;  %5087 = vmatprep.mubr.bf16.mxu1 %v4805_v5  ;;  %v7127_v5 = vld [vmem:[%s7650_s16 + $0x30] sm:$0xff] }
 0x338   : > { %v6384_v41 = vadd.f32 %v6383_v21, %v4707_v15  ;;  %v4709_v59 = vpop.f32.mrb[63].mxu0  ;;  %5088 = vmatmul.mubr.bf16.gmra.mrb[120].mxu1 %v4804_v29  ;;  %v4772_v42 = vmax.f32 %v6380_v62, 0.0  ;;  %v7128_v21 = vld [vmem:[%s7650_s16 + $0x38] sm:$0xff] }
 0x339   : > { %v6386_v34 = vadd.f32 %v6385_v56, %v4709_v59  ;;  %v4773_v63 = vmax.f32 %v6382_v30, 0.0 }
 0x33a   : > { %v4774_v13 = vmax.f32 %v6384_v41, 0.0 }
 0x33b   : > { %v4775_v43 = vmax.f32 %v6386_v34, 0.0  ;;  %v7129_v34 = vld [vmem:[%s7650_s16 + $0x40] sm:$0xff] }
 0x33c   : > { %v4806_v16 = vpack.c.bf16 %v4774_v13, %v4772_v42 }
 0x33d   : > { %v4807_v22 = vpack.c.bf16 %v4775_v43, %v4773_v63  ;;  %v7130_v63 = vld [vmem:[%s7650_s16 + $0x48] sm:$0xff] }
 0x33f   : > { %5095 = vmatprep.mubr.bf16.mxu1 %v4807_v22 }
 0x340   : > { %5096 = vmatmul.mubr.bf16.gmra.mrb[124].mxu1 %v4806_v16 }
 0x39b   : > { %v6163_v1 = vpop.f32.mrb[64].mxu1 }
 0x39c   : > { %v6164_v45 = vpop.f32.mrb[65].mxu1 }
 0x39d   : > { %v6165_v58 = vadd.f32 %v6164_v45, %v6163_v1  ;;  %v6166_v23 = vpop.f32.mrb[66].mxu1 }
 0x39e   : > { %v6167_v61 = vpop.f32.mrb[67].mxu1 }
 0x39f   : > { %v4978_v24 = vadd.f32 %v6165_v58, %v8350_v7  ;;  %v6168_v17 = vadd.f32 %v6167_v61, %v6166_v23 }
 0x3a1   : > { %v4981_v28 = vadd.f32 %v6168_v17, %v8350_v7  ;;  %v8355_v18 = vadd.f32 %v7121_v26, %v4978_v24  ;;  %v7131_v24 = vld [vmem:[%s7650_s16 + $0x50] sm:$0xff]  ;;  %v7132_v26 = vld [vmem:[%s7650_s16 + $0x58] sm:$0xff] }
 0x3a3   : > { %v6169_v46 = vpop.f32.mrb[68].mxu1  ;;  %5136 = vadd.xlane.f32.xlu0 %v8355_v18  ;;  %v8359_v8 = vadd.f32 %v7122_v32, %v4981_v28 }
 0x3a4   : > { %v6170_v60 = vpop.f32.mrb[69].mxu1 }
 0x3a5   : > { %v6171_v27 = vadd.f32 %v6170_v60, %v6169_v46  ;;  %v6172_v47 = vpop.f32.mrb[70].mxu1 }
 0x3a6   : > { %v6173_v48 = vpop.f32.mrb[71].mxu1 }
 0x3a7   : > { %v4986_v57 = vadd.f32 %v6171_v27, %v8350_v7  ;;  %v6174_v35 = vadd.f32 %v6173_v48, %v6172_v47  ;;  %5138 = vadd.xlane.f32.xlu0 %v8359_v8 }
 0x3a9   : > { %v4989_v50 = vadd.f32 %v6174_v35, %v8350_v7  ;;  %v8365_v9 = vadd.f32 %v7123_v33, %v4986_v57 }
 0x3ab   : > { %v6175_v36 = vpop.f32.mrb[72].mxu1  ;;  %5140 = vadd.xlane.f32.xlu1 %v8365_v9  ;;  %v8369_v51 = vadd.f32 %v7124_v10, %v4989_v50  ;;  %v7133_v50 = vld [vmem:[%s7650_s16 + $0x60] sm:$0xff] }
 0x3ac   : > { %v6176_v55 = vpop.f32.mrb[73].mxu1 }
 0x3ad   : > { %v6177_v49 = vadd.f32 %v6176_v55, %v6175_v36  ;;  %v6178_v53 = vpop.f32.mrb[74].mxu1  ;;  %v7134_v55 = vld [vmem:[%s7650_s16 + $0x68] sm:$0xff] }
 0x3ae   : > { %v6179_v25 = vpop.f32.mrb[75].mxu1 }
 0x3af   : > { %v4994_v14 = vadd.f32 %v6177_v49, %v8350_v7  ;;  %v6180_v31 = vadd.f32 %v6179_v25, %v6178_v53  ;;  %5142 = vadd.xlane.f32.xlu1 %v8369_v51 }
 0x3b1   : > { %v4997_v0 = vadd.f32 %v6180_v31, %v8350_v7  ;;  %v8375_v52 = vadd.f32 %v7125_v12, %v4994_v14 }
 0x3b3   : > { %v6181_v11 = vpop.f32.mrb[76].mxu1  ;;  %5144 = vadd.xlane.f32.xlu0 %v8375_v52  ;;  %v8379_v37 = vadd.f32 %v7126_v19, %v4997_v0 }
 0x3b4   : > { %v6182_v44 = vpop.f32.mrb[77].mxu1 }
 0x3b5   : > { %v6183_v3 = vadd.f32 %v6182_v44, %v6181_v11  ;;  %v6184_v38 = vpop.f32.mrb[78].mxu1  ;;  %5146 = vadd.xlane.f32.xlu1 %v8379_v37  ;;  %v7135_v11 = vld [vmem:[%s7650_s16 + $0x70] sm:$0xff] }
 0x3b6   : > { %v6185_v4 = vpop.f32.mrb[79].mxu1 }
 0x3b7   : > { %v5002_v29 = vadd.f32 %v6183_v3, %v8350_v7  ;;  %v6186_v39 = vadd.f32 %v6185_v4, %v6184_v38  ;;  %v7136_v3 = vld [vmem:[%s7650_s16 + $0x78] sm:$0xff] }
 0x3b9   : > { %v5005_v20 = vadd.f32 %v6186_v39, %v8350_v7  ;;  %v8385_v40 = vadd.f32 %v7127_v5, %v5002_v29 }
 0x3bb   : > { %v6187_v54 = vpop.f32.mrb[80].mxu1  ;;  %5148 = vadd.xlane.f32.xlu0 %v8385_v40  ;;  %v8389_v62 = vadd.f32 %v7128_v21, %v5005_v20 }
 0x3bc   : > { %v6188_v2 = vpop.f32.mrb[81].mxu1 }
 0x3bd   : > { %v6189_v6 = vadd.f32 %v6188_v2, %v6187_v54  ;;  %v6190_v56 = vpop.f32.mrb[82].mxu1  ;;  %5150 = vadd.xlane.f32.xlu1 %v8389_v62  ;;  %v7137_v2 = vld [vmem:[%s7650_s16 + $0x80] sm:$0xff] }
 0x3be   : > { %v6191_v30 = vpop.f32.mrb[83].mxu1 }
 0x3bf   : > { %v5010_v15 = vadd.f32 %v6189_v6, %v8350_v7  ;;  %v6192_v41 = vadd.f32 %v6191_v30, %v6190_v56  ;;  %v7138_v30 = vld [vmem:[%s7650_s16 + $0x88] sm:$0xff] }
 0x3c1   : > { %v5013_v59 = vadd.f32 %v6192_v41, %v8350_v7  ;;  %v8395_v42 = vadd.f32 %v7129_v34, %v5010_v15 }
 0x3c3   : > { %v6193_v13 = vpop.f32.mrb[84].mxu1  ;;  %5152 = vadd.xlane.f32.xlu0 %v8395_v42  ;;  %v8399_v43 = vadd.f32 %v7130_v63, %v5013_v59 }
 0x3c4   : > { %v6194_v16 = vpop.f32.mrb[85].mxu1 }
 0x3c5   : > { %v6195_v22 = vadd.f32 %v6194_v16, %v6193_v13  ;;  %v6196_v1 = vpop.f32.mrb[86].mxu1  ;;  %5154 = vadd.xlane.f32.xlu1 %v8399_v43 }
 0x3c6   : > { %v6197_v45 = vpop.f32.mrb[87].mxu1 }
 0x3c7   : > { %v5018_v58 = vadd.f32 %v6195_v22, %v8350_v7  ;;  %v6198_v23 = vadd.f32 %v6197_v45, %v6196_v1  ;;  %v7139_v1 = vld [vmem:[%s7650_s16 + $0x90] sm:$0xff] }
 0x3c9   : > { %v5021_v61 = vadd.f32 %v6198_v23, %v8350_v7  ;;  %v8405_v17 = vadd.f32 %v7131_v24, %v5018_v58  ;;  %v7140_v23 = vld [vmem:[%s7650_s16 + $0x98] sm:$0xff] }
 0x3cb   : > { %v6199_v28 = vpop.f32.mrb[88].mxu1  ;;  %5156 = vadd.xlane.f32.xlu0 %v8405_v17  ;;  %v8409_v46 = vadd.f32 %v7132_v26, %v5021_v61 }
 0x3cc   : > { %v6200_v60 = vpop.f32.mrb[89].mxu1 }
 0x3cd   : > { %v6201_v27 = vadd.f32 %v6200_v60, %v6199_v28  ;;  %v6202_v47 = vpop.f32.mrb[90].mxu1  ;;  %5158 = vadd.xlane.f32.xlu1 %v8409_v46 }
 0x3ce   : > { %v6203_v32 = vpop.f32.mrb[91].mxu1 }
 0x3cf   : > { %v5026_v48 = vadd.f32 %v6201_v27, %v8350_v7  ;;  %v6204_v57 = vadd.f32 %v6203_v32, %v6202_v47 }
 0x3d1   : > { %v5029_v35 = vadd.f32 %v6204_v57, %v8350_v7  ;;  %v8415_v33 = vadd.f32 %v7133_v50, %v5026_v48  ;;  %v7141_v48 = vld [vmem:[%s7650_s16 + $0xa0] sm:$0xff]  ;;  %v7142_v50 = vld [vmem:[%s7650_s16 + $0xa8] sm:$0xff] }
 0x3d3   : > { %v6205_v36 = vpop.f32.mrb[92].mxu1  ;;  %5160 = vadd.xlane.f32.xlu0 %v8415_v33  ;;  %v8419_v49 = vadd.f32 %v7134_v55, %v5029_v35 }
 0x3d4   : > { %v6206_v53 = vpop.f32.mrb[93].mxu1 }
 0x3d5   : > { %v6207_v10 = vadd.f32 %v6206_v53, %v6205_v36  ;;  %v6208_v25 = vpop.f32.mrb[94].mxu1  ;;  %5162 = vadd.xlane.f32.xlu1 %v8419_v49 }
 0x3d6   : > { %v6209_v14 = vpop.f32.mrb[95].mxu1 }
 0x3d7   : > { %v5034_v31 = vadd.f32 %v6207_v10, %v8350_v7  ;;  %v6210_v0 = vadd.f32 %v6209_v14, %v6208_v25 }
 0x3d9   : > { %v5037_v12 = vadd.f32 %v6210_v0, %v8350_v7  ;;  %v8425_v19 = vadd.f32 %v7135_v11, %v5034_v31 }
 0x3db   : > { %v6211_v44 = vpop.f32.mrb[96].mxu1  ;;  %5164 = vadd.xlane.f32.xlu0 %v8425_v19  ;;  %v8429_v38 = vadd.f32 %v7136_v3, %v5037_v12  ;;  %v7143_v12 = vld [vmem:[%s7650_s16 + $0xb0] sm:$0xff]  ;;  %v7144_v3 = vld [vmem:[%s7650_s16 + $0xb8] sm:$0xff] }
 0x3dc   : > { %v6212_v4 = vpop.f32.mrb[97].mxu1 }
 0x3dd   : > { %v6213_v29 = vadd.f32 %v6212_v4, %v6211_v44  ;;  %v6214_v39 = vpop.f32.mrb[98].mxu1  ;;  %5166 = vadd.xlane.f32.xlu1 %v8429_v38 }
 0x3de   : > { %v6215_v20 = vpop.f32.mrb[99].mxu1 }
 0x3df   : > { %v5042_v5 = vadd.f32 %v6213_v29, %v8350_v7  ;;  %v6216_v54 = vadd.f32 %v6215_v20, %v6214_v39 }
 0x3e1   : > { %v5045_v21 = vadd.f32 %v6216_v54, %v8350_v7  ;;  %v8435_v6 = vadd.f32 %v7137_v2, %v5042_v5 }
 0x3e3   : > { %v6217_v56 = vpop.f32.mrb[100].mxu1  ;;  %5168 = vadd.xlane.f32.xlu0 %v8435_v6  ;;  %v8439_v15 = vadd.f32 %v7138_v30, %v5045_v21 }
 0x3e4   : > { %v6218_v41 = vpop.f32.mrb[101].mxu1 }
 0x3e5   : > { %v6219_v59 = vadd.f32 %v6218_v41, %v6217_v56  ;;  %v6220_v34 = vpop.f32.mrb[102].mxu1  ;;  %5170 = vadd.xlane.f32.xlu1 %v8439_v15  ;;  %v7145_v56 = vld [vmem:[%s7650_s16 + $0xc0] sm:$0xff] }
 0x3e6   : > { %v6221_v13 = vpop.f32.mrb[103].mxu1 }
 0x3e7   : > { %v5050_v63 = vadd.f32 %v6219_v59, %v8350_v7  ;;  %v6222_v16 = vadd.f32 %v6221_v13, %v6220_v34  ;;  %v7146_v59 = vld [vmem:[%s7650_s16 + $0xc8] sm:$0xff] }
 0x3e9   : > { %v5053_v22 = vadd.f32 %v6222_v16, %v8350_v7  ;;  %v8445_v45 = vadd.f32 %v7139_v1, %v5050_v63 }
 0x3eb   : > { %v6223_v58 = vpop.f32.mrb[104].mxu1  ;;  %5172 = vadd.xlane.f32.xlu0 %v8445_v45  ;;  %v8449_v61 = vadd.f32 %v7140_v23, %v5053_v22 }
 0x3ec   : > { %v6224_v24 = vpop.f32.mrb[105].mxu1 }
 0x3ed   : > { %v6225_v28 = vadd.f32 %v6224_v24, %v6223_v58  ;;  %v6226_v26 = vpop.f32.mrb[106].mxu1  ;;  %5174 = vadd.xlane.f32.xlu1 %v8449_v61  ;;  %v7147_v24 = vld [vmem:[%s7650_s16 + $0xd0] sm:$0xff] }
 0x3ee   : > { %v6227_v60 = vpop.f32.mrb[107].mxu1 }
 0x3ef   : > { %v5058_v27 = vadd.f32 %v6225_v28, %v8350_v7  ;;  %v6228_v47 = vadd.f32 %v6227_v60, %v6226_v26  ;;  %v7148_v60 = vld [vmem:[%s7650_s16 + $0xd8] sm:$0xff] }
 0x3f1   : > { %v5061_v32 = vadd.f32 %v6228_v47, %v8350_v7  ;;  %v8455_v57 = vadd.f32 %v7141_v48, %v5058_v27 }
 0x3f3   : > { %v6229_v35 = vpop.f32.mrb[108].mxu1  ;;  %5176 = vadd.xlane.f32.xlu0 %v8455_v57  ;;  %v8459_v36 = vadd.f32 %v7142_v50, %v5061_v32 }
 0x3f4   : > { %v6230_v55 = vpop.f32.mrb[109].mxu1 }
 0x3f5   : > { %v6231_v53 = vadd.f32 %v6230_v55, %v6229_v35  ;;  %v6232_v10 = vpop.f32.mrb[110].mxu1  ;;  %5178 = vadd.xlane.f32.xlu1 %v8459_v36 }
 0x3f6   : > { %v6233_v25 = vpop.f32.mrb[111].mxu1 }
 0x3f7   : > { %v5066_v14 = vadd.f32 %v6231_v53, %v8350_v7  ;;  %v6234_v31 = vadd.f32 %v6233_v25, %v6232_v10  ;;  %v7149_v10 = vld [vmem:[%s7650_s16 + $0xe0] sm:$0xff] }
 0x3f9   : > { %v5069_v0 = vadd.f32 %v6234_v31, %v8350_v7  ;;  %v8465_v11 = vadd.f32 %v7143_v12, %v5066_v14  ;;  %v7150_v31 = vld [vmem:[%s7650_s16 + $0xe8] sm:$0xff] }
 0x3fb   : > { %v6235_v44 = vpop.f32.mrb[112].mxu1  ;;  %5180 = vadd.xlane.f32.xlu0 %v8465_v11  ;;  %v8469_v4 = vadd.f32 %v7144_v3, %v5069_v0 }
 0x3fc   : > { %v6236_v29 = vpop.f32.mrb[113].mxu1 }
 0x3fd   : > { %v6237_v39 = vadd.f32 %v6236_v29, %v6235_v44  ;;  %v6238_v20 = vpop.f32.mrb[114].mxu1  ;;  %5182 = vadd.xlane.f32.xlu1 %v8469_v4 }
 0x3fe   : > { %v6239_v5 = vpop.f32.mrb[115].mxu1 }
 0x3ff   : > { %v5074_v54 = vadd.f32 %v6237_v39, %v8350_v7  ;;  %v6240_v21 = vadd.f32 %v6239_v5, %v6238_v20 }
 0x401   : > { %v5077_v2 = vadd.f32 %v6240_v21, %v8350_v7  ;;  %v8475_v30 = vadd.f32 %v7145_v56, %v5074_v54  ;;  %v7151_v54 = vld [vmem:[%s7650_s16 + $0xf0] sm:$0xff] }
 0x403   : > { %v6241_v41 = vpop.f32.mrb[116].mxu1  ;;  %5184 = vadd.xlane.f32.xlu0 %v8475_v30  ;;  %v8479_v34 = vadd.f32 %v7146_v59, %v5077_v2  ;;  %v7152_v2 = vld [vmem:[%s7650_s16 + $0xf8] sm:$0xff]  ;;  %s7269_s16 = scalar_lea.vmem %s8818_s14, 4096 }
 0x404   : > { %v6242_v13 = vpop.f32.mrb[117].mxu1  ;;  %p7270_p2 = scmp.ne.s32.totalorder %s8818_s14, %s7269_s16  ;;  %p7277_p9 = scmp.lt.s32.totalorder %s7275_s21, %s7269_s16 }
 0x405   : > { %v6243_v63 = vadd.f32 %v6242_v13, %v6241_v41  ;;  %v6244_v16 = vpop.f32.mrb[118].mxu1  ;;  %5186 = vadd.xlane.f32.xlu1 %v8479_v34 }
 0x406   : > { %v6245_v22 = vpop.f32.mrb[119].mxu1  ;;  %p7271_p10 = pnand %p7270_p2, %p8954_p6  ;;  %p7278_p5 = por %p7277_p9, %p7276_p4 }
 0x407   : > { %v5082_v1 = vadd.f32 %v6243_v63, %v8350_v7  ;;  %v6246_v58 = vadd.f32 %v6245_v22, %v6244_v16 }
 0x408   : > { %p7272_p3 = pneg %p7271_p10 }
 0x409   : > { %v5085_v23 = vadd.f32 %v6246_v58, %v8350_v7  ;;  %v8485_v28 = vadd.f32 %v7147_v24, %v5082_v1 }
 0x40a   : > { %p7279_p7 = pnand %p7278_p5, %p7272_p3 }
 0x40b   : > { %v6247_v26 = vpop.f32.mrb[120].mxu1  ;;  %5188 = vadd.xlane.f32.xlu0 %v8485_v28  ;;  %v8489_v27 = vadd.f32 %v7148_v60, %v5085_v23 }
 0x40c   : > { %v6248_v47 = vpop.f32.mrb[121].mxu1 }
 0x40d   : > { %v6249_v32 = vadd.f32 %v6248_v47, %v6247_v26  ;;  %v6250_v48 = vpop.f32.mrb[122].mxu1  ;;  %5190 = vadd.xlane.f32.xlu1 %v8489_v27 }
 0x40e   : > { %v6251_v35 = vpop.f32.mrb[123].mxu1 }
 0x40f   : > { %v5090_v50 = vadd.f32 %v6249_v32, %v8350_v7  ;;  %v6252_v55 = vadd.f32 %v6251_v35, %v6250_v48 }
 0x411   : > { %v5093_v53 = vadd.f32 %v6252_v55, %v8350_v7  ;;  %v8495_v25 = vadd.f32 %v7149_v10, %v5090_v50 }
 0x413   : > { %5192 = vadd.xlane.f32.xlu0 %v8495_v25  ;;  %v6253_v14 = vpop.f32.mrb[124].mxu1  ;;  %v8499_v0 = vadd.f32 %v7150_v31, %v5093_v53 }
 0x414   : > { %v6254_v12 = vpop.f32.mrb[125].mxu1 }
 0x415   : > { %v6255_v44 = vadd.f32 %v6254_v12, %v6253_v14  ;;  %5194 = vadd.xlane.f32.xlu1 %v8499_v0  ;;  %v6256_v3 = vpop.f32.mrb[126].mxu1 }
 0x416   : > { %v6257_v29 = vpop.f32.mrb[127].mxu1 }
 0x417   : > { %v5098_v39 = vadd.f32 %v6255_v44, %v8350_v7  ;;  %v6258_v20 = vadd.f32 %v6257_v29, %v6256_v3 }
 0x419   : > { %v5101_v5 = vadd.f32 %v6258_v20, %v8350_v7  ;;  %v8505_v21 = vadd.f32 %v7151_v54, %v5098_v39 }
 0x41b   : > { %5196 = vadd.xlane.f32.xlu0 %v8505_v21  ;;  %v8509_v56 = vadd.f32 %v7152_v2, %v5101_v5 }
 0x41d   : > { %5198 = vadd.xlane.f32.xlu1 %v8509_v56 }
 0x430   : > { %v5137_v41 = vpop.xlane.xlu0 %5136 }
 0x431   : > { %v5201_v59 = vmul.f32 0.0078125, %v5137_v41 }
 0x433   : > { %v8513_v13 = vsub.f32 %v8355_v18, %v5201_v59 }
 0x434   : > { %v5139_v63 = vpop.xlane.xlu0 %5138 }
 0x435   : > { %v5202_v16 = vmul.f32 0.0078125, %v5139_v63  ;;  %v5265_v7 = vmul.f32 %v8513_v13, %v8513_v13 }
 0x437   : > { %v8518_v22 = vsub.f32 %v8359_v8, %v5202_v16  ;;  %5297 = vadd.xlane.f32.xlu0 %v5265_v7 }
 0x438   : > { %v5141_v1 = vpop.xlane.xlu1 %5140 }
 0x439   : > { %v5203_v58 = vmul.f32 0.0078125, %v5141_v1  ;;  %v5266_v23 = vmul.f32 %v8518_v22, %v8518_v22 }
 0x43b   : > { %v8523_v24 = vsub.f32 %v8365_v9, %v5203_v58  ;;  %5299 = vadd.xlane.f32.xlu1 %v5266_v23 }
 0x43c   : > { %v5143_v18 = vpop.xlane.xlu1 %5142 }
 0x43d   : > { %v5204_v26 = vmul.f32 0.0078125, %v5143_v18  ;;  %v5267_v60 = vmul.f32 %v8523_v24, %v8523_v24 }
 0x43f   : > { %v8528_v47 = vsub.f32 %v8369_v51, %v5204_v26  ;;  %5301 = vadd.xlane.f32.xlu0 %v5267_v60 }
 0x440   : > { %v5145_v8 = vpop.xlane.xlu0 %5144 }
 0x441   : > { %v5205_v32 = vmul.f32 0.0078125, %v5145_v8  ;;  %v5268_v48 = vmul.f32 %v8528_v47, %v8528_v47 }
 0x442   : > { %v5147_v35 = vpop.xlane.xlu1 %5146 }
 0x443   : > { %v8533_v50 = vsub.f32 %v8375_v52, %v5205_v32  ;;  %v5206_v9 = vmul.f32 0.0078125, %v5147_v35  ;;  %5303 = vadd.xlane.f32.xlu1 %v5268_v48 }
 0x445   : > { %v8536_v55 = vsub.f32 %v8379_v37, %v5206_v9  ;;  %v5269_v53 = vmul.f32 %v8533_v50, %v8533_v50 }
 0x447   : > { %5305 = vadd.xlane.f32.xlu0 %v5269_v53  ;;  %v5270_v51 = vmul.f32 %v8536_v55, %v8536_v55 }
 0x448   : > { %v5149_v10 = vpop.xlane.xlu0 %5148 }
 0x449   : > { %v5207_v14 = vmul.f32 0.0078125, %v5149_v10  ;;  %5307 = vadd.xlane.f32.xlu1 %v5270_v51 }
 0x44a   : > { %v5151_v31 = vpop.xlane.xlu1 %5150 }
 0x44b   : > { %v8543_v12 = vsub.f32 %v8385_v40, %v5207_v14  ;;  %v5208_v52 = vmul.f32 0.0078125, %v5151_v31 }
 0x44d   : > { %v8546_v44 = vsub.f32 %v8389_v62, %v5208_v52  ;;  %v5271_v37 = vmul.f32 %v8543_v12, %v8543_v12 }
 0x44f   : > { %5309 = vadd.xlane.f32.xlu0 %v5271_v37  ;;  %v5272_v3 = vmul.f32 %v8546_v44, %v8546_v44 }
 0x450   : > { %v5153_v29 = vpop.xlane.xlu0 %5152 }
 0x451   : > { %v5209_v39 = vmul.f32 0.0078125, %v5153_v29  ;;  %5311 = vadd.xlane.f32.xlu1 %v5272_v3 }
 0x452   : > { %v5155_v20 = vpop.xlane.xlu1 %5154 }
 0x453   : > { %v8553_v5 = vsub.f32 %v8395_v42, %v5209_v39  ;;  %v5210_v40 = vmul.f32 0.0078125, %v5155_v20 }
 0x455   : > { %v8556_v54 = vsub.f32 %v8399_v43, %v5210_v40  ;;  %v5273_v62 = vmul.f32 %v8553_v5, %v8553_v5 }
 0x457   : > { %5313 = vadd.xlane.f32.xlu0 %v5273_v62  ;;  %v5274_v2 = vmul.f32 %v8556_v54, %v8556_v54 }
 0x458   : > { %v5157_v41 = vpop.xlane.xlu0 %5156 }
 0x459   : > { %v5211_v59 = vmul.f32 0.0078125, %v5157_v41  ;;  %5315 = vadd.xlane.f32.xlu1 %v5274_v2 }
 0x45a   : > { %v5159_v63 = vpop.xlane.xlu1 %5158 }
 0x45b   : > { %v8563_v16 = vsub.f32 %v8405_v17, %v5211_v59  ;;  %v5212_v42 = vmul.f32 0.0078125, %v5159_v63 }
 0x45d   : > { %v8566_v7 = vsub.f32 %v8409_v46, %v5212_v42  ;;  %v5275_v43 = vmul.f32 %v8563_v16, %v8563_v16 }
 0x45f   : > { %5317 = vadd.xlane.f32.xlu0 %v5275_v43  ;;  %v5276_v1 = vmul.f32 %v8566_v7, %v8566_v7 }
 0x460   : > { %v5161_v58 = vpop.xlane.xlu0 %5160 }
 0x461   : > { %v5213_v23 = vmul.f32 0.0078125, %v5161_v58  ;;  %5319 = vadd.xlane.f32.xlu1 %v5276_v1 }
 0x462   : > { %v5163_v18 = vpop.xlane.xlu1 %5162 }
 0x463   : > { %v8573_v26 = vsub.f32 %v8415_v33, %v5213_v23  ;;  %v5214_v17 = vmul.f32 0.0078125, %v5163_v18 }
 0x465   : > { %v8576_v60 = vsub.f32 %v8419_v49, %v5214_v17  ;;  %v5277_v46 = vmul.f32 %v8573_v26, %v8573_v26 }
 0x467   : > { %5321 = vadd.xlane.f32.xlu0 %v5277_v46  ;;  %v5278_v8 = vmul.f32 %v8576_v60, %v8576_v60 }
 0x468   : > { %v5165_v32 = vpop.xlane.xlu0 %5164 }
 0x469   : > { %v5215_v48 = vmul.f32 0.0078125, %v5165_v32  ;;  %5323 = vadd.xlane.f32.xlu1 %v5278_v8 }
 0x46a   : > { %v5167_v35 = vpop.xlane.xlu1 %5166 }
 0x46b   : > { %v8583_v9 = vsub.f32 %v8425_v19, %v5215_v48  ;;  %v5216_v33 = vmul.f32 0.0078125, %v5167_v35 }
 0x46d   : > { %v8586_v53 = vsub.f32 %v8429_v38, %v5216_v33  ;;  %v5279_v49 = vmul.f32 %v8583_v9, %v8583_v9 }
 0x46f   : > { %5325 = vadd.xlane.f32.xlu0 %v5279_v49  ;;  %v5280_v51 = vmul.f32 %v8586_v53, %v8586_v53 }
 0x470   : > { %v5169_v10 = vpop.xlane.xlu0 %5168 }
 0x471   : > { %v5217_v14 = vmul.f32 0.0078125, %v5169_v10  ;;  %5327 = vadd.xlane.f32.xlu1 %v5280_v51 }
 0x472   : > { %v5171_v31 = vpop.xlane.xlu1 %5170 }
 0x473   : > { %v8593_v52 = vsub.f32 %v8435_v6, %v5217_v14  ;;  %v5218_v19 = vmul.f32 0.0078125, %v5171_v31 }
 0x475   : > { %v8596_v37 = vsub.f32 %v8439_v15, %v5218_v19  ;;  %v5281_v38 = vmul.f32 %v8593_v52, %v8593_v52 }
 0x477   : > { %5329 = vadd.xlane.f32.xlu0 %v5281_v38  ;;  %v5282_v3 = vmul.f32 %v8596_v37, %v8596_v37 }
 0x478   : > { %v5173_v29 = vpop.xlane.xlu0 %5172 }
 0x479   : > { %v5219_v39 = vmul.f32 0.0078125, %v5173_v29  ;;  %5331 = vadd.xlane.f32.xlu1 %v5282_v3 }
 0x47a   : > { %v5175_v20 = vpop.xlane.xlu1 %5174 }
 0x47b   : > { %v8603_v40 = vsub.f32 %v8445_v45, %v5219_v39  ;;  %v5220_v6 = vmul.f32 0.0078125, %v5175_v20 }
 0x47d   : > { %v8606_v62 = vsub.f32 %v8449_v61, %v5220_v6  ;;  %v5283_v15 = vmul.f32 %v8603_v40, %v8603_v40 }
 0x47f   : > { %5333 = vadd.xlane.f32.xlu0 %v5283_v15  ;;  %v5284_v2 = vmul.f32 %v8606_v62, %v8606_v62 }
 0x480   : > { %v5177_v41 = vpop.xlane.xlu0 %5176 }
 0x481   : > { %v5221_v59 = vmul.f32 0.0078125, %v5177_v41  ;;  %5335 = vadd.xlane.f32.xlu1 %v5284_v2 }
 0x482   : > { %v5179_v63 = vpop.xlane.xlu1 %5178 }
 0x483   : > { %v8613_v42 = vsub.f32 %v8455_v57, %v5221_v59  ;;  %v5222_v45 = vmul.f32 0.0078125, %v5179_v63 }
 0x485   : > { %v8616_v43 = vsub.f32 %v8459_v36, %v5222_v45  ;;  %v5285_v61 = vmul.f32 %v8613_v42, %v8613_v42 }
 0x487   : > { %5337 = vadd.xlane.f32.xlu0 %v5285_v61  ;;  %v5286_v1 = vmul.f32 %v8616_v43, %v8616_v43 }
 0x488   : > { %v5181_v58 = vpop.xlane.xlu0 %5180 }
 0x489   : > { %v5223_v23 = vmul.f32 0.0078125, %v5181_v58  ;;  %5339 = vadd.xlane.f32.xlu1 %v5286_v1 }
 0x48a   : > { %v5183_v18 = vpop.xlane.xlu1 %5182 }
 0x48b   : > { %v8623_v17 = vsub.f32 %v8465_v11, %v5223_v23  ;;  %v5224_v57 = vmul.f32 0.0078125, %v5183_v18 }
 0x48d   : > { %v8626_v46 = vsub.f32 %v8469_v4, %v5224_v57  ;;  %v5287_v36 = vmul.f32 %v8623_v17, %v8623_v17 }
 0x48f   : > { %5341 = vadd.xlane.f32.xlu0 %v5287_v36  ;;  %v5288_v8 = vmul.f32 %v8626_v46, %v8626_v46 }
 0x490   : > { %v5185_v32 = vpop.xlane.xlu0 %5184 }
 0x491   : > { %v5225_v48 = vmul.f32 0.0078125, %v5185_v32  ;;  %5343 = vadd.xlane.f32.xlu1 %v5288_v8 }
 0x492   : > { %v5187_v35 = vpop.xlane.xlu1 %5186 }
 0x493   : > { %v8633_v33 = vsub.f32 %v8475_v30, %v5225_v48  ;;  %v5226_v11 = vmul.f32 0.0078125, %v5187_v35 }
 0x495   : > { %v8636_v49 = vsub.f32 %v8479_v34, %v5226_v11  ;;  %v5289_v4 = vmul.f32 %v8633_v33, %v8633_v33 }
 0x497   : > { %5345 = vadd.xlane.f32.xlu0 %v5289_v4  ;;  %v5290_v51 = vmul.f32 %v8636_v49, %v8636_v49  ;;  %v8675_v4 = vld [vmem:[%s8876_s6] ss:$0 sm:$0xff] }
 0x498   : > { %v5189_v10 = vpop.xlane.xlu0 %5188 }
 0x499   : > { %v5227_v14 = vmul.f32 0.0078125, %v5189_v10  ;;  %5347 = vadd.xlane.f32.xlu1 %v5290_v51 }
 0x49a   : > { %v5191_v31 = vpop.xlane.xlu1 %5190 }
 0x49b   : > { %v8643_v19 = vsub.f32 %v8485_v28, %v5227_v14  ;;  %v5228_v30 = vmul.f32 0.0078125, %v5191_v31  ;;  %v8681_v31 = vld [vmem:[%s8877_s7] ss:$0 sm:$0xff] }
 0x49d   : > { %v8646_v38 = vsub.f32 %v8489_v27, %v5228_v30  ;;  %v5291_v34 = vmul.f32 %v8643_v19, %v8643_v19 }
 0x49f   : > { %5349 = vadd.xlane.f32.xlu0 %v5291_v34  ;;  %v5292_v3 = vmul.f32 %v8646_v38, %v8646_v38 }
 0x4a0   : > { %v5193_v29 = vpop.xlane.xlu0 %5192 }
 0x4a1   : > { %v5229_v39 = vmul.f32 0.0078125, %v5193_v29  ;;  %5351 = vadd.xlane.f32.xlu1 %v5292_v3 }
 0x4a2   : > { %v5195_v20 = vpop.xlane.xlu1 %5194 }
 0x4a3   : > { %v8653_v6 = vsub.f32 %v8495_v25, %v5229_v39  ;;  %v5230_v28 = vmul.f32 0.0078125, %v5195_v20 }
 0x4a5   : > { %v8656_v15 = vsub.f32 %v8499_v0, %v5230_v28  ;;  %v5293_v27 = vmul.f32 %v8653_v6, %v8653_v6 }
 0x4a7   : > { %5353 = vadd.xlane.f32.xlu0 %v5293_v27  ;;  %v5294_v2 = vmul.f32 %v8656_v15, %v8656_v15 }
 0x4a8   : > { %v5197_v41 = vpop.xlane.xlu0 %5196 }
 0x4a9   : > { %v5231_v59 = vmul.f32 0.0078125, %v5197_v41  ;;  %5355 = vadd.xlane.f32.xlu1 %v5294_v2 }
 0x4aa   : > { %v5199_v63 = vpop.xlane.xlu1 %5198 }
 0x4ab   : > { %v8663_v45 = vsub.f32 %v8505_v21, %v5231_v59  ;;  %v5232_v25 = vmul.f32 0.0078125, %v5199_v63 }
 0x4ad   : > { %v8666_v61 = vsub.f32 %v8509_v56, %v5232_v25  ;;  %v5295_v0 = vmul.f32 %v8663_v45, %v8663_v45 }
 0x4af   : > { %5357 = vadd.xlane.f32.xlu0 %v5295_v0  ;;  %v5296_v1 = vmul.f32 %v8666_v61, %v8666_v61 }
 0x4b1   : > { %5359 = vadd.xlane.f32.xlu1 %v5296_v1 }
 0x4c4   : > { %v5298_v58 = vpop.xlane.xlu0 %5297 }
 0x4c5   : > { %v5361_v23 = vmul.f32 0.0078125, %v5298_v58 }
 0x4c7   : > { %v5393_v18 = vadd.f32 1e-05, %v5361_v23 }
 0x4c8   : > { %v5300_v57 = vpop.xlane.xlu1 %5299 }
 0x4c9   : > { %7057 = vrsqrt.f32 %v5393_v18  ;;  %v5362_v36 = vmul.f32 0.0078125, %v5300_v57 }
 0x4cb   : > { %v5394_v21 = vadd.f32 1e-05, %v5362_v36 }
 0x4cc   : > { %v5302_v8 = vpop.xlane.xlu0 %5301 }
 0x4cd   : > { %7059 = vrsqrt.f32 %v5394_v21  ;;  %v5363_v32 = vmul.f32 0.0078125, %v5302_v8 }
 0x4cf   : > { %v5395_v56 = vadd.f32 1e-05, %v5363_v32 }
 0x4d0   : > { %v5304_v48 = vpop.xlane.xlu1 %5303 }
 0x4d1   : > { %7061 = vrsqrt.f32 %v5395_v56  ;;  %v5364_v35 = vmul.f32 0.0078125, %v5304_v48 }
 0x4d3   : > { %v7058_v11 = vpop.eup %7057  ;;  %v5396_v51 = vadd.f32 1e-05, %v5364_v35 }
 0x4d4   : > { %v5457_v10 = vmul.f32 %v7058_v11, %v8513_v13  ;;  %v5306_v14 = vpop.xlane.xlu0 %5305 }
 0x4d5   : > { %7063 = vrsqrt.f32 %v5396_v51  ;;  %v5365_v30 = vmul.f32 0.0078125, %v5306_v14 }
 0x4d6   : > { %v5496_v34 = vmul.f32 %v8675_v4, %v5457_v10  ;;  %v5308_v3 = vpop.xlane.xlu1 %5307 }
 0x4d7   : > { %v7060_v29 = vpop.eup %7059  ;;  %v5397_v39 = vadd.f32 1e-05, %v5365_v30  ;;  %v5366_v20 = vmul.f32 0.0078125, %v5308_v3 }
 0x4d8   : > { %v5535_v28 = vadd.f32 %v8681_v31, %v5496_v34  ;;  %v5458_v27 = vmul.f32 %v7060_v29, %v8518_v22 }
 0x4d9   : > { %7065 = vrsqrt.f32 %v5397_v39  ;;  %v5398_v13 = vadd.f32 1e-05, %v5366_v20 }
 0x4da   : > { %5567 = vst [vmem:[%s8688_s0] sm:$0xff] %v5535_v28  ;;  %v5497_v2 = vmul.f32 %v8675_v4, %v5458_v27 }
 0x4db   : > { %v7062_v41 = vpop.eup %7061  ;;  %7067 = vrsqrt.f32 %v5398_v13 }
 0x4dc   : > { %v5536_v59 = vadd.f32 %v8681_v31, %v5497_v2  ;;  %v5459_v63 = vmul.f32 %v7062_v41, %v8523_v24  ;;  %v5310_v25 = vpop.xlane.xlu0 %5309 }
 0x4dd   : > { %v5367_v0 = vmul.f32 0.0078125, %v5310_v25 }
 0x4de   : > { %5568 = vst [vmem:[%s8688_s0 + $0x8] sm:$0xff] %v5536_v59  ;;  %v5498_v22 = vmul.f32 %v8675_v4, %v5459_v63  ;;  %v5312_v1 = vpop.xlane.xlu1 %5311 }
 0x4df   : > { %v7064_v58 = vpop.eup %7063  ;;  %v5399_v23 = vadd.f32 1e-05, %v5367_v0  ;;  %v5368_v18 = vmul.f32 0.0078125, %v5312_v1 }
 0x4e0   : > { %v5537_v57 = vadd.f32 %v8681_v31, %v5498_v22  ;;  %v5460_v36 = vmul.f32 %v7064_v58, %v8528_v47 }
 0x4e1   : > { %7069 = vrsqrt.f32 %v5399_v23  ;;  %v5400_v21 = vadd.f32 1e-05, %v5368_v18 }
 0x4e2   : > { %5569 = vst [vmem:[%s8688_s0 + $0x10] sm:$0xff] %v5537_v57  ;;  %v5499_v8 = vmul.f32 %v8675_v4, %v5460_v36 }
 0x4e3   : > { %v7066_v24 = vpop.eup %7065  ;;  %7071 = vrsqrt.f32 %v5400_v21 }
 0x4e4   : > { %v5538_v32 = vadd.f32 %v8681_v31, %v5499_v8  ;;  %v5461_v56 = vmul.f32 %v7066_v24, %v8533_v50  ;;  %v5314_v48 = vpop.xlane.xlu0 %5313 }
 0x4e5   : > { %v7068_v35 = vpop.eup %7067  ;;  %v5369_v11 = vmul.f32 0.0078125, %v5314_v48 }
 0x4e6   : > { %5570 = vst [vmem:[%s8688_s0 + $0x18] sm:$0xff] %v5538_v32  ;;  %v5500_v51 = vmul.f32 %v8675_v4, %v5461_v56  ;;  %v5462_v47 = vmul.f32 %v7068_v35, %v8536_v55  ;;  %v5316_v10 = vpop.xlane.xlu1 %5315 }
 0x4e7   : > { %v5401_v14 = vadd.f32 1e-05, %v5369_v11  ;;  %v5370_v30 = vmul.f32 0.0078125, %v5316_v10 }
 0x4e8   : > { %v5539_v34 = vadd.f32 %v8681_v31, %v5500_v51  ;;  %v5501_v3 = vmul.f32 %v8675_v4, %v5462_v47 }
 0x4e9   : > { %7073 = vrsqrt.f32 %v5401_v14  ;;  %v5402_v29 = vadd.f32 1e-05, %v5370_v30 }
 0x4ea   : > { %5571 = vst [vmem:[%s8688_s0 + $0x20] sm:$0xff] %v5539_v34  ;;  %v5540_v50 = vadd.f32 %v8681_v31, %v5501_v3 }
 0x4eb   : > { %v7070_v39 = vpop.eup %7069  ;;  %7075 = vrsqrt.f32 %v5402_v29 }
 0x4ec   : > { %5572 = vst [vmem:[%s8688_s0 + $0x28] sm:$0xff] %v5540_v50  ;;  %v5463_v20 = vmul.f32 %v7070_v39, %v8543_v12  ;;  %v5318_v28 = vpop.xlane.xlu0 %5317 }
 0x4ed   : > { %v7072_v55 = vpop.eup %7071  ;;  %v5371_v27 = vmul.f32 0.0078125, %v5318_v28 }
 0x4ee   : > { %v5502_v13 = vmul.f32 %v8675_v4, %v5463_v20  ;;  %v5464_v2 = vmul.f32 %v7072_v55, %v8546_v44  ;;  %v5320_v41 = vpop.xlane.xlu1 %5319 }
 0x4ef   : > { %v5403_v59 = vadd.f32 1e-05, %v5371_v27  ;;  %v5372_v63 = vmul.f32 0.0078125, %v5320_v41 }
 0x4f0   : > { %v5541_v25 = vadd.f32 %v8681_v31, %v5502_v13  ;;  %v5503_v0 = vmul.f32 %v8675_v4, %v5464_v2 }
 0x4f1   : > { %7077 = vrsqrt.f32 %v5403_v59  ;;  %v5404_v22 = vadd.f32 1e-05, %v5372_v63 }
 0x4f2   : > { %5573 = vst [vmem:[%s8688_s0 + $0x30] sm:$0xff] %v5541_v25  ;;  %v5542_v12 = vadd.f32 %v8681_v31, %v5503_v0 }
 0x4f3   : > { %v7074_v1 = vpop.eup %7073  ;;  %7079 = vrsqrt.f32 %v5404_v22 }
 0x4f4   : > { %5574 = vst [vmem:[%s8688_s0 + $0x38] sm:$0xff] %v5542_v12  ;;  %v5465_v58 = vmul.f32 %v7074_v1, %v8553_v5  ;;  %v5322_v23 = vpop.xlane.xlu0 %5321 }
 0x4f5   : > { %v7076_v44 = vpop.eup %7075  ;;  %v5373_v18 = vmul.f32 0.0078125, %v5322_v23 }
 0x4f6   : > { %v5504_v57 = vmul.f32 %v8675_v4, %v5465_v58  ;;  %v5466_v36 = vmul.f32 %v7076_v44, %v8556_v54  ;;  %v5324_v21 = vpop.xlane.xlu1 %5323 }
 0x4f7   : > { %v5405_v8 = vadd.f32 1e-05, %v5373_v18  ;;  %v5374_v24 = vmul.f32 0.0078125, %v5324_v21 }
 0x4f8   : > { %v5543_v32 = vadd.f32 %v8681_v31, %v5504_v57  ;;  %v5505_v56 = vmul.f32 %v8675_v4, %v5466_v36 }
 0x4f9   : > { %7081 = vrsqrt.f32 %v5405_v8  ;;  %v5406_v48 = vadd.f32 1e-05, %v5374_v24 }
 0x4fa   : > { %5575 = vst [vmem:[%s8688_s0 + $0x40] sm:$0xff] %v5543_v32  ;;  %v5544_v5 = vadd.f32 %v8681_v31, %v5505_v56 }
 0x4fb   : > { %v7078_v35 = vpop.eup %7077  ;;  %7083 = vrsqrt.f32 %v5406_v48 }
 0x4fc   : > { %5576 = vst [vmem:[%s8688_s0 + $0x48] sm:$0xff] %v5544_v5  ;;  %v5467_v11 = vmul.f32 %v7078_v35, %v8563_v16  ;;  %v5326_v51 = vpop.xlane.xlu0 %5325 }
 0x4fd   : > { %v7080_v54 = vpop.eup %7079  ;;  %v5375_v47 = vmul.f32 0.0078125, %v5326_v51 }
 0x4fe   : > { %v5506_v10 = vmul.f32 %v8675_v4, %v5467_v11  ;;  %v5468_v14 = vmul.f32 %v7080_v54, %v8566_v7  ;;  %v5328_v30 = vpop.xlane.xlu1 %5327 }
 0x4ff   : > { %v5407_v34 = vadd.f32 1e-05, %v5375_v47  ;;  %v5376_v3 = vmul.f32 0.0078125, %v5328_v30 }
 0x500   : > { %v5545_v29 = vadd.f32 %v8681_v31, %v5506_v10  ;;  %v5507_v50 = vmul.f32 %v8675_v4, %v5468_v14 }
 0x501   : > { %7085 = vrsqrt.f32 %v5407_v34  ;;  %v5408_v39 = vadd.f32 1e-05, %v5376_v3 }
 0x502   : > { %5577 = vst [vmem:[%s8688_s0 + $0x50] sm:$0xff] %v5545_v29  ;;  %v5546_v16 = vadd.f32 %v8681_v31, %v5507_v50 }
 0x503   : > { %v7082_v20 = vpop.eup %7081  ;;  %7087 = vrsqrt.f32 %v5408_v39 }
 0x504   : > { %5578 = vst [vmem:[%s8688_s0 + $0x58] sm:$0xff] %v5546_v16  ;;  %v5469_v28 = vmul.f32 %v7082_v20, %v8573_v26  ;;  %v5330_v55 = vpop.xlane.xlu0 %5329 }
 0x505   : > { %v7084_v7 = vpop.eup %7083  ;;  %v5377_v27 = vmul.f32 0.0078125, %v5330_v55 }
 0x506   : > { %v5508_v13 = vmul.f32 %v8675_v4, %v5469_v28  ;;  %v5470_v2 = vmul.f32 %v7084_v7, %v8576_v60  ;;  %v5332_v41 = vpop.xlane.xlu1 %5331 }
 0x507   : > { %v5409_v59 = vadd.f32 1e-05, %v5377_v27  ;;  %v5378_v63 = vmul.f32 0.0078125, %v5332_v41 }
 0x508   : > { %v5547_v25 = vadd.f32 %v8681_v31, %v5508_v13  ;;  %v5509_v0 = vmul.f32 %v8675_v4, %v5470_v2 }
 0x509   : > { %7089 = vrsqrt.f32 %v5409_v59  ;;  %v5410_v22 = vadd.f32 1e-05, %v5378_v63 }
 0x50a   : > { %5579 = vst [vmem:[%s8688_s0 + $0x60] sm:$0xff] %v5547_v25  ;;  %v5548_v26 = vadd.f32 %v8681_v31, %v5509_v0 }
 0x50b   : > { %v7086_v12 = vpop.eup %7085  ;;  %7091 = vrsqrt.f32 %v5410_v22 }
 0x50c   : > { %5580 = vst [vmem:[%s8688_s0 + $0x68] sm:$0xff] %v5548_v26  ;;  %v5471_v1 = vmul.f32 %v7086_v12, %v8583_v9  ;;  %v5334_v58 = vpop.xlane.xlu0 %5333 }
 0x50d   : > { %v7088_v60 = vpop.eup %7087  ;;  %v5379_v23 = vmul.f32 0.0078125, %v5334_v58 }
 0x50e   : > { %v5510_v44 = vmul.f32 %v8675_v4, %v5471_v1  ;;  %v5472_v18 = vmul.f32 %v7088_v60, %v8586_v53  ;;  %v5336_v57 = vpop.xlane.xlu1 %5335 }
 0x50f   : > { %v5411_v36 = vadd.f32 1e-05, %v5379_v23  ;;  %v5380_v21 = vmul.f32 0.0078125, %v5336_v57 }
 0x510   : > { %v5549_v8 = vadd.f32 %v8681_v31, %v5510_v44  ;;  %v5511_v24 = vmul.f32 %v8675_v4, %v5472_v18 }
 0x511   : > { %7093 = vrsqrt.f32 %v5411_v36  ;;  %v5412_v32 = vadd.f32 1e-05, %v5380_v21 }
 0x512   : > { %5581 = vst [vmem:[%s8688_s0 + $0x70] sm:$0xff] %v5549_v8  ;;  %v5550_v9 = vadd.f32 %v8681_v31, %v5511_v24 }
 0x513   : > { %v7090_v56 = vpop.eup %7089  ;;  %7095 = vrsqrt.f32 %v5412_v32 }
 0x514   : > { %5582 = vst [vmem:[%s8688_s0 + $0x78] sm:$0xff] %v5550_v9  ;;  %v5473_v48 = vmul.f32 %v7090_v56, %v8593_v52  ;;  %v5338_v5 = vpop.xlane.xlu0 %5337 }
 0x515   : > { %v7092_v53 = vpop.eup %7091  ;;  %v5381_v35 = vmul.f32 0.0078125, %v5338_v5 }
 0x516   : > { %v5512_v11 = vmul.f32 %v8675_v4, %v5473_v48  ;;  %v5474_v51 = vmul.f32 %v7092_v53, %v8596_v37  ;;  %v5340_v54 = vpop.xlane.xlu1 %5339 }
 0x517   : > { %v5413_v47 = vadd.f32 1e-05, %v5381_v35  ;;  %v5382_v10 = vmul.f32 0.0078125, %v5340_v54 }
 0x518   : > { %v5551_v14 = vadd.f32 %v8681_v31, %v5512_v11  ;;  %v5513_v30 = vmul.f32 %v8675_v4, %v5474_v51 }
 0x519   : > { %7097 = vrsqrt.f32 %v5413_v47  ;;  %v5414_v34 = vadd.f32 1e-05, %v5382_v10 }
 0x51a   : > { %5583 = vst [vmem:[%s8688_s0 + $0x80] sm:$0xff] %v5551_v14  ;;  %v5552_v52 = vadd.f32 %v8681_v31, %v5513_v30 }
 0x51b   : > { %v7094_v3 = vpop.eup %7093  ;;  %7099 = vrsqrt.f32 %v5414_v34 }
 0x51c   : > { %5584 = vst [vmem:[%s8688_s0 + $0x88] sm:$0xff] %v5552_v52  ;;  %v5475_v29 = vmul.f32 %v7094_v3, %v8603_v40  ;;  %v5342_v50 = vpop.xlane.xlu0 %5341 }
 0x51d   : > { %v7096_v37 = vpop.eup %7095  ;;  %v5383_v39 = vmul.f32 0.0078125, %v5342_v50 }
 0x51e   : > { %v5514_v16 = vmul.f32 %v8675_v4, %v5475_v29  ;;  %v5476_v20 = vmul.f32 %v7096_v37, %v8606_v62  ;;  %v5344_v28 = vpop.xlane.xlu1 %5343 }
 0x51f   : > { %v5415_v55 = vadd.f32 1e-05, %v5383_v39  ;;  %v5384_v7 = vmul.f32 0.0078125, %v5344_v28 }
 0x520   : > { %v5553_v27 = vadd.f32 %v8681_v31, %v5514_v16  ;;  %v5515_v13 = vmul.f32 %v8675_v4, %v5476_v20 }
 0x521   : > { %7101 = vrsqrt.f32 %v5415_v55  ;;  %v5416_v2 = vadd.f32 1e-05, %v5384_v7 }
 0x522   : > { %5585 = vst [vmem:[%s8688_s0 + $0x90] sm:$0xff] %v5553_v27  ;;  %v5554_v40 = vadd.f32 %v8681_v31, %v5515_v13 }
 0x523   : > { %v7098_v41 = vpop.eup %7097  ;;  %7103 = vrsqrt.f32 %v5416_v2 }
 0x524   : > { %5586 = vst [vmem:[%s8688_s0 + $0x98] sm:$0xff] %v5554_v40  ;;  %v5477_v59 = vmul.f32 %v7098_v41, %v8613_v42  ;;  %v5346_v63 = vpop.xlane.xlu0 %5345 }
 0x525   : > { %v7100_v62 = vpop.eup %7099  ;;  %v5385_v25 = vmul.f32 0.0078125, %v5346_v63 }
 0x526   : > { %v5516_v0 = vmul.f32 %v8675_v4, %v5477_v59  ;;  %v5478_v22 = vmul.f32 %v7100_v62, %v8616_v43  ;;  %v5348_v26 = vpop.xlane.xlu1 %5347 }
 0x527   : > { %v5417_v12 = vadd.f32 1e-05, %v5385_v25  ;;  %v5386_v1 = vmul.f32 0.0078125, %v5348_v26 }
 0x528   : > { %v5555_v58 = vadd.f32 %v8681_v31, %v5516_v0  ;;  %v5517_v60 = vmul.f32 %v8675_v4, %v5478_v22 }
 0x529   : > { %7105 = vrsqrt.f32 %v5417_v12  ;;  %v5418_v23 = vadd.f32 1e-05, %v5386_v1 }
 0x52a   : > { %5587 = vst [vmem:[%s8688_s0 + $0xa0] sm:$0xff] %v5555_v58  ;;  %v5556_v42 = vadd.f32 %v8681_v31, %v5517_v60 }
 0x52b   : > { %v7102_v44 = vpop.eup %7101  ;;  %7107 = vrsqrt.f32 %v5418_v23 }
 0x52c   : > { %5588 = vst [vmem:[%s8688_s0 + $0xa8] sm:$0xff] %v5556_v42  ;;  %v5479_v18 = vmul.f32 %v7102_v44, %v8623_v17  ;;  %v5350_v57 = vpop.xlane.xlu0 %5349 }
 0x52d   : > { %v7104_v43 = vpop.eup %7103  ;;  %v5387_v36 = vmul.f32 0.0078125, %v5350_v57 }
 0x52e   : > { %v5518_v21 = vmul.f32 %v8675_v4, %v5479_v18  ;;  %v5480_v8 = vmul.f32 %v7104_v43, %v8626_v46  ;;  %v5352_v24 = vpop.xlane.xlu1 %5351 }
 0x52f   : > { %v5419_v32 = vadd.f32 1e-05, %v5387_v36  ;;  %v5388_v9 = vmul.f32 0.0078125, %v5352_v24 }
 0x530   : > { %v5557_v56 = vadd.f32 %v8681_v31, %v5518_v21  ;;  %v5519_v48 = vmul.f32 %v8675_v4, %v5480_v8 }
 0x531   : > { %7109 = vrsqrt.f32 %v5419_v32  ;;  %v5420_v5 = vadd.f32 1e-05, %v5388_v9 }
 0x532   : > { %5589 = vst [vmem:[%s8688_s0 + $0xb0] sm:$0xff] %v5557_v56  ;;  %v5558_v17 = vadd.f32 %v8681_v31, %v5519_v48 }
 0x533   : > { %v7106_v53 = vpop.eup %7105  ;;  %7111 = vrsqrt.f32 %v5420_v5 }
 0x534   : > { %5590 = vst [vmem:[%s8688_s0 + $0xb8] sm:$0xff] %v5558_v17  ;;  %v5481_v35 = vmul.f32 %v7106_v53, %v8633_v33  ;;  %v5354_v11 = vpop.xlane.xlu0 %5353 }
 0x535   : > { %v7108_v46 = vpop.eup %7107  ;;  %v5389_v51 = vmul.f32 0.0078125, %v5354_v11 }
 0x536   : > { %v5520_v54 = vmul.f32 %v8675_v4, %v5481_v35  ;;  %v5482_v47 = vmul.f32 %v7108_v46, %v8636_v49  ;;  %v5356_v10 = vpop.xlane.xlu1 %5355 }
 0x537   : > { %v5421_v14 = vadd.f32 1e-05, %v5389_v51  ;;  %v5390_v30 = vmul.f32 0.0078125, %v5356_v10 }
 0x538   : > { %v5559_v34 = vadd.f32 %v8681_v31, %v5520_v54  ;;  %v5521_v52 = vmul.f32 %v8675_v4, %v5482_v47 }
 0x539   : > { %7113 = vrsqrt.f32 %v5421_v14  ;;  %v5422_v3 = vadd.f32 1e-05, %v5390_v30 }
 0x53a   : > { %5591 = vst [vmem:[%s8688_s0 + $0xc0] sm:$0xff] %v5559_v34  ;;  %v5560_v33 = vadd.f32 %v8681_v31, %v5521_v52 }
 0x53b   : > { %v7110_v29 = vpop.eup %7109  ;;  %7115 = vrsqrt.f32 %v5422_v3 }
 0x53c   : > { %5592 = vst [vmem:[%s8688_s0 + $0xc8] sm:$0xff] %v5560_v33  ;;  %v5483_v50 = vmul.f32 %v7110_v29, %v8643_v19  ;;  %v5358_v37 = vpop.xlane.xlu0 %5357 }
 0x53d   : > { %v7112_v49 = vpop.eup %7111  ;;  %v5391_v39 = vmul.f32 0.0078125, %v5358_v37 }
 0x53e   : > { %v5522_v16 = vmul.f32 %v8675_v4, %v5483_v50  ;;  %v5484_v20 = vmul.f32 %v7112_v49, %v8646_v38  ;;  %v5360_v28 = vpop.xlane.xlu1 %5359 }
 0x53f   : > { %v5423_v55 = vadd.f32 1e-05, %v5391_v39  ;;  %v5392_v7 = vmul.f32 0.0078125, %v5360_v28 }
 0x540   : > { %v5561_v27 = vadd.f32 %v8681_v31, %v5522_v16  ;;  %v5523_v13 = vmul.f32 %v8675_v4, %v5484_v20 }
 0x541   : > { %7117 = vrsqrt.f32 %v5423_v55  ;;  %v5424_v2 = vadd.f32 1e-05, %v5392_v7 }
 0x542   : > { %5593 = vst [vmem:[%s8688_s0 + $0xd0] sm:$0xff] %v5561_v27  ;;  %v5562_v19 = vadd.f32 %v8681_v31, %v5523_v13 }
 0x543   : > { %v7114_v40 = vpop.eup %7113  ;;  %7119 = vrsqrt.f32 %v5424_v2 }
 0x544   : > { %5594 = vst [vmem:[%s8688_s0 + $0xd8] sm:$0xff] %v5562_v19  ;;  %v5485_v38 = vmul.f32 %v7114_v40, %v8653_v6 }
 0x545   : > { %v7116_v41 = vpop.eup %7115 }
 0x546   : > { %v5524_v59 = vmul.f32 %v8675_v4, %v5485_v38  ;;  %v5486_v63 = vmul.f32 %v7116_v41, %v8656_v15 }
 0x548   : > { %v5563_v62 = vadd.f32 %v8681_v31, %v5524_v59  ;;  %v5525_v25 = vmul.f32 %v8675_v4, %v5486_v63 }
 0x54a   : > { %5595 = vst [vmem:[%s8688_s0 + $0xe0] sm:$0xff] %v5563_v62  ;;  %v5564_v0 = vadd.f32 %v8681_v31, %v5525_v25 }
 0x54b   : > { %v7118_v22 = vpop.eup %7117 }
 0x54c   : > { %5596 = vst [vmem:[%s8688_s0 + $0xe8] sm:$0xff] %v5564_v0  ;;  %v5487_v26 = vmul.f32 %v7118_v22, %v8663_v45 }
 0x54d   : > { %v7120_v6 = vpop.eup %7119 }
 0x54e   : > { %v5526_v12 = vmul.f32 %v8675_v4, %v5487_v26  ;;  %v5488_v15 = vmul.f32 %v7120_v6, %v8666_v61 }
 0x550   : > { %v5565_v1 = vadd.f32 %v8681_v31, %v5526_v12  ;;  %v5527_v58 = vmul.f32 %v8675_v4, %v5488_v15 }
 0x552   : > { %5597 = vst [vmem:[%s8688_s0 + $0xf0] sm:$0xff] %v5565_v1  ;;  %v5566_v45 = vadd.f32 %v8681_v31, %v5527_v58 }
 0x554   : > { %5598 = vst [vmem:[%s8688_s0 + $0xf8] sm:$0xff] %v5566_v45 }
 0x555   : > { %7282 = shalt.err (!%p7279_p7)
}
 0x556   : > { %s7283_s17 = scalar_lea.hbm %s8816_s25, 4096  ;;  %s7287_s2 = scalar_lea.hbm %s8878_s8, 8192 }
 0x557   : > { %p7284_p13 = scmp.ne.s32.totalorder %s8816_s25, %s7283_s17  ;;  %p7288_p1 = scmp.lt.u32.totalorder %s8816_s25, %s8878_s8 }
 0x558   : > { %p7289_p11 = scmp.lt.u32.totalorder %s7287_s2, %s7283_s17  ;;  %p7291_p2 = scmp.lt.u32.totalorder %s7283_s17, %s8816_s25 }
 0x559   : > { %p7285_p8 = pnand %p7284_p13, %p8954_p6 }
 0x55a   : > { %p7290_p0 = por %p7289_p11, %p7288_p1 }
 0x55b   : > { %p7286_p12 = pneg %p7285_p8 }
 0x55c   : > { %p7292_p10 = por %p7291_p2, %p7290_p0 }
 0x55e   : > { %p7293_p3 = pnand %p7292_p10, %p7286_p12 }
 0x560   : > { %7296 = shalt.err (!%p7293_p3)
}
 0x561   : > { %s7375_s22 = smov 128   ;;  %s7376_s26 = smov 8  }
 0x562   : > { %6591 = dma.vmem_to_hbm [thread:$0]  (%p8954_p6), %s8818_s14, 4096, %s8816_s25, %s5600_s30, %s7375_s22, %s7375_s22, %s7376_s26  }
 0x563 PF: > { %s8955_s27 = sld [smem:[#allocation18_spill]]  ;;  %s8956_s0 = sld [smem:[#allocation20_spill]] }
 0x564   : > { %p8958_p9 = scmp.ge.s32.totalorder %s7363_s10, 2 }
 0x569   : > { %s5630_s24 = sand.u32 1, %s8955_s27   ;;  %p8957_p4 = scmp.ne.s32.totalorder %s8956_s0, 0 }
 0x56a   : > { %s5631_s23 = scalar_lea.sflag [#allocation6], %s5630_s24 }
 0x56b   : > { %p6608_p5 = pnand %p8958_p9, %p8957_p4 }
 0x56d   : > { %7338 = dma.done.wait (!%p6608_p5), %s5631_s23, 4096  }
 0x56e   : > { %7340 = vsyncadd (!%p6608_p5), %s5631_s23, 4294963200  ;;  %s28_s10 = sadd.s32 1, %s7363_s10   ;;  %s8959_s20 = sld [smem:[#allocation19_spill]] }
 0x56f   : > { %p25_p7 = scmp.ge.s32.totalorder %s28_s10, 4   ;;  %s8960_s29 = sld [smem:[#allocation22_spill]] }
 0x570   : > { %s8961_s18 = sld [smem:[#allocation21_spill]]  ;;  %s8962_s27 = smov %s7347_s28 }
 0x571   : > { %s8964_s30 = smov %s7359_s9  ;;  %27 = sbr.rel (!%p25_p7) target bundleno = 13 (0xd), region = 118 }
 0x574   : > { %s8963_s28 = smov %s8959_s20 }
 0x576   : > { %s8965_s9 = smov %s8961_s18 }
 0x578   :  { %5636 = vsyncpa [#allocation5], 1 }
 0x579   :  { %5638 = vsyncpa [#allocation5 + $0x1], 1 }
 0x57a   :  { %5639 = vsyncpa [#allocation8], 1 }
 0x57b   :  { %5641 = vsyncpa [#allocation8 + $0x1], 1 }
 0x57c   :  { %5642 = vsyncpa [#allocation11], 1 }
 0x57d   :  { %5643 = vsyncpa [#allocation6], 1 }
 0x57e   :  { %5645 = vsyncpa [#allocation6 + $0x1], 1 }

// kernel: tpu_custom_call.1
= control target key start
LH: loop header
LB: loop body
LE: loop exit
PB: predicated region body
PF: predicated region fallthrough
CT: control target
= control target key end

     0   :  { %s8870_s0 = inlined_call_operand.hbm [shape: f32[2,256,128], index: 0, kind: input, shape index: {}]   ;;  %s8871_s1 = inlined_call_operand.hbm [shape: bf16[2,1,8,128], index: 1, kind: input, shape index: {}]   ;;  %s8872_s2 = inlined_call_operand.hbm [shape: bf16[1152,256], index: 2, kind: input, shape index: {}]   ;;  %s8873_s3 = inlined_call_operand.vmem [shape: f32[1,256], index: 3, kind: input, shape index: {}]   ;;  %s8874_s4 = inlined_call_operand.hbm [shape: bf16[256,128], index: 4, kind: input, shape index: {}]   ;;  %s8875_s5 = inlined_call_operand.vmem [shape: f32[1,128], index: 5, kind: input, shape index: {}]   ;;  %s8876_s6 = inlined_call_operand.vmem [shape: f32[1,128], index: 6, kind: input, shape index: {}]   ;;  %s8877_s7 = inlined_call_operand.vmem [shape: f32[1,128], index: 7, kind: input, shape index: {}]   ;;  %s8878_s8 = inlined_call_operand.hbm [shape: f32[2,256,128], index: 8, kind: output, shape index: {}]  }
   0x1   :  { %8889 = sst [smem:[#allocation41_spill]] %s8870_s0 }
   0x2   :  { %8890 = sst [smem:[#allocation42_spill]] %s8872_s2 }
   0x3   :  { %8891 = sst [smem:[#allocation43_spill]] %s8874_s4 }
   0x4   :  { %13 = vsyncpa [#allocation5], 0 }
   0x5   :  { %15 = vsyncpa [#allocation5 + $0x1], 0 }
   0x6   :  { %16 = vsyncpa [#allocation8], 0 }
   0x7   :  { %18 = vsyncpa [#allocation8 + $0x1], 0 }
   0x8   :  { %19 = vsyncpa [#allocation11], 0 }
   0x9   :  { %20 = vsyncpa [#allocation6], 0 }
   0xa   :  { %22 = vsyncpa [#allocation6 + $0x1], 0  ;;  %s7422_s27 = smov 0   ;;  %s7424_s28 = smov 0  }
   0xb   :  { %s7426_s29 = smov 0   ;;  %s7428_s30 = smov 0  }
   0xc   :  { %s7430_s9 = smov 0   ;;  %s7432_s10 = smov 0  }
   0xd LB: > { %8892 = sst [smem:[#allocation18_spill]] %s7343_s27  ;;  %s7453_s11 = sadd.s32 4294967295, %s7363_s10   ;;  %s7363_s10 = sphi %s7432_s10, %s28_s10   ;;  %s7359_s9 = sphi %s7430_s9, %s8965_s9   ;;  %s7355_s30 = sphi %s7428_s30, %s8964_s30   ;;  %s7351_s29 = sphi %s7426_s29, %s8960_s29   ;;  %s7347_s28 = sphi %s7424_s28, %s8963_s28   ;;  %s7343_s27 = sphi %s7422_s27, %s8962_s27  }
   0xe   : > { %8893 = sst [smem:[#allocation19_spill]] %s7351_s29  ;;  %s5746_s12 = sadd.s32 4294967294, %s7363_s10  }
   0xf   : > { %p62_p0 = scmp.ne.s32.totalorder %s7347_s28, %s7343_s27  ;;  %p8879_p1 = scmp.eq.s32.totalorder %s7453_s11, 0 }
  0x10   : > { %p248_p3 = scmp.eq.s32.totalorder %s5746_s12, 1  ;;  %p5747_p5 = scmp.ge.s32.totalorder %s7363_s10, 1 }
  0x11   : > { %p7462_p4 = por %p8879_p1, %p62_p0  ;;  %p255_p7 = scmp.lt.s32.totalorder %s7363_s10, 3 }
  0x12   : > { %p7467_p6 = por %p248_p3, %p62_p0  ;;  %s7365_s16 = smov [#allocation9]  }
  0x13   : > { %s8894_s13 = scalar_select %p7462_p4, 1, 0 }
  0x14   : > { %s8895_s14 = scalar_select %p7467_p6, 1, 0 }
  0x15   : > { %p7472_p8 = pnand %p5747_p5, %p255_p7  ;;  %s267_s17 = sshll.u32 %s7365_s16, 4  ;;  %s7476_s17 = int_to_ptr.vmem [resolvable:$true] %s267_s17 }
  0x16   : > { %8896 = sst [smem:[#allocation20_spill]] %s8895_s14  ;;  %s7366_s19 = smov [#allocation10]  }
  0x17   : > { %s8897_s15 = scalar_select %p7472_p8, 1, 0 }
  0x18   : > { %p6593_p9 = pneg %p7472_p8  ;;  %s283_s20 = sshll.u32 %s7366_s19, 4  ;;  %s7487_s20 = int_to_ptr.vmem [resolvable:$true] %s283_s20 }
  0x19   : > { %s8899_s2 = sld [smem:[#allocation42_spill]] }
  0x1a   : > { %p7483_p11 = pnand %p6593_p9, %p8879_p1 }
  0x1c   : > { %p7155_p13 = pneg %p7483_p11 }
  0x1f   : > { %s7153_s23 = scalar_lea.hbm %s8899_s2, 18432 }
  0x20   : > { %p7154_p12 = scmp.ne.s32.totalorder %s8899_s2, %s7153_s23  ;;  %p7160_p5 = scmp.lt.u32.totalorder %s7153_s23, %s8899_s2 }
  0x22   : > { %p7156_p0 = pnand %p7155_p13, %p7154_p12 }
  0x24   : > { %p7157_p3 = pneg %p7156_p0 }
  0x26   : > { %p7162_p7 = pnand %p7160_p5, %p7157_p3 }
  0x28   : > { %7165 = shalt.err (!%p7162_p7)
}
  0x29   : > { %s7166_s16 = scalar_lea.vmem %s7476_s17, 18432  ;;  %p7174_p2 = scmp.lt.s32.totalorder %s7476_s17, %s7476_s17 }
  0x2a   : > { %p7167_p9 = scmp.ne.s32.totalorder %s7476_s17, %s7166_s16  ;;  %p7175_p12 = scmp.lt.s32.totalorder %s7166_s16, %s7166_s16 }
  0x2c   : > { %p7169_p10 = pnand %p7167_p9, %p7155_p13  ;;  %p7176_p0 = por %p7175_p12, %p7174_p2 }
  0x2e   : > { %p7170_p1 = pneg %p7169_p10 }
  0x30   : > { %p7177_p6 = pnand %p7176_p0, %p7170_p1 }
  0x32   : > { %7180 = shalt.err (!%p7177_p6)
}
  0x33   : > { %s8882_s19 = smov 128   ;;  %s8883_s21 = smov 8  }
  0x34   : > { %6596 = dma.hbm_to_vmem [thread:$0]  (!%p7483_p11), %s8899_s2, 18432, %s7476_s17, [#allocation8], %s8882_s19, %s8882_s19, %s8883_s21  }
  0x35   : > { %s8900_s4 = sld [smem:[#allocation43_spill]] }
  0x3b   : > { %s7181_s26 = scalar_lea.hbm %s8900_s4, 2048 }
  0x3c   : > { %p7182_p1 = scmp.ne.s32.totalorder %s8900_s4, %s7181_s26  ;;  %p7188_p10 = scmp.lt.u32.totalorder %s7181_s26, %s8900_s4 }
  0x3e   : > { %p7184_p2 = pnand %p7182_p1, %p7155_p13 }
  0x40   : > { %p7185_p6 = pneg %p7184_p2 }
  0x42   : > { %p7190_p3 = pnand %p7188_p10, %p7185_p6 }
  0x44   : > { %7193 = shalt.err (!%p7190_p3)
}
  0x45   : > { %s7194_s17 = scalar_lea.vmem %s7487_s20, 2048  ;;  %p7202_p12 = scmp.lt.s32.totalorder %s7487_s20, %s7487_s20 }
  0x46   : > { %p7195_p5 = scmp.ne.s32.totalorder %s7487_s20, %s7194_s17  ;;  %p7203_p0 = scmp.lt.s32.totalorder %s7194_s17, %s7194_s17 }
  0x48   : > { %p7197_p7 = pnand %p7195_p5, %p7155_p13  ;;  %p7204_p1 = por %p7203_p0, %p7202_p12 }
  0x4a   : > { %p7198_p9 = pneg %p7197_p7 }
  0x4c   : > { %p7205_p2 = pnand %p7204_p1, %p7198_p9 }
  0x4e   : > { %7208 = shalt.err (!%p7205_p2)
}
  0x4f   : > { %s7369_s27 = smov 64   ;;  %s7370_s14 = smov 4  }
  0x50   : > { %6599 = dma.hbm_to_vmem [thread:$0]  (!%p7483_p11), %s8900_s4, 2048, %s7487_s20, [#allocation11], %s7369_s27, %s7369_s27, %s7370_s14  }
  0x51   : > { %s40_s24 = sadd.s32 1, %s7359_s9  ;;  %s49_s25 = sadd.s32 1, %s7351_s29 }
  0x52   : > { %p42_p13 = scmp.ge.s32.totalorder %s40_s24, 2  ;;  %p56_p6 = scmp.ne.s32.totalorder %s7351_s29, %s7347_s28 }
  0x53   : > { %p57_p10 = scmp.eq.s32.totalorder %s7363_s10, 0  ;;  %p6613_p3 = scmp.lt.s32.totalorder %s7363_s10, 2 }
  0x54   : > { %s8967_s24 = smov (%p42_p13, %s40_s24), 0  ;;  %p8902_p7 = scmp.eq.s32.totalorder %s7453_s11, 1 }
  0x55   : > { %8901 = sst [smem:[#allocation21_spill]] %s8967_s24  ;;  %p58_p5 = por %p57_p10, %p56_p6 }
  0x56   : > { %p7554_p9 = por %p8902_p7, %p56_p6  ;;  %s44_s26 = ssub.s32 %s7359_s9, %s8967_s24 }
  0x57   : > { %s7561_s12 = sand.u32 1, %s7351_s29   ;;  %p47_p11 = scmp.eq.s32.totalorder %s44_s26, 0 }
  0x58   : > { %s8903_s18 = scalar_select %p7554_p9, 1, 0 }
  0x59   : > { %s5751_s20 = sshll.u32 %s7561_s12, 8  ;;  %s6113_s16 = sshll.u32 %s7359_s9, 12 }
  0x5a   : > { %s7566_s17 = scalar_select %p47_p11, %s7351_s29, %s49_s25  }
  0x5b   : > { %s8905_s0 = sld [smem:[#allocation41_spill]]  ;;  %s310_s23 = scalar_lea.vmem [#allocation4], %s5751_s20 }
  0x5c   : > { %8904 = sst [smem:[#allocation22_spill]] %s7566_s17  ;;  %s319_s19 = sshll.u32 %s310_s23, 4  ;;  %s7579_s19 = int_to_ptr.vmem [resolvable:$true] %s319_s19 }
  0x5d   : > { %p7575_p12 = pnand %p6613_p3, %p58_p5  ;;  %s307_s26 = scalar_lea.sflag [#allocation5], %s7561_s12 }
  0x5f   : > { %p7211_p1 = pneg %p7575_p12 }
  0x61   : > { %s7571_s22 = scalar_lea.hbm %s8905_s0, %s6113_s16  ;;  %s7214_s14 = scalar_lea.hbm %s8905_s0, 8192 }
  0x62   : > { %s7209_s27 = scalar_lea.hbm %s7571_s22, 4096  ;;  %p7215_p6 = scmp.lt.u32.totalorder %s7571_s22, %s8905_s0 }
  0x63   : > { %p7210_p0 = scmp.ne.s32.totalorder %s7571_s22, %s7209_s27  ;;  %p7216_p10 = scmp.lt.u32.totalorder %s7214_s14, %s7209_s27 }
  0x64   : > { %p7218_p5 = scmp.lt.u32.totalorder %s7209_s27, %s7571_s22 }
  0x65   : > { %p7212_p2 = pnand %p7211_p1, %p7210_p0  ;;  %p7217_p3 = por %p7216_p10, %p7215_p6 }
  0x67   : > { %p7213_p13 = pneg %p7212_p2  ;;  %p7219_p7 = por %p7218_p5, %p7217_p3 }
  0x69   : > { %p7220_p11 = pnand %p7219_p7, %p7213_p13 }
  0x6b   : > { %7223 = shalt.err (!%p7220_p11)
}
  0x6c   : > { %s7224_s25 = scalar_lea.vmem %s7579_s19, 4096  ;;  %s7371_s20 = smov [#allocation4]  }
  0x6d   : > { %p7225_p0 = scmp.ne.s32.totalorder %s7579_s19, %s7224_s25  ;;  %s7229_s16 = sshll.u32 %s7371_s20, 4  ;;  %s7230_s16 = int_to_ptr.vmem [resolvable:$false] %s7229_s16 }
  0x6e   : > { %s7231_s2 = scalar_lea.vmem %s7230_s16, 8192  ;;  %p7232_p4 = scmp.lt.s32.totalorder %s7579_s19, %s7230_s16 }
  0x6f   : > { %p7227_p2 = pnand %p7225_p0, %p7211_p1  ;;  %p7233_p6 = scmp.lt.s32.totalorder %s7231_s2, %s7224_s25 }
  0x71   : > { %p7228_p9 = pneg %p7227_p2  ;;  %p7234_p10 = por %p7233_p6, %p7232_p4 }
  0x73   : > { %p7235_p3 = pnand %p7234_p10, %p7228_p9 }
  0x75   : > { %7238 = shalt.err (!%p7235_p3)
}
  0x76   : > { %s8907_s27 = smov 8   ;;  %s8908_s14 = smov 128  }
  0x77   : > { %6603 = dma.hbm_to_vmem [thread:$0]  (!%p7575_p12), %s7571_s22, 4096, %s7579_s19, %s307_s26, %s8908_s14, %s8908_s14, %s8907_s27  }
  0x78   : > { %s5754_s23 = sshll.u32 %s7561_s12, 2  ;;  %s5755_s20 = sshll.u32 %s7359_s9, 6 }
  0x79   : > { %s7618_s2 = scalar_lea.hbm %s8871_s1, %s5755_s20  ;;  %s333_s0 = scalar_lea.vmem [#allocation7], %s5754_s23 }
  0x7a   : > { %s341_s4 = sshll.u32 %s333_s0, 4  ;;  %s8909_s24 = sand.u32 1, %s7363_s10   ;;  %s342_s4 = int_to_ptr.vmem [resolvable:$true] %s341_s4 }
  0x7b   : > { %s330_s17 = scalar_lea.sflag [#allocation8], %s8909_s24  ;;  %s7239_s29 = scalar_lea.hbm %s7618_s2, 64 }
  0x7c   : > { %p7240_p4 = scmp.ne.s32.totalorder %s7618_s2, %s7239_s29  ;;  %s7244_s22 = scalar_lea.hbm %s8871_s1, 128 }
  0x7d   : > { %p7245_p5 = scmp.lt.u32.totalorder %s7618_s2, %s8871_s1  ;;  %p7246_p7 = scmp.lt.u32.totalorder %s7244_s22, %s7239_s29 }
  0x7e   : > { %p7242_p9 = pnand %p7240_p4, %p7211_p1  ;;  %p7248_p0 = scmp.lt.u32.totalorder %s7239_s29, %s7618_s2 }
  0x7f   : > { %p7247_p11 = por %p7246_p7, %p7245_p5 }
  0x80   : > { %p7243_p13 = pneg %p7242_p9 }
  0x81   : > { %p7249_p2 = por %p7248_p0, %p7247_p11 }
  0x83   : > { %p7250_p6 = pnand %p7249_p2, %p7243_p13 }
  0x85   : > { %7253 = shalt.err (!%p7250_p6)
}
  0x86   : > { %s7254_s0 = scalar_lea.vmem %s342_s4, 64  ;;  %s7372_s24 = smov [#allocation7]  }
  0x87   : > { %p7255_p10 = scmp.ne.s32.totalorder %s342_s4, %s7254_s0  ;;  %s7259_s14 = sshll.u32 %s7372_s24, 4  ;;  %s7260_s14 = int_to_ptr.vmem [resolvable:$false] %s7259_s14 }
  0x88   : > { %s7261_s23 = scalar_lea.vmem %s7260_s14, 128  ;;  %p7262_p9 = scmp.lt.s32.totalorder %s342_s4, %s7260_s14 }
  0x89   : > { %p7257_p3 = pnand %p7255_p10, %p7211_p1  ;;  %p7263_p8 = scmp.lt.s32.totalorder %s7261_s23, %s7254_s0 }
  0x8b   : > { %p7258_p4 = pneg %p7257_p3  ;;  %p7264_p5 = por %p7263_p8, %p7262_p9 }
  0x8d   : > { %p7265_p7 = pnand %p7264_p5, %p7258_p4 }
  0x8f   : > { %7268 = shalt.err (!%p7265_p7)
}
  0x90   : > { %6606 = dma.hbm_to_vmem [thread:$0]  (!%p7575_p12), %s7618_s2, 64, %s342_s4, %s330_s17  }
  0x91   : > { %p8910_p13 = scmp.ne.s32.totalorder %s8897_s15, 0 }
  0x93   : > { %350 = sbr.rel (%p8910_p13) target bundleno = 1379 (0x563), region = 52 }
  0x9a   : > { %s7644_s29 = sand.u32 1, %s7347_s28   ;;  %p8911_p8 = scmp.ne.s32.totalorder %s8894_s13, 0 }
  0x9b   : > { %s5757_s20 = sshll.u32 %s7644_s29, 8  ;;  %s353_s25 = scalar_lea.sflag [#allocation5], %s7644_s29 }
  0x9c   : > { %s7650_s16 = scalar_lea.vmem [#allocation4], %s5757_s20 }
  0x9d   : > { %7322 = dma.done.wait (%p8911_p8), %s353_s25, 4096  }
  0x9e   : > { %7324 = vsyncadd (%p8911_p8), %s353_s25, 4294963200  ;;  %s361_s4 = sand.u32 1, %s7453_s11   ;;  %s5758_s15 = sshll.u32 %s7644_s29, 2 }
  0x9f   : > { %s362_s21 = scalar_lea.sflag [#allocation8], %s361_s4  ;;  %s7658_s17 = scalar_lea.vmem [#allocation7], %s5758_s15 }
  0xa0   : > { %7326 = dma.done.wait (%p8911_p8), %s362_s21, 64  }
  0xa1   : > { %7328 = vsyncadd (%p8911_p8), %s362_s21, 4294967232  ;;  %p8912_p12 = scmp.eq.s32.totalorder %s7453_s11, 0 }
  0xa3   : > { %7330 = dma.done.wait (%p8912_p12), [#allocation8], 18432   ;;  %p8913_p1 = pmov %p8912_p12 }
  0xa5   : > { %7332 = vsyncadd (%p8913_p1), [#allocation8], 4294948864  ;;  %p8914_p11 = pmov %p8913_p1 }
  0xa6   : > { %p8915_p0 = pmov %p8913_p1 }
  0xa7   : > { %7334 = dma.done.wait (%p8914_p11), [#allocation11], 2048  }
  0xa8   : > { %7336 = vsyncadd (%p8915_p0), [#allocation11], 4294965248  ;;  %v6674_v0 = vld [vmem:[#allocation9 + $0x4] ss:$8 sps:$4 sm:$0xff]   ;;  %v6678_v2 = vld [vmem:[#allocation9] ss:$8 sps:$4 sm:$0xff]  }
  0xa9   : > { %v6676_v1 = vld [vmem:[#allocation9 + $0x204] ss:$8 sps:$4 sm:$0xff]   ;;  %3747 = vmatprep.subr.bf16.mxu1 %v6674_v0  ;;  %v6679_v3 = vld [vmem:[#allocation9 + $0x200] ss:$8 sps:$4 sm:$0xff]   ;;  %v6680_v4 = vld [vmem:[#allocation9 + $0x14] ss:$8 sps:$4 sm:$0xff]  }
  0xaa   : > { %4133 = vmatprep.subr.bf16.mxu0 %v6676_v1  ;;  %3748 = vmatpush1.bf16.msra.mxu1 %v6678_v2  ;;  %v6682_v5 = vld [vmem:[#allocation9 + $0x214] ss:$8 sps:$4 sm:$0xff]   ;;  %v6684_v6 = vld [vmem:[#allocation9 + $0x10] ss:$8 sps:$4 sm:$0xff]   ;;  %v6686_v8 = vld [vmem:[#allocation9 + $0x24] ss:$8 sps:$4 sm:$0xff]  }
  0xab   : > { %4134 = vmatpush1.bf16.msra.mxu0 %v6679_v3  ;;  %3749 = vmatprep.subr.bf16.mxu1 %v6680_v4  ;;  %v6685_v7 = vld [vmem:[#allocation9 + $0x210] ss:$8 sps:$4 sm:$0xff]   ;;  %v6688_v9 = vld [vmem:[#allocation9 + $0x224] ss:$8 sps:$4 sm:$0xff]   ;;  %v6690_v10 = vld [vmem:[#allocation9 + $0x20] ss:$8 sps:$4 sm:$0xff]  }
  0xac   : > { %4135 = vmatprep.subr.bf16.mxu0 %v6682_v5  ;;  %v6691_v11 = vld [vmem:[#allocation9 + $0x220] ss:$8 sps:$4 sm:$0xff]   ;;  %v6692_v12 = vld [vmem:[#allocation9 + $0x34] ss:$8 sps:$4 sm:$0xff]   ;;  %v6696_v14 = vld [vmem:[#allocation9 + $0x30] ss:$8 sps:$4 sm:$0xff]  }
  0xad   : > { %v6694_v13 = vld [vmem:[#allocation9 + $0x234] ss:$8 sps:$4 sm:$0xff]   ;;  %v6697_v15 = vld [vmem:[#allocation9 + $0x230] ss:$8 sps:$4 sm:$0xff]   ;;  %v6698_v16 = vld [vmem:[#allocation9 + $0x44] ss:$8 sps:$4 sm:$0xff]  }
  0xae   : > { %3750 = vmatpush1.bf16.msra.mxu1 %v6684_v6  ;;  %v6700_v17 = vld [vmem:[#allocation9 + $0x244] ss:$8 sps:$4 sm:$0xff]   ;;  %v6702_v18 = vld [vmem:[#allocation9 + $0x40] ss:$8 sps:$4 sm:$0xff]   ;;  %v6704_v20 = vld [vmem:[#allocation9 + $0x54] ss:$8 sps:$4 sm:$0xff]  }
  0xaf   : > { %4136 = vmatpush1.bf16.msra.mxu0 %v6685_v7  ;;  %3751 = vmatprep.subr.bf16.mxu1 %v6686_v8  ;;  %v6703_v19 = vld [vmem:[#allocation9 + $0x240] ss:$8 sps:$4 sm:$0xff]   ;;  %v6706_v21 = vld [vmem:[#allocation9 + $0x254] ss:$8 sps:$4 sm:$0xff]   ;;  %v6708_v22 = vld [vmem:[#allocation9 + $0x50] ss:$8 sps:$4 sm:$0xff]  }
  0xb0   : > { %4137 = vmatprep.subr.bf16.mxu0 %v6688_v9  ;;  %v6709_v23 = vld [vmem:[#allocation9 + $0x250] ss:$8 sps:$4 sm:$0xff]   ;;  %v6710_v24 = vld [vmem:[#allocation9 + $0x64] ss:$8 sps:$4 sm:$0xff]   ;;  %v6714_v26 = vld [vmem:[#allocation9 + $0x60] ss:$8 sps:$4 sm:$0xff]  }
  0xb1   : > { %v6712_v25 = vld [vmem:[#allocation9 + $0x264] ss:$8 sps:$4 sm:$0xff]   ;;  %v6715_v27 = vld [vmem:[#allocation9 + $0x260] ss:$8 sps:$4 sm:$0xff]   ;;  %v6716_v28 = vld [vmem:[#allocation9 + $0x74] ss:$8 sps:$4 sm:$0xff]  }
  0xb2   : > { %3752 = vmatpush1.bf16.msra.mxu1 %v6690_v10  ;;  %v6718_v29 = vld [vmem:[#allocation9 + $0x274] ss:$8 sps:$4 sm:$0xff]   ;;  %v6720_v30 = vld [vmem:[#allocation9 + $0x70] ss:$8 sps:$4 sm:$0xff]   ;;  %v6722_v32 = vld [vmem:[#allocation9 + $0x84] ss:$8 sps:$4 sm:$0xff]  }
  0xb3   : > { %4138 = vmatpush1.bf16.msra.mxu0 %v6691_v11  ;;  %3753 = vmatprep.subr.bf16.mxu1 %v6692_v12  ;;  %v6721_v31 = vld [vmem:[#allocation9 + $0x270] ss:$8 sps:$4 sm:$0xff]   ;;  %v6724_v33 = vld [vmem:[#allocation9 + $0x284] ss:$8 sps:$4 sm:$0xff]   ;;  %v6726_v34 = vld [vmem:[#allocation9 + $0x80] ss:$8 sps:$4 sm:$0xff]  }
  0xb4   : > { %4139 = vmatprep.subr.bf16.mxu0 %v6694_v13  ;;  %v6727_v35 = vld [vmem:[#allocation9 + $0x280] ss:$8 sps:$4 sm:$0xff]   ;;  %v6728_v36 = vld [vmem:[#allocation9 + $0x94] ss:$8 sps:$4 sm:$0xff]   ;;  %v6732_v38 = vld [vmem:[#allocation9 + $0x90] ss:$8 sps:$4 sm:$0xff]  }
  0xb5   : > { %v6730_v37 = vld [vmem:[#allocation9 + $0x294] ss:$8 sps:$4 sm:$0xff]   ;;  %vm544_vm0 = vcmask 1041408   ;;  %v6733_v39 = vld [vmem:[#allocation9 + $0x290] ss:$8 sps:$4 sm:$0xff]   ;;  %vm545_vm1 = vcmask 1045508  }
  0xb6   : > { %3754 = vmatpush1.bf16.msra.mxu1 %v6696_v14  ;;  %v6734_v40 = vld [vmem:[#allocation9 + $0xa4] ss:$8 sps:$4 sm:$0xff]   ;;  %v6738_v42 = vld [vmem:[#allocation9 + $0xa0] ss:$8 sps:$4 sm:$0xff]   ;;  %vm7672_vm2 = vmor %vm544_vm0, %vm545_vm1  ;;  %vm969_vm3 = vsmask.f32 7424 }
  0xb7   : > { %4140 = vmatpush1.bf16.msra.mxu0 %v6697_v15  ;;  %3755 = vmatprep.subr.bf16.mxu1 %v6698_v16  ;;  %v6736_v41 = vld [vmem:[#allocation9 + $0x2a4] ss:$8 sps:$4 sm:$0xff]   ;;  %v6739_v43 = vld [vmem:[#allocation9 + $0x2a0] ss:$8 sps:$4 sm:$0xff]   ;;  %v6740_v45 = vld [vmem:[#allocation9 + $0xb4] ss:$8 sps:$4 sm:$0xff]  }
  0xb8   : > { %4141 = vmatprep.subr.bf16.mxu0 %v6700_v17  ;;  %v6742_v46 = vld [vmem:[#allocation9 + $0x2b4] ss:$8 sps:$4 sm:$0xff]   ;;  %v6744_v47 = vld [vmem:[#allocation9 + $0xb0] ss:$8 sps:$4 sm:$0xff]   ;;  %v415_v50 = vld [vmem:[%s7650_s16 + $0x8] sm:$0xff]  ;;  %vm1733_vm4 = vcmask 1045504  }
  0xb9   : > { %v6745_v48 = vld [vmem:[#allocation9 + $0x2b0] ss:$8 sps:$4 sm:$0xff]   ;;  %v416_v51 = vld [vmem:[%s7650_s16 + $0x10] sm:$0xff]  ;;  %v6115_v55 = vpack.c.bf16 %v415_v50, %v415_v50  ;;  %v419_v1 = vld [vmem:[%s7650_s16 + $0x28] sm:$0xff]  ;;  %vm1915_vm5 = vsmask.f32 5376 }
  0xba   : > { %3756 = vmatpush1.bf16.msra.mxu1 %v6702_v18  ;;  %v414_v49 = vld [vmem:[%s7650_s16] sm:$0xff]  ;;  %v417_v52 = vld [vmem:[%s7650_s16 + $0x18] sm:$0xff]  ;;  %v6116_v56 = vpack.c.bf16 %v416_v51, %v416_v51  ;;  %v6746_v58 = vld [vmem:[#allocation9 + $0xc4] ss:$8 sps:$4 sm:$0xff]   ;;  %v6119_v6 = vpack.c.bf16 %v419_v1, %v419_v1  ;;  %vm1432_vm6 = vsmask.f32 6400 }
  0xbb   : > { %4142 = vmatpush1.bf16.msra.mxu0 %v6703_v19  ;;  %3757 = vmatprep.subr.bf16.mxu1 %v6704_v20  ;;  %v6114_v53 = vpack.c.bf16 %v414_v49, %v414_v49  ;;  %v446_v54 = vld [vmem:[%s7658_s17] sm:$0xf]  ;;  %v6117_v57 = vpack.c.bf16 %v417_v52, %v417_v52  ;;  %v6748_v59 = vld [vmem:[#allocation9 + $0x2c4] ss:$8 sps:$4 sm:$0xff]   ;;  %v549_v62 = vrot.slane %v6115_v55, 6  ;;  %v421_v12 = vld [vmem:[%s7650_s16 + $0x38] sm:$0xff] }
  0xbc   : > { %4143 = vmatprep.subr.bf16.mxu0 %v6706_v21  ;;  %447 = vst [vmem:[#allocation2] sm:$0x3] %v446_v54  ;;  %708 = vst [vmem:[#allocation2 + $0x80] sm:$0xc] %v446_v54  ;;  %v418_v61 = vld [vmem:[%s7650_s16 + $0x20] sm:$0xff]  ;;  %v552_v63 = vrot.slane %v6116_v56, 6  ;;  %v6121_v18 = vpack.c.bf16 %v421_v12, %v421_v12 }
  0xbd   : > { %v547_v60 = vrot.slane %v6114_v53, 6  ;;  %v555_v0 = vrot.slane %v6117_v57, 6  ;;  %v6118_v2 = vpack.c.bf16 %v418_v61, %v418_v61  ;;  %v6750_v3 = vld [vmem:[#allocation9 + $0xc0] ss:$8 sps:$4 sm:$0xff]   ;;  %v551_v8 = vrot.slane %v549_v62, 4  ;;  %s8688_s0 = scalar_lea.vmem [#allocation12], %s5757_s20 }
  0xbe   : > { %3758 = vmatpush1.bf16.msra.mxu1 %v6708_v22  ;;  %v6751_v4 = vld [vmem:[#allocation9 + $0x2c0] ss:$8 sps:$4 sm:$0xff]   ;;  %v554_v9 = vrot.slane %v552_v63, 4  ;;  %v6752_v13 = vld [vmem:[#allocation9 + $0xd4] ss:$8 sps:$4 sm:$0xff]   ;;  %v561_v16 = vrot.slane %v6119_v6, 6 }
  0xbf   : > { %4144 = vmatpush1.bf16.msra.mxu0 %v6709_v23  ;;  %3759 = vmatprep.subr.bf16.mxu1 %v6710_v24  ;;  %v548_v5 = vrot.slane %v547_v60, 4  ;;  %675 = vst [vmem:[#allocation2] sm:$0xc] %v547_v60  ;;  %v420_v7 = vld [vmem:[%s7650_s16 + $0x30] sm:$0xff]  ;;  %v557_v10 = vrot.slane %v555_v0, 4  ;;  %v558_v11 = vrot.slane %v6118_v2, 6  ;;  %v553_v21 = vsel %vm7672_vm2, %v551_v8, %v552_v63 }
  0xc0   : > { %4145 = vmatprep.subr.bf16.mxu0 %v6712_v25  ;;  %v6754_v14 = vld [vmem:[#allocation9 + $0x2d4] ss:$8 sps:$4 sm:$0xff]   ;;  %v6120_v17 = vpack.c.bf16 %v420_v7, %v420_v7  ;;  %v6756_v19 = vld [vmem:[#allocation9 + $0xd0] ss:$8 sps:$4 sm:$0xff]   ;;  %v556_v22 = vsel %vm7672_vm2, %v554_v9, %v555_v0  ;;  %677 = vst [vmem:[#allocation2 + $0x8] sm:$0xf] %v553_v21 }
  0xc1   : > { %v550_v15 = vsel %vm7672_vm2, %v548_v5, %v549_v62  ;;  %v6757_v20 = vld [vmem:[#allocation9 + $0x2d0] ss:$8 sps:$4 sm:$0xff]   ;;  %v559_v23 = vsel %vm7672_vm2, %v557_v10, %v558_v11  ;;  %v560_v24 = vrot.slane %v558_v11, 4  ;;  %678 = vst [vmem:[#allocation2 + $0xc] sm:$0xf] %v556_v22  ;;  %vm1250_vm8 = vcmask 1046528  }
  0xc2   : > { %3760 = vmatpush1.bf16.msra.mxu1 %v6714_v26  ;;  %676 = vst [vmem:[#allocation2 + $0x4] sm:$0xf] %v550_v15  ;;  %v422_v25 = vld [vmem:[%s7650_s16 + $0x40] sm:$0xff]  ;;  %v423_v26 = vld [vmem:[%s7650_s16 + $0x48] sm:$0xff]  ;;  %679 = vst [vmem:[#allocation2 + $0x10] sm:$0xf] %v559_v23 }
  0xc3   : > { %4146 = vmatpush1.bf16.msra.mxu0 %v6715_v27  ;;  %3761 = vmatprep.subr.bf16.mxu1 %v6716_v28  ;;  %v6758_v27 = vld [vmem:[#allocation9 + $0xe4] ss:$8 sps:$4 sm:$0xff]   ;;  %v563_v28 = vrot.slane %v561_v16, 4  ;;  %v6764_v50 = vld [vmem:[#allocation9 + $0xf4] ss:$8 sps:$4 sm:$0xff]   ;;  %vm2216_vm9 = vcmask 1044480  }
  0xc4   : > { %4147 = vmatprep.subr.bf16.mxu0 %v6718_v29  ;;  %v564_v29 = vrot.slane %v6120_v17, 6  ;;  %v6766_v51 = vld [vmem:[#allocation9 + $0x2f4] ss:$8 sps:$4 sm:$0xff]   ;;  %v6768_v57 = vld [vmem:[#allocation9 + $0xf0] ss:$8 sps:$4 sm:$0xff]   ;;  %s6146_s24 = sshll.u32 %s7355_s30, 12 }
  0xc5   : > { %v6779_v63 = vld [vmem:[#allocation9 + $0x304] ss:$8 sps:$4 sm:$0xff]   ;;  %vm2398_vm7 = vsmask.f32 4352  ;;  %s5615_s14 = sshll.u32 %s8688_s0, 4  ;;  %s8816_s25 = scalar_lea.hbm %s8878_s8, %s6146_s24  ;;  %s8818_s14 = int_to_ptr.vmem [resolvable:$true] %s5615_s14 }
  0xc6   : > { %3762 = vmatpush1.bf16.msra.mxu1 %v6720_v30  ;;  %v567_v30 = vrot.slane %v6121_v18, 6  ;;  %s5600_s30 = scalar_lea.sflag [#allocation6], %s7644_s29  ;;  %p8954_p6 = scmp.ne.s32.totalorder %s8903_s18, 0 }
  0xc7   : > { %4148 = vmatpush1.bf16.msra.mxu0 %v6721_v31  ;;  %3763 = vmatprep.subr.bf16.mxu1 %v6722_v32  ;;  %v6122_v31 = vpack.c.bf16 %v422_v25, %v422_v25  ;;  %v6760_v32 = vld [vmem:[#allocation9 + $0x2e4] ss:$8 sps:$4 sm:$0xff]   ;;  %v6777_v25 = vld [vmem:[#allocation9 + $0x300] ss:$8 sps:$4 sm:$0xff]   ;;  %s7374_s4 = smov [#allocation12]  }
  0xc8   : > { %4149 = vmatprep.subr.bf16.mxu0 %v6724_v33  ;;  %v562_v33 = vsel %vm7672_vm2, %v560_v24, %v561_v16  ;;  %s7273_s15 = sshll.u32 %s7374_s4, 4  ;;  %s7274_s15 = int_to_ptr.vmem [resolvable:$false] %s7273_s15 }
  0xc9   : > { %680 = vst [vmem:[#allocation2 + $0x14] sm:$0xf] %v562_v33  ;;  %v6770_v54 = vld [vmem:[#allocation2] sm:$0xff]   ;;  %s7275_s21 = scalar_lea.vmem %s7274_s15, 8192  ;;  %p7276_p4 = scmp.lt.s32.totalorder %s8818_s14, %s7274_s15 }
  0xca   : > { %3764 = vmatpush1.bf16.msra.mxu1 %v6726_v34  ;;  %v6123_v34 = vpack.c.bf16 %v423_v26, %v423_v26  ;;  %v971_v61 = vshrl.u32 %v6770_v54, 16  ;;  %v973_v62 = vshll.u32 %v6770_v54, 16  ;;  %v6772_v2 = vld [vmem:[#allocation2] sm:$0xfc]  }
  0xcb   : > { %4150 = vmatpush1.bf16.msra.mxu0 %v6727_v35  ;;  %3765 = vmatprep.subr.bf16.mxu1 %v6728_v36  ;;  %v424_v35 = vld [vmem:[%s7650_s16 + $0x50] sm:$0xff]  ;;  %v425_v36 = vld [vmem:[%s7650_s16 + $0x58] sm:$0xff]  ;;  %v1917_v8 = vshrl.u32 %v6772_v2, 16  ;;  %v1920_v9 = vshll.u32 %v6772_v2, 16  ;;  %v426_v33 = vld [vmem:[%s7650_s16 + $0x60] sm:$0xff] }
  0xcc   : > { %4151 = vmatprep.subr.bf16.mxu0 %v6730_v37  ;;  %v565_v37 = vsel %vm7672_vm2, %v563_v28, %v564_v29  ;;  %v573_v49 = vrot.slane %v6123_v34, 6  ;;  %v975_v5 = vrot.slane %v973_v62, 1  ;;  %v6774_v6 = vld [vmem:[#allocation2] sm:$0xff]  }
  0xcd   : > { %681 = vst [vmem:[#allocation2 + $0x18] sm:$0xf] %v565_v37  ;;  %v1919_v15 = vrot.slane %v1917_v8, 2  ;;  %v1922_v16 = vrot.slane %v1920_v9, 3 }
  0xce   : > { %3766 = vmatpush1.bf16.msra.mxu1 %v6732_v38  ;;  %v566_v38 = vrot.slane %v564_v29, 4  ;;  %v575_v56 = vrot.slane %v573_v49, 4  ;;  %v976_v11 = vor.u32 %v975_v5, %v971_v61  ;;  %v427_v5 = vld [vmem:[%s7650_s16 + $0x68] sm:$0xff] }
  0xcf   : > { %4152 = vmatpush1.bf16.msra.mxu0 %v6733_v39  ;;  %3767 = vmatprep.subr.bf16.mxu1 %v6734_v40  ;;  %v569_v39 = vrot.slane %v567_v30, 4  ;;  %v570_v40 = vrot.slane %v6122_v31, 6  ;;  %v1923_v24 = vor.u32 %v1922_v16, %v1919_v15 }
  0xd0   : > { %4153 = vmatprep.subr.bf16.mxu0 %v6736_v41  ;;  %v6762_v41 = vld [vmem:[#allocation9 + $0xe0] ss:$8 sps:$4 sm:$0xff]  }
  0xd1   : > { %v6780_v18 = vld [vmem:[#allocation2 + $0x10] sm:$0xff]  }
  0xd2   : > { %3768 = vmatpush1.bf16.msra.mxu1 %v6738_v42  ;;  %v6124_v42 = vpack.c.bf16 %v424_v35, %v424_v35  ;;  %v6781_v23 = vld [vmem:[#allocation2 + $0x10] sm:$0xff]  }
  0xd3   : > { %4154 = vmatpush1.bf16.msra.mxu0 %v6739_v43  ;;  %3769 = vmatprep.subr.bf16.mxu1 %v6740_v45  ;;  %v6125_v43 = vpack.c.bf16 %v425_v36, %v425_v36  ;;  %v6763_v45 = vld [vmem:[#allocation9 + $0x2e0] ss:$8 sps:$4 sm:$0xff]   ;;  %v1934_v29 = vshrl.u32 %v6781_v23, 16 }
  0xd4   : > { %4155 = vmatprep.subr.bf16.mxu0 %v6742_v46  ;;  %v568_v46 = vsel %vm7672_vm2, %v566_v38, %v567_v30  ;;  %v576_v52 = vrot.slane %v6124_v42, 6  ;;  %v1937_v30 = vshll.u32 %v6781_v23, 16  ;;  %v7718_v31 = vld [vmem:[#allocation2 + $0x10] sm:$0xff]  }
  0xd5   : > { %682 = vst [vmem:[#allocation2 + $0x1c] sm:$0xf] %v568_v46  ;;  %v7705_v53 = vrot.slane %v6125_v43, 6  ;;  %v990_v46 = vshrl.u32 %v6780_v18, 16  ;;  %v1737_v54 = vrot.slane %v7718_v31, 2 }
  0xd6   : > { %3770 = vmatpush1.bf16.msra.mxu1 %v6744_v47  ;;  %v571_v47 = vsel %vm7672_vm2, %v569_v39, %v570_v40  ;;  %v578_v60 = vrot.slane %v576_v52, 4  ;;  %v577_v0 = vsel %vm7672_vm2, %v575_v56, %v576_v52  ;;  %v1936_v39 = vrot.slane %v1934_v29, 2 }
  0xd7   : > { %4156 = vmatpush1.bf16.msra.mxu0 %v6745_v48  ;;  %3771 = vmatprep.subr.bf16.mxu1 %v6746_v58  ;;  %v572_v48 = vrot.slane %v570_v40, 4  ;;  %683 = vst [vmem:[#allocation2 + $0x20] sm:$0xf] %v571_v47  ;;  %v6769_v58 = vld [vmem:[#allocation9 + $0x2f0] ss:$8 sps:$4 sm:$0xff]   ;;  %v1939_v40 = vrot.slane %v1937_v30, 3  ;;  %v6126_v52 = vpack.c.bf16 %v426_v33, %v426_v33 }
  0xd8   : > { %4157 = vmatprep.subr.bf16.mxu0 %v6748_v59  ;;  %v6771_v59 = vld [vmem:[#allocation2 + $0x8] sm:$0xff]   ;;  %685 = vst [vmem:[#allocation2 + $0x28] sm:$0xf] %v577_v0  ;;  %v581_v29 = vrot.slane %v7705_v53, 4 }
  0xd9   : > { %v574_v55 = vsel %vm7672_vm2, %v572_v48, %v573_v49  ;;  %v978_v1 = vshll.u32 %v6771_v59, 16  ;;  %v982_v26 = vshrl.u32 %v6771_v59, 16  ;;  %v1940_v48 = vor.u32 %v1939_v40, %v1936_v39  ;;  %v6814_v39 = vld [vmem:[#allocation9 + $0x354] ss:$8 sps:$4 sm:$0xff]  }
  0xda   : > { %3772 = vmatpush1.bf16.msra.mxu1 %v6750_v3  ;;  %684 = vst [vmem:[#allocation2 + $0x24] sm:$0xf] %v574_v55  ;;  %v6773_v3 = vld [vmem:[#allocation2 + $0x8] sm:$0xff]  }
  0xdb   : > { %4158 = vmatpush1.bf16.msra.mxu0 %v6751_v4  ;;  %3773 = vmatprep.subr.bf16.mxu1 %v6752_v13  ;;  %v580_v4 = vsel %vm7672_vm2, %v578_v60, %v7705_v53  ;;  %v980_v7 = vrot.slane %v978_v1, 1  ;;  %v1925_v10 = vshrl.u32 %v6773_v3, 16  ;;  %v1928_v12 = vshll.u32 %v6773_v3, 16  ;;  %v6775_v13 = vld [vmem:[#allocation2] sm:$0xfc]  }
  0xdc   : > { %4159 = vmatprep.subr.bf16.mxu0 %v6754_v14  ;;  %686 = vst [vmem:[#allocation2 + $0x2c] sm:$0xf] %v580_v4  ;;  %v7714_v14 = vld [vmem:[#allocation2 + $0x8] sm:$0xff]   ;;  %v1734_v21 = vrot.slane %v6775_v13, 2  ;;  %v6787_v37 = vld [vmem:[#allocation2 + $0x18] sm:$0xff]  }
  0xdd   : > { %v1927_v17 = vrot.slane %v1925_v10, 2  ;;  %v1735_v22 = vrot.slane %v7714_v14, 2  ;;  %v984_v35 = vor.u32 %v982_v26, %v980_v7  ;;  %v6788_v42 = vld [vmem:[#allocation2 + $0x18] sm:$0xff]   ;;  %v994_v47 = vshll.u32 %v6787_v37, 16  ;;  %v6800_v4 = vld [vmem:[#allocation9 + $0x334] ss:$8 sps:$4 sm:$0xff]  }
  0xde   : > { %3774 = vmatpush1.bf16.msra.mxu1 %v6756_v19  ;;  %v981_v19 = vsel %vm969_vm3, %v976_v11, %v980_v7  ;;  %v1943_v49 = vshrl.u32 %v6788_v42, 16  ;;  %v7726_v60 = vld [vmem:[#allocation2 + $0x18] sm:$0xff]   ;;  %v998_v0 = vshrl.u32 %v6787_v37, 16  ;;  %v6789_v11 = vld [vmem:[#allocation2 + $0x10] sm:$0xff]  }
  0xdf   : > { %4160 = vmatpush1.bf16.msra.mxu0 %v6757_v20  ;;  %3775 = vmatprep.subr.bf16.mxu1 %v6758_v27  ;;  %v1930_v20 = vrot.slane %v1928_v12, 3  ;;  %v986_v27 = vshll.u32 %v6780_v18, 16  ;;  %v1736_v34 = vsel %vm1733_vm4, %v1734_v21, %v1735_v22  ;;  %v996_v56 = vrot.slane %v994_v47, 1 }
  0xe0   : > { %4161 = vmatprep.subr.bf16.mxu0 %v6760_v32  ;;  %3779 = vmatprep.mubr.bf16.mxu1 %v981_v19  ;;  %v6786_v32 = vld [vmem:[#allocation9 + $0x314] ss:$8 sps:$4 sm:$0xff]   ;;  %v1738_v7 = vsel %vm1733_vm4, %v1735_v22, %v1737_v54  ;;  %v1739_v14 = vrot.slane %v7726_v60, 2  ;;  %v6127_v22 = vpack.c.bf16 %v427_v5, %v427_v5  ;;  %v6834_v60 = vld [vmem:[#allocation9 + $0x104] ss:$8 sps:$4 sm:$0xff]  }
  0xe1   : > { %v1931_v28 = vor.u32 %v1930_v20, %v1927_v17  ;;  %v988_v36 = vrot.slane %v986_v27, 1  ;;  %v6794_v61 = vld [vmem:[#allocation2 + $0x20] sm:$0xff]   ;;  %v1000_v12 = vor.u32 %v998_v0, %v996_v56  ;;  %v6807_v27 = vld [vmem:[#allocation9 + $0x344] ss:$8 sps:$4 sm:$0xff]   ;;  %v6819_v0 = vld [vmem:[#allocation9 + $0x360] ss:$8 sps:$4 sm:$0xff]  }
  0xe2   : > { %3776 = vmatpush1.bf16.msra.mxu1 %v6762_v41  ;;  %v6782_v41 = vld [vmem:[#allocation2 + $0x8] sm:$0xff]   ;;  %v6795_v1 = vld [vmem:[#allocation2 + $0x20] sm:$0xff]   ;;  %v1002_v3 = vshll.u32 %v6794_v61, 16  ;;  %v1006_v19 = vshrl.u32 %v6794_v61, 16  ;;  %v1740_v30 = vsel %vm1733_vm4, %v1737_v54, %v1739_v14  ;;  %v585_v37 = vrot.slane %v6127_v22, 6 }
  0xe3   : > { %4162 = vmatpush1.bf16.msra.mxu0 %v6763_v45  ;;  %3777 = vmatprep.subr.bf16.mxu1 %v6764_v50  ;;  %v1932_v38 = vsel %vm1915_vm5, %v1923_v24, %v1931_v28  ;;  %v989_v43 = vsel %vm969_vm3, %v984_v35, %v988_v36  ;;  %v6784_v45 = vld [vmem:[#allocation9 + $0x310] ss:$8 sps:$4 sm:$0xff]   ;;  %v1946_v50 = vshll.u32 %v6788_v42, 16  ;;  %v992_v55 = vor.u32 %v990_v46, %v988_v36  ;;  %v7733_v18 = vld [vmem:[#allocation2 + $0x28] sm:$0xff]  }
  0xe4   : > { %4163 = vmatprep.subr.bf16.mxu0 %v6766_v51  ;;  %4165 = vmatprep.mubr.bf16.mxu0 %v1932_v38  ;;  %v6793_v51 = vld [vmem:[#allocation9 + $0x324] ss:$8 sps:$4 sm:$0xff]   ;;  %v1952_v8 = vshrl.u32 %v6795_v1, 16  ;;  %v1955_v9 = vshll.u32 %v6795_v1, 16  ;;  %v1004_v13 = vrot.slane %v1002_v3, 1  ;;  %v6802_v20 = vld [vmem:[#allocation2 + $0x28] sm:$0xff]  }
  0xe5   : > { %v1948_v59 = vrot.slane %v1946_v50, 3  ;;  %v997_v62 = vsel %vm969_vm3, %v992_v55, %v996_v56  ;;  %v6798_v17 = vld [vmem:[#allocation9 + $0x330] ss:$8 sps:$4 sm:$0xff]   ;;  %v1010_v21 = vshll.u32 %v7733_v18, 16  ;;  %v1964_v26 = vshll.u32 %v6802_v20, 16  ;;  %v431_v54 = vld [vmem:[%s7650_s16 + $0x88] sm:$0xff] }
  0xe6   : > { %3778 = vmatpush1.bf16.msra.mxu1 %v6768_v57  ;;  %v1941_v57 = vsel %vm1915_vm5, %v1931_v28, %v1940_v48  ;;  %v1954_v15 = vrot.slane %v1952_v8, 2  ;;  %v1957_v16 = vrot.slane %v1955_v9, 3  ;;  %v1005_v23 = vsel %vm969_vm3, %v1000_v12, %v1004_v13  ;;  %v6805_v28 = vld [vmem:[#allocation9 + $0x340] ss:$8 sps:$4 sm:$0xff]   ;;  %v7741_v31 = vld [vmem:[#allocation2 + $0x20] sm:$0xff]  }
  0xe7   : > { %4164 = vmatpush1.bf16.msra.mxu0 %v6769_v58  ;;  %v1945_v58 = vrot.slane %v1943_v49, 2  ;;  %v7743_v33 = vrot.slane %v1010_v21, 1  ;;  %v1966_v36 = vrot.slane %v1964_v26, 3  ;;  %v429_v42 = vld [vmem:[%s7650_s16 + $0x78] sm:$0xff]  ;;  %v1741_v49 = vrot.slane %v7741_v31, 2  ;;  %v7759_v55 = vld [vmem:[#allocation2 + $0x28] sm:$0xff]   ;;  %3940 = vmatprep.subr.bf16.mxu1 %v6834_v60 }
  0xe8   : > { %4326 = vmatprep.subr.bf16.mxu0 %v6779_v63  ;;  %v6791_v63 = vld [vmem:[#allocation9 + $0x320] ss:$8 sps:$4 sm:$0xff]   ;;  %v1958_v24 = vor.u32 %v1957_v16, %v1954_v15  ;;  %v6129_v47 = vpack.c.bf16 %v429_v42, %v429_v42  ;;  %v6131_v61 = vpack.c.bf16 %v431_v54, %v431_v54  ;;  %v433_v1 = vld [vmem:[%s7650_s16 + $0x98] sm:$0xff] }
  0xe9   : > { %3780 = vmatmul.mubr.bf16.vlgmr.msra.gmra.mrb[0].mxu1 %v6774_v6  ;;  %v1949_v2 = vor.u32 %v1948_v59, %v1945_v58  ;;  %v582_v6 = vrot.slane %v6126_v52, 6  ;;  %v430_v52 = vld [vmem:[%s7650_s16 + $0x80] sm:$0xff]  ;;  %v6821_v58 = vld [vmem:[#allocation9 + $0x364] ss:$8 sps:$4 sm:$0xff]   ;;  %v6832_v8 = vld [vmem:[#allocation9 + $0x100] ss:$8 sps:$4 sm:$0xff]   ;;  %v1742_v9 = vsel %vm1733_vm4, %v1739_v14, %v1741_v49 }
  0xea   : > { %4166 = vmatmul.mubr.bf16.vlgmr.msra.gmra.mrb[0].mxu0 %v1736_v34  ;;  %3789 = vmatprep.mubr.bf16.mxu1 %v989_v43  ;;  %v6796_v43 = vld [vmem:[#allocation2 + $0x18] sm:$0xff]   ;;  %v6130_v59 = vpack.c.bf16 %v430_v52, %v430_v52  ;;  %v6803_v12 = vld [vmem:[#allocation2 + $0x20] sm:$0xff]  }
  0xeb   : > { %4327 = vmatpush1.bf16.msra.mxu0 %v6777_v25  ;;  %4175 = vmatprep.mubr.bf16.mxu0 %v1941_v57  ;;  %v1950_v10 = vsel %vm1915_vm5, %v1940_v48, %v1949_v2  ;;  %v1961_v25 = vshrl.u32 %v6802_v20, 16  ;;  %v584_v34 = vrot.slane %v582_v6, 4  ;;  %v583_v53 = vsel %vm7672_vm2, %v581_v29, %v582_v6  ;;  %v6826_v26 = vld [vmem:[#allocation9 + $0x370] ss:$8 sps:$4 sm:$0xff]  }
  0xec   : > { %4328 = vmatprep.subr.bf16.mxu0 %v6786_v32  ;;  %v1008_v32 = vor.u32 %v1006_v19, %v1004_v13  ;;  %v1959_v38 = vsel %vm1915_vm5, %v1949_v2, %v1958_v24  ;;  %687 = vst [vmem:[#allocation2 + $0x30] sm:$0xf] %v583_v53  ;;  %v587_v48 = vrot.slane %v585_v37, 4  ;;  %v591_v57 = vrot.slane %v6129_v47, 6  ;;  %3941 = vmatpush1.bf16.msra.mxu1 %v6832_v8 }
  0xed   : > { %v1963_v35 = vrot.slane %v1961_v25, 2  ;;  %v586_v40 = vsel %vm7672_vm2, %v584_v34, %v585_v37  ;;  %v594_v6 = vrot.slane %v6130_v59, 6  ;;  %v1743_v19 = vrot.slane %v7759_v55, 2 }
  0xee   : > { %688 = vst [vmem:[#allocation2 + $0x34] sm:$0xf] %v586_v40  ;;  %v1013_v50 = vsel %vm969_vm3, %v1008_v32, %v7743_v33  ;;  %v593_v5 = vrot.slane %v591_v57, 4  ;;  %v6836_v40 = vld [vmem:[#allocation9 + $0x380] ss:$8 sps:$4 sm:$0xff]  }
  0xef   : > { %4329 = vmatpush1.bf16.msra.mxu0 %v6784_v45  ;;  %v6812_v45 = vld [vmem:[#allocation9 + $0x350] ss:$8 sps:$4 sm:$0xff]   ;;  %v596_v16 = vrot.slane %v594_v6, 4 }
  0xf0   : > { %4330 = vmatprep.subr.bf16.mxu0 %v6793_v51  ;;  %v7755_v51 = vor.u32 %v1966_v36, %v1963_v35  ;;  %v595_v15 = vsel %vm7672_vm2, %v593_v5, %v594_v6  ;;  %v6838_v36 = vld [vmem:[#allocation9 + $0x384] ss:$8 sps:$4 sm:$0xff]  }
  0xf1   : > { %3790 = vmatmul.mubr.bf16.gmra.mrb[4].mxu1 %v6782_v41  ;;  %v428_v41 = vld [vmem:[%s7650_s16 + $0x70] sm:$0xff]  ;;  %691 = vst [vmem:[#allocation2 + $0x40] sm:$0xf] %v595_v15  ;;  %v6841_v15 = vld [vmem:[#allocation9 + $0x114] ss:$8 sps:$4 sm:$0xff]  }
  0xf2   : > { %3799 = vmatprep.mubr.bf16.mxu1 %v997_v62  ;;  %4176 = vmatmul.mubr.bf16.gmra.mrb[4].mxu0 %v1738_v7  ;;  %v6128_v46 = vpack.c.bf16 %v428_v41, %v428_v41  ;;  %v432_v62 = vld [vmem:[%s7650_s16 + $0x90] sm:$0xff]  ;;  %v6828_v7 = vld [vmem:[#allocation9 + $0x374] ss:$8 sps:$4 sm:$0xff]  }
  0xf3   : > { %4185 = vmatprep.mubr.bf16.mxu0 %v1950_v10  ;;  %4331 = vmatpush1.bf16.msra.mxu0 %v6791_v63  ;;  %v1014_v63 = vshrl.u32 %v7733_v18, 16  ;;  %v6132_v2 = vpack.c.bf16 %v432_v62, %v432_v62  ;;  %v1968_v10 = vsel %vm1915_vm5, %v1958_v24, %v7755_v51 }
  0xf4   : > { %4332 = vmatprep.subr.bf16.mxu0 %v6800_v4  ;;  %v588_v56 = vrot.slane %v6128_v46, 6  ;;  %3942 = vmatprep.subr.bf16.mxu1 %v6841_v15 }
  0xf5   : > { %v6808_v18 = vld [vmem:[#allocation2 + $0x30] sm:$0xff]   ;;  %v600_v14 = vrot.slane %v6132_v2, 6  ;;  %v1016_v24 = vor.u32 %v1014_v63, %v7743_v33 }
  0xf6   : > { %v589_v3 = vsel %vm7672_vm2, %v587_v48, %v588_v56  ;;  %v590_v4 = vrot.slane %v588_v56, 4  ;;  %v6809_v20 = vld [vmem:[#allocation2 + $0x30] sm:$0xff]   ;;  %v1018_v25 = vshll.u32 %v6808_v18, 16  ;;  %v1022_v35 = vshrl.u32 %v6808_v18, 16 }
  0xf7   : > { %4333 = vmatpush1.bf16.msra.mxu0 %v6798_v17  ;;  %689 = vst [vmem:[#allocation2 + $0x38] sm:$0xf] %v589_v3  ;;  %v597_v17 = vrot.slane %v6131_v61, 6  ;;  %v1973_v29 = vshll.u32 %v6809_v20, 16  ;;  %v7785_v34 = vld [vmem:[#allocation2 + $0x30] sm:$0xff]  }
  0xf8   : > { %4334 = vmatprep.subr.bf16.mxu0 %v6807_v27  ;;  %v592_v13 = vsel %vm7672_vm2, %v590_v4, %v591_v57  ;;  %v602_v27 = vrot.slane %v600_v14, 4  ;;  %v1020_v32 = vrot.slane %v1018_v25, 1  ;;  %v1745_v31 = vrot.slane %v7785_v34, 2 }
  0xf9   : > { %3800 = vmatmul.mubr.bf16.gmra.mrb[8].mxu1 %v6789_v11  ;;  %v6133_v11 = vpack.c.bf16 %v433_v1, %v433_v1  ;;  %690 = vst [vmem:[#allocation2 + $0x3c] sm:$0xf] %v592_v13  ;;  %v598_v21 = vsel %vm7672_vm2, %v596_v16, %v597_v17  ;;  %v599_v22 = vrot.slane %v597_v17, 4  ;;  %v1975_v37 = vrot.slane %v1973_v29, 3 }
  0xfa   : > { %3809 = vmatprep.mubr.bf16.mxu1 %v1005_v23  ;;  %4186 = vmatmul.mubr.bf16.gmra.mrb[8].mxu0 %v1740_v30  ;;  %692 = vst [vmem:[#allocation2 + $0x44] sm:$0xf] %v598_v21  ;;  %v1024_v47 = vor.u32 %v1022_v35, %v1020_v32 }
  0xfb   : > { %4195 = vmatprep.mubr.bf16.mxu0 %v1959_v38  ;;  %4335 = vmatpush1.bf16.msra.mxu0 %v6805_v28  ;;  %v7780_v23 = vrot.slane %v6133_v11, 6  ;;  %v1970_v28 = vshrl.u32 %v6809_v20, 16  ;;  %v601_v30 = vsel %vm7672_vm2, %v599_v22, %v600_v14  ;;  %v1744_v38 = vsel %vm1733_vm4, %v1741_v49, %v1743_v19  ;;  %v434_v14 = vld [vmem:[%s7650_s16 + $0xa0] sm:$0xff] }
  0xfc   : > { %4336 = vmatprep.subr.bf16.mxu0 %v6814_v39  ;;  %693 = vst [vmem:[#allocation2 + $0x48] sm:$0xf] %v601_v30  ;;  %v1021_v39 = vsel %vm969_vm3, %v1016_v24, %v1020_v32  ;;  %v6134_v21 = vpack.c.bf16 %v434_v14, %v434_v14  ;;  %v6849_v32 = vld [vmem:[#allocation9 + $0x390] ss:$8 sps:$4 sm:$0xff]  }
  0xfd   : > { %v604_v33 = vsel %vm7672_vm2, %v602_v27, %v7780_v23  ;;  %v1972_v53 = vrot.slane %v1970_v28, 2  ;;  %v605_v24 = vrot.slane %v7780_v23, 4  ;;  %v6847_v27 = vld [vmem:[#allocation9 + $0x124] ss:$8 sps:$4 sm:$0xff]  }
  0xfe   : > { %694 = vst [vmem:[#allocation2 + $0x4c] sm:$0xf] %v604_v33  ;;  %v606_v29 = vrot.slane %v6134_v21, 6 }
  0xff   : > { %4337 = vmatpush1.bf16.msra.mxu0 %v6812_v45  ;;  %v1976_v41 = vor.u32 %v1975_v37, %v1972_v53 }
 0x100   : > { %4338 = vmatprep.subr.bf16.mxu0 %v6821_v58  ;;  %v6815_v42 = vld [vmem:[#allocation2 + $0x38] sm:$0xff]   ;;  %v607_v37 = vsel %vm7672_vm2, %v605_v24, %v606_v29 }
 0x101   : > { %3810 = vmatmul.mubr.bf16.gmra.mrb[12].mxu1 %v6796_v43  ;;  %v6810_v43 = vld [vmem:[#allocation2 + $0x28] sm:$0xff]   ;;  %v6816_v45 = vld [vmem:[#allocation2 + $0x38] sm:$0xff]   ;;  %v1977_v46 = vsel %vm1915_vm5, %v7755_v51, %v1976_v41  ;;  %v1026_v48 = vshll.u32 %v6815_v42, 16  ;;  %v1030_v55 = vshrl.u32 %v6815_v42, 16  ;;  %v6823_v57 = vld [vmem:[#allocation2 + $0x40] sm:$0xff]  }
 0x102   : > { %3819 = vmatprep.mubr.bf16.mxu1 %v1013_v50  ;;  %4196 = vmatmul.mubr.bf16.gmra.mrb[12].mxu0 %v1742_v9  ;;  %v6822_v50 = vld [vmem:[#allocation2 + $0x40] sm:$0xff]   ;;  %v1979_v49 = vshrl.u32 %v6816_v45, 16  ;;  %v1982_v52 = vshll.u32 %v6816_v45, 16  ;;  %v7798_v62 = vld [vmem:[#allocation2 + $0x38] sm:$0xff]   ;;  %v1988_v51 = vshrl.u32 %v6823_v57, 16  ;;  %v1991_v2 = vshll.u32 %v6823_v57, 16 }
 0x103   : > { %4205 = vmatprep.mubr.bf16.mxu0 %v1968_v10  ;;  %4339 = vmatpush1.bf16.msra.mxu0 %v6819_v0  ;;  %v1028_v54 = vrot.slane %v1026_v48, 1  ;;  %v1034_v56 = vshll.u32 %v6822_v50, 16  ;;  %v1746_v0 = vsel %vm1733_vm4, %v1743_v19, %v1745_v31  ;;  %v6839_v9 = vld [vmem:[#allocation9 + $0x110] ss:$8 sps:$4 sm:$0xff]   ;;  %v6817_v10 = vld [vmem:[#allocation2 + $0x30] sm:$0xff]   ;;  %v1747_v11 = vrot.slane %v7798_v62, 2 }
 0x104   : > { %4340 = vmatprep.subr.bf16.mxu0 %v6828_v7  ;;  %v1981_v58 = vrot.slane %v1979_v49, 2  ;;  %v1984_v59 = vrot.slane %v1982_v52, 3  ;;  %v1990_v5 = vrot.slane %v1988_v51, 2  ;;  %v1993_v8 = vrot.slane %v1991_v2, 3  ;;  %v435_v19 = vld [vmem:[%s7650_s16 + $0xa8] sm:$0xff]  ;;  %v7811_v20 = vld [vmem:[#allocation2 + $0x40] sm:$0xff]   ;;  %3943 = vmatpush1.bf16.msra.mxu1 %v6839_v9 }
 0x105   : > { %v1029_v61 = vsel %vm969_vm3, %v1024_v47, %v1028_v54  ;;  %v7800_v63 = vld [vmem:[#allocation2 + $0x48] sm:$0xff]   ;;  %v1032_v3 = vor.u32 %v1030_v55, %v1028_v54  ;;  %v1036_v4 = vrot.slane %v1034_v56, 1  ;;  %v6135_v22 = vpack.c.bf16 %v435_v19, %v435_v19  ;;  %3944 = vmatprep.subr.bf16.mxu1 %v6847_v27  ;;  %v6824_v53 = vld [vmem:[#allocation2 + $0x38] sm:$0xff]   ;;  %695 = vst [vmem:[#allocation2 + $0x50] sm:$0xf] %v607_v37 }
 0x106   : > { %v1985_v1 = vor.u32 %v1984_v59, %v1981_v58  ;;  %v6830_v6 = vld [vmem:[#allocation2 + $0x48] sm:$0xff]   ;;  %v1042_v13 = vshll.u32 %v7800_v63, 16  ;;  %v7807_v17 = vor.u32 %v1993_v8, %v1990_v5  ;;  %v1748_v28 = vsel %vm1733_vm4, %v1745_v31, %v1747_v11  ;;  %v6852_v47 = vld [vmem:[#allocation9 + $0x130] ss:$8 sps:$4 sm:$0xff]   ;;  %v6864_v55 = vld [vmem:[#allocation9 + $0x3a4] ss:$8 sps:$4 sm:$0xff]  }
 0x107   : > { %4341 = vmatpush1.bf16.msra.mxu0 %v6826_v26  ;;  %v1037_v16 = vsel %vm969_vm3, %v1032_v3, %v1036_v4  ;;  %v1997_v60 = vshrl.u32 %v6830_v6, 16  ;;  %v2000_v18 = vshll.u32 %v6830_v6, 16  ;;  %v6845_v26 = vld [vmem:[#allocation9 + $0x120] ss:$8 sps:$4 sm:$0xff]   ;;  %v609_v30 = vrot.slane %v6135_v22, 6  ;;  %v6831_v5 = vld [vmem:[#allocation2 + $0x40] sm:$0xff]  }
 0x108   : > { %4342 = vmatprep.subr.bf16.mxu0 %v6838_v36  ;;  %v1986_v7 = vsel %vm1915_vm5, %v1976_v41, %v1985_v1  ;;  %v7814_v25 = vrot.slane %v1042_v13, 1  ;;  %v1995_v34 = vsel %vm1915_vm5, %v1985_v1, %v7807_v17  ;;  %v6851_v36 = vld [vmem:[#allocation9 + $0x394] ss:$8 sps:$4 sm:$0xff]   ;;  %v1749_v45 = vrot.slane %v7811_v20, 2  ;;  %3945 = vmatpush1.bf16.msra.mxu1 %v6845_v26  ;;  %v6862_v54 = vld [vmem:[#allocation9 + $0x3a0] ss:$8 sps:$4 sm:$0xff]  }
 0x109   : > { %3820 = vmatmul.mubr.bf16.gmra.mrb[16].mxu1 %v6803_v12  ;;  %v1038_v12 = vshrl.u32 %v6822_v50, 16  ;;  %v1999_v35 = vrot.slane %v1997_v60, 2  ;;  %v2002_v33 = vrot.slane %v2000_v18, 3  ;;  %v437_v41 = vld [vmem:[%s7650_s16 + $0xb8] sm:$0xff]  ;;  %v6860_v50 = vld [vmem:[#allocation9 + $0x144] ss:$8 sps:$4 sm:$0xff]  }
 0x10a   : > { %3829 = vmatprep.mubr.bf16.mxu1 %v1021_v39  ;;  %4206 = vmatmul.mubr.bf16.gmra.mrb[16].mxu0 %v1744_v38  ;;  %v608_v38 = vrot.slane %v606_v29, 4  ;;  %v6854_v39 = vld [vmem:[#allocation9 + $0x134] ss:$8 sps:$4 sm:$0xff]   ;;  %v6137_v48 = vpack.c.bf16 %v437_v41, %v437_v41  ;;  %v439_v51 = vld [vmem:[%s7650_s16 + $0xc8] sm:$0xff]  ;;  %v1046_v6 = vshrl.u32 %v7800_v63, 16 }
 0x10b   : > { %4215 = vmatprep.mubr.bf16.mxu0 %v1977_v46  ;;  %4343 = vmatpush1.bf16.msra.mxu0 %v6836_v40  ;;  %v1040_v23 = vor.u32 %v1038_v12, %v1036_v4  ;;  %v436_v40 = vld [vmem:[%s7650_s16 + $0xb0] sm:$0xff]  ;;  %v7830_v49 = vor.u32 %v2002_v33, %v1999_v35  ;;  %v7832_v57 = vld [vmem:[#allocation2 + $0x48] sm:$0xff]   ;;  %v6139_v3 = vpack.c.bf16 %v439_v51, %v439_v51  ;;  %v6865_v9 = vld [vmem:[#allocation9 + $0x150] ss:$8 sps:$4 sm:$0xff]  }
 0x10c   : > { %4344 = vmatprep.subr.bf16.mxu0 %v6851_v36  ;;  %v6136_v42 = vpack.c.bf16 %v436_v40, %v436_v40  ;;  %v610_v46 = vsel %vm7672_vm2, %v608_v38, %v609_v30  ;;  %3946 = vmatprep.subr.bf16.mxu1 %v6854_v39  ;;  %v615_v56 = vrot.slane %v6137_v48, 6  ;;  %v6858_v1 = vld [vmem:[#allocation9 + $0x140] ss:$8 sps:$4 sm:$0xff]   ;;  %v6867_v62 = vld [vmem:[#allocation9 + $0x154] ss:$8 sps:$4 sm:$0xff]   ;;  %v1751_v12 = vrot.slane %v7832_v57, 2 }
 0x10d   : > { %v1045_v31 = vsel %vm969_vm3, %v1040_v23, %v7814_v25  ;;  %696 = vst [vmem:[#allocation2 + $0x54] sm:$0xf] %v610_v46  ;;  %3947 = vmatpush1.bf16.msra.mxu1 %v6852_v47  ;;  %v2004_v4 = vsel %vm1915_vm5, %v7807_v17, %v7830_v49  ;;  %v6873_v17 = vld [vmem:[#allocation9 + $0x164] ss:$8 sps:$4 sm:$0xff]   ;;  %v1048_v60 = vor.u32 %v1046_v6, %v7814_v25  ;;  %v6871_v19 = vld [vmem:[#allocation9 + $0x160] ss:$8 sps:$4 sm:$0xff]  }
 0x10e   : > { %v612_v52 = vrot.slane %v6136_v42, 6  ;;  %3948 = vmatprep.subr.bf16.mxu1 %v6860_v50  ;;  %v617_v8 = vrot.slane %v615_v56, 4  ;;  %v1752_v26 = vsel %vm1733_vm4, %v1749_v45, %v1751_v12  ;;  %v6844_v37 = vld [vmem:[#allocation2 + $0x48] sm:$0xff]   ;;  %v441_v50 = vld [vmem:[%s7650_s16 + $0xd8] sm:$0xff] }
 0x10f   : > { %4345 = vmatpush1.bf16.msra.mxu0 %v6849_v32 }
 0x110   : > { %v614_v59 = vrot.slane %v612_v52, 4  ;;  %4346 = vmatprep.subr.bf16.mxu0 %v6864_v55 }
 0x111   : > { %3830 = vmatmul.mubr.bf16.gmra.mrb[20].mxu1 %v6810_v43  ;;  %v611_v43 = vrot.slane %v609_v30, 4 }
 0x112   : > { %3839 = vmatprep.mubr.bf16.mxu1 %v1029_v61  ;;  %4216 = vmatmul.mubr.bf16.gmra.mrb[20].mxu0 %v1746_v0  ;;  %v438_v61 = vld [vmem:[%s7650_s16 + $0xc0] sm:$0xff]  ;;  %v1750_v0 = vsel %vm1733_vm4, %v1747_v11, %v1749_v45  ;;  %v7847_v11 = vrot.slane %v6139_v3, 6 }
 0x113   : > { %4225 = vmatprep.mubr.bf16.mxu0 %v1986_v7  ;;  %v613_v58 = vsel %vm7672_vm2, %v611_v43, %v612_v52  ;;  %v6138_v2 = vpack.c.bf16 %v438_v61, %v438_v61  ;;  %v616_v7 = vsel %vm7672_vm2, %v614_v59, %v615_v56  ;;  %4347 = vmatpush1.bf16.msra.mxu0 %v6862_v54  ;;  %v6877_v43 = vld [vmem:[#allocation9 + $0x3b4] ss:$8 sps:$4 sm:$0xff]   ;;  %v6878_v61 = vld [vmem:[#allocation9 + $0x170] ss:$8 sps:$4 sm:$0xff]  }
 0x114   : > { %697 = vst [vmem:[#allocation2 + $0x58] sm:$0xf] %v613_v58  ;;  %698 = vst [vmem:[#allocation2 + $0x5c] sm:$0xf] %v616_v7  ;;  %v6842_v13 = vld [vmem:[#allocation2 + $0x50] sm:$0xff]   ;;  %3949 = vmatpush1.bf16.msra.mxu1 %v6858_v1  ;;  %v623_v36 = vrot.slane %v7847_v11, 4  ;;  %4348 = vmatprep.subr.bf16.mxu0 %v6877_v43  ;;  %v6141_v52 = vpack.c.bf16 %v441_v50, %v441_v50 }
 0x115   : > { %v6843_v15 = vld [vmem:[#allocation2 + $0x50] sm:$0xff]   ;;  %3950 = vmatprep.subr.bf16.mxu1 %v6867_v62  ;;  %v1050_v18 = vshll.u32 %v6842_v13, 16  ;;  %v1054_v14 = vshrl.u32 %v6842_v13, 16 }
 0x116   : > { %v2006_v20 = vshrl.u32 %v6843_v15, 16  ;;  %v2009_v21 = vshll.u32 %v6843_v15, 16  ;;  %v7853_v22 = vld [vmem:[#allocation2 + $0x50] sm:$0xff]   ;;  %v627_v51 = vrot.slane %v6141_v52, 6  ;;  %v6906_v52 = vld [vmem:[#allocation9 + $0x1b4] ss:$8 sps:$4 sm:$0xff]  }
 0x117   : > { %v1052_v27 = vrot.slane %v1050_v18, 1  ;;  %v1753_v41 = vrot.slane %v7853_v22, 2  ;;  %v6857_v7 = vld [vmem:[#allocation2 + $0x50] sm:$0xff]   ;;  %v6891_v18 = vld [vmem:[#allocation9 + $0x190] ss:$8 sps:$4 sm:$0xff]  }
 0x118   : > { %3951 = vmatpush1.bf16.msra.mxu1 %v6865_v9  ;;  %v2008_v25 = vrot.slane %v2006_v20, 2  ;;  %v2011_v29 = vrot.slane %v2009_v21, 3  ;;  %v6886_v13 = vld [vmem:[#allocation9 + $0x184] ss:$8 sps:$4 sm:$0xff]  }
 0x119   : > { %3840 = vmatmul.mubr.bf16.gmra.mrb[24].mxu1 %v6817_v10  ;;  %v618_v10 = vrot.slane %v6138_v2, 6  ;;  %3952 = vmatprep.subr.bf16.mxu1 %v6873_v17  ;;  %v1053_v23 = vsel %vm969_vm3, %v1048_v60, %v1052_v27  ;;  %v1056_v35 = vor.u32 %v1054_v14, %v1052_v27  ;;  %v1754_v58 = vsel %vm1733_vm4, %v1751_v12, %v1753_v41  ;;  %v6880_v2 = vld [vmem:[#allocation9 + $0x174] ss:$8 sps:$4 sm:$0xff]   ;;  %v6884_v12 = vld [vmem:[#allocation9 + $0x180] ss:$8 sps:$4 sm:$0xff]  }
 0x11a   : > { %3849 = vmatprep.mubr.bf16.mxu1 %v1037_v16  ;;  %4226 = vmatmul.mubr.bf16.gmra.mrb[24].mxu0 %v1748_v28  ;;  %v440_v28 = vld [vmem:[%s7650_s16 + $0xd0] sm:$0xff]  ;;  %v6893_v14 = vld [vmem:[#allocation9 + $0x194] ss:$8 sps:$4 sm:$0xff]   ;;  %v443_v22 = vld [vmem:[%s7650_s16 + $0xe8] sm:$0xff] }
 0x11b   : > { %4235 = vmatprep.mubr.bf16.mxu0 %v1995_v34  ;;  %v619_v63 = vsel %vm7672_vm2, %v617_v8, %v618_v10  ;;  %v620_v16 = vrot.slane %v618_v10, 4  ;;  %v6855_v30 = vld [vmem:[#allocation2 + $0x58] sm:$0xff]   ;;  %v6140_v33 = vpack.c.bf16 %v440_v28, %v440_v28  ;;  %v6143_v28 = vpack.c.bf16 %v443_v22, %v443_v22 }
 0x11c   : > { %699 = vst [vmem:[#allocation2 + $0x60] sm:$0xf] %v619_v63  ;;  %v6856_v32 = vld [vmem:[#allocation2 + $0x58] sm:$0xff]   ;;  %v1058_v38 = vshll.u32 %v6855_v30, 16  ;;  %v1062_v42 = vshrl.u32 %v6855_v30, 16  ;;  %3953 = vmatpush1.bf16.msra.mxu1 %v6871_v19  ;;  %v442_v19 = vld [vmem:[%s7650_s16 + $0xe0] sm:$0xff] }
 0x11d   : > { %v622_v24 = vsel %vm7672_vm2, %v620_v16, %v7847_v11  ;;  %v6875_v34 = vld [vmem:[#allocation9 + $0x3b0] ss:$8 sps:$4 sm:$0xff]   ;;  %v2015_v39 = vshrl.u32 %v6856_v32, 16  ;;  %v2018_v40 = vshll.u32 %v6856_v32, 16  ;;  %v624_v57 = vrot.slane %v6140_v33, 6  ;;  %3954 = vmatprep.subr.bf16.mxu1 %v6880_v2 }
 0x11e   : > { %700 = vst [vmem:[#allocation2 + $0x64] sm:$0xf] %v622_v24  ;;  %v1060_v46 = vrot.slane %v1058_v38, 1  ;;  %4349 = vmatpush1.bf16.msra.mxu0 %v6875_v34  ;;  %v6888_v63 = vld [vmem:[#allocation9 + $0x3c0] ss:$8 sps:$4 sm:$0xff]   ;;  %v6142_v24 = vpack.c.bf16 %v442_v19, %v442_v19  ;;  %v633_v32 = vrot.slane %v6143_v28, 6 }
 0x11f   : > { %v2017_v47 = vrot.slane %v2015_v39, 2  ;;  %v2020_v48 = vrot.slane %v2018_v40, 3  ;;  %v625_v3 = vsel %vm7672_vm2, %v623_v36, %v624_v57  ;;  %v6890_v60 = vld [vmem:[#allocation9 + $0x3c4] ss:$8 sps:$4 sm:$0xff]   ;;  %v6910_v2 = vld [vmem:[#allocation9 + $0x1c0] ss:$8 sps:$4 sm:$0xff]  }
 0x120   : > { %v1061_v54 = vsel %vm969_vm3, %v1056_v35, %v1060_v46  ;;  %701 = vst [vmem:[#allocation2 + $0x68] sm:$0xf] %v625_v3  ;;  %3955 = vmatpush1.bf16.msra.mxu1 %v6878_v61  ;;  %4350 = vmatprep.subr.bf16.mxu0 %v6890_v60  ;;  %v6914_v3 = vld [vmem:[#allocation9 + $0x3e0] ss:$8 sps:$4 sm:$0xff]  }
 0x121   : > { %3850 = vmatmul.mubr.bf16.gmra.mrb[28].mxu1 %v6824_v53  ;;  %v2012_v53 = vor.u32 %v2011_v29, %v2008_v25  ;;  %v2021_v55 = vor.u32 %v2020_v48, %v2017_v47  ;;  %3956 = vmatprep.subr.bf16.mxu1 %v6886_v13  ;;  %v6870_v25 = vld [vmem:[#allocation2 + $0x58] sm:$0xff]   ;;  %v630_v29 = vrot.slane %v6142_v24, 6  ;;  %v6923_v24 = vld [vmem:[#allocation9 + $0x1e0] ss:$8 sps:$4 sm:$0xff]  }
 0x122   : > { %3859 = vmatprep.mubr.bf16.mxu1 %v1045_v31  ;;  %4236 = vmatmul.mubr.bf16.gmra.mrb[28].mxu0 %v1750_v0  ;;  %v7866_v31 = vld [vmem:[#allocation2 + $0x58] sm:$0xff]  }
 0x123   : > { %4245 = vmatprep.mubr.bf16.mxu0 %v2004_v4  ;;  %v2013_v45 = vsel %vm1915_vm5, %v7830_v49, %v2012_v53  ;;  %v1064_v49 = vor.u32 %v1062_v42, %v1060_v46  ;;  %v2022_v0 = vsel %vm1915_vm5, %v2012_v53, %v2021_v55  ;;  %v626_v4 = vrot.slane %v624_v57, 4  ;;  %4351 = vmatpush1.bf16.msra.mxu0 %v6888_v63  ;;  %v6899_v42 = vld [vmem:[#allocation9 + $0x1a4] ss:$8 sps:$4 sm:$0xff]   ;;  %v6903_v46 = vld [vmem:[#allocation9 + $0x3d4] ss:$8 sps:$4 sm:$0xff]  }
 0x124   : > { %v1755_v62 = vrot.slane %v7866_v31, 2  ;;  %3957 = vmatpush1.bf16.msra.mxu1 %v6884_v12  ;;  %v632_v33 = vrot.slane %v630_v29, 4  ;;  %v6904_v31 = vld [vmem:[#allocation9 + $0x1b0] ss:$8 sps:$4 sm:$0xff]   ;;  %4352 = vmatprep.subr.bf16.mxu0 %v6903_v46 }
 0x125   : > { %v7869_v56 = vld [vmem:[#allocation2 + $0x60] sm:$0xff]   ;;  %v628_v9 = vsel %vm7672_vm2, %v626_v4, %v627_v51  ;;  %3958 = vmatprep.subr.bf16.mxu1 %v6893_v14 }
 0x126   : > { %v6869_v59 = vld [vmem:[#allocation2 + $0x60] sm:$0xff]   ;;  %v1066_v1 = vshll.u32 %v7869_v56, 16  ;;  %702 = vst [vmem:[#allocation2 + $0x6c] sm:$0xf] %v628_v9  ;;  %v1756_v20 = vsel %vm1733_vm4, %v1753_v41, %v1755_v62  ;;  %v1070_v21 = vshrl.u32 %v7869_v56, 16  ;;  %v634_v41 = vsel %vm7672_vm2, %v632_v33, %v633_v32 }
 0x127   : > { %v2027_v6 = vshll.u32 %v6869_v59, 16  ;;  %v7882_v17 = vld [vmem:[#allocation2 + $0x60] sm:$0xff]   ;;  %704 = vst [vmem:[#allocation2 + $0x74] sm:$0xf] %v634_v41 }
 0x128   : > { %v1068_v8 = vrot.slane %v1066_v1, 1  ;;  %v1757_v34 = vrot.slane %v7882_v17, 2  ;;  %3959 = vmatpush1.bf16.msra.mxu1 %v6891_v18  ;;  %v445_v56 = vld [vmem:[%s7650_s16 + $0xf8] sm:$0xff]  ;;  %v635_v1 = vrot.slane %v633_v32, 4 }
 0x129   : > { %3860 = vmatmul.mubr.bf16.gmra.mrb[32].mxu1 %v6831_v5  ;;  %v2024_v5 = vshrl.u32 %v6869_v59, 16  ;;  %v2029_v11 = vrot.slane %v2027_v6, 3  ;;  %3960 = vmatprep.subr.bf16.mxu1 %v6899_v42  ;;  %v6145_v61 = vpack.c.bf16 %v445_v56, %v445_v56  ;;  %v6917_v14 = vld [vmem:[#allocation9 + $0x1d0] ss:$8 sps:$4 sm:$0xff]   ;;  %v6932_v32 = vld [vmem:[#allocation9 + $0x1f4] ss:$8 sps:$4 sm:$0xff]  }
 0x12a   : > { %4246 = vmatmul.mubr.bf16.gmra.mrb[32].mxu0 %v1752_v26  ;;  %3869 = vmatprep.mubr.bf16.mxu1 %v1053_v23  ;;  %v1069_v15 = vsel %vm969_vm3, %v1064_v49, %v1068_v8  ;;  %v629_v26 = vrot.slane %v627_v51, 4  ;;  %v1072_v36 = vor.u32 %v1070_v21, %v1068_v8  ;;  %v1758_v47 = vsel %vm1733_vm4, %v1755_v62, %v1757_v34  ;;  %v6912_v51 = vld [vmem:[#allocation9 + $0x1c4] ss:$8 sps:$4 sm:$0xff]  }
 0x12b   : > { %4255 = vmatprep.mubr.bf16.mxu0 %v2013_v45  ;;  %v2026_v10 = vrot.slane %v2024_v5, 2  ;;  %v6901_v45 = vld [vmem:[#allocation9 + $0x3d0] ss:$8 sps:$4 sm:$0xff]   ;;  %v639_v6 = vrot.slane %v6145_v61, 6 }
 0x12c   : > { %v631_v35 = vsel %vm7672_vm2, %v629_v26, %v630_v29  ;;  %4353 = vmatpush1.bf16.msra.mxu0 %v6901_v45  ;;  %v6925_v26 = vld [vmem:[#allocation9 + $0x1e4] ss:$8 sps:$4 sm:$0xff]   ;;  %v6929_v29 = vld [vmem:[#allocation9 + $0x3f4] ss:$8 sps:$4 sm:$0xff]  }
 0x12d   : > { %v7880_v16 = vor.u32 %v2029_v11, %v2026_v10  ;;  %v7890_v30 = vld [vmem:[#allocation2 + $0x68] sm:$0xff]   ;;  %703 = vst [vmem:[#allocation2 + $0x70] sm:$0xf] %v631_v35  ;;  %v641_v11 = vrot.slane %v639_v6, 4 }
 0x12e   : > { %v6882_v23 = vld [vmem:[#allocation2 + $0x68] sm:$0xff]   ;;  %v1074_v53 = vshll.u32 %v7890_v30, 16  ;;  %v1078_v49 = vshrl.u32 %v7890_v30, 16 }
 0x12f   : > { %v2031_v27 = vsel %vm1915_vm5, %v2021_v55, %v7880_v16  ;;  %v2033_v38 = vshrl.u32 %v6882_v23, 16  ;;  %v2036_v39 = vshll.u32 %v6882_v23, 16  ;;  %v7896_v40 = vld [vmem:[#allocation2 + $0x68] sm:$0xff]   ;;  %v444_v55 = vld [vmem:[%s7650_s16 + $0xf0] sm:$0xff]  ;;  %707 = vst [vmem:[#allocation2 + $0x80] sm:$0x3] %v641_v11 }
 0x130   : > { %v1076_v43 = vrot.slane %v1074_v53, 1  ;;  %v6144_v59 = vpack.c.bf16 %v444_v55, %v444_v55  ;;  %v6896_v60 = vld [vmem:[#allocation2 + $0x68] sm:$0xff]   ;;  %v6930_v23 = vld [vmem:[#allocation9 + $0x1f0] ss:$8 sps:$4 sm:$0xff]  }
 0x131   : > { %3870 = vmatmul.mubr.bf16.gmra.mrb[36].mxu1 %v6844_v37  ;;  %v6897_v37 = vld [vmem:[#allocation9 + $0x1a0] ss:$8 sps:$4 sm:$0xff]   ;;  %v2035_v48 = vrot.slane %v2033_v38, 2  ;;  %v2038_v50 = vrot.slane %v2036_v39, 3 }
 0x132   : > { %3879 = vmatprep.mubr.bf16.mxu1 %v1061_v54  ;;  %4256 = vmatmul.mubr.bf16.gmra.mrb[36].mxu0 %v1754_v58  ;;  %v1077_v54 = vsel %vm969_vm3, %v1072_v36, %v1076_v43  ;;  %v6883_v58 = vld [vmem:[#allocation2 + $0x60] sm:$0xff]   ;;  %v636_v5 = vrot.slane %v6144_v59, 6  ;;  %v1080_v13 = vor.u32 %v1078_v49, %v1076_v43  ;;  %v6934_v36 = vld [vmem:[#allocation2 + $0x8] sm:$0xff]  }
 0x133   : > { %4265 = vmatprep.mubr.bf16.mxu0 %v2022_v0  ;;  %3961 = vmatpush1.bf16.msra.mxu1 %v6897_v37  ;;  %v2039_v57 = vor.u32 %v2038_v50, %v2035_v48  ;;  %v1759_v0 = vrot.slane %v7896_v40, 2  ;;  %v1442_v40 = vshrl.u32 %v6934_v36, 16 }
 0x134   : > { %3962 = vmatprep.subr.bf16.mxu1 %v6906_v52  ;;  %v6894_v62 = vld [vmem:[#allocation2 + $0x70] sm:$0xff]   ;;  %v637_v9 = vsel %vm7672_vm2, %v635_v1, %v636_v5  ;;  %v638_v10 = vrot.slane %v636_v5, 4 }
 0x135   : > { %v2040_v4 = vsel %vm1915_vm5, %v7880_v16, %v2039_v57  ;;  %v6895_v8 = vld [vmem:[#allocation2 + $0x70] sm:$0xff]   ;;  %v1760_v12 = vsel %vm1733_vm4, %v1757_v34, %v1759_v0  ;;  %705 = vst [vmem:[#allocation2 + $0x78] sm:$0xf] %v637_v9  ;;  %v1086_v30 = vshrl.u32 %v6894_v62, 16  ;;  %v1445_v9 = vshll.u32 %v6934_v36, 16 }
 0x136   : > { %v7911_v63 = vld [vmem:[#allocation2 + $0x70] sm:$0xff]   ;;  %v2042_v16 = vshrl.u32 %v6895_v8, 16  ;;  %v2045_v17 = vshll.u32 %v6895_v8, 16  ;;  %v640_v18 = vsel %vm7672_vm2, %v638_v10, %v639_v6  ;;  %v6920_v33 = vld [vmem:[#allocation2 + $0x80] ss:$0 sps:$4 sm:$0x11]  }
 0x137   : > { %3963 = vmatpush1.bf16.msra.mxu1 %v6904_v31  ;;  %706 = vst [vmem:[#allocation2 + $0x7c] sm:$0xf] %v640_v18  ;;  %v1761_v28 = vrot.slane %v7911_v63, 2  ;;  %v1098_v39 = vshll.u32 %v6920_v33, 16  ;;  %v1447_v63 = vrot.slane %v1445_v9, 2  ;;  %v7946_v9 = vld [vmem:[#allocation2 + $0x18] sm:$0xff]  }
 0x138   : > { %3964 = vmatprep.subr.bf16.mxu1 %v6912_v51  ;;  %v2044_v21 = vrot.slane %v2042_v16, 2  ;;  %v2047_v22 = vrot.slane %v2045_v17, 3  ;;  %v6921_v52 = vld [vmem:[#allocation2 + $0x80] ss:$0 sps:$4 sm:$0x77]   ;;  %v6936_v51 = vld [vmem:[#allocation2 + $0x8] sm:$0xff]  }
 0x139   : > { %3880 = vmatmul.mubr.bf16.gmra.mrb[40].mxu1 %v6857_v7  ;;  %v6916_v7 = vld [vmem:[#allocation9 + $0x3e4] ss:$8 sps:$4 sm:$0xff]   ;;  %v1762_v35 = vsel %vm1733_vm4, %v1759_v0, %v1761_v28  ;;  %v1100_v31 = vrot.slane %v1098_v39, 1  ;;  %v2060_v49 = vshrl.u32 %v6921_v52, 16  ;;  %v2063_v59 = vshll.u32 %v6921_v52, 16 }
 0x13a   : > { %3889 = vmatprep.mubr.bf16.mxu1 %v1069_v15  ;;  %4266 = vmatmul.mubr.bf16.gmra.mrb[40].mxu0 %v1756_v20  ;;  %v1082_v15 = vshll.u32 %v6894_v62, 16  ;;  %v6919_v20 = vld [vmem:[#allocation9 + $0x1d4] ss:$8 sps:$4 sm:$0xff]   ;;  %v2048_v44 = vor.u32 %v2047_v22, %v2044_v21  ;;  %v2408_v16 = vshrl.u32 %v6936_v51, 16  ;;  %v6943_v33 = vld [vmem:[#allocation9 + $0x404] ss:$8 sps:$4 sm:$0xff]  }
 0x13b   : > { %4275 = vmatprep.mubr.bf16.mxu0 %v2031_v27  ;;  %4354 = vmatprep.subr.bf16.mxu0 %v6916_v7  ;;  %v6926_v61 = vld [vmem:[#allocation2 + $0x80] ss:$0 sps:$4 sm:$0x33]   ;;  %v2065_v5 = vrot.slane %v2063_v59, 3  ;;  %v7927_v22 = vld [vmem:[#allocation2 + $0x8] sm:$0xff]   ;;  %v7940_v52 = vld [vmem:[#allocation2 + $0x10] sm:$0xff]  }
 0x13c   : > { %4355 = vmatpush1.bf16.msra.mxu0 %v6914_v3  ;;  %3965 = vmatpush1.bf16.msra.mxu1 %v6910_v2  ;;  %v1084_v19 = vrot.slane %v1082_v15, 1  ;;  %v2049_v34 = vsel %vm1915_vm5, %v2039_v57, %v2048_v44  ;;  %v6933_v2 = vld [vmem:[#allocation2] sm:$0xfe]   ;;  %v1765_v6 = vrot.slane %v6926_v61, 2  ;;  %v2410_v21 = vrot.slane %v2408_v16, 3 }
 0x13d   : > { %3966 = vmatprep.subr.bf16.mxu1 %v6919_v20  ;;  %4356 = vmatprep.subr.bf16.mxu0 %v6929_v29  ;;  %v1434_v62 = vshrl.u32 %v6933_v2, 16  ;;  %v1437_v8 = vshll.u32 %v6933_v2, 16 }
 0x13e   : > { %v1085_v27 = vsel %vm969_vm3, %v1080_v13, %v1084_v19  ;;  %v6907_v53 = vld [vmem:[#allocation2 + $0x78] sm:$0xff]   ;;  %v1088_v41 = vor.u32 %v1086_v30, %v1084_v19 }
 0x13f   : > { %v6908_v37 = vld [vmem:[#allocation2 + $0x78] sm:$0xff]   ;;  %v1090_v42 = vshll.u32 %v6907_v53, 16  ;;  %v1094_v43 = vshrl.u32 %v6907_v53, 16  ;;  %v1436_v13 = vrot.slane %v1434_v62, 1  ;;  %v1439_v15 = vrot.slane %v1437_v8, 2  ;;  %v6944_v53 = vld [vmem:[#allocation2 + $0x10] sm:$0xff]  }
 0x140   : > { %3967 = vmatpush1.bf16.msra.mxu1 %v6917_v14  ;;  %v7919_v38 = vld [vmem:[#allocation2 + $0x78] sm:$0xff]   ;;  %v2051_v45 = vshrl.u32 %v6908_v37, 16  ;;  %v2054_v46 = vshll.u32 %v6908_v37, 16  ;;  %v2411_v14 = vshll.u32 %v6936_v51, 16  ;;  %v2220_v62 = vrot.slane %v7940_v52, 3  ;;  %v6967_v52 = vld [vmem:[#allocation2 + $0x30] sm:$0xff]  }
 0x141   : > { %3890 = vmatmul.mubr.bf16.gmra.mrb[44].mxu1 %v6870_v25  ;;  %v6927_v25 = vld [vmem:[#allocation9 + $0x3f0] ss:$8 sps:$4 sm:$0xff]   ;;  %3968 = vmatprep.subr.bf16.mxu1 %v6925_v26  ;;  %v1763_v48 = vrot.slane %v7919_v38, 2  ;;  %v1092_v50 = vrot.slane %v1090_v42, 1  ;;  %v1440_v19 = vor.u32 %v1439_v15, %v1436_v13  ;;  %v6945_v38 = vld [vmem:[#allocation2 + $0x10] sm:$0xff]  }
 0x142   : > { %3899 = vmatprep.mubr.bf16.mxu1 %v1077_v54  ;;  %4276 = vmatmul.mubr.bf16.gmra.mrb[44].mxu0 %v1758_v47  ;;  %v6909_v47 = vld [vmem:[#allocation2 + $0x70] sm:$0xff]   ;;  %v1444_v54 = vrot.slane %v1442_v40, 1  ;;  %v2053_v55 = vrot.slane %v2051_v45, 2  ;;  %v2056_v56 = vrot.slane %v2054_v46, 3  ;;  %v6922_v11 = vld [vmem:[#allocation2 + $0x78] sm:$0xff]   ;;  %v1451_v40 = vshrl.u32 %v6944_v53, 16 }
 0x143   : > { %4285 = vmatprep.mubr.bf16.mxu0 %v2040_v4  ;;  %4357 = vmatpush1.bf16.msra.mxu0 %v6927_v25  ;;  %v1093_v57 = vsel %vm969_vm3, %v1088_v41, %v1092_v50  ;;  %v1764_v1 = vsel %vm1733_vm4, %v1761_v28, %v1763_v48  ;;  %v2062_v4 = vrot.slane %v2060_v49, 2  ;;  %v6937_v28 = vld [vmem:[#allocation2] sm:$0xfe]   ;;  %v7929_v25 = vld [vmem:[#allocation2 + $0x8] sm:$0xff]   ;;  %v1766_v29 = vsel %vm1733_vm4, %v1763_v48, %v1765_v6  ;;  %v7936_v42 = vld [vmem:[#allocation2 + $0x10] sm:$0xff]  }
 0x144   : > { %3969 = vmatpush1.bf16.msra.mxu1 %v6923_v24  ;;  %v2057_v0 = vor.u32 %v2056_v56, %v2053_v55  ;;  %v1448_v20 = vor.u32 %v1447_v63, %v1444_v54  ;;  %v2218_v37 = vrot.slane %v7929_v25, 3  ;;  %4519 = vmatprep.subr.bf16.mxu0 %v6943_v33  ;;  %v1454_v41 = vshll.u32 %v6944_v53, 16  ;;  %v6948_v56 = vld [vmem:[#allocation2 + $0x18] sm:$0xff]   ;;  %v6954_v15 = vld [vmem:[#allocation9 + $0x414] ss:$8 sps:$4 sm:$0xff]  }
 0x145   : > { %3970 = vmatprep.subr.bf16.mxu1 %v6932_v32  ;;  %v2066_v10 = vor.u32 %v2065_v5, %v2062_v4  ;;  %v2417_v45 = vshrl.u32 %v6945_v38, 16  ;;  %v2420_v46 = vshll.u32 %v6945_v38, 16  ;;  %v1453_v48 = vrot.slane %v1451_v40, 1  ;;  %v7955_v25 = vld [vmem:[#allocation2 + $0x20] sm:$0xff]  }
 0x146   : > { %v2058_v7 = vsel %vm1915_vm5, %v2048_v44, %v2057_v0  ;;  %v1449_v44 = vsel %vm1432_vm6, %v1440_v19, %v1448_v20  ;;  %v1460_v61 = vshrl.u32 %v6948_v56, 16  ;;  %v1463_v51 = vshll.u32 %v6948_v56, 16 }
 0x147   : > { %v2067_v17 = vsel %vm1915_vm5, %v2057_v0, %v2066_v10  ;;  %v2419_v54 = vrot.slane %v2417_v45, 3  ;;  %v2422_v55 = vrot.slane %v2420_v46, 4  ;;  %v6952_v10 = vld [vmem:[#allocation9 + $0x410] ss:$8 sps:$4 sm:$0xff]   ;;  %v1258_v40 = vrot.slane %v7955_v25, 1 }
 0x148   : > { %3971 = vmatpush1.bf16.msra.mxu1 %v6930_v23  ;;  %v1251_v23 = vrot.slane %v6937_v28, 1  ;;  %v1462_v4 = vrot.slane %v1460_v61, 1  ;;  %v1465_v5 = vrot.slane %v1463_v51, 2  ;;  %v6965_v46 = vld [vmem:[#allocation9 + $0x424] ss:$8 sps:$4 sm:$0xff]   ;;  %v2453_v61 = vshrl.u32 %v6967_v52, 16 }
 0x149   : > { %3900 = vmatmul.mubr.bf16.gmra.mrb[48].mxu1 %v6883_v58  ;;  %v1096_v58 = vor.u32 %v1094_v43, %v1092_v50  ;;  %v1456_v50 = vrot.slane %v1454_v41, 2  ;;  %v2423_v59 = vor.u32 %v2422_v55, %v2419_v54  ;;  %v6958_v41 = vld [vmem:[#allocation2 + $0x20] sm:$0xff]   ;;  %v2456_v51 = vshll.u32 %v6967_v52, 16 }
 0x14a   : > { %4286 = vmatmul.mubr.bf16.gmra.mrb[48].mxu0 %v1760_v12  ;;  %3909 = vmatprep.mubr.bf16.mxu1 %v1085_v27  ;;  %v6935_v12 = vld [vmem:[#allocation2] sm:$0xf8]   ;;  %v2413_v27 = vrot.slane %v2411_v14, 4  ;;  %v1466_v13 = vor.u32 %v1465_v5, %v1462_v4  ;;  %v2224_v56 = vrot.slane %v6958_v41, 3  ;;  %v6971_v4 = vld [vmem:[#allocation2 + $0x38] sm:$0xff]  }
 0x14b   : > { %4295 = vmatprep.mubr.bf16.mxu0 %v2049_v34  ;;  %v1101_v3 = vsel %vm969_vm3, %v1096_v58, %v1100_v31  ;;  %v2403_v18 = vshll.u32 %v6935_v12, 16  ;;  %v6939_v34 = vld [vmem:[#allocation2] sm:$0xf8]   ;;  %v1254_v31 = vrot.slane %v7936_v42, 1  ;;  %v1457_v49 = vor.u32 %v1456_v50, %v1453_v48  ;;  %v6966_v50 = vld [vmem:[#allocation2 + $0x30] sm:$0xff]  }
 0x14c   : > { %v2414_v32 = vor.u32 %v2413_v27, %v2410_v21  ;;  %v2217_v39 = vrot.slane %v6939_v34, 3  ;;  %v1256_v21 = vrot.slane %v7946_v9, 1  ;;  %v1487_v54 = vshrl.u32 %v6966_v50, 16 }
 0x14d   : > { %v2405_v26 = vrot.slane %v2403_v18, 4  ;;  %v1490_v55 = vshll.u32 %v6966_v50, 16 }
 0x14e   : > { %v2219_v58 = vsel %vm2216_vm9, %v2217_v39, %v2218_v37 }
 0x151   : > { %3910 = vmatmul.mubr.bf16.gmra.mrb[52].mxu1 %v6896_v60  ;;  %v2400_v60 = vshrl.u32 %v6935_v12, 16 }
 0x152   : > { %4296 = vmatmul.mubr.bf16.gmra.mrb[52].mxu0 %v1762_v35  ;;  %3919 = vmatprep.mubr.bf16.mxu1 %v1093_v57  ;;  %v1252_v35 = vrot.slane %v7927_v22, 1  ;;  %v6949_v57 = vld [vmem:[#allocation2 + $0x18] sm:$0xff]  }
 0x153   : > { %4305 = vmatprep.mubr.bf16.mxu0 %v2058_v7  ;;  %v2402_v24 = vrot.slane %v2400_v60, 3  ;;  %v2426_v0 = vshrl.u32 %v6949_v57, 16  ;;  %v2429_v2 = vshll.u32 %v6949_v57, 16  ;;  %v6955_v7 = vld [vmem:[#allocation2 + $0x20] sm:$0xff]   ;;  %v7950_v60 = vld [vmem:[#allocation2 + $0x18] sm:$0xff]   ;;  %v6961_v57 = vld [vmem:[#allocation2 + $0x28] sm:$0xff]  }
 0x154   : > { %v1253_v43 = vsel %vm1250_vm8, %v1251_v23, %v1252_v35  ;;  %v1255_v12 = vsel %vm1250_vm8, %v1252_v35, %v1254_v31  ;;  %v1469_v16 = vshrl.u32 %v6955_v7, 16  ;;  %v1472_v18 = vshll.u32 %v6955_v7, 16 }
 0x155   : > { %v2406_v30 = vor.u32 %v2405_v26, %v2402_v24  ;;  %v2428_v6 = vrot.slane %v2426_v0, 3  ;;  %v2431_v8 = vrot.slane %v2429_v2, 4  ;;  %v1257_v35 = vsel %vm1250_vm8, %v1254_v31, %v1256_v21 }
 0x156   : > { %v1471_v22 = vrot.slane %v1469_v16, 1  ;;  %v1474_v26 = vrot.slane %v1472_v18, 2  ;;  %v1492_v2 = vrot.slane %v1490_v55, 2  ;;  %v6976_v16 = vld [vmem:[#allocation9 + $0x434] ss:$8 sps:$4 sm:$0xff]  }
 0x157   : > { %v2415_v36 = vsel %vm2398_vm7, %v2406_v30, %v2414_v32  ;;  %v2432_v63 = vor.u32 %v2431_v8, %v2428_v6  ;;  %v1260_v6 = vrot.slane %v6961_v57, 1  ;;  %v2458_v8 = vrot.slane %v2456_v51, 4  ;;  %v6979_v57 = vld [vmem:[#allocation2 + $0x40] sm:$0xff]  }
 0x158   : > { %v1475_v30 = vor.u32 %v1474_v26, %v1471_v22  ;;  %v6969_v26 = vld [vmem:[#allocation2 + $0x30] sm:$0xff]  }
 0x159   : > { %3920 = vmatmul.mubr.bf16.gmra.mrb[56].mxu1 %v6909_v47  ;;  %v6941_v47 = vld [vmem:[#allocation9 + $0x400] ss:$8 sps:$4 sm:$0xff]   ;;  %v2433_v24 = vsel %vm2398_vm7, %v2423_v59, %v2432_v63 }
 0x15a   : > { %3929 = vmatprep.mubr.bf16.mxu1 %v1101_v3  ;;  %4306 = vmatmul.mubr.bf16.gmra.mrb[56].mxu0 %v1764_v1  ;;  %v1458_v1 = vsel %vm1432_vm6, %v1448_v20, %v1457_v49  ;;  %v2424_v3 = vsel %vm2398_vm7, %v2414_v32, %v2423_v59  ;;  %v2221_v20 = vsel %vm2216_vm9, %v2218_v37, %v2220_v62  ;;  %v6960_v32 = vld [vmem:[#allocation2 + $0x28] sm:$0xff]  }
 0x15b   : > { %4315 = vmatprep.mubr.bf16.mxu0 %v2067_v17  ;;  %v1467_v17 = vsel %vm1432_vm6, %v1457_v49, %v1466_v13  ;;  %v2447_v53 = vshll.u32 %v6960_v32, 16  ;;  %v1476_v37 = vsel %vm1432_vm6, %v1466_v13, %v1475_v30  ;;  %v7964_v59 = vld [vmem:[#allocation2 + $0x28] sm:$0xff]  }
 0x15c   : > { %v2226_v13 = vrot.slane %v7964_v59, 3 }
 0x15d   : > { %v2449_v48 = vrot.slane %v2447_v53, 4 }
 0x15e   : > { %v2227_v22 = vsel %vm2216_vm9, %v2224_v56, %v2226_v13 }
 0x161   : > { %3930 = vmatmul.mubr.bf16.gmra.mrb[60].mxu1 %v6922_v11  ;;  %v6956_v11 = vld [vmem:[#allocation2 + $0x20] sm:$0xff]  }
 0x162   : > { %3972 = vmatprep.mubr.bf16.mxu1 %v1449_v44  ;;  %4316 = vmatmul.mubr.bf16.gmra.mrb[60].mxu0 %v1766_v29  ;;  %v2435_v14 = vshrl.u32 %v6956_v11, 16  ;;  %v2438_v19 = vshll.u32 %v6956_v11, 16  ;;  %v6959_v44 = vld [vmem:[#allocation2 + $0x28] sm:$0xff]   ;;  %v2222_v29 = vrot.slane %v7950_v60, 3 }
 0x163   : > { %4358 = vmatprep.mubr.bf16.mxu0 %v2415_v36  ;;  %v1478_v34 = vshrl.u32 %v6959_v44, 16  ;;  %v1481_v23 = vshll.u32 %v6959_v44, 16  ;;  %v2444_v36 = vshrl.u32 %v6960_v32, 16  ;;  %v7974_v44 = vld [vmem:[#allocation2 + $0x38] sm:$0xff]  }
 0x164   : > { %v2437_v27 = vrot.slane %v2435_v14, 3  ;;  %v2440_v28 = vrot.slane %v2438_v19, 4  ;;  %v2223_v45 = vsel %vm2216_vm9, %v2220_v62, %v2222_v29  ;;  %v2225_v5 = vsel %vm2216_vm9, %v2222_v29, %v2224_v56  ;;  %v6978_v29 = vld [vmem:[#allocation2 + $0x40] sm:$0xff]  }
 0x165   : > { %v1480_v38 = vrot.slane %v1478_v34, 1  ;;  %v1483_v39 = vrot.slane %v1481_v23, 2  ;;  %v2446_v42 = vrot.slane %v2444_v36, 3  ;;  %v2455_v62 = vrot.slane %v2453_v61, 3 }
 0x166   : > { %v2441_v33 = vor.u32 %v2440_v28, %v2437_v27  ;;  %v2465_v14 = vshll.u32 %v6971_v4, 16  ;;  %v2228_v23 = vrot.slane %v6969_v26, 3  ;;  %v2471_v53 = vshrl.u32 %v6978_v29, 16 }
 0x167   : > { %v1484_v31 = vor.u32 %v1483_v39, %v1480_v38  ;;  %v2450_v49 = vor.u32 %v2449_v48, %v2446_v42  ;;  %v2459_v60 = vor.u32 %v2458_v8, %v2455_v62  ;;  %v1264_v39 = vrot.slane %v7974_v44, 1  ;;  %v6982_v48 = vld [vmem:[#allocation2 + $0x48] sm:$0xff]  }
 0x168   : > { %v2467_v25 = vrot.slane %v2465_v14, 4  ;;  %v2483_v59 = vshll.u32 %v6982_v48, 16  ;;  %v1266_v62 = vrot.slane %v6979_v57, 1  ;;  %v6992_v14 = vld [vmem:[#allocation2 + $0x58] sm:$0xff]  }
 0x169   : > { %3973 = vmatmul.mubr.bf16.vlgmr.msra.gmra.mrb[0].mxu1 %v1253_v43  ;;  %v6963_v43 = vld [vmem:[#allocation9 + $0x420] ss:$8 sps:$4 sm:$0xff]   ;;  %v1485_v0 = vsel %vm1432_vm6, %v1475_v30, %v1484_v31  ;;  %v2451_v7 = vsel %vm2398_vm7, %v2441_v33, %v2450_v49  ;;  %v2460_v27 = vsel %vm2398_vm7, %v2450_v49, %v2459_v60  ;;  %v2480_v49 = vshrl.u32 %v6982_v48, 16 }
 0x16a   : > { %4359 = vmatmul.mubr.bf16.vlgmr.msra.gmra.mrb[0].mxu0 %v2219_v58  ;;  %3982 = vmatprep.mubr.bf16.mxu1 %v1458_v1  ;;  %v1259_v58 = vsel %vm1250_vm8, %v1256_v21, %v1258_v40  ;;  %v1489_v1 = vrot.slane %v1487_v54, 1  ;;  %v6977_v21 = vld [vmem:[#allocation2 + $0x40] sm:$0xff]  }
 0x16b   : > { %4520 = vmatpush1.bf16.msra.mxu0 %v6941_v47  ;;  %4368 = vmatprep.mubr.bf16.mxu0 %v2424_v3  ;;  %v2442_v47 = vsel %vm2398_vm7, %v2432_v63, %v2441_v33  ;;  %v6970_v3 = vld [vmem:[#allocation2 + $0x38] sm:$0xff]   ;;  %v2462_v63 = vshrl.u32 %v6971_v4, 16  ;;  %v1505_v32 = vshrl.u32 %v6977_v21, 16  ;;  %v1508_v34 = vshll.u32 %v6977_v21, 16  ;;  %v6989_v4 = vld [vmem:[#allocation2 + $0x50] sm:$0xff]  }
 0x16c   : > { %4521 = vmatprep.subr.bf16.mxu0 %v6954_v15  ;;  %v1496_v9 = vshrl.u32 %v6970_v3, 16  ;;  %v1499_v11 = vshll.u32 %v6970_v3, 16  ;;  %v6968_v15 = vld [vmem:[#allocation2 + $0x30] sm:$0xff]   ;;  %v6980_v3 = vld [vmem:[#allocation2 + $0x40] sm:$0xff]   ;;  %v2482_v8 = vrot.slane %v2480_v49, 3 }
 0x16d   : > { %v2464_v28 = vrot.slane %v2462_v63, 3  ;;  %v1507_v41 = vrot.slane %v1505_v32, 1  ;;  %v1510_v42 = vrot.slane %v1508_v34, 2  ;;  %v2232_v63 = vrot.slane %v6980_v3, 3  ;;  %v6999_v34 = vld [vmem:[#allocation2 + $0x60] sm:$0xff]  }
 0x16e   : > { %v1498_v18 = vrot.slane %v1496_v9, 1  ;;  %v2485_v9 = vrot.slane %v2483_v59, 4  ;;  %v1535_v32 = vshll.u32 %v6992_v14, 16 }
 0x16f   : > { %4522 = vmatpush1.bf16.msra.mxu0 %v6952_v10  ;;  %v1493_v10 = vor.u32 %v1492_v2, %v1489_v1  ;;  %v2468_v36 = vor.u32 %v2467_v25, %v2464_v28  ;;  %v1511_v54 = vor.u32 %v1510_v42, %v1507_v41  ;;  %v6988_v2 = vld [vmem:[#allocation2 + $0x50] sm:$0xff]   ;;  %v6993_v28 = vld [vmem:[#allocation2 + $0x58] sm:$0xff]  }
 0x170   : > { %4523 = vmatprep.subr.bf16.mxu0 %v6965_v46  ;;  %v2229_v46 = vsel %vm2216_vm9, %v2226_v13, %v2228_v23  ;;  %v1526_v13 = vshll.u32 %v6988_v2, 16  ;;  %v7009_v41 = vld [vmem:[#allocation9 + $0x464] ss:$8 sps:$4 sm:$0xff]  }
 0x171   : > { %3983 = vmatmul.mubr.bf16.gmra.mrb[4].mxu1 %v1255_v12  ;;  %v6974_v12 = vld [vmem:[#allocation9 + $0x430] ss:$8 sps:$4 sm:$0xff]   ;;  %v1494_v19 = vsel %vm1432_vm6, %v1484_v31, %v1493_v10  ;;  %v2469_v50 = vsel %vm2398_vm7, %v2459_v60, %v2468_v36  ;;  %v2473_v31 = vrot.slane %v2471_v53, 3  ;;  %v2486_v60 = vor.u32 %v2485_v9, %v2482_v8  ;;  %v7007_v53 = vld [vmem:[#allocation9 + $0x460] ss:$8 sps:$4 sm:$0xff]  }
 0x172   : > { %3992 = vmatprep.mubr.bf16.mxu1 %v1467_v17  ;;  %4369 = vmatmul.mubr.bf16.gmra.mrb[4].mxu0 %v2221_v20  ;;  %v1261_v17 = vsel %vm1250_vm8, %v1258_v40, %v1260_v6  ;;  %v1501_v20 = vrot.slane %v1499_v11, 2  ;;  %v6973_v40 = vld [vmem:[#allocation2 + $0x38] sm:$0xff]   ;;  %v1528_v21 = vrot.slane %v1526_v13, 2 }
 0x173   : > { %4378 = vmatprep.mubr.bf16.mxu0 %v2433_v24  ;;  %4524 = vmatpush1.bf16.msra.mxu0 %v6963_v43  ;;  %v1262_v24 = vrot.slane %v6968_v15, 1  ;;  %v6985_v43 = vld [vmem:[#allocation9 + $0x440] ss:$8 sps:$4 sm:$0xff]   ;;  %v2230_v56 = vrot.slane %v6973_v40, 3  ;;  %v2501_v40 = vshll.u32 %v6993_v28, 16 }
 0x174   : > { %4525 = vmatprep.subr.bf16.mxu0 %v6976_v16  ;;  %v1502_v30 = vor.u32 %v1501_v20, %v1498_v18  ;;  %v7985_v15 = vld [vmem:[#allocation2 + $0x48] sm:$0xff]   ;;  %v2489_v16 = vshrl.u32 %v6989_v4, 16  ;;  %v2492_v18 = vshll.u32 %v6989_v4, 16  ;;  %v8006_v4 = vld [vmem:[#allocation2 + $0x58] sm:$0xff]  }
 0x175   : > { %v1263_v33 = vsel %vm1250_vm8, %v1260_v6, %v1262_v24  ;;  %v1265_v61 = vsel %vm1250_vm8, %v1262_v24, %v1264_v39  ;;  %v6996_v6 = vld [vmem:[#allocation9 + $0x450] ss:$8 sps:$4 sm:$0xff]   ;;  %v7990_v24 = vld [vmem:[#allocation2 + $0x48] sm:$0xff]   ;;  %v2233_v26 = vsel %vm2216_vm9, %v2230_v56, %v2232_v63 }
 0x176   : > { %v1503_v38 = vsel %vm1432_vm6, %v1493_v10, %v1502_v30  ;;  %v6998_v10 = vld [vmem:[#allocation9 + $0x454] ss:$8 sps:$4 sm:$0xff]   ;;  %v2494_v44 = vrot.slane %v2492_v18, 4 }
 0x177   : > { %4526 = vmatpush1.bf16.msra.mxu0 %v6974_v12  ;;  %v1523_v12 = vshrl.u32 %v6988_v2, 16 }
 0x179   : > { %3993 = vmatmul.mubr.bf16.gmra.mrb[8].mxu1 %v1257_v35  ;;  %v6981_v35 = vld [vmem:[#allocation2 + $0x48] sm:$0xff]   ;;  %v1525_v20 = vrot.slane %v1523_v12, 1 }
 0x17a   : > { %4002 = vmatprep.mubr.bf16.mxu1 %v1476_v37  ;;  %4379 = vmatmul.mubr.bf16.gmra.mrb[8].mxu0 %v2223_v45  ;;  %v2474_v37 = vshll.u32 %v6978_v29, 16  ;;  %v6987_v45 = vld [vmem:[#allocation9 + $0x444] ss:$8 sps:$4 sm:$0xff]   ;;  %v1517_v55 = vshll.u32 %v6981_v35, 16  ;;  %v1532_v29 = vshrl.u32 %v6992_v14, 16  ;;  %v8013_v12 = vld [vmem:[#allocation2 + $0x68] sm:$0xff]  }
 0x17b   : > { %4388 = vmatprep.mubr.bf16.mxu0 %v2442_v47  ;;  %v1514_v47 = vshrl.u32 %v6981_v35, 16  ;;  %4527 = vmatprep.subr.bf16.mxu0 %v6987_v45  ;;  %v6990_v35 = vld [vmem:[#allocation2 + $0x50] sm:$0xff]   ;;  %v7000_v45 = vld [vmem:[#allocation2 + $0x60] sm:$0xff]  }
 0x17c   : > { %v2476_v52 = vrot.slane %v2474_v37, 4  ;;  %4528 = vmatpush1.bf16.msra.mxu0 %v6985_v43  ;;  %v1519_v1 = vrot.slane %v1517_v55, 2  ;;  %v1537_v43 = vrot.slane %v1535_v32, 2  ;;  %v2503_v55 = vrot.slane %v2501_v40, 4  ;;  %v7020_v14 = vld [vmem:[#allocation9 + $0x474] ss:$8 sps:$4 sm:$0xff]  }
 0x17d   : > { %4529 = vmatprep.subr.bf16.mxu0 %v6998_v10  ;;  %v2510_v49 = vshll.u32 %v7000_v45, 16  ;;  %v8028_v40 = vld [vmem:[#allocation2 + $0x70] sm:$0xff]  }
 0x17e   : > { %v2477_v51 = vor.u32 %v2476_v52, %v2473_v31  ;;  %v8000_v31 = vld [vmem:[#allocation2 + $0x58] sm:$0xff]  }
 0x17f   : > { %v1272_v3 = vrot.slane %v8000_v31, 1  ;;  %v2512_v9 = vrot.slane %v2510_v49, 4 }
 0x180   : > { %4530 = vmatpush1.bf16.msra.mxu0 %v6996_v6  ;;  %v2487_v25 = vsel %vm2398_vm7, %v2477_v51, %v2486_v60 }
 0x181   : > { %4003 = vmatmul.mubr.bf16.gmra.mrb[12].mxu1 %v1259_v58  ;;  %v1516_v58 = vrot.slane %v1514_v47, 1  ;;  %v1544_v47 = vshll.u32 %v6999_v34, 16  ;;  %4531 = vmatprep.subr.bf16.mxu0 %v7009_v41  ;;  %v8030_v41 = vld [vmem:[#allocation2 + $0x70] sm:$0xff]  }
 0x182   : > { %4012 = vmatprep.mubr.bf16.mxu1 %v1485_v0  ;;  %4389 = vmatmul.mubr.bf16.gmra.mrb[12].mxu0 %v2225_v5  ;;  %v1512_v0 = vsel %vm1432_vm6, %v1502_v30, %v1511_v54  ;;  %v2231_v5 = vsel %vm2216_vm9, %v2228_v23, %v2230_v56  ;;  %v1529_v30 = vor.u32 %v1528_v21, %v1525_v20  ;;  %v2234_v23 = vrot.slane %v7990_v24, 3  ;;  %v7011_v21 = vld [vmem:[#allocation2 + $0x70] sm:$0xff]  }
 0x183   : > { %4398 = vmatprep.mubr.bf16.mxu0 %v2451_v7  ;;  %v2478_v7 = vsel %vm2398_vm7, %v2468_v36, %v2477_v51  ;;  %v1520_v11 = vor.u32 %v1519_v1, %v1516_v58  ;;  %v2498_v36 = vshrl.u32 %v6993_v28, 16  ;;  %v2507_v58 = vshrl.u32 %v7000_v45, 16  ;;  %v7003_v51 = vld [vmem:[#allocation2 + $0x68] sm:$0xff]  }
 0x184   : > { %v2235_v48 = vsel %vm2216_vm9, %v2232_v63, %v2234_v23  ;;  %4532 = vmatpush1.bf16.msra.mxu0 %v7007_v53  ;;  %v1550_v10 = vshrl.u32 %v7003_v51, 16  ;;  %v2238_v20 = vrot.slane %v8006_v4, 3  ;;  %v2525_v53 = vshrl.u32 %v7011_v21, 16  ;;  %v7022_v4 = vld [vmem:[#allocation2 + $0x80] ss:$0 sps:$4 sm:$0xff]  }
 0x185   : > { %v1530_v42 = vsel %vm1432_vm6, %v1520_v11, %v1529_v30  ;;  %4533 = vmatprep.subr.bf16.mxu0 %v7020_v14  ;;  %v7016_v14 = vld [vmem:[#allocation2 + $0x78] sm:$0xff]  }
 0x189   : > { %4013 = vmatmul.mubr.bf16.gmra.mrb[16].mxu1 %v1261_v17  ;;  %v1267_v17 = vsel %vm1250_vm8, %v1264_v39, %v1266_v62  ;;  %v1534_v39 = vrot.slane %v1532_v29, 1 }
 0x18a   : > { %4022 = vmatprep.mubr.bf16.mxu1 %v1494_v19  ;;  %4399 = vmatmul.mubr.bf16.gmra.mrb[16].mxu0 %v2227_v22  ;;  %v1521_v19 = vsel %vm1432_vm6, %v1511_v54, %v1520_v11  ;;  %v1268_v22 = vrot.slane %v7985_v15, 1  ;;  %v2500_v54 = vrot.slane %v2498_v36, 3  ;;  %v1553_v11 = vshll.u32 %v7003_v51, 16 }
 0x18b   : > { %4408 = vmatprep.mubr.bf16.mxu0 %v2460_v27  ;;  %v2491_v27 = vrot.slane %v2489_v16, 3  ;;  %v1538_v57 = vor.u32 %v1537_v43, %v1534_v39  ;;  %v8018_v16 = vld [vmem:[#allocation2 + $0x68] sm:$0xff]  }
 0x18c   : > { %v1269_v37 = vsel %vm1250_vm8, %v1266_v62, %v1268_v22  ;;  %v2504_v2 = vor.u32 %v2503_v55, %v2500_v54  ;;  %v8011_v62 = vld [vmem:[#allocation2 + $0x60] sm:$0xff]   ;;  %v1555_v29 = vrot.slane %v1553_v11, 2  ;;  %v2242_v32 = vrot.slane %v8018_v16, 3  ;;  %v7041_v16 = vld [vmem:[#allocation10 + $0x48] sm:$0xff]  }
 0x18d   : > { %v1539_v6 = vsel %vm1432_vm6, %v1529_v30, %v1538_v57  ;;  %v2240_v28 = vrot.slane %v8011_v62, 3  ;;  %v1276_v30 = vrot.slane %v8013_v12, 1  ;;  %v1278_v55 = vrot.slane %v8028_v40, 1 }
 0x18e   : > { %v2543_v11 = vshrl.u32 %v7022_v4, 16  ;;  %v7373_v40 = vmov 0  }
 0x191   : > { %4023 = vmatmul.mubr.bf16.gmra.mrb[20].mxu1 %v1263_v33  ;;  %v7995_v33 = vld [vmem:[#allocation2 + $0x50] sm:$0xff]  }
 0x192   : > { %4032 = vmatprep.mubr.bf16.mxu1 %v1503_v38  ;;  %4409 = vmatmul.mubr.bf16.gmra.mrb[20].mxu0 %v2229_v46  ;;  %v2495_v38 = vor.u32 %v2494_v44, %v2491_v27  ;;  %v1541_v46 = vshrl.u32 %v6999_v34, 16  ;;  %v2236_v56 = vrot.slane %v7995_v33, 3  ;;  %v1552_v44 = vrot.slane %v1550_v10, 1 }
 0x193   : > { %4418 = vmatprep.mubr.bf16.mxu0 %v2469_v50  ;;  %v1270_v50 = vrot.slane %v6990_v35, 1 }
 0x194   : > { %v2496_v52 = vsel %vm2398_vm7, %v2486_v60, %v2495_v38  ;;  %v1543_v59 = vrot.slane %v1541_v46, 1  ;;  %v2237_v13 = vsel %vm2216_vm9, %v2234_v23, %v2236_v56  ;;  %v7018_v60 = vld [vmem:[#allocation9 + $0x470] ss:$8 sps:$4 sm:$0xff]   ;;  %v2505_v18 = vsel %vm2398_vm7, %v2495_v38, %v2504_v2 }
 0x195   : > { %v1271_v1 = vsel %vm1250_vm8, %v1268_v22, %v1270_v50  ;;  %v7014_v22 = vld [vmem:[#allocation2 + $0x78] sm:$0xff]   ;;  %4534 = vmatpush1.bf16.msra.mxu0 %v7018_v60  ;;  %v2239_v45 = vsel %vm2216_vm9, %v2236_v56, %v2238_v20 }
 0x196   : > { %v1568_v38 = vshrl.u32 %v7014_v22, 16  ;;  %v1571_v39 = vshll.u32 %v7014_v22, 16  ;;  %v7017_v22 = vld [vmem:[#allocation2 + $0x78] sm:$0xff]  }
 0x197   : > { %v2246_v12 = vrot.slane %v7017_v22, 3 }
 0x198   : > { %v1570_v49 = vrot.slane %v1568_v38, 1 }
 0x199   : > { %4033 = vmatmul.mubr.bf16.gmra.mrb[24].mxu1 %v1265_v61  ;;  %v1546_v61 = vrot.slane %v1544_v47, 2  ;;  %v1556_v47 = vor.u32 %v1555_v29, %v1552_v44 }
 0x19a   : > { %4042 = vmatprep.mubr.bf16.mxu1 %v1512_v0  ;;  %4419 = vmatmul.mubr.bf16.gmra.mrb[24].mxu0 %v2231_v5  ;;  %v7004_v0 = vld [vmem:[#allocation2 + $0x68] sm:$0xff]   ;;  %v8008_v5 = vld [vmem:[#allocation2 + $0x60] sm:$0xff]  }
 0x19b   : > { %4428 = vmatprep.mubr.bf16.mxu0 %v2478_v7  ;;  %v2509_v7 = vrot.slane %v2507_v58, 3  ;;  %v1547_v8 = vor.u32 %v1546_v61, %v1543_v59  ;;  %v2516_v15 = vshrl.u32 %v7004_v0, 16  ;;  %v2519_v63 = vshll.u32 %v7004_v0, 16 }
 0x19c   : > { %v1274_v27 = vrot.slane %v8008_v5, 1  ;;  %v2527_v58 = vrot.slane %v2525_v53, 3  ;;  %v1573_v59 = vrot.slane %v1571_v39, 2  ;;  %v2241_v0 = vsel %vm2216_vm9, %v2238_v20, %v2240_v28 }
 0x19d   : > { %v1548_v24 = vsel %vm1432_vm6, %v1538_v57, %v1547_v8  ;;  %v2518_v34 = vrot.slane %v2516_v15, 3  ;;  %v2521_v23 = vrot.slane %v2519_v63, 4  ;;  %v2244_v57 = vrot.slane %v8030_v41, 3  ;;  %v7037_v15 = vld [vmem:[#allocation10 + $0x40] sm:$0xff]   ;;  %v7025_v41 = vld [vmem:[#allocation2 + $0x4] sm:$0xff]  }
 0x19e   : > { %v1557_v33 = vsel %vm1432_vm6, %v1547_v8, %v1556_v47  ;;  %v7038_v63 = vld [vmem:[#allocation10] sm:$0xff]   ;;  %6147 = vmatprep.subr.bf16.mxu1 %v7037_v15 }
 0x19f   : > { %v2522_v54 = vor.u32 %v2521_v23, %v2518_v34  ;;  %6148 = vmatpush3.bf16.msra.mxu1 %v7038_v63  ;;  %v2245_v62 = vsel %vm2216_vm9, %v2242_v32, %v2244_v57  ;;  %v7042_v23 = vld [vmem:[#allocation10 + $0x8] sm:$0xff]  }
 0x1a0   : > { %6149 = vmatprep.subr.bf16.mxu1 %v7041_v16 }
 0x1a1   : > { %4043 = vmatmul.mubr.bf16.gmra.mrb[28].mxu1 %v1267_v17  ;;  %v7010_v17 = vld [vmem:[#allocation2 + $0x70] sm:$0xff]  }
 0x1a2   : > { %4052 = vmatprep.mubr.bf16.mxu1 %v1521_v19  ;;  %4429 = vmatmul.mubr.bf16.gmra.mrb[28].mxu0 %v2233_v26  ;;  %v1273_v19 = vsel %vm1250_vm8, %v1270_v50, %v1272_v3  ;;  %v2513_v26 = vor.u32 %v2512_v9, %v2509_v7  ;;  %v1559_v35 = vshrl.u32 %v7010_v17, 16  ;;  %v1562_v36 = vshll.u32 %v7010_v17, 16 }
 0x1a3   : > { %4438 = vmatprep.mubr.bf16.mxu0 %v2487_v25  ;;  %v7015_v25 = vld [vmem:[#allocation2 + $0x78] sm:$0xff]   ;;  %v2243_v17 = vsel %vm2216_vm9, %v2240_v28, %v2242_v32  ;;  %v2247_v32 = vsel %vm2216_vm9, %v2244_v57, %v2246_v12  ;;  %6150 = vmatpush3.bf16.msra.mxu1 %v7042_v23 }
 0x1a4   : > { %v2537_v43 = vshll.u32 %v7015_v25, 16  ;;  %v2514_v46 = vsel %vm2398_vm7, %v2504_v2, %v2513_v26  ;;  %v1561_v50 = vrot.slane %v1559_v35, 1  ;;  %v1564_v31 = vrot.slane %v1562_v36, 2  ;;  %v7024_v35 = vld [vmem:[#allocation2 + $0x80] ss:$0 sps:$4 sm:$0x77]  }
 0x1a5   : > { %v7031_v57 = vld [vmem:[#allocation2 + $0x34] sm:$0xff]  }
 0x1a6   : > { %v2539_v51 = vrot.slane %v2537_v43, 4  ;;  %v1565_v5 = vor.u32 %v1564_v31, %v1561_v50  ;;  %v7046_v43 = vld [vmem:[#allocation10 + $0x10] sm:$0xff]   ;;  %v7029_v31 = vld [vmem:[#allocation2 + $0x24] sm:$0xff]  }
 0x1a7   : > { %v7028_v50 = vld [vmem:[#allocation2 + $0x1c] sm:$0xff]  }
 0x1a8   : > { %v1566_v8 = vsel %vm1432_vm6, %v1556_v47, %v1565_v5  ;;  %v7047_v47 = vld [vmem:[#allocation10 + $0x58] sm:$0xff]  }
 0x1a9   : > { %4053 = vmatmul.mubr.bf16.gmra.mrb[32].mxu1 %v1269_v37  ;;  %v2528_v37 = vshll.u32 %v7011_v21, 16 }
 0x1aa   : > { %4062 = vmatprep.mubr.bf16.mxu1 %v1530_v42  ;;  %4439 = vmatmul.mubr.bf16.gmra.mrb[32].mxu0 %v2235_v48  ;;  %v2534_v42 = vshrl.u32 %v7015_v25, 16  ;;  %v7021_v48 = vld [vmem:[#allocation2 + $0x80] ss:$0 sps:$4 sm:$0x33]  }
 0x1ab   : > { %4448 = vmatprep.mubr.bf16.mxu0 %v2496_v52  ;;  %v1275_v52 = vsel %vm1250_vm8, %v1272_v3, %v1274_v27  ;;  %v2530_v56 = vrot.slane %v2528_v37, 4  ;;  %v1580_v2 = vshll.u32 %v7021_v48, 16  ;;  %v2523_v3 = vsel %vm2398_vm7, %v2513_v26, %v2522_v54 }
 0x1ac   : > { %v2536_v61 = vrot.slane %v2534_v42, 3  ;;  %v1280_v26 = vrot.slane %v7016_v14, 1  ;;  %v2248_v37 = vrot.slane %v7024_v35, 3  ;;  %v7045_v42 = vld [vmem:[#allocation10 + $0x50] sm:$0xff]  }
 0x1ad   : > { %v2531_v7 = vor.u32 %v2530_v56, %v2527_v58  ;;  %v1582_v10 = vrot.slane %v1580_v2, 2  ;;  %6151 = vmatprep.subr.bf16.mxu1 %v7045_v42  ;;  %v7052_v58 = vld [vmem:[#allocation10 + $0x28] sm:$0xff]   ;;  %v7032_v56 = vld [vmem:[#allocation2 + $0x3c] sm:$0xff]   ;;  %v7056_v2 = vld [vmem:[#allocation10 + $0x38] sm:$0xff]  }
 0x1ae   : > { %v2540_v20 = vor.u32 %v2539_v51, %v2536_v61  ;;  %v1281_v44 = vsel %vm1250_vm8, %v1278_v55, %v1280_v26  ;;  %v2249_v39 = vsel %vm2216_vm9, %v2246_v12, %v2248_v37  ;;  %6152 = vmatpush3.bf16.msra.mxu1 %v7046_v43  ;;  %v7054_v61 = vld [vmem:[#allocation10 + $0x30] sm:$0xff]   ;;  %v7034_v51 = vld [vmem:[#allocation2 + $0x4c] sm:$0xff]  }
 0x1af   : > { %v2532_v60 = vsel %vm2398_vm7, %v2522_v54, %v2531_v7  ;;  %6153 = vmatprep.subr.bf16.mxu1 %v7047_v47  ;;  %v7050_v54 = vld [vmem:[#allocation10 + $0x20] sm:$0xff]  }
 0x1b1   : > { %4063 = vmatmul.mubr.bf16.gmra.mrb[36].mxu1 %v1271_v1  ;;  %v1577_v1 = vshrl.u32 %v7021_v48, 16  ;;  %v7048_v48 = vld [vmem:[#allocation10 + $0x18] sm:$0xff]  }
 0x1b2   : > { %4072 = vmatprep.mubr.bf16.mxu1 %v1539_v6  ;;  %4449 = vmatmul.mubr.bf16.gmra.mrb[36].mxu0 %v2237_v13  ;;  %v1277_v6 = vsel %vm1250_vm8, %v1274_v27, %v1276_v30  ;;  %v2546_v13 = vshll.u32 %v7022_v4, 16  ;;  %v2545_v27 = vrot.slane %v2543_v11, 3 }
 0x1b3   : > { %4458 = vmatprep.mubr.bf16.mxu0 %v2505_v18  ;;  %v1579_v9 = vrot.slane %v1577_v1, 1  ;;  %v1574_v18 = vor.u32 %v1573_v59, %v1570_v49  ;;  %6154 = vmatpush3.bf16.msra.mxu1 %v7048_v48  ;;  %v7033_v49 = vld [vmem:[#allocation2 + $0x44] sm:$0xff]   ;;  %v7053_v59 = vld [vmem:[#allocation10 + $0x70] sm:$0xff]  }
 0x1b4   : > { %v2548_v28 = vrot.slane %v2546_v13, 4  ;;  %v7055_v1 = vld [vmem:[#allocation10 + $0x78] sm:$0xff]  }
 0x1b5   : > { %v1575_v21 = vsel %vm1432_vm6, %v1565_v5, %v1574_v18  ;;  %v1583_v25 = vor.u32 %v1582_v10, %v1579_v9  ;;  %v7039_v13 = vld [vmem:[#allocation2 + $0x64] sm:$0xff]  }
 0x1b6   : > { %v2549_v29 = vor.u32 %v2548_v28, %v2545_v27  ;;  %v7044_v28 = vld [vmem:[#allocation2 + $0x7c] sm:$0xff]  }
 0x1b7   : > { %v1584_v34 = vsel %vm1432_vm6, %v1574_v18, %v1583_v25  ;;  %v7040_v18 = vld [vmem:[#allocation2 + $0x6c] sm:$0xff]  }
 0x1b8   : > { %v2550_v36 = vsel %vm2398_vm7, %v2540_v20, %v2549_v29 }
 0x1b9   : > { %4073 = vmatmul.mubr.bf16.gmra.mrb[40].mxu1 %v1273_v19  ;;  %v1279_v19 = vsel %vm1250_vm8, %v1276_v30, %v1278_v55  ;;  %v7023_v30 = vld [vmem:[#allocation2 + $0x80] ss:$0 sps:$4 sm:$0x11]   ;;  %v7030_v55 = vld [vmem:[#allocation2 + $0x2c] sm:$0xff]  }
 0x1ba   : > { %4082 = vmatprep.mubr.bf16.mxu1 %v1548_v24  ;;  %4459 = vmatmul.mubr.bf16.gmra.mrb[40].mxu0 %v2239_v45  ;;  %v2541_v24 = vsel %vm2398_vm7, %v2531_v7, %v2540_v20  ;;  %v1282_v53 = vrot.slane %v7023_v30, 1  ;;  %v7026_v45 = vld [vmem:[#allocation2 + $0xc] sm:$0xff]   ;;  %v7036_v7 = vld [vmem:[#allocation2 + $0x5c] sm:$0xff]  }
 0x1bb   : > { %4468 = vmatprep.mubr.bf16.mxu0 %v2514_v46  ;;  %v7027_v46 = vld [vmem:[#allocation2 + $0x14] sm:$0xff]  }
 0x1bc   : > { %v1283_v38 = vsel %vm1250_vm8, %v1280_v26, %v1282_v53 }
 0x1c1   : > { %4083 = vmatmul.mubr.bf16.gmra.mrb[44].mxu1 %v1275_v52  ;;  %v7049_v52 = vld [vmem:[#allocation10 + $0x60] sm:$0xff]  }
 0x1c2   : > { %4092 = vmatprep.mubr.bf16.mxu1 %v1557_v33  ;;  %4469 = vmatmul.mubr.bf16.gmra.mrb[44].mxu0 %v2241_v0  ;;  %v7051_v33 = vld [vmem:[#allocation10 + $0x68] sm:$0xff]  }
 0x1c3   : > { %4478 = vmatprep.mubr.bf16.mxu0 %v2523_v3  ;;  %6155 = vmatprep.subr.bf16.mxu1 %v7049_v52  ;;  %v7035_v0 = vld [vmem:[#allocation2 + $0x54] sm:$0xff]  }
 0x1c4   : > { %6156 = vmatpush3.bf16.msra.mxu1 %v7050_v54 }
 0x1c5   : > { %6157 = vmatprep.subr.bf16.mxu1 %v7051_v33 }
 0x1c8   : > { %6158 = vmatpush3.bf16.msra.mxu1 %v7052_v58 }
 0x1c9   : > { %4093 = vmatmul.mubr.bf16.gmra.mrb[48].mxu1 %v1277_v6  ;;  %6159 = vmatprep.subr.bf16.mxu1 %v7053_v59 }
 0x1ca   : > { %4102 = vmatprep.mubr.bf16.mxu1 %v1566_v8  ;;  %4479 = vmatmul.mubr.bf16.gmra.mrb[48].mxu0 %v2243_v17 }
 0x1cb   : > { %4488 = vmatprep.mubr.bf16.mxu0 %v2532_v60 }
 0x1cc   : > { %6160 = vmatpush3.bf16.msra.mxu1 %v7054_v61 }
 0x1cd   : > { %6161 = vmatprep.subr.bf16.mxu1 %v7055_v1 }
 0x1d0   : > { %6162 = vmatpush3.bf16.msra.mxu1 %v7056_v2  ;;  %v3017_v2 = vlaneseq }
 0x1d1   : > { %4103 = vmatmul.mubr.bf16.gmra.mrb[52].mxu1 %v1279_v19 }
 0x1d2   : > { %4112 = vmatprep.mubr.bf16.mxu1 %v1575_v21  ;;  %4489 = vmatmul.mubr.bf16.gmra.mrb[52].mxu0 %v2245_v62  ;;  %v7043_v62 = vld [vmem:[#allocation2 + $0x74] sm:$0xff]  }
 0x1d3   : > { %4498 = vmatprep.mubr.bf16.mxu0 %v2541_v24 }
 0x1d9   : > { %4113 = vmatmul.mubr.bf16.gmra.mrb[56].mxu1 %v1281_v44 }
 0x1da   : > { %4122 = vmatprep.mubr.bf16.mxu1 %v1584_v34  ;;  %4499 = vmatmul.mubr.bf16.gmra.mrb[56].mxu0 %v2247_v32 }
 0x1db   : > { %4508 = vmatprep.mubr.bf16.mxu0 %v2550_v36 }
 0x1e1   : > { %4123 = vmatmul.mubr.bf16.gmra.mrb[60].mxu1 %v1283_v38 }
 0x1e2   : > { %4509 = vmatmul.mubr.bf16.gmra.mrb[60].mxu0 %v2249_v39 }
 0x1e3   : > { %4551 = vmatprep.mubr.bf16.mxu0 %v7373_v40 }
 0x1ea   : > { %4552 = vmatmul.mubr.bf16.vlgmr.msra.gmra.mrb[0].mxu0 %v7025_v41 }
 0x1eb   : > { %4561 = vmatprep.mubr.bf16.mxu0 %v7373_v40 }
 0x1f2   : > { %4562 = vmatmul.mubr.bf16.gmra.mrb[4].mxu0 %v7026_v45 }
 0x1f3   : > { %4571 = vmatprep.mubr.bf16.mxu0 %v7373_v40 }
 0x1fa   : > { %4572 = vmatmul.mubr.bf16.gmra.mrb[8].mxu0 %v7027_v46 }
 0x1fb   : > { %4581 = vmatprep.mubr.bf16.mxu0 %v7373_v40 }
 0x202   : > { %4582 = vmatmul.mubr.bf16.gmra.mrb[12].mxu0 %v7028_v50 }
 0x203   : > { %4591 = vmatprep.mubr.bf16.mxu0 %v7373_v40 }
 0x20a   : > { %4592 = vmatmul.mubr.bf16.gmra.mrb[16].mxu0 %v7029_v31 }
 0x20b   : > { %4601 = vmatprep.mubr.bf16.mxu0 %v7373_v40 }
 0x212   : > { %4602 = vmatmul.mubr.bf16.gmra.mrb[20].mxu0 %v7030_v55 }
 0x213   : > { %4611 = vmatprep.mubr.bf16.mxu0 %v7373_v40 }
 0x21a   : > { %4612 = vmatmul.mubr.bf16.gmra.mrb[24].mxu0 %v7031_v57 }
 0x21b   : > { %4621 = vmatprep.mubr.bf16.mxu0 %v7373_v40 }
 0x222   : > { %4622 = vmatmul.mubr.bf16.gmra.mrb[28].mxu0 %v7032_v56 }
 0x223   : > { %4631 = vmatprep.mubr.bf16.mxu0 %v7373_v40 }
 0x22a   : > { %4632 = vmatmul.mubr.bf16.gmra.mrb[32].mxu0 %v7033_v49 }
 0x22b   : > { %4641 = vmatprep.mubr.bf16.mxu0 %v7373_v40 }
 0x232   : > { %4642 = vmatmul.mubr.bf16.gmra.mrb[36].mxu0 %v7034_v51 }
 0x233   : > { %4651 = vmatprep.mubr.bf16.mxu0 %v7373_v40 }
 0x23a   : > { %4652 = vmatmul.mubr.bf16.gmra.mrb[40].mxu0 %v7035_v0 }
 0x23b   : > { %4661 = vmatprep.mubr.bf16.mxu0 %v7373_v40 }
 0x23c   : > { %v8079_v3 = vpop.f32.mrb[0].mxu1 }
 0x23d   : > { %v8081_v4 = vpop.f32.mrb[1].mxu1 }
 0x23e   : > { %v8084_v5 = vpop.f32.mrb[2].mxu1 }
 0x23f   : > { %v8086_v6 = vpop.f32.mrb[3].mxu1 }
 0x242   : > { %4662 = vmatmul.mubr.bf16.gmra.mrb[44].mxu0 %v7036_v7 }
 0x243   : > { %4671 = vmatprep.mubr.bf16.mxu0 %v7373_v40 }
 0x244   : > { %v8088_v8 = vpop.f32.mrb[4].mxu1 }
 0x245   : > { %v8090_v9 = vpop.f32.mrb[5].mxu1 }
 0x246   : > { %v8093_v10 = vpop.f32.mrb[6].mxu1 }
 0x247   : > { %v8095_v11 = vpop.f32.mrb[7].mxu1 }
 0x24a   : > { %4672 = vmatmul.mubr.bf16.gmra.mrb[48].mxu0 %v7039_v13 }
 0x24b   : > { %4681 = vmatprep.mubr.bf16.mxu0 %v7373_v40 }
 0x24c   : > { %v8097_v15 = vpop.f32.mrb[8].mxu1 }
 0x24d   : > { %v8099_v63 = vpop.f32.mrb[9].mxu1 }
 0x24e   : > { %v8102_v17 = vpop.f32.mrb[10].mxu1 }
 0x24f   : > { %v8104_v60 = vpop.f32.mrb[11].mxu1 }
 0x252   : > { %4682 = vmatmul.mubr.bf16.gmra.mrb[52].mxu0 %v7040_v18  ;;  %v3018_v18 = vshrl.u32 %v3017_v2, 7 }
 0x253   : > { %4691 = vmatprep.mubr.bf16.mxu0 %v7373_v40 }
 0x254   : > { %v8106_v14 = vpop.f32.mrb[12].mxu1 }
 0x255   : > { %v8108_v19 = vpop.f32.mrb[13].mxu1 }
 0x256   : > { %v8111_v20 = vpop.f32.mrb[14].mxu1 }
 0x257   : > { %v8113_v21 = vpop.f32.mrb[15].mxu1 }
 0x25a   : > { %4692 = vmatmul.mubr.bf16.gmra.mrb[56].mxu0 %v7043_v62 }
 0x25b   : > { %4701 = vmatprep.mubr.bf16.mxu0 %v7373_v40 }
 0x25c   : > { %v8115_v22 = vpop.f32.mrb[16].mxu1 }
 0x25d   : > { %v8117_v24 = vpop.f32.mrb[17].mxu1 }
 0x25e   : > { %v8120_v26 = vpop.f32.mrb[18].mxu1 }
 0x25f   : > { %v8122_v27 = vpop.f32.mrb[19].mxu1 }
 0x262   : > { %4702 = vmatmul.mubr.bf16.gmra.mrb[60].mxu0 %v7044_v28 }
 0x264   : > { %v8124_v25 = vpop.f32.mrb[20].mxu1 }
 0x265   : > { %v8126_v12 = vpop.f32.mrb[21].mxu1 }
 0x266   : > { %v8128_v44 = vpop.f32.mrb[22].mxu1 }
 0x267   : > { %v8130_v29 = vpop.f32.mrb[23].mxu1 }
 0x26c   : > { %v8132_v30 = vpop.f32.mrb[24].mxu1 }
 0x26d   : > { %v8134_v34 = vpop.f32.mrb[25].mxu1 }
 0x26e   : > { %v8136_v16 = vpop.f32.mrb[26].mxu1 }
 0x26f   : > { %v8138_v23 = vpop.f32.mrb[27].mxu1 }
 0x274   : > { %v8140_v32 = vpop.f32.mrb[28].mxu1 }
 0x275   : > { %v8142_v35 = vpop.f32.mrb[29].mxu1 }
 0x276   : > { %v8144_v36 = vpop.f32.mrb[30].mxu1 }
 0x277   : > { %v8146_v53 = vpop.f32.mrb[31].mxu1 }
 0x27c   : > { %v8148_v37 = vpop.f32.mrb[32].mxu1 }
 0x27d   : > { %v8150_v38 = vpop.f32.mrb[33].mxu1 }
 0x27e   : > { %v8152_v39 = vpop.f32.mrb[34].mxu1 }
 0x27f   : > { %v8154_v40 = vpop.f32.mrb[35].mxu1 }
 0x284   : > { %v8156_v41 = vpop.f32.mrb[36].mxu1 }
 0x285   : > { %v8158_v42 = vpop.f32.mrb[37].mxu1 }
 0x286   : > { %v8160_v43 = vpop.f32.mrb[38].mxu1 }
 0x287   : > { %v8162_v45 = vpop.f32.mrb[39].mxu1 }
 0x28c   : > { %v8164_v46 = vpop.f32.mrb[40].mxu1 }
 0x28d   : > { %v8166_v47 = vpop.f32.mrb[41].mxu1 }
 0x28e   : > { %v8168_v48 = vpop.f32.mrb[42].mxu1 }
 0x28f   : > { %v8170_v50 = vpop.f32.mrb[43].mxu1 }
 0x294   : > { %v8172_v31 = vpop.f32.mrb[44].mxu1 }
 0x295   : > { %v8174_v52 = vpop.f32.mrb[45].mxu1 }
 0x296   : > { %v8176_v54 = vpop.f32.mrb[46].mxu1 }
 0x297   : > { %8918 = vst [vmem:[#allocation23_spill] sm:$0xff] %v8176_v54  ;;  %v8178_v55 = vpop.f32.mrb[47].mxu1 }
 0x298   : > { %8919 = vst [vmem:[#allocation24_spill] sm:$0xff] %v8178_v55 }
 0x29c   : > { %v8180_v57 = vpop.f32.mrb[48].mxu1 }
 0x29d   : > { %8920 = vst [vmem:[#allocation25_spill] sm:$0xff] %v8180_v57  ;;  %v8182_v33 = vpop.f32.mrb[49].mxu1 }
 0x29e   : > { %8921 = vst [vmem:[#allocation26_spill] sm:$0xff] %v8182_v33  ;;  %v8184_v58 = vpop.f32.mrb[50].mxu1 }
 0x29f   : > { %8922 = vst [vmem:[#allocation27_spill] sm:$0xff] %v8184_v58  ;;  %v8186_v56 = vpop.f32.mrb[51].mxu1 }
 0x2a0   : > { %8923 = vst [vmem:[#allocation28_spill] sm:$0xff] %v8186_v56 }
 0x2a4   : > { %v8188_v49 = vpop.f32.mrb[52].mxu1 }
 0x2a5   : > { %8924 = vst [vmem:[#allocation29_spill] sm:$0xff] %v8188_v49  ;;  %v8190_v59 = vpop.f32.mrb[53].mxu1  ;;  %v3019_v49 = vsub.s32 0, %v3018_v18 }
 0x2a6   : > { %8925 = vst [vmem:[#allocation30_spill] sm:$0xff] %v8190_v59  ;;  %v8192_v61 = vpop.f32.mrb[54].mxu1 }
 0x2a7   : > { %8926 = vst [vmem:[#allocation31_spill] sm:$0xff] %v8192_v61  ;;  %v8194_v51 = vpop.f32.mrb[55].mxu1 }
 0x2a8   : > { %8927 = vst [vmem:[#allocation32_spill] sm:$0xff] %v8194_v51  ;;  %v3015_v51 = vld [vmem:[%s8873_s3] sm:$0x3] }
 0x2ac   : > { %v8196_v0 = vpop.f32.mrb[56].mxu1 }
 0x2ad   : > { %8928 = vst [vmem:[#allocation33_spill] sm:$0xff] %v8196_v0  ;;  %v8198_v1 = vpop.f32.mrb[57].mxu1  ;;  %v3023_v0 = vsub.s32 1, %v3018_v18 }
 0x2ae   : > { %8929 = vst [vmem:[#allocation34_spill] sm:$0xff] %v8198_v1  ;;  %v8200_v7 = vpop.f32.mrb[58].mxu1  ;;  %v8215_v1 = vrot.slane %v3015_v51, %v3019_v49 }
 0x2af   : > { %8930 = vst [vmem:[#allocation35_spill] sm:$0xff] %v8200_v7  ;;  %v8202_v13 = vpop.f32.mrb[59].mxu1  ;;  %v8217_v7 = vrot.slane %v3015_v51, %v3023_v0 }
 0x2b0   : > { %8931 = vst [vmem:[#allocation36_spill] sm:$0xff] %v8202_v13  ;;  %v6259_v2 = vadd.f32 %v8079_v3, %v8215_v1 }
 0x2b1   : > { %v6265_v18 = vadd.f32 %v8086_v6, %v8217_v7  ;;  %v6271_v6 = vadd.f32 %v8093_v10, %v8215_v1 }
 0x2b4   : > { %v8204_v62 = vpop.f32.mrb[60].mxu1 }
 0x2b5   : > { %8932 = vst [vmem:[#allocation37_spill] sm:$0xff] %v8204_v62  ;;  %v8206_v28 = vpop.f32.mrb[61].mxu1 }
 0x2b6   : > { %8933 = vst [vmem:[#allocation38_spill] sm:$0xff] %v8206_v28  ;;  %v8208_v59 = vpop.f32.mrb[62].mxu1  ;;  %v6261_v28 = vadd.f32 %v8081_v4, %v8217_v7  ;;  %v6267_v4 = vadd.f32 %v8088_v8, %v8215_v1 }
 0x2b7   : > { %8934 = vst [vmem:[#allocation39_spill] sm:$0xff] %v8208_v59  ;;  %v8213_v61 = vpop.f32.mrb[63].mxu1  ;;  %v6263_v59 = vadd.f32 %v8084_v5, %v8215_v1  ;;  %v6269_v5 = vadd.f32 %v8090_v9, %v8217_v7 }
 0x2b8   : > { %8935 = vst [vmem:[#allocation40_spill] sm:$0xff] %v8213_v61 }
 0x2bd   : > { %v4553_v62 = vpop.f32.mrb[0].mxu0 }
 0x2be   : > { %v6260_v13 = vadd.f32 %v6259_v2, %v4553_v62  ;;  %v4555_v56 = vpop.f32.mrb[1].mxu0 }
 0x2bf   : > { %v6262_v61 = vadd.f32 %v6261_v28, %v4555_v56  ;;  %v4557_v49 = vpop.f32.mrb[2].mxu0 }
 0x2c0   : > { %v6264_v58 = vadd.f32 %v6263_v59, %v4557_v49  ;;  %v4559_v51 = vpop.f32.mrb[3].mxu0  ;;  %v4712_v33 = vmax.f32 %v6260_v13, 0.0  ;;  %v6273_v13 = vadd.f32 %v8095_v11, %v8217_v7  ;;  %v6275_v49 = vadd.f32 %v8097_v15, %v8215_v1 }
 0x2c1   : > { %v6266_v0 = vadd.f32 %v6265_v18, %v4559_v51  ;;  %v4713_v3 = vmax.f32 %v6262_v61, 0.0  ;;  %v6277_v51 = vadd.f32 %v8099_v63, %v8217_v7 }
 0x2c2   : > { %v4714_v57 = vmax.f32 %v6264_v58, 0.0 }
 0x2c3   : > { %v4715_v55 = vmax.f32 %v6266_v0, 0.0 }
 0x2c4   : > { %v4776_v54 = vpack.c.bf16 %v4714_v57, %v4712_v33 }
 0x2c5   : > { %v4777_v62 = vpack.c.bf16 %v4715_v55, %v4713_v3  ;;  %v4563_v2 = vpop.f32.mrb[4].mxu0  ;;  %v6279_v3 = vadd.f32 %v8102_v17, %v8215_v1 }
 0x2c6   : > { %v6268_v56 = vadd.f32 %v6267_v4, %v4563_v2  ;;  %v4565_v59 = vpop.f32.mrb[5].mxu0 }
 0x2c7   : > { %v6270_v58 = vadd.f32 %v6269_v5, %v4565_v59  ;;  %v4567_v61 = vpop.f32.mrb[6].mxu0  ;;  %4975 = vmatprep.mubr.bf16.mxu1 %v4777_v62 }
 0x2c8   : > { %v6272_v28 = vadd.f32 %v6271_v6, %v4567_v61  ;;  %v4569_v18 = vpop.f32.mrb[7].mxu0  ;;  %4976 = vmatmul.mubr.bf16.vlgmr.msra.gmra.mrb[64].mxu1 %v4776_v54  ;;  %v4716_v57 = vmax.f32 %v6268_v56, 0.0  ;;  %v6281_v54 = vadd.f32 %v8104_v60, %v8217_v7  ;;  %v6283_v61 = vadd.f32 %v8106_v14, %v8215_v1 }
 0x2c9   : > { %v6274_v8 = vadd.f32 %v6273_v13, %v4569_v18  ;;  %v4717_v9 = vmax.f32 %v6270_v58, 0.0 }
 0x2ca   : > { %v4718_v33 = vmax.f32 %v6272_v28, 0.0  ;;  %v6285_v28 = vadd.f32 %v8108_v19, %v8217_v7 }
 0x2cb   : > { %v4719_v55 = vmax.f32 %v6274_v8, 0.0  ;;  %v6287_v8 = vadd.f32 %v8111_v20, %v8215_v1 }
 0x2cc   : > { %v4778_v10 = vpack.c.bf16 %v4718_v33, %v4716_v57 }
 0x2cd   : > { %v4779_v0 = vpack.c.bf16 %v4719_v55, %v4717_v9  ;;  %v4573_v11 = vpop.f32.mrb[8].mxu0  ;;  %v6289_v9 = vadd.f32 %v8113_v21, %v8217_v7 }
 0x2ce   : > { %v6276_v4 = vadd.f32 %v6275_v49, %v4573_v11  ;;  %v4575_v5 = vpop.f32.mrb[9].mxu0 }
 0x2cf   : > { %v6278_v62 = vadd.f32 %v6277_v51, %v4575_v5  ;;  %v4577_v2 = vpop.f32.mrb[10].mxu0  ;;  %4983 = vmatprep.mubr.bf16.mxu1 %v4779_v0  ;;  %v6293_v5 = vadd.f32 %v8117_v24, %v8217_v7 }
 0x2d0   : > { %v6280_v6 = vadd.f32 %v6279_v3, %v4577_v2  ;;  %v4579_v56 = vpop.f32.mrb[11].mxu0  ;;  %4984 = vmatmul.mubr.bf16.gmra.mrb[68].mxu1 %v4778_v10  ;;  %v4720_v59 = vmax.f32 %v6276_v4, 0.0  ;;  %v6291_v4 = vadd.f32 %v8115_v22, %v8215_v1 }
 0x2d1   : > { %v6282_v15 = vadd.f32 %v6281_v54, %v4579_v56  ;;  %v4721_v63 = vmax.f32 %v6278_v62, 0.0  ;;  %v6295_v62 = vadd.f32 %v8120_v26, %v8215_v1  ;;  %v6297_v56 = vadd.f32 %v8122_v27, %v8217_v7 }
 0x2d2   : > { %v4722_v13 = vmax.f32 %v6280_v6, 0.0 }
 0x2d3   : > { %v4723_v58 = vmax.f32 %v6282_v15, 0.0 }
 0x2d4   : > { %v4780_v17 = vpack.c.bf16 %v4722_v13, %v4720_v59 }
 0x2d5   : > { %v4781_v18 = vpack.c.bf16 %v4723_v58, %v4721_v63  ;;  %v4583_v60 = vpop.f32.mrb[12].mxu0 }
 0x2d6   : > { %v6284_v57 = vadd.f32 %v6283_v61, %v4583_v60  ;;  %v4585_v33 = vpop.f32.mrb[13].mxu0 }
 0x2d7   : > { %v6286_v55 = vadd.f32 %v6285_v28, %v4585_v33  ;;  %v4587_v49 = vpop.f32.mrb[14].mxu0  ;;  %4991 = vmatprep.mubr.bf16.mxu1 %v4781_v18  ;;  %v6299_v28 = vadd.f32 %v8124_v25, %v8215_v1  ;;  %v6301_v18 = vadd.f32 %v8126_v12, %v8217_v7 }
 0x2d8   : > { %v6288_v10 = vadd.f32 %v6287_v8, %v4587_v49  ;;  %v4589_v51 = vpop.f32.mrb[15].mxu0  ;;  %4992 = vmatmul.mubr.bf16.gmra.mrb[72].mxu1 %v4780_v17  ;;  %v4724_v0 = vmax.f32 %v6284_v57, 0.0  ;;  %v6303_v8 = vadd.f32 %v8128_v44, %v8215_v1 }
 0x2d9   : > { %v6290_v14 = vadd.f32 %v6289_v9, %v4589_v51  ;;  %v4725_v19 = vmax.f32 %v6286_v55, 0.0  ;;  %v6305_v9 = vadd.f32 %v8130_v29, %v8217_v7 }
 0x2da   : > { %v4726_v11 = vmax.f32 %v6288_v10, 0.0 }
 0x2db   : > { %v4727_v3 = vmax.f32 %v6290_v14, 0.0 }
 0x2dc   : > { %v4782_v20 = vpack.c.bf16 %v4726_v11, %v4724_v0 }
 0x2dd   : > { %v4783_v54 = vpack.c.bf16 %v4727_v3, %v4725_v19  ;;  %v4593_v21 = vpop.f32.mrb[16].mxu0  ;;  %v6307_v19 = vadd.f32 %v8132_v30, %v8215_v1  ;;  %v6309_v3 = vadd.f32 %v8134_v34, %v8217_v7 }
 0x2de   : > { %v6292_v2 = vadd.f32 %v6291_v4, %v4593_v21  ;;  %v4595_v6 = vpop.f32.mrb[17].mxu0  ;;  %v6313_v21 = vadd.f32 %v8138_v23, %v8217_v7 }
 0x2df   : > { %v6294_v15 = vadd.f32 %v6293_v5, %v4595_v6  ;;  %v4597_v59 = vpop.f32.mrb[18].mxu0  ;;  %4999 = vmatprep.mubr.bf16.mxu1 %v4783_v54 }
 0x2e0   : > { %v6296_v13 = vadd.f32 %v6295_v62, %v4597_v59  ;;  %v4599_v63 = vpop.f32.mrb[19].mxu0  ;;  %5000 = vmatmul.mubr.bf16.gmra.mrb[76].mxu1 %v4782_v20  ;;  %v4728_v58 = vmax.f32 %v6292_v2, 0.0  ;;  %v6311_v20 = vadd.f32 %v8136_v16, %v8215_v1 }
 0x2e1   : > { %v6298_v22 = vadd.f32 %v6297_v56, %v4599_v63  ;;  %v4729_v24 = vmax.f32 %v6294_v15, 0.0  ;;  %v6315_v63 = vadd.f32 %v8140_v32, %v8215_v1 }
 0x2e2   : > { %v4730_v61 = vmax.f32 %v6296_v13, 0.0 }
 0x2e3   : > { %v4731_v17 = vmax.f32 %v6298_v22, 0.0  ;;  %v6317_v22 = vadd.f32 %v8142_v35, %v8217_v7 }
 0x2e4   : > { %v4784_v26 = vpack.c.bf16 %v4730_v61, %v4728_v58  ;;  %v6319_v61 = vadd.f32 %v8144_v36, %v8215_v1 }
 0x2e5   : > { %v4785_v60 = vpack.c.bf16 %v4731_v17, %v4729_v24  ;;  %v4603_v27 = vpop.f32.mrb[20].mxu0 }
 0x2e6   : > { %v6300_v57 = vadd.f32 %v6299_v28, %v4603_v27  ;;  %v4605_v33 = vpop.f32.mrb[21].mxu0  ;;  %v6321_v28 = vadd.f32 %v8146_v53, %v8217_v7 }
 0x2e7   : > { %v6302_v55 = vadd.f32 %v6301_v18, %v4605_v33  ;;  %v4607_v49 = vpop.f32.mrb[22].mxu0  ;;  %5007 = vmatprep.mubr.bf16.mxu1 %v4785_v60 }
 0x2e8   : > { %v6304_v10 = vadd.f32 %v6303_v8, %v4607_v49  ;;  %v4609_v51 = vpop.f32.mrb[23].mxu0  ;;  %5008 = vmatmul.mubr.bf16.gmra.mrb[80].mxu1 %v4784_v26  ;;  %v4732_v14 = vmax.f32 %v6300_v57, 0.0 }
 0x2e9   : > { %v6306_v25 = vadd.f32 %v6305_v9, %v4609_v51  ;;  %v4733_v12 = vmax.f32 %v6302_v55, 0.0  ;;  %v6323_v9 = vadd.f32 %v8148_v37, %v8215_v1  ;;  %v6325_v55 = vadd.f32 %v8150_v38, %v8217_v7 }
 0x2ea   : > { %v4734_v0 = vmax.f32 %v6304_v10, 0.0  ;;  %v6327_v10 = vadd.f32 %v8152_v39, %v8215_v1 }
 0x2eb   : > { %v4735_v11 = vmax.f32 %v6306_v25, 0.0 }
 0x2ec   : > { %v4786_v44 = vpack.c.bf16 %v4734_v0, %v4732_v14  ;;  %v6329_v14 = vadd.f32 %v8154_v40, %v8217_v7 }
 0x2ed   : > { %v4787_v4 = vpack.c.bf16 %v4735_v11, %v4733_v12  ;;  %v4613_v29 = vpop.f32.mrb[24].mxu0 }
 0x2ee   : > { %v6308_v5 = vadd.f32 %v6307_v19, %v4613_v29  ;;  %v4615_v54 = vpop.f32.mrb[25].mxu0  ;;  %v6331_v29 = vadd.f32 %v8156_v41, %v8215_v1 }
 0x2ef   : > { %v6310_v62 = vadd.f32 %v6309_v3, %v4615_v54  ;;  %v4617_v2 = vpop.f32.mrb[26].mxu0  ;;  %5015 = vmatprep.mubr.bf16.mxu1 %v4787_v4  ;;  %v6335_v54 = vadd.f32 %v8160_v43, %v8215_v1 }
 0x2f0   : > { %v6312_v6 = vadd.f32 %v6311_v20, %v4617_v2  ;;  %v4619_v56 = vpop.f32.mrb[27].mxu0  ;;  %5016 = vmatmul.mubr.bf16.gmra.mrb[84].mxu1 %v4786_v44  ;;  %v4736_v15 = vmax.f32 %v6308_v5, 0.0  ;;  %v6333_v20 = vadd.f32 %v8158_v42, %v8217_v7  ;;  %v6337_v2 = vadd.f32 %v8162_v45, %v8217_v7 }
 0x2f1   : > { %v6314_v30 = vadd.f32 %v6313_v21, %v4619_v56  ;;  %v4737_v34 = vmax.f32 %v6310_v62, 0.0 }
 0x2f2   : > { %v4738_v59 = vmax.f32 %v6312_v6, 0.0 }
 0x2f3   : > { %v4739_v13 = vmax.f32 %v6314_v30, 0.0 }
 0x2f4   : > { %v4788_v16 = vpack.c.bf16 %v4738_v59, %v4736_v15 }
 0x2f5   : > { %v4789_v58 = vpack.c.bf16 %v4739_v13, %v4737_v34  ;;  %v4623_v23 = vpop.f32.mrb[28].mxu0 }
 0x2f6   : > { %v6316_v24 = vadd.f32 %v6315_v63, %v4623_v23  ;;  %v4625_v17 = vpop.f32.mrb[29].mxu0  ;;  %v6339_v63 = vadd.f32 %v8164_v46, %v8215_v1 }
 0x2f7   : > { %v6318_v26 = vadd.f32 %v6317_v22, %v4625_v17  ;;  %v4627_v18 = vpop.f32.mrb[30].mxu0  ;;  %5023 = vmatprep.mubr.bf16.mxu1 %v4789_v58  ;;  %v6343_v58 = vadd.f32 %v8168_v48, %v8215_v1 }
 0x2f8   : > { %v6320_v60 = vadd.f32 %v6319_v61, %v4627_v18  ;;  %v4629_v27 = vpop.f32.mrb[31].mxu0  ;;  %5024 = vmatmul.mubr.bf16.gmra.mrb[88].mxu1 %v4788_v16  ;;  %v4740_v8 = vmax.f32 %v6316_v24, 0.0  ;;  %v6341_v16 = vadd.f32 %v8166_v47, %v8217_v7  ;;  %v6345_v24 = vadd.f32 %v8170_v50, %v8217_v7 }
 0x2f9   : > { %v6322_v32 = vadd.f32 %v6321_v28, %v4629_v27  ;;  %v4741_v35 = vmax.f32 %v6318_v26, 0.0 }
 0x2fa   : > { %v4742_v57 = vmax.f32 %v6320_v60, 0.0 }
 0x2fb   : > { %v4743_v33 = vmax.f32 %v6322_v32, 0.0 }
 0x2fc   : > { %v4790_v36 = vpack.c.bf16 %v4742_v57, %v4740_v8  ;;  %v6347_v8 = vadd.f32 %v8172_v31, %v8215_v1  ;;  %v6349_v57 = vadd.f32 %v8174_v52, %v8217_v7 }
 0x2fd   : > { %v4791_v49 = vpack.c.bf16 %v4743_v33, %v4741_v35  ;;  %v4633_v53 = vpop.f32.mrb[32].mxu0  ;;  %v8936_v33 = vld [vmem:[#allocation23_spill] sm:$0xff] }
 0x2fe   : > { %v6324_v51 = vadd.f32 %v6323_v9, %v4633_v53  ;;  %v4635_v25 = vpop.f32.mrb[33].mxu0  ;;  %v6351_v9 = vadd.f32 %v8936_v33, %v8215_v1  ;;  %v8947_v33 = vld [vmem:[#allocation34_spill] sm:$0xff] }
 0x2ff   : > { %v6326_v0 = vadd.f32 %v6325_v55, %v4635_v25  ;;  %v4637_v12 = vpop.f32.mrb[34].mxu0  ;;  %5031 = vmatprep.mubr.bf16.mxu1 %v4791_v49  ;;  %v8937_v49 = vld [vmem:[#allocation24_spill] sm:$0xff] }
 0x300   : > { %v6328_v11 = vadd.f32 %v6327_v10, %v4637_v12  ;;  %v4639_v19 = vpop.f32.mrb[35].mxu0  ;;  %5032 = vmatmul.mubr.bf16.gmra.mrb[92].mxu1 %v4790_v36  ;;  %v4744_v44 = vmax.f32 %v6324_v51, 0.0  ;;  %v6353_v53 = vadd.f32 %v8937_v49, %v8217_v7  ;;  %v8948_v49 = vld [vmem:[#allocation35_spill] sm:$0xff] }
 0x301   : > { %v6330_v37 = vadd.f32 %v6329_v14, %v4639_v19  ;;  %v4745_v38 = vmax.f32 %v6326_v0, 0.0  ;;  %v8938_v19 = vld [vmem:[#allocation25_spill] sm:$0xff] }
 0x302   : > { %v4746_v3 = vmax.f32 %v6328_v11, 0.0 }
 0x303   : > { %v4747_v4 = vmax.f32 %v6330_v37, 0.0  ;;  %v6355_v37 = vadd.f32 %v8938_v19, %v8215_v1 }
 0x304   : > { %v4792_v39 = vpack.c.bf16 %v4746_v3, %v4744_v44  ;;  %v8939_v3 = vld [vmem:[#allocation26_spill] sm:$0xff] }
 0x305   : > { %v4793_v5 = vpack.c.bf16 %v4747_v4, %v4745_v38  ;;  %v4643_v40 = vpop.f32.mrb[36].mxu0  ;;  %v6357_v38 = vadd.f32 %v8939_v3, %v8217_v7 }
 0x306   : > { %v6332_v21 = vadd.f32 %v6331_v29, %v4643_v40  ;;  %v4645_v62 = vpop.f32.mrb[37].mxu0 }
 0x307   : > { %v6334_v6 = vadd.f32 %v6333_v20, %v4645_v62  ;;  %v4647_v56 = vpop.f32.mrb[38].mxu0  ;;  %5039 = vmatprep.mubr.bf16.mxu1 %v4793_v5 }
 0x308   : > { %v6336_v30 = vadd.f32 %v6335_v54, %v4647_v56  ;;  %v4649_v15 = vpop.f32.mrb[39].mxu0  ;;  %5040 = vmatmul.mubr.bf16.gmra.mrb[96].mxu1 %v4792_v39  ;;  %v4748_v59 = vmax.f32 %v6332_v21, 0.0  ;;  %v8940_v39 = vld [vmem:[#allocation27_spill] sm:$0xff]  ;;  %v8941_v54 = vld [vmem:[#allocation28_spill] sm:$0xff] }
 0x309   : > { %v6338_v41 = vadd.f32 %v6337_v2, %v4649_v15  ;;  %v4749_v42 = vmax.f32 %v6334_v6, 0.0  ;;  %v6359_v20 = vadd.f32 %v8940_v39, %v8215_v1  ;;  %v6361_v21 = vadd.f32 %v8941_v54, %v8217_v7  ;;  %v8951_v39 = vld [vmem:[#allocation38_spill] sm:$0xff]  ;;  %v8952_v54 = vld [vmem:[#allocation39_spill] sm:$0xff] }
 0x30a   : > { %v4750_v34 = vmax.f32 %v6336_v30, 0.0 }
 0x30b   : > { %v4751_v13 = vmax.f32 %v6338_v41, 0.0 }
 0x30c   : > { %v4794_v43 = vpack.c.bf16 %v4750_v34, %v4748_v59 }
 0x30d   : > { %v4795_v22 = vpack.c.bf16 %v4751_v13, %v4749_v42  ;;  %v4653_v45 = vpop.f32.mrb[40].mxu0  ;;  %v8942_v42 = vld [vmem:[#allocation29_spill] sm:$0xff] }
 0x30e   : > { %v6340_v23 = vadd.f32 %v6339_v63, %v4653_v45  ;;  %v4655_v61 = vpop.f32.mrb[41].mxu0  ;;  %v6363_v13 = vadd.f32 %v8942_v42, %v8215_v1 }
 0x30f   : > { %v6342_v17 = vadd.f32 %v6341_v16, %v4655_v61  ;;  %v4657_v28 = vpop.f32.mrb[42].mxu0  ;;  %5047 = vmatprep.mubr.bf16.mxu1 %v4795_v22 }
 0x310   : > { %v6344_v26 = vadd.f32 %v6343_v58, %v4657_v28  ;;  %v4659_v18 = vpop.f32.mrb[43].mxu0  ;;  %5048 = vmatmul.mubr.bf16.gmra.mrb[100].mxu1 %v4794_v43  ;;  %v4752_v60 = vmax.f32 %v6340_v23, 0.0  ;;  %v8943_v43 = vld [vmem:[#allocation30_spill] sm:$0xff]  ;;  %v8944_v58 = vld [vmem:[#allocation31_spill] sm:$0xff] }
 0x311   : > { %v6346_v46 = vadd.f32 %v6345_v24, %v4659_v18  ;;  %v4753_v47 = vmax.f32 %v6342_v17, 0.0  ;;  %v6365_v16 = vadd.f32 %v8943_v43, %v8217_v7  ;;  %v6367_v23 = vadd.f32 %v8944_v58, %v8215_v1  ;;  %v8945_v17 = vld [vmem:[#allocation32_spill] sm:$0xff] }
 0x312   : > { %v4754_v27 = vmax.f32 %v6344_v26, 0.0  ;;  %v6369_v28 = vadd.f32 %v8945_v17, %v8217_v7 }
 0x313   : > { %v4755_v32 = vmax.f32 %v6346_v46, 0.0 }
 0x314   : > { %v4796_v48 = vpack.c.bf16 %v4754_v27, %v4752_v60 }
 0x315   : > { %v4797_v35 = vpack.c.bf16 %v4755_v32, %v4753_v47  ;;  %v4663_v50 = vpop.f32.mrb[44].mxu0 }
 0x316   : > { %v6348_v36 = vadd.f32 %v6347_v8, %v4663_v50  ;;  %v4665_v55 = vpop.f32.mrb[45].mxu0 }
 0x317   : > { %v6350_v10 = vadd.f32 %v6349_v57, %v4665_v55  ;;  %v4667_v51 = vpop.f32.mrb[46].mxu0  ;;  %5055 = vmatprep.mubr.bf16.mxu1 %v4797_v35  ;;  %v8946_v57 = vld [vmem:[#allocation33_spill] sm:$0xff] }
 0x318   : > { %v6352_v25 = vadd.f32 %v6351_v9, %v4667_v51  ;;  %v4669_v14 = vpop.f32.mrb[47].mxu0  ;;  %5056 = vmatmul.mubr.bf16.gmra.mrb[104].mxu1 %v4796_v48  ;;  %v4756_v0 = vmax.f32 %v6348_v36, 0.0  ;;  %v6371_v35 = vadd.f32 %v8946_v57, %v8215_v1  ;;  %v6373_v9 = vadd.f32 %v8947_v33, %v8217_v7  ;;  %v7123_v33 = vld [vmem:[%s7650_s16 + $0x10] sm:$0xff] }
 0x319   : > { %v6354_v31 = vadd.f32 %v6353_v53, %v4669_v14  ;;  %v4757_v52 = vmax.f32 %v6350_v10, 0.0  ;;  %v6375_v53 = vadd.f32 %v8948_v49, %v8215_v1 }
 0x31a   : > { %v4758_v12 = vmax.f32 %v6352_v25, 0.0  ;;  %v8949_v25 = vld [vmem:[#allocation36_spill] sm:$0xff] }
 0x31b   : > { %v4759_v11 = vmax.f32 %v6354_v31, 0.0  ;;  %v6377_v14 = vadd.f32 %v8949_v25, %v8217_v7 }
 0x31c   : > { %v4798_v44 = vpack.c.bf16 %v4758_v12, %v4756_v0 }
 0x31d   : > { %v4799_v4 = vpack.c.bf16 %v4759_v11, %v4757_v52  ;;  %v4673_v29 = vpop.f32.mrb[48].mxu0 }
 0x31e   : > { %v6356_v5 = vadd.f32 %v6355_v37, %v4673_v29  ;;  %v4675_v40 = vpop.f32.mrb[49].mxu0 }
 0x31f   : > { %v6358_v62 = vadd.f32 %v6357_v38, %v4675_v40  ;;  %v4677_v2 = vpop.f32.mrb[50].mxu0  ;;  %5063 = vmatprep.mubr.bf16.mxu1 %v4799_v4  ;;  %v8950_v38 = vld [vmem:[#allocation37_spill] sm:$0xff] }
 0x320   : > { %v6360_v6 = vadd.f32 %v6359_v20, %v4677_v2  ;;  %v4679_v56 = vpop.f32.mrb[51].mxu0  ;;  %5064 = vmatmul.mubr.bf16.gmra.mrb[108].mxu1 %v4798_v44  ;;  %v4760_v15 = vmax.f32 %v6356_v5, 0.0  ;;  %v6379_v4 = vadd.f32 %v8950_v38, %v8215_v1  ;;  %v6381_v20 = vadd.f32 %v8951_v39, %v8217_v7 }
 0x321   : > { %v6362_v30 = vadd.f32 %v6361_v21, %v4679_v56  ;;  %v4761_v59 = vmax.f32 %v6358_v62, 0.0  ;;  %v6383_v21 = vadd.f32 %v8952_v54, %v8215_v1 }
 0x322   : > { %v4762_v41 = vmax.f32 %v6360_v6, 0.0  ;;  %v8953_v6 = vld [vmem:[#allocation40_spill] sm:$0xff] }
 0x323   : > { %v4763_v34 = vmax.f32 %v6362_v30, 0.0  ;;  %v6385_v56 = vadd.f32 %v8953_v6, %v8217_v7  ;;  %v8350_v7 = vld [vmem:[%s8875_s5] ss:$0 sm:$0xff] }
 0x324   : > { %v4800_v63 = vpack.c.bf16 %v4762_v41, %v4760_v15 }
 0x325   : > { %v4801_v22 = vpack.c.bf16 %v4763_v34, %v4761_v59  ;;  %v4683_v45 = vpop.f32.mrb[52].mxu0 }
 0x326   : > { %v6364_v61 = vadd.f32 %v6363_v13, %v4683_v45  ;;  %v4685_v24 = vpop.f32.mrb[53].mxu0 }
 0x327   : > { %v6366_v26 = vadd.f32 %v6365_v16, %v4685_v24  ;;  %v4687_v18 = vpop.f32.mrb[54].mxu0  ;;  %5071 = vmatprep.mubr.bf16.mxu1 %v4801_v22 }
 0x328   : > { %v6368_v46 = vadd.f32 %v6367_v23, %v4687_v18  ;;  %v4689_v60 = vpop.f32.mrb[55].mxu0  ;;  %5072 = vmatmul.mubr.bf16.gmra.mrb[112].mxu1 %v4800_v63  ;;  %v4764_v47 = vmax.f32 %v6364_v61, 0.0 }
 0x329   : > { %v6370_v27 = vadd.f32 %v6369_v28, %v4689_v60  ;;  %v4765_v8 = vmax.f32 %v6366_v26, 0.0  ;;  %v7121_v26 = vld [vmem:[%s7650_s16] sm:$0xff] }
 0x32a   : > { %v4766_v32 = vmax.f32 %v6368_v46, 0.0 }
 0x32b   : > { %v4767_v48 = vmax.f32 %v6370_v27, 0.0 }
 0x32c   : > { %v4802_v50 = vpack.c.bf16 %v4766_v32, %v4764_v47  ;;  %v7122_v32 = vld [vmem:[%s7650_s16 + $0x8] sm:$0xff] }
 0x32d   : > { %v4803_v36 = vpack.c.bf16 %v4767_v48, %v4765_v8  ;;  %v4693_v55 = vpop.f32.mrb[56].mxu0 }
 0x32e   : > { %v6372_v10 = vadd.f32 %v6371_v35, %v4693_v55  ;;  %v4695_v51 = vpop.f32.mrb[57].mxu0 }
 0x32f   : > { %v6374_v31 = vadd.f32 %v6373_v9, %v4695_v51  ;;  %v4697_v0 = vpop.f32.mrb[58].mxu0  ;;  %5079 = vmatprep.mubr.bf16.mxu1 %v4803_v36 }
 0x330   : > { %v6376_v12 = vadd.f32 %v6375_v53, %v4697_v0  ;;  %v4699_v52 = vpop.f32.mrb[59].mxu0  ;;  %5080 = vmatmul.mubr.bf16.gmra.mrb[116].mxu1 %v4802_v50  ;;  %v4768_v19 = vmax.f32 %v6372_v10, 0.0  ;;  %v7124_v10 = vld [vmem:[%s7650_s16 + $0x18] sm:$0xff] }
 0x331   : > { %v6378_v11 = vadd.f32 %v6377_v14, %v4699_v52  ;;  %v4769_v44 = vmax.f32 %v6374_v31, 0.0 }
 0x332   : > { %v4770_v37 = vmax.f32 %v6376_v12, 0.0  ;;  %v7125_v12 = vld [vmem:[%s7650_s16 + $0x20] sm:$0xff] }
 0x333   : > { %v4771_v3 = vmax.f32 %v6378_v11, 0.0 }
 0x334   : > { %v4804_v29 = vpack.c.bf16 %v4770_v37, %v4768_v19  ;;  %v7126_v19 = vld [vmem:[%s7650_s16 + $0x28] sm:$0xff] }
 0x335   : > { %v4805_v5 = vpack.c.bf16 %v4771_v3, %v4769_v44  ;;  %v4703_v40 = vpop.f32.mrb[60].mxu0 }
 0x336   : > { %v6380_v62 = vadd.f32 %v6379_v4, %v4703_v40  ;;  %v4705_v2 = vpop.f32.mrb[61].mxu0 }
 0x337   : > { %v6382_v30 = vadd.f32 %v6381_v20, %v4705_v2  ;;  %v4707_v15 = vpop.f32.mrb[62].mxu0  ;;  %5087 = vmatprep.mubr.bf16.mxu1 %v4805_v5  ;;  %v7127_v5 = vld [vmem:[%s7650_s16 + $0x30] sm:$0xff] }
 0x338   : > { %v6384_v41 = vadd.f32 %v6383_v21, %v4707_v15  ;;  %v4709_v59 = vpop.f32.mrb[63].mxu0  ;;  %5088 = vmatmul.mubr.bf16.gmra.mrb[120].mxu1 %v4804_v29  ;;  %v4772_v42 = vmax.f32 %v6380_v62, 0.0  ;;  %v7128_v21 = vld [vmem:[%s7650_s16 + $0x38] sm:$0xff] }
 0x339   : > { %v6386_v34 = vadd.f32 %v6385_v56, %v4709_v59  ;;  %v4773_v63 = vmax.f32 %v6382_v30, 0.0 }
 0x33a   : > { %v4774_v13 = vmax.f32 %v6384_v41, 0.0 }
 0x33b   : > { %v4775_v43 = vmax.f32 %v6386_v34, 0.0  ;;  %v7129_v34 = vld [vmem:[%s7650_s16 + $0x40] sm:$0xff] }
 0x33c   : > { %v4806_v16 = vpack.c.bf16 %v4774_v13, %v4772_v42 }
 0x33d   : > { %v4807_v22 = vpack.c.bf16 %v4775_v43, %v4773_v63  ;;  %v7130_v63 = vld [vmem:[%s7650_s16 + $0x48] sm:$0xff] }
 0x33f   : > { %5095 = vmatprep.mubr.bf16.mxu1 %v4807_v22 }
 0x340   : > { %5096 = vmatmul.mubr.bf16.gmra.mrb[124].mxu1 %v4806_v16 }
 0x39b   : > { %v6163_v1 = vpop.f32.mrb[64].mxu1 }
 0x39c   : > { %v6164_v45 = vpop.f32.mrb[65].mxu1 }
 0x39d   : > { %v6165_v58 = vadd.f32 %v6164_v45, %v6163_v1  ;;  %v6166_v23 = vpop.f32.mrb[66].mxu1 }
 0x39e   : > { %v6167_v61 = vpop.f32.mrb[67].mxu1 }
 0x39f   : > { %v4978_v24 = vadd.f32 %v6165_v58, %v8350_v7  ;;  %v6168_v17 = vadd.f32 %v6167_v61, %v6166_v23 }
 0x3a1   : > { %v4981_v28 = vadd.f32 %v6168_v17, %v8350_v7  ;;  %v8355_v18 = vadd.f32 %v7121_v26, %v4978_v24  ;;  %v7131_v24 = vld [vmem:[%s7650_s16 + $0x50] sm:$0xff]  ;;  %v7132_v26 = vld [vmem:[%s7650_s16 + $0x58] sm:$0xff] }
 0x3a3   : > { %v6169_v46 = vpop.f32.mrb[68].mxu1  ;;  %5136 = vadd.xlane.f32.xlu0 %v8355_v18  ;;  %v8359_v8 = vadd.f32 %v7122_v32, %v4981_v28 }
 0x3a4   : > { %v6170_v60 = vpop.f32.mrb[69].mxu1 }
 0x3a5   : > { %v6171_v27 = vadd.f32 %v6170_v60, %v6169_v46  ;;  %v6172_v47 = vpop.f32.mrb[70].mxu1 }
 0x3a6   : > { %v6173_v48 = vpop.f32.mrb[71].mxu1 }
 0x3a7   : > { %v4986_v57 = vadd.f32 %v6171_v27, %v8350_v7  ;;  %v6174_v35 = vadd.f32 %v6173_v48, %v6172_v47  ;;  %5138 = vadd.xlane.f32.xlu0 %v8359_v8 }
 0x3a9   : > { %v4989_v50 = vadd.f32 %v6174_v35, %v8350_v7  ;;  %v8365_v9 = vadd.f32 %v7123_v33, %v4986_v57 }
 0x3ab   : > { %v6175_v36 = vpop.f32.mrb[72].mxu1  ;;  %5140 = vadd.xlane.f32.xlu1 %v8365_v9  ;;  %v8369_v51 = vadd.f32 %v7124_v10, %v4989_v50  ;;  %v7133_v50 = vld [vmem:[%s7650_s16 + $0x60] sm:$0xff] }
 0x3ac   : > { %v6176_v55 = vpop.f32.mrb[73].mxu1 }
 0x3ad   : > { %v6177_v49 = vadd.f32 %v6176_v55, %v6175_v36  ;;  %v6178_v53 = vpop.f32.mrb[74].mxu1  ;;  %v7134_v55 = vld [vmem:[%s7650_s16 + $0x68] sm:$0xff] }
 0x3ae   : > { %v6179_v25 = vpop.f32.mrb[75].mxu1 }
 0x3af   : > { %v4994_v14 = vadd.f32 %v6177_v49, %v8350_v7  ;;  %v6180_v31 = vadd.f32 %v6179_v25, %v6178_v53  ;;  %5142 = vadd.xlane.f32.xlu1 %v8369_v51 }
 0x3b1   : > { %v4997_v0 = vadd.f32 %v6180_v31, %v8350_v7  ;;  %v8375_v52 = vadd.f32 %v7125_v12, %v4994_v14 }
 0x3b3   : > { %v6181_v11 = vpop.f32.mrb[76].mxu1  ;;  %5144 = vadd.xlane.f32.xlu0 %v8375_v52  ;;  %v8379_v37 = vadd.f32 %v7126_v19, %v4997_v0 }
 0x3b4   : > { %v6182_v44 = vpop.f32.mrb[77].mxu1 }
 0x3b5   : > { %v6183_v3 = vadd.f32 %v6182_v44, %v6181_v11  ;;  %v6184_v38 = vpop.f32.mrb[78].mxu1  ;;  %5146 = vadd.xlane.f32.xlu1 %v8379_v37  ;;  %v7135_v11 = vld [vmem:[%s7650_s16 + $0x70] sm:$0xff] }
 0x3b6   : > { %v6185_v4 = vpop.f32.mrb[79].mxu1 }
 0x3b7   : > { %v5002_v29 = vadd.f32 %v6183_v3, %v8350_v7  ;;  %v6186_v39 = vadd.f32 %v6185_v4, %v6184_v38  ;;  %v7136_v3 = vld [vmem:[%s7650_s16 + $0x78] sm:$0xff] }
 0x3b9   : > { %v5005_v20 = vadd.f32 %v6186_v39, %v8350_v7  ;;  %v8385_v40 = vadd.f32 %v7127_v5, %v5002_v29 }
 0x3bb   : > { %v6187_v54 = vpop.f32.mrb[80].mxu1  ;;  %5148 = vadd.xlane.f32.xlu0 %v8385_v40  ;;  %v8389_v62 = vadd.f32 %v7128_v21, %v5005_v20 }
 0x3bc   : > { %v6188_v2 = vpop.f32.mrb[81].mxu1 }
 0x3bd   : > { %v6189_v6 = vadd.f32 %v6188_v2, %v6187_v54  ;;  %v6190_v56 = vpop.f32.mrb[82].mxu1  ;;  %5150 = vadd.xlane.f32.xlu1 %v8389_v62  ;;  %v7137_v2 = vld [vmem:[%s7650_s16 + $0x80] sm:$0xff] }
 0x3be   : > { %v6191_v30 = vpop.f32.mrb[83].mxu1 }
 0x3bf   : > { %v5010_v15 = vadd.f32 %v6189_v6, %v8350_v7  ;;  %v6192_v41 = vadd.f32 %v6191_v30, %v6190_v56  ;;  %v7138_v30 = vld [vmem:[%s7650_s16 + $0x88] sm:$0xff] }
 0x3c1   : > { %v5013_v59 = vadd.f32 %v6192_v41, %v8350_v7  ;;  %v8395_v42 = vadd.f32 %v7129_v34, %v5010_v15 }
 0x3c3   : > { %v6193_v13 = vpop.f32.mrb[84].mxu1  ;;  %5152 = vadd.xlane.f32.xlu0 %v8395_v42  ;;  %v8399_v43 = vadd.f32 %v7130_v63, %v5013_v59 }
 0x3c4   : > { %v6194_v16 = vpop.f32.mrb[85].mxu1 }
 0x3c5   : > { %v6195_v22 = vadd.f32 %v6194_v16, %v6193_v13  ;;  %v6196_v1 = vpop.f32.mrb[86].mxu1  ;;  %5154 = vadd.xlane.f32.xlu1 %v8399_v43 }
 0x3c6   : > { %v6197_v45 = vpop.f32.mrb[87].mxu1 }
 0x3c7   : > { %v5018_v58 = vadd.f32 %v6195_v22, %v8350_v7  ;;  %v6198_v23 = vadd.f32 %v6197_v45, %v6196_v1  ;;  %v7139_v1 = vld [vmem:[%s7650_s16 + $0x90] sm:$0xff] }
 0x3c9   : > { %v5021_v61 = vadd.f32 %v6198_v23, %v8350_v7  ;;  %v8405_v17 = vadd.f32 %v7131_v24, %v5018_v58  ;;  %v7140_v23 = vld [vmem:[%s7650_s16 + $0x98] sm:$0xff] }
 0x3cb   : > { %v6199_v28 = vpop.f32.mrb[88].mxu1  ;;  %5156 = vadd.xlane.f32.xlu0 %v8405_v17  ;;  %v8409_v46 = vadd.f32 %v7132_v26, %v5021_v61 }
 0x3cc   : > { %v6200_v60 = vpop.f32.mrb[89].mxu1 }
 0x3cd   : > { %v6201_v27 = vadd.f32 %v6200_v60, %v6199_v28  ;;  %v6202_v47 = vpop.f32.mrb[90].mxu1  ;;  %5158 = vadd.xlane.f32.xlu1 %v8409_v46 }
 0x3ce   : > { %v6203_v32 = vpop.f32.mrb[91].mxu1 }
 0x3cf   : > { %v5026_v48 = vadd.f32 %v6201_v27, %v8350_v7  ;;  %v6204_v57 = vadd.f32 %v6203_v32, %v6202_v47 }
 0x3d1   : > { %v5029_v35 = vadd.f32 %v6204_v57, %v8350_v7  ;;  %v8415_v33 = vadd.f32 %v7133_v50, %v5026_v48  ;;  %v7141_v48 = vld [vmem:[%s7650_s16 + $0xa0] sm:$0xff]  ;;  %v7142_v50 = vld [vmem:[%s7650_s16 + $0xa8] sm:$0xff] }
 0x3d3   : > { %v6205_v36 = vpop.f32.mrb[92].mxu1  ;;  %5160 = vadd.xlane.f32.xlu0 %v8415_v33  ;;  %v8419_v49 = vadd.f32 %v7134_v55, %v5029_v35 }
 0x3d4   : > { %v6206_v53 = vpop.f32.mrb[93].mxu1 }
 0x3d5   : > { %v6207_v10 = vadd.f32 %v6206_v53, %v6205_v36  ;;  %v6208_v25 = vpop.f32.mrb[94].mxu1  ;;  %5162 = vadd.xlane.f32.xlu1 %v8419_v49 }
 0x3d6   : > { %v6209_v14 = vpop.f32.mrb[95].mxu1 }
 0x3d7   : > { %v5034_v31 = vadd.f32 %v6207_v10, %v8350_v7  ;;  %v6210_v0 = vadd.f32 %v6209_v14, %v6208_v25 }
 0x3d9   : > { %v5037_v12 = vadd.f32 %v6210_v0, %v8350_v7  ;;  %v8425_v19 = vadd.f32 %v7135_v11, %v5034_v31 }
 0x3db   : > { %v6211_v44 = vpop.f32.mrb[96].mxu1  ;;  %5164 = vadd.xlane.f32.xlu0 %v8425_v19  ;;  %v8429_v38 = vadd.f32 %v7136_v3, %v5037_v12  ;;  %v7143_v12 = vld [vmem:[%s7650_s16 + $0xb0] sm:$0xff]  ;;  %v7144_v3 = vld [vmem:[%s7650_s16 + $0xb8] sm:$0xff] }
 0x3dc   : > { %v6212_v4 = vpop.f32.mrb[97].mxu1 }
 0x3dd   : > { %v6213_v29 = vadd.f32 %v6212_v4, %v6211_v44  ;;  %v6214_v39 = vpop.f32.mrb[98].mxu1  ;;  %5166 = vadd.xlane.f32.xlu1 %v8429_v38 }
 0x3de   : > { %v6215_v20 = vpop.f32.mrb[99].mxu1 }
 0x3df   : > { %v5042_v5 = vadd.f32 %v6213_v29, %v8350_v7  ;;  %v6216_v54 = vadd.f32 %v6215_v20, %v6214_v39 }
 0x3e1   : > { %v5045_v21 = vadd.f32 %v6216_v54, %v8350_v7  ;;  %v8435_v6 = vadd.f32 %v7137_v2, %v5042_v5 }
 0x3e3   : > { %v6217_v56 = vpop.f32.mrb[100].mxu1  ;;  %5168 = vadd.xlane.f32.xlu0 %v8435_v6  ;;  %v8439_v15 = vadd.f32 %v7138_v30, %v5045_v21 }
 0x3e4   : > { %v6218_v41 = vpop.f32.mrb[101].mxu1 }
 0x3e5   : > { %v6219_v59 = vadd.f32 %v6218_v41, %v6217_v56  ;;  %v6220_v34 = vpop.f32.mrb[102].mxu1  ;;  %5170 = vadd.xlane.f32.xlu1 %v8439_v15  ;;  %v7145_v56 = vld [vmem:[%s7650_s16 + $0xc0] sm:$0xff] }
 0x3e6   : > { %v6221_v13 = vpop.f32.mrb[103].mxu1 }
 0x3e7   : > { %v5050_v63 = vadd.f32 %v6219_v59, %v8350_v7  ;;  %v6222_v16 = vadd.f32 %v6221_v13, %v6220_v34  ;;  %v7146_v59 = vld [vmem:[%s7650_s16 + $0xc8] sm:$0xff] }
 0x3e9   : > { %v5053_v22 = vadd.f32 %v6222_v16, %v8350_v7  ;;  %v8445_v45 = vadd.f32 %v7139_v1, %v5050_v63 }
 0x3eb   : > { %v6223_v58 = vpop.f32.mrb[104].mxu1  ;;  %5172 = vadd.xlane.f32.xlu0 %v8445_v45  ;;  %v8449_v61 = vadd.f32 %v7140_v23, %v5053_v22 }
 0x3ec   : > { %v6224_v24 = vpop.f32.mrb[105].mxu1 }
 0x3ed   : > { %v6225_v28 = vadd.f32 %v6224_v24, %v6223_v58  ;;  %v6226_v26 = vpop.f32.mrb[106].mxu1  ;;  %5174 = vadd.xlane.f32.xlu1 %v8449_v61  ;;  %v7147_v24 = vld [vmem:[%s7650_s16 + $0xd0] sm:$0xff] }
 0x3ee   : > { %v6227_v60 = vpop.f32.mrb[107].mxu1 }
 0x3ef   : > { %v5058_v27 = vadd.f32 %v6225_v28, %v8350_v7  ;;  %v6228_v47 = vadd.f32 %v6227_v60, %v6226_v26  ;;  %v7148_v60 = vld [vmem:[%s7650_s16 + $0xd8] sm:$0xff] }
 0x3f1   : > { %v5061_v32 = vadd.f32 %v6228_v47, %v8350_v7  ;;  %v8455_v57 = vadd.f32 %v7141_v48, %v5058_v27 }
 0x3f3   : > { %v6229_v35 = vpop.f32.mrb[108].mxu1  ;;  %5176 = vadd.xlane.f32.xlu0 %v8455_v57  ;;  %v8459_v36 = vadd.f32 %v7142_v50, %v5061_v32 }
 0x3f4   : > { %v6230_v55 = vpop.f32.mrb[109].mxu1 }
 0x3f5   : > { %v6231_v53 = vadd.f32 %v6230_v55, %v6229_v35  ;;  %v6232_v10 = vpop.f32.mrb[110].mxu1  ;;  %5178 = vadd.xlane.f32.xlu1 %v8459_v36 }
 0x3f6   : > { %v6233_v25 = vpop.f32.mrb[111].mxu1 }
 0x3f7   : > { %v5066_v14 = vadd.f32 %v6231_v53, %v8350_v7  ;;  %v6234_v31 = vadd.f32 %v6233_v25, %v6232_v10  ;;  %v7149_v10 = vld [vmem:[%s7650_s16 + $0xe0] sm:$0xff] }
 0x3f9   : > { %v5069_v0 = vadd.f32 %v6234_v31, %v8350_v7  ;;  %v8465_v11 = vadd.f32 %v7143_v12, %v5066_v14  ;;  %v7150_v31 = vld [vmem:[%s7650_s16 + $0xe8] sm:$0xff] }
 0x3fb   : > { %v6235_v44 = vpop.f32.mrb[112].mxu1  ;;  %5180 = vadd.xlane.f32.xlu0 %v8465_v11  ;;  %v8469_v4 = vadd.f32 %v7144_v3, %v5069_v0 }
 0x3fc   : > { %v6236_v29 = vpop.f32.mrb[113].mxu1 }
 0x3fd   : > { %v6237_v39 = vadd.f32 %v6236_v29, %v6235_v44  ;;  %v6238_v20 = vpop.f32.mrb[114].mxu1  ;;  %5182 = vadd.xlane.f32.xlu1 %v8469_v4 }
 0x3fe   : > { %v6239_v5 = vpop.f32.mrb[115].mxu1 }
 0x3ff   : > { %v5074_v54 = vadd.f32 %v6237_v39, %v8350_v7  ;;  %v6240_v21 = vadd.f32 %v6239_v5, %v6238_v20 }
 0x401   : > { %v5077_v2 = vadd.f32 %v6240_v21, %v8350_v7  ;;  %v8475_v30 = vadd.f32 %v7145_v56, %v5074_v54  ;;  %v7151_v54 = vld [vmem:[%s7650_s16 + $0xf0] sm:$0xff] }
 0x403   : > { %v6241_v41 = vpop.f32.mrb[116].mxu1  ;;  %5184 = vadd.xlane.f32.xlu0 %v8475_v30  ;;  %v8479_v34 = vadd.f32 %v7146_v59, %v5077_v2  ;;  %v7152_v2 = vld [vmem:[%s7650_s16 + $0xf8] sm:$0xff]  ;;  %s7269_s16 = scalar_lea.vmem %s8818_s14, 4096 }
 0x404   : > { %v6242_v13 = vpop.f32.mrb[117].mxu1  ;;  %p7270_p2 = scmp.ne.s32.totalorder %s8818_s14, %s7269_s16  ;;  %p7277_p9 = scmp.lt.s32.totalorder %s7275_s21, %s7269_s16 }
 0x405   : > { %v6243_v63 = vadd.f32 %v6242_v13, %v6241_v41  ;;  %v6244_v16 = vpop.f32.mrb[118].mxu1  ;;  %5186 = vadd.xlane.f32.xlu1 %v8479_v34 }
 0x406   : > { %v6245_v22 = vpop.f32.mrb[119].mxu1  ;;  %p7271_p10 = pnand %p7270_p2, %p8954_p6  ;;  %p7278_p5 = por %p7277_p9, %p7276_p4 }
 0x407   : > { %v5082_v1 = vadd.f32 %v6243_v63, %v8350_v7  ;;  %v6246_v58 = vadd.f32 %v6245_v22, %v6244_v16 }
 0x408   : > { %p7272_p3 = pneg %p7271_p10 }
 0x409   : > { %v5085_v23 = vadd.f32 %v6246_v58, %v8350_v7  ;;  %v8485_v28 = vadd.f32 %v7147_v24, %v5082_v1 }
 0x40a   : > { %p7279_p7 = pnand %p7278_p5, %p7272_p3 }
 0x40b   : > { %v6247_v26 = vpop.f32.mrb[120].mxu1  ;;  %5188 = vadd.xlane.f32.xlu0 %v8485_v28  ;;  %v8489_v27 = vadd.f32 %v7148_v60, %v5085_v23 }
 0x40c   : > { %v6248_v47 = vpop.f32.mrb[121].mxu1 }
 0x40d   : > { %v6249_v32 = vadd.f32 %v6248_v47, %v6247_v26  ;;  %v6250_v48 = vpop.f32.mrb[122].mxu1  ;;  %5190 = vadd.xlane.f32.xlu1 %v8489_v27 }
 0x40e   : > { %v6251_v35 = vpop.f32.mrb[123].mxu1 }
 0x40f   : > { %v5090_v50 = vadd.f32 %v6249_v32, %v8350_v7  ;;  %v6252_v55 = vadd.f32 %v6251_v35, %v6250_v48 }
 0x411   : > { %v5093_v53 = vadd.f32 %v6252_v55, %v8350_v7  ;;  %v8495_v25 = vadd.f32 %v7149_v10, %v5090_v50 }
 0x413   : > { %5192 = vadd.xlane.f32.xlu0 %v8495_v25  ;;  %v6253_v14 = vpop.f32.mrb[124].mxu1  ;;  %v8499_v0 = vadd.f32 %v7150_v31, %v5093_v53 }
 0x414   : > { %v6254_v12 = vpop.f32.mrb[125].mxu1 }
 0x415   : > { %v6255_v44 = vadd.f32 %v6254_v12, %v6253_v14  ;;  %5194 = vadd.xlane.f32.xlu1 %v8499_v0  ;;  %v6256_v3 = vpop.f32.mrb[126].mxu1 }
 0x416   : > { %v6257_v29 = vpop.f32.mrb[127].mxu1 }
 0x417   : > { %v5098_v39 = vadd.f32 %v6255_v44, %v8350_v7  ;;  %v6258_v20 = vadd.f32 %v6257_v29, %v6256_v3 }
 0x419   : > { %v5101_v5 = vadd.f32 %v6258_v20, %v8350_v7  ;;  %v8505_v21 = vadd.f32 %v7151_v54, %v5098_v39 }
 0x41b   : > { %5196 = vadd.xlane.f32.xlu0 %v8505_v21  ;;  %v8509_v56 = vadd.f32 %v7152_v2, %v5101_v5 }
 0x41d   : > { %5198 = vadd.xlane.f32.xlu1 %v8509_v56 }
 0x430   : > { %v5137_v41 = vpop.xlane.xlu0 %5136 }
 0x431   : > { %v5201_v59 = vmul.f32 0.0078125, %v5137_v41 }
 0x433   : > { %v8513_v13 = vsub.f32 %v8355_v18, %v5201_v59 }
 0x434   : > { %v5139_v63 = vpop.xlane.xlu0 %5138 }
 0x435   : > { %v5202_v16 = vmul.f32 0.0078125, %v5139_v63  ;;  %v5265_v7 = vmul.f32 %v8513_v13, %v8513_v13 }
 0x437   : > { %v8518_v22 = vsub.f32 %v8359_v8, %v5202_v16  ;;  %5297 = vadd.xlane.f32.xlu0 %v5265_v7 }
 0x438   : > { %v5141_v1 = vpop.xlane.xlu1 %5140 }
 0x439   : > { %v5203_v58 = vmul.f32 0.0078125, %v5141_v1  ;;  %v5266_v23 = vmul.f32 %v8518_v22, %v8518_v22 }
 0x43b   : > { %v8523_v24 = vsub.f32 %v8365_v9, %v5203_v58  ;;  %5299 = vadd.xlane.f32.xlu1 %v5266_v23 }
 0x43c   : > { %v5143_v18 = vpop.xlane.xlu1 %5142 }
 0x43d   : > { %v5204_v26 = vmul.f32 0.0078125, %v5143_v18  ;;  %v5267_v60 = vmul.f32 %v8523_v24, %v8523_v24 }
 0x43f   : > { %v8528_v47 = vsub.f32 %v8369_v51, %v5204_v26  ;;  %5301 = vadd.xlane.f32.xlu0 %v5267_v60 }
 0x440   : > { %v5145_v8 = vpop.xlane.xlu0 %5144 }
 0x441   : > { %v5205_v32 = vmul.f32 0.0078125, %v5145_v8  ;;  %v5268_v48 = vmul.f32 %v8528_v47, %v8528_v47 }
 0x442   : > { %v5147_v35 = vpop.xlane.xlu1 %5146 }
 0x443   : > { %v8533_v50 = vsub.f32 %v8375_v52, %v5205_v32  ;;  %v5206_v9 = vmul.f32 0.0078125, %v5147_v35  ;;  %5303 = vadd.xlane.f32.xlu1 %v5268_v48 }
 0x445   : > { %v8536_v55 = vsub.f32 %v8379_v37, %v5206_v9  ;;  %v5269_v53 = vmul.f32 %v8533_v50, %v8533_v50 }
 0x447   : > { %5305 = vadd.xlane.f32.xlu0 %v5269_v53  ;;  %v5270_v51 = vmul.f32 %v8536_v55, %v8536_v55 }
 0x448   : > { %v5149_v10 = vpop.xlane.xlu0 %5148 }
 0x449   : > { %v5207_v14 = vmul.f32 0.0078125, %v5149_v10  ;;  %5307 = vadd.xlane.f32.xlu1 %v5270_v51 }
 0x44a   : > { %v5151_v31 = vpop.xlane.xlu1 %5150 }
 0x44b   : > { %v8543_v12 = vsub.f32 %v8385_v40, %v5207_v14  ;;  %v5208_v52 = vmul.f32 0.0078125, %v5151_v31 }
 0x44d   : > { %v8546_v44 = vsub.f32 %v8389_v62, %v5208_v52  ;;  %v5271_v37 = vmul.f32 %v8543_v12, %v8543_v12 }
 0x44f   : > { %5309 = vadd.xlane.f32.xlu0 %v5271_v37  ;;  %v5272_v3 = vmul.f32 %v8546_v44, %v8546_v44 }
 0x450   : > { %v5153_v29 = vpop.xlane.xlu0 %5152 }
 0x451   : > { %v5209_v39 = vmul.f32 0.0078125, %v5153_v29  ;;  %5311 = vadd.xlane.f32.xlu1 %v5272_v3 }
 0x452   : > { %v5155_v20 = vpop.xlane.xlu1 %5154 }
 0x453   : > { %v8553_v5 = vsub.f32 %v8395_v42, %v5209_v39  ;;  %v5210_v40 = vmul.f32 0.0078125, %v5155_v20 }
 0x455   : > { %v8556_v54 = vsub.f32 %v8399_v43, %v5210_v40  ;;  %v5273_v62 = vmul.f32 %v8553_v5, %v8553_v5 }
 0x457   : > { %5313 = vadd.xlane.f32.xlu0 %v5273_v62  ;;  %v5274_v2 = vmul.f32 %v8556_v54, %v8556_v54 }
 0x458   : > { %v5157_v41 = vpop.xlane.xlu0 %5156 }
 0x459   : > { %v5211_v59 = vmul.f32 0.0078125, %v5157_v41  ;;  %5315 = vadd.xlane.f32.xlu1 %v5274_v2 }
 0x45a   : > { %v5159_v63 = vpop.xlane.xlu1 %5158 }
 0x45b   : > { %v8563_v16 = vsub.f32 %v8405_v17, %v5211_v59  ;;  %v5212_v42 = vmul.f32 0.0078125, %v5159_v63 }
 0x45d   : > { %v8566_v7 = vsub.f32 %v8409_v46, %v5212_v42  ;;  %v5275_v43 = vmul.f32 %v8563_v16, %v8563_v16 }
 0x45f   : > { %5317 = vadd.xlane.f32.xlu0 %v5275_v43  ;;  %v5276_v1 = vmul.f32 %v8566_v7, %v8566_v7 }
 0x460   : > { %v5161_v58 = vpop.xlane.xlu0 %5160 }
 0x461   : > { %v5213_v23 = vmul.f32 0.0078125, %v5161_v58  ;;  %5319 = vadd.xlane.f32.xlu1 %v5276_v1 }
 0x462   : > { %v5163_v18 = vpop.xlane.xlu1 %5162 }
 0x463   : > { %v8573_v26 = vsub.f32 %v8415_v33, %v5213_v23  ;;  %v5214_v17 = vmul.f32 0.0078125, %v5163_v18 }
 0x465   : > { %v8576_v60 = vsub.f32 %v8419_v49, %v5214_v17  ;;  %v5277_v46 = vmul.f32 %v8573_v26, %v8573_v26 }
 0x467   : > { %5321 = vadd.xlane.f32.xlu0 %v5277_v46  ;;  %v5278_v8 = vmul.f32 %v8576_v60, %v8576_v60 }
 0x468   : > { %v5165_v32 = vpop.xlane.xlu0 %5164 }
 0x469   : > { %v5215_v48 = vmul.f32 0.0078125, %v5165_v32  ;;  %5323 = vadd.xlane.f32.xlu1 %v5278_v8 }
 0x46a   : > { %v5167_v35 = vpop.xlane.xlu1 %5166 }
 0x46b   : > { %v8583_v9 = vsub.f32 %v8425_v19, %v5215_v48  ;;  %v5216_v33 = vmul.f32 0.0078125, %v5167_v35 }
 0x46d   : > { %v8586_v53 = vsub.f32 %v8429_v38, %v5216_v33  ;;  %v5279_v49 = vmul.f32 %v8583_v9, %v8583_v9 }
 0x46f   : > { %5325 = vadd.xlane.f32.xlu0 %v5279_v49  ;;  %v5280_v51 = vmul.f32 %v8586_v53, %v8586_v53 }
 0x470   : > { %v5169_v10 = vpop.xlane.xlu0 %5168 }
 0x471   : > { %v5217_v14 = vmul.f32 0.0078125, %v5169_v10  ;;  %5327 = vadd.xlane.f32.xlu1 %v5280_v51 }
 0x472   : > { %v5171_v31 = vpop.xlane.xlu1 %5170 }
 0x473   : > { %v8593_v52 = vsub.f32 %v8435_v6, %v5217_v14  ;;  %v5218_v19 = vmul.f32 0.0078125, %v5171_v31 }
 0x475   : > { %v8596_v37 = vsub.f32 %v8439_v15, %v5218_v19  ;;  %v5281_v38 = vmul.f32 %v8593_v52, %v8593_v52 }
 0x477   : > { %5329 = vadd.xlane.f32.xlu0 %v5281_v38  ;;  %v5282_v3 = vmul.f32 %v8596_v37, %v8596_v37 }
 0x478   : > { %v5173_v29 = vpop.xlane.xlu0 %5172 }
 0x479   : > { %v5219_v39 = vmul.f32 0.0078125, %v5173_v29  ;;  %5331 = vadd.xlane.f32.xlu1 %v5282_v3 }
 0x47a   : > { %v5175_v20 = vpop.xlane.xlu1 %5174 }
 0x47b   : > { %v8603_v40 = vsub.f32 %v8445_v45, %v5219_v39  ;;  %v5220_v6 = vmul.f32 0.0078125, %v5175_v20 }
 0x47d   : > { %v8606_v62 = vsub.f32 %v8449_v61, %v5220_v6  ;;  %v5283_v15 = vmul.f32 %v8603_v40, %v8603_v40 }
 0x47f   : > { %5333 = vadd.xlane.f32.xlu0 %v5283_v15  ;;  %v5284_v2 = vmul.f32 %v8606_v62, %v8606_v62 }
 0x480   : > { %v5177_v41 = vpop.xlane.xlu0 %5176 }
 0x481   : > { %v5221_v59 = vmul.f32 0.0078125, %v5177_v41  ;;  %5335 = vadd.xlane.f32.xlu1 %v5284_v2 }
 0x482   : > { %v5179_v63 = vpop.xlane.xlu1 %5178 }
 0x483   : > { %v8613_v42 = vsub.f32 %v8455_v57, %v5221_v59  ;;  %v5222_v45 = vmul.f32 0.0078125, %v5179_v63 }
 0x485   : > { %v8616_v43 = vsub.f32 %v8459_v36, %v5222_v45  ;;  %v5285_v61 = vmul.f32 %v8613_v42, %v8613_v42 }
 0x487   : > { %5337 = vadd.xlane.f32.xlu0 %v5285_v61  ;;  %v5286_v1 = vmul.f32 %v8616_v43, %v8616_v43 }
 0x488   : > { %v5181_v58 = vpop.xlane.xlu0 %5180 }
 0x489   : > { %v5223_v23 = vmul.f32 0.0078125, %v5181_v58  ;;  %5339 = vadd.xlane.f32.xlu1 %v5286_v1 }
 0x48a   : > { %v5183_v18 = vpop.xlane.xlu1 %5182 }
 0x48b   : > { %v8623_v17 = vsub.f32 %v8465_v11, %v5223_v23  ;;  %v5224_v57 = vmul.f32 0.0078125, %v5183_v18 }
 0x48d   : > { %v8626_v46 = vsub.f32 %v8469_v4, %v5224_v57  ;;  %v5287_v36 = vmul.f32 %v8623_v17, %v8623_v17 }
 0x48f   : > { %5341 = vadd.xlane.f32.xlu0 %v5287_v36  ;;  %v5288_v8 = vmul.f32 %v8626_v46, %v8626_v46 }
 0x490   : > { %v5185_v32 = vpop.xlane.xlu0 %5184 }
 0x491   : > { %v5225_v48 = vmul.f32 0.0078125, %v5185_v32  ;;  %5343 = vadd.xlane.f32.xlu1 %v5288_v8 }
 0x492   : > { %v5187_v35 = vpop.xlane.xlu1 %5186 }
 0x493   : > { %v8633_v33 = vsub.f32 %v8475_v30, %v5225_v48  ;;  %v5226_v11 = vmul.f32 0.0078125, %v5187_v35 }
 0x495   : > { %v8636_v49 = vsub.f32 %v8479_v34, %v5226_v11  ;;  %v5289_v4 = vmul.f32 %v8633_v33, %v8633_v33 }
 0x497   : > { %5345 = vadd.xlane.f32.xlu0 %v5289_v4  ;;  %v5290_v51 = vmul.f32 %v8636_v49, %v8636_v49  ;;  %v8675_v4 = vld [vmem:[%s8876_s6] ss:$0 sm:$0xff] }
 0x498   : > { %v5189_v10 = vpop.xlane.xlu0 %5188 }
 0x499   : > { %v5227_v14 = vmul.f32 0.0078125, %v5189_v10  ;;  %5347 = vadd.xlane.f32.xlu1 %v5290_v51 }
 0x49a   : > { %v5191_v31 = vpop.xlane.xlu1 %5190 }
 0x49b   : > { %v8643_v19 = vsub.f32 %v8485_v28, %v5227_v14  ;;  %v5228_v30 = vmul.f32 0.0078125, %v5191_v31  ;;  %v8681_v31 = vld [vmem:[%s8877_s7] ss:$0 sm:$0xff] }
 0x49d   : > { %v8646_v38 = vsub.f32 %v8489_v27, %v5228_v30  ;;  %v5291_v34 = vmul.f32 %v8643_v19, %v8643_v19 }
 0x49f   : > { %5349 = vadd.xlane.f32.xlu0 %v5291_v34  ;;  %v5292_v3 = vmul.f32 %v8646_v38, %v8646_v38 }
 0x4a0   : > { %v5193_v29 = vpop.xlane.xlu0 %5192 }
 0x4a1   : > { %v5229_v39 = vmul.f32 0.0078125, %v5193_v29  ;;  %5351 = vadd.xlane.f32.xlu1 %v5292_v3 }
 0x4a2   : > { %v5195_v20 = vpop.xlane.xlu1 %5194 }
 0x4a3   : > { %v8653_v6 = vsub.f32 %v8495_v25, %v5229_v39  ;;  %v5230_v28 = vmul.f32 0.0078125, %v5195_v20 }
 0x4a5   : > { %v8656_v15 = vsub.f32 %v8499_v0, %v5230_v28  ;;  %v5293_v27 = vmul.f32 %v8653_v6, %v8653_v6 }
 0x4a7   : > { %5353 = vadd.xlane.f32.xlu0 %v5293_v27  ;;  %v5294_v2 = vmul.f32 %v8656_v15, %v8656_v15 }
 0x4a8   : > { %v5197_v41 = vpop.xlane.xlu0 %5196 }
 0x4a9   : > { %v5231_v59 = vmul.f32 0.0078125, %v5197_v41  ;;  %5355 = vadd.xlane.f32.xlu1 %v5294_v2 }
 0x4aa   : > { %v5199_v63 = vpop.xlane.xlu1 %5198 }
 0x4ab   : > { %v8663_v45 = vsub.f32 %v8505_v21, %v5231_v59  ;;  %v5232_v25 = vmul.f32 0.0078125, %v5199_v63 }
 0x4ad   : > { %v8666_v61 = vsub.f32 %v8509_v56, %v5232_v25  ;;  %v5295_v0 = vmul.f32 %v8663_v45, %v8663_v45 }
 0x4af   : > { %5357 = vadd.xlane.f32.xlu0 %v5295_v0  ;;  %v5296_v1 = vmul.f32 %v8666_v61, %v8666_v61 }
 0x4b1   : > { %5359 = vadd.xlane.f32.xlu1 %v5296_v1 }
 0x4c4   : > { %v5298_v58 = vpop.xlane.xlu0 %5297 }
 0x4c5   : > { %v5361_v23 = vmul.f32 0.0078125, %v5298_v58 }
 0x4c7   : > { %v5393_v18 = vadd.f32 1e-05, %v5361_v23 }
 0x4c8   : > { %v5300_v57 = vpop.xlane.xlu1 %5299 }
 0x4c9   : > { %7057 = vrsqrt.f32 %v5393_v18  ;;  %v5362_v36 = vmul.f32 0.0078125, %v5300_v57 }
 0x4cb   : > { %v5394_v21 = vadd.f32 1e-05, %v5362_v36 }
 0x4cc   : > { %v5302_v8 = vpop.xlane.xlu0 %5301 }
 0x4cd   : > { %7059 = vrsqrt.f32 %v5394_v21  ;;  %v5363_v32 = vmul.f32 0.0078125, %v5302_v8 }
 0x4cf   : > { %v5395_v56 = vadd.f32 1e-05, %v5363_v32 }
 0x4d0   : > { %v5304_v48 = vpop.xlane.xlu1 %5303 }
 0x4d1   : > { %7061 = vrsqrt.f32 %v5395_v56  ;;  %v5364_v35 = vmul.f32 0.0078125, %v5304_v48 }
 0x4d3   : > { %v7058_v11 = vpop.eup %7057  ;;  %v5396_v51 = vadd.f32 1e-05, %v5364_v35 }
 0x4d4   : > { %v5457_v10 = vmul.f32 %v7058_v11, %v8513_v13  ;;  %v5306_v14 = vpop.xlane.xlu0 %5305 }
 0x4d5   : > { %7063 = vrsqrt.f32 %v5396_v51  ;;  %v5365_v30 = vmul.f32 0.0078125, %v5306_v14 }
 0x4d6   : > { %v5496_v34 = vmul.f32 %v8675_v4, %v5457_v10  ;;  %v5308_v3 = vpop.xlane.xlu1 %5307 }
 0x4d7   : > { %v7060_v29 = vpop.eup %7059  ;;  %v5397_v39 = vadd.f32 1e-05, %v5365_v30  ;;  %v5366_v20 = vmul.f32 0.0078125, %v5308_v3 }
 0x4d8   : > { %v5535_v28 = vadd.f32 %v8681_v31, %v5496_v34  ;;  %v5458_v27 = vmul.f32 %v7060_v29, %v8518_v22 }
 0x4d9   : > { %7065 = vrsqrt.f32 %v5397_v39  ;;  %v5398_v13 = vadd.f32 1e-05, %v5366_v20 }
 0x4da   : > { %5567 = vst [vmem:[%s8688_s0] sm:$0xff] %v5535_v28  ;;  %v5497_v2 = vmul.f32 %v8675_v4, %v5458_v27 }
 0x4db   : > { %v7062_v41 = vpop.eup %7061  ;;  %7067 = vrsqrt.f32 %v5398_v13 }
 0x4dc   : > { %v5536_v59 = vadd.f32 %v8681_v31, %v5497_v2  ;;  %v5459_v63 = vmul.f32 %v7062_v41, %v8523_v24  ;;  %v5310_v25 = vpop.xlane.xlu0 %5309 }
 0x4dd   : > { %v5367_v0 = vmul.f32 0.0078125, %v5310_v25 }
 0x4de   : > { %5568 = vst [vmem:[%s8688_s0 + $0x8] sm:$0xff] %v5536_v59  ;;  %v5498_v22 = vmul.f32 %v8675_v4, %v5459_v63  ;;  %v5312_v1 = vpop.xlane.xlu1 %5311 }
 0x4df   : > { %v7064_v58 = vpop.eup %7063  ;;  %v5399_v23 = vadd.f32 1e-05, %v5367_v0  ;;  %v5368_v18 = vmul.f32 0.0078125, %v5312_v1 }
 0x4e0   : > { %v5537_v57 = vadd.f32 %v8681_v31, %v5498_v22  ;;  %v5460_v36 = vmul.f32 %v7064_v58, %v8528_v47 }
 0x4e1   : > { %7069 = vrsqrt.f32 %v5399_v23  ;;  %v5400_v21 = vadd.f32 1e-05, %v5368_v18 }
 0x4e2   : > { %5569 = vst [vmem:[%s8688_s0 + $0x10] sm:$0xff] %v5537_v57  ;;  %v5499_v8 = vmul.f32 %v8675_v4, %v5460_v36 }
 0x4e3   : > { %v7066_v24 = vpop.eup %7065  ;;  %7071 = vrsqrt.f32 %v5400_v21 }
 0x4e4   : > { %v5538_v32 = vadd.f32 %v8681_v31, %v5499_v8  ;;  %v5461_v56 = vmul.f32 %v7066_v24, %v8533_v50  ;;  %v5314_v48 = vpop.xlane.xlu0 %5313 }
 0x4e5   : > { %v7068_v35 = vpop.eup %7067  ;;  %v5369_v11 = vmul.f32 0.0078125, %v5314_v48 }
 0x4e6   : > { %5570 = vst [vmem:[%s8688_s0 + $0x18] sm:$0xff] %v5538_v32  ;;  %v5500_v51 = vmul.f32 %v8675_v4, %v5461_v56  ;;  %v5462_v47 = vmul.f32 %v7068_v35, %v8536_v55  ;;  %v5316_v10 = vpop.xlane.xlu1 %5315 }
 0x4e7   : > { %v5401_v14 = vadd.f32 1e-05, %v5369_v11  ;;  %v5370_v30 = vmul.f32 0.0078125, %v5316_v10 }
 0x4e8   : > { %v5539_v34 = vadd.f32 %v8681_v31, %v5500_v51  ;;  %v5501_v3 = vmul.f32 %v8675_v4, %v5462_v47 }
 0x4e9   : > { %7073 = vrsqrt.f32 %v5401_v14  ;;  %v5402_v29 = vadd.f32 1e-05, %v5370_v30 }
 0x4ea   : > { %5571 = vst [vmem:[%s8688_s0 + $0x20] sm:$0xff] %v5539_v34  ;;  %v5540_v50 = vadd.f32 %v8681_v31, %v5501_v3 }
 0x4eb   : > { %v7070_v39 = vpop.eup %7069  ;;  %7075 = vrsqrt.f32 %v5402_v29 }
 0x4ec   : > { %5572 = vst [vmem:[%s8688_s0 + $0x28] sm:$0xff] %v5540_v50  ;;  %v5463_v20 = vmul.f32 %v7070_v39, %v8543_v12  ;;  %v5318_v28 = vpop.xlane.xlu0 %5317 }
 0x4ed   : > { %v7072_v55 = vpop.eup %7071  ;;  %v5371_v27 = vmul.f32 0.0078125, %v5318_v28 }
 0x4ee   : > { %v5502_v13 = vmul.f32 %v8675_v4, %v5463_v20  ;;  %v5464_v2 = vmul.f32 %v7072_v55, %v8546_v44  ;;  %v5320_v41 = vpop.xlane.xlu1 %5319 }
 0x4ef   : > { %v5403_v59 = vadd.f32 1e-05, %v5371_v27  ;;  %v5372_v63 = vmul.f32 0.0078125, %v5320_v41 }
 0x4f0   : > { %v5541_v25 = vadd.f32 %v8681_v31, %v5502_v13  ;;  %v5503_v0 = vmul.f32 %v8675_v4, %v5464_v2 }
 0x4f1   : > { %7077 = vrsqrt.f32 %v5403_v59  ;;  %v5404_v22 = vadd.f32 1e-05, %v5372_v63 }
 0x4f2   : > { %5573 = vst [vmem:[%s8688_s0 + $0x30] sm:$0xff] %v5541_v25  ;;  %v5542_v12 = vadd.f32 %v8681_v31, %v5503_v0 }
 0x4f3   : > { %v7074_v1 = vpop.eup %7073  ;;  %7079 = vrsqrt.f32 %v5404_v22 }
 0x4f4   : > { %5574 = vst [vmem:[%s8688_s0 + $0x38] sm:$0xff] %v5542_v12  ;;  %v5465_v58 = vmul.f32 %v7074_v1, %v8553_v5  ;;  %v5322_v23 = vpop.xlane.xlu0 %5321 }
 0x4f5   : > { %v7076_v44 = vpop.eup %7075  ;;  %v5373_v18 = vmul.f32 0.0078125, %v5322_v23 }
 0x4f6   : > { %v5504_v57 = vmul.f32 %v8675_v4, %v5465_v58  ;;  %v5466_v36 = vmul.f32 %v7076_v44, %v8556_v54  ;;  %v5324_v21 = vpop.xlane.xlu1 %5323 }
 0x4f7   : > { %v5405_v8 = vadd.f32 1e-05, %v5373_v18  ;;  %v5374_v24 = vmul.f32 0.0078125, %v5324_v21 }
 0x4f8   : > { %v5543_v32 = vadd.f32 %v8681_v31, %v5504_v57  ;;  %v5505_v56 = vmul.f32 %v8675_v4, %v5466_v36 }
 0x4f9   : > { %7081 = vrsqrt.f32 %v5405_v8  ;;  %v5406_v48 = vadd.f32 1e-05, %v5374_v24 }
 0x4fa   : > { %5575 = vst [vmem:[%s8688_s0 + $0x40] sm:$0xff] %v5543_v32  ;;  %v5544_v5 = vadd.f32 %v8681_v31, %v5505_v56 }
 0x4fb   : > { %v7078_v35 = vpop.eup %7077  ;;  %7083 = vrsqrt.f32 %v5406_v48 }
 0x4fc   : > { %5576 = vst [vmem:[%s8688_s0 + $0x48] sm:$0xff] %v5544_v5  ;;  %v5467_v11 = vmul.f32 %v7078_v35, %v8563_v16  ;;  %v5326_v51 = vpop.xlane.xlu0 %5325 }
 0x4fd   : > { %v7080_v54 = vpop.eup %7079  ;;  %v5375_v47 = vmul.f32 0.0078125, %v5326_v51 }
 0x4fe   : > { %v5506_v10 = vmul.f32 %v8675_v4, %v5467_v11  ;;  %v5468_v14 = vmul.f32 %v7080_v54, %v8566_v7  ;;  %v5328_v30 = vpop.xlane.xlu1 %5327 }
 0x4ff   : > { %v5407_v34 = vadd.f32 1e-05, %v5375_v47  ;;  %v5376_v3 = vmul.f32 0.0078125, %v5328_v30 }
 0x500   : > { %v5545_v29 = vadd.f32 %v8681_v31, %v5506_v10  ;;  %v5507_v50 = vmul.f32 %v8675_v4, %v5468_v14 }
 0x501   : > { %7085 = vrsqrt.f32 %v5407_v34  ;;  %v5408_v39 = vadd.f32 1e-05, %v5376_v3 }
 0x502   : > { %5577 = vst [vmem:[%s8688_s0 + $0x50] sm:$0xff] %v5545_v29  ;;  %v5546_v16 = vadd.f32 %v8681_v31, %v5507_v50 }
 0x503   : > { %v7082_v20 = vpop.eup %7081  ;;  %7087 = vrsqrt.f32 %v5408_v39 }
 0x504   : > { %5578 = vst [vmem:[%s8688_s0 + $0x58] sm:$0xff] %v5546_v16  ;;  %v5469_v28 = vmul.f32 %v7082_v20, %v8573_v26  ;;  %v5330_v55 = vpop.xlane.xlu0 %5329 }
 0x505   : > { %v7084_v7 = vpop.eup %7083  ;;  %v5377_v27 = vmul.f32 0.0078125, %v5330_v55 }
 0x506   : > { %v5508_v13 = vmul.f32 %v8675_v4, %v5469_v28  ;;  %v5470_v2 = vmul.f32 %v7084_v7, %v8576_v60  ;;  %v5332_v41 = vpop.xlane.xlu1 %5331 }
 0x507   : > { %v5409_v59 = vadd.f32 1e-05, %v5377_v27  ;;  %v5378_v63 = vmul.f32 0.0078125, %v5332_v41 }
 0x508   : > { %v5547_v25 = vadd.f32 %v8681_v31, %v5508_v13  ;;  %v5509_v0 = vmul.f32 %v8675_v4, %v5470_v2 }
 0x509   : > { %7089 = vrsqrt.f32 %v5409_v59  ;;  %v5410_v22 = vadd.f32 1e-05, %v5378_v63 }
 0x50a   : > { %5579 = vst [vmem:[%s8688_s0 + $0x60] sm:$0xff] %v5547_v25  ;;  %v5548_v26 = vadd.f32 %v8681_v31, %v5509_v0 }
 0x50b   : > { %v7086_v12 = vpop.eup %7085  ;;  %7091 = vrsqrt.f32 %v5410_v22 }
 0x50c   : > { %5580 = vst [vmem:[%s8688_s0 + $0x68] sm:$0xff] %v5548_v26  ;;  %v5471_v1 = vmul.f32 %v7086_v12, %v8583_v9  ;;  %v5334_v58 = vpop.xlane.xlu0 %5333 }
 0x50d   : > { %v7088_v60 = vpop.eup %7087  ;;  %v5379_v23 = vmul.f32 0.0078125, %v5334_v58 }
 0x50e   : > { %v5510_v44 = vmul.f32 %v8675_v4, %v5471_v1  ;;  %v5472_v18 = vmul.f32 %v7088_v60, %v8586_v53  ;;  %v5336_v57 = vpop.xlane.xlu1 %5335 }
 0x50f   : > { %v5411_v36 = vadd.f32 1e-05, %v5379_v23  ;;  %v5380_v21 = vmul.f32 0.0078125, %v5336_v57 }
 0x510   : > { %v5549_v8 = vadd.f32 %v8681_v31, %v5510_v44  ;;  %v5511_v24 = vmul.f32 %v8675_v4, %v5472_v18 }
 0x511   : > { %7093 = vrsqrt.f32 %v5411_v36  ;;  %v5412_v32 = vadd.f32 1e-05, %v5380_v21 }
 0x512   : > { %5581 = vst [vmem:[%s8688_s0 + $0x70] sm:$0xff] %v5549_v8  ;;  %v5550_v9 = vadd.f32 %v8681_v31, %v5511_v24 }
 0x513   : > { %v7090_v56 = vpop.eup %7089  ;;  %7095 = vrsqrt.f32 %v5412_v32 }
 0x514   : > { %5582 = vst [vmem:[%s8688_s0 + $0x78] sm:$0xff] %v5550_v9  ;;  %v5473_v48 = vmul.f32 %v7090_v56, %v8593_v52  ;;  %v5338_v5 = vpop.xlane.xlu0 %5337 }
 0x515   : > { %v7092_v53 = vpop.eup %7091  ;;  %v5381_v35 = vmul.f32 0.0078125, %v5338_v5 }
 0x516   : > { %v5512_v11 = vmul.f32 %v8675_v4, %v5473_v48  ;;  %v5474_v51 = vmul.f32 %v7092_v53, %v8596_v37  ;;  %v5340_v54 = vpop.xlane.xlu1 %5339 }
 0x517   : > { %v5413_v47 = vadd.f32 1e-05, %v5381_v35  ;;  %v5382_v10 = vmul.f32 0.0078125, %v5340_v54 }
 0x518   : > { %v5551_v14 = vadd.f32 %v8681_v31, %v5512_v11  ;;  %v5513_v30 = vmul.f32 %v8675_v4, %v5474_v51 }
 0x519   : > { %7097 = vrsqrt.f32 %v5413_v47  ;;  %v5414_v34 = vadd.f32 1e-05, %v5382_v10 }
 0x51a   : > { %5583 = vst [vmem:[%s8688_s0 + $0x80] sm:$0xff] %v5551_v14  ;;  %v5552_v52 = vadd.f32 %v8681_v31, %v5513_v30 }
 0x51b   : > { %v7094_v3 = vpop.eup %7093  ;;  %7099 = vrsqrt.f32 %v5414_v34 }
 0x51c   : > { %5584 = vst [vmem:[%s8688_s0 + $0x88] sm:$0xff] %v5552_v52  ;;  %v5475_v29 = vmul.f32 %v7094_v3, %v8603_v40  ;;  %v5342_v50 = vpop.xlane.xlu0 %5341 }
 0x51d   : > { %v7096_v37 = vpop.eup %7095  ;;  %v5383_v39 = vmul.f32 0.0078125, %v5342_v50 }
 0x51e   : > { %v5514_v16 = vmul.f32 %v8675_v4, %v5475_v29  ;;  %v5476_v20 = vmul.f32 %v7096_v37, %v8606_v62  ;;  %v5344_v28 = vpop.xlane.xlu1 %5343 }
 0x51f   : > { %v5415_v55 = vadd.f32 1e-05, %v5383_v39  ;;  %v5384_v7 = vmul.f32 0.0078125, %v5344_v28 }
 0x520   : > { %v5553_v27 = vadd.f32 %v8681_v31, %v5514_v16  ;;  %v5515_v13 = vmul.f32 %v8675_v4, %v5476_v20 }
 0x521   : > { %7101 = vrsqrt.f32 %v5415_v55  ;;  %v5416_v2 = vadd.f32 1e-05, %v5384_v7 }
 0x522   : > { %5585 = vst [vmem:[%s8688_s0 + $0x90] sm:$0xff] %v5553_v27  ;;  %v5554_v40 = vadd.f32 %v8681_v31, %v5515_v13 }
 0x523   : > { %v7098_v41 = vpop.eup %7097  ;;  %7103 = vrsqrt.f32 %v5416_v2 }
 0x524   : > { %5586 = vst [vmem:[%s8688_s0 + $0x98] sm:$0xff] %v5554_v40  ;;  %v5477_v59 = vmul.f32 %v7098_v41, %v8613_v42  ;;  %v5346_v63 = vpop.xlane.xlu0 %5345 }
 0x525   : > { %v7100_v62 = vpop.eup %7099  ;;  %v5385_v25 = vmul.f32 0.0078125, %v5346_v63 }
 0x526   : > { %v5516_v0 = vmul.f32 %v8675_v4, %v5477_v59  ;;  %v5478_v22 = vmul.f32 %v7100_v62, %v8616_v43  ;;  %v5348_v26 = vpop.xlane.xlu1 %5347 }
 0x527   : > { %v5417_v12 = vadd.f32 1e-05, %v5385_v25  ;;  %v5386_v1 = vmul.f32 0.0078125, %v5348_v26 }
 0x528   : > { %v5555_v58 = vadd.f32 %v8681_v31, %v5516_v0  ;;  %v5517_v60 = vmul.f32 %v8675_v4, %v5478_v22 }
 0x529   : > { %7105 = vrsqrt.f32 %v5417_v12  ;;  %v5418_v23 = vadd.f32 1e-05, %v5386_v1 }
 0x52a   : > { %5587 = vst [vmem:[%s8688_s0 + $0xa0] sm:$0xff] %v5555_v58  ;;  %v5556_v42 = vadd.f32 %v8681_v31, %v5517_v60 }
 0x52b   : > { %v7102_v44 = vpop.eup %7101  ;;  %7107 = vrsqrt.f32 %v5418_v23 }
 0x52c   : > { %5588 = vst [vmem:[%s8688_s0 + $0xa8] sm:$0xff] %v5556_v42  ;;  %v5479_v18 = vmul.f32 %v7102_v44, %v8623_v17  ;;  %v5350_v57 = vpop.xlane.xlu0 %5349 }
 0x52d   : > { %v7104_v43 = vpop.eup %7103  ;;  %v5387_v36 = vmul.f32 0.0078125, %v5350_v57 }
 0x52e   : > { %v5518_v21 = vmul.f32 %v8675_v4, %v5479_v18  ;;  %v5480_v8 = vmul.f32 %v7104_v43, %v8626_v46  ;;  %v5352_v24 = vpop.xlane.xlu1 %5351 }
 0x52f   : > { %v5419_v32 = vadd.f32 1e-05, %v5387_v36  ;;  %v5388_v9 = vmul.f32 0.0078125, %v5352_v24 }
 0x530   : > { %v5557_v56 = vadd.f32 %v8681_v31, %v5518_v21  ;;  %v5519_v48 = vmul.f32 %v8675_v4, %v5480_v8 }
 0x531   : > { %7109 = vrsqrt.f32 %v5419_v32  ;;  %v5420_v5 = vadd.f32 1e-05, %v5388_v9 }
 0x532   : > { %5589 = vst [vmem:[%s8688_s0 + $0xb0] sm:$0xff] %v5557_v56  ;;  %v5558_v17 = vadd.f32 %v8681_v31, %v5519_v48 }
 0x533   : > { %v7106_v53 = vpop.eup %7105  ;;  %7111 = vrsqrt.f32 %v5420_v5 }
 0x534   : > { %5590 = vst [vmem:[%s8688_s0 + $0xb8] sm:$0xff] %v5558_v17  ;;  %v5481_v35 = vmul.f32 %v7106_v53, %v8633_v33  ;;  %v5354_v11 = vpop.xlane.xlu0 %5353 }
 0x535   : > { %v7108_v46 = vpop.eup %7107  ;;  %v5389_v51 = vmul.f32 0.0078125, %v5354_v11 }
 0x536   : > { %v5520_v54 = vmul.f32 %v8675_v4, %v5481_v35  ;;  %v5482_v47 = vmul.f32 %v7108_v46, %v8636_v49  ;;  %v5356_v10 = vpop.xlane.xlu1 %5355 }
 0x537   : > { %v5421_v14 = vadd.f32 1e-05, %v5389_v51  ;;  %v5390_v30 = vmul.f32 0.0078125, %v5356_v10 }
 0x538   : > { %v5559_v34 = vadd.f32 %v8681_v31, %v5520_v54  ;;  %v5521_v52 = vmul.f32 %v8675_v4, %v5482_v47 }
 0x539   : > { %7113 = vrsqrt.f32 %v5421_v14  ;;  %v5422_v3 = vadd.f32 1e-05, %v5390_v30 }
 0x53a   : > { %5591 = vst [vmem:[%s8688_s0 + $0xc0] sm:$0xff] %v5559_v34  ;;  %v5560_v33 = vadd.f32 %v8681_v31, %v5521_v52 }
 0x53b   : > { %v7110_v29 = vpop.eup %7109  ;;  %7115 = vrsqrt.f32 %v5422_v3 }
 0x53c   : > { %5592 = vst [vmem:[%s8688_s0 + $0xc8] sm:$0xff] %v5560_v33  ;;  %v5483_v50 = vmul.f32 %v7110_v29, %v8643_v19  ;;  %v5358_v37 = vpop.xlane.xlu0 %5357 }
 0x53d   : > { %v7112_v49 = vpop.eup %7111  ;;  %v5391_v39 = vmul.f32 0.0078125, %v5358_v37 }
 0x53e   : > { %v5522_v16 = vmul.f32 %v8675_v4, %v5483_v50  ;;  %v5484_v20 = vmul.f32 %v7112_v49, %v8646_v38  ;;  %v5360_v28 = vpop.xlane.xlu1 %5359 }
 0x53f   : > { %v5423_v55 = vadd.f32 1e-05, %v5391_v39  ;;  %v5392_v7 = vmul.f32 0.0078125, %v5360_v28 }
 0x540   : > { %v5561_v27 = vadd.f32 %v8681_v31, %v5522_v16  ;;  %v5523_v13 = vmul.f32 %v8675_v4, %v5484_v20 }
 0x541   : > { %7117 = vrsqrt.f32 %v5423_v55  ;;  %v5424_v2 = vadd.f32 1e-05, %v5392_v7 }
 0x542   : > { %5593 = vst [vmem:[%s8688_s0 + $0xd0] sm:$0xff] %v5561_v27  ;;  %v5562_v19 = vadd.f32 %v8681_v31, %v5523_v13 }
 0x543   : > { %v7114_v40 = vpop.eup %7113  ;;  %7119 = vrsqrt.f32 %v5424_v2 }
 0x544   : > { %5594 = vst [vmem:[%s8688_s0 + $0xd8] sm:$0xff] %v5562_v19  ;;  %v5485_v38 = vmul.f32 %v7114_v40, %v8653_v6 }
 0x545   : > { %v7116_v41 = vpop.eup %7115 }
 0x546   : > { %v5524_v59 = vmul.f32 %v8675_v4, %v5485_v38  ;;  %v5486_v63 = vmul.f32 %v7116_v41, %v8656_v15 }
 0x548   : > { %v5563_v62 = vadd.f32 %v8681_v31, %v5524_v59  ;;  %v5525_v25 = vmul.f32 %v8675_v4, %v5486_v63 }
 0x54a   : > { %5595 = vst [vmem:[%s8688_s0 + $0xe0] sm:$0xff] %v5563_v62  ;;  %v5564_v0 = vadd.f32 %v8681_v31, %v5525_v25 }
 0x54b   : > { %v7118_v22 = vpop.eup %7117 }
 0x54c   : > { %5596 = vst [vmem:[%s8688_s0 + $0xe8] sm:$0xff] %v5564_v0  ;;  %v5487_v26 = vmul.f32 %v7118_v22, %v8663_v45 }
 0x54d   : > { %v7120_v6 = vpop.eup %7119 }
 0x54e   : > { %v5526_v12 = vmul.f32 %v8675_v4, %v5487_v26  ;;  %v5488_v15 = vmul.f32 %v7120_v6, %v8666_v61 }
 0x550   : > { %v5565_v1 = vadd.f32 %v8681_v31, %v5526_v12  ;;  %v5527_v58 = vmul.f32 %v8675_v4, %v5488_v15 }
 0x552   : > { %5597 = vst [vmem:[%s8688_s0 + $0xf0] sm:$0xff] %v5565_v1  ;;  %v5566_v45 = vadd.f32 %v8681_v31, %v5527_v58 }
 0x554   : > { %5598 = vst [vmem:[%s8688_s0 + $0xf8] sm:$0xff] %v5566_v45 }
 0x555   : > { %7282 = shalt.err (!%p7279_p7)
}
 0x556   : > { %s7283_s17 = scalar_lea.hbm %s8816_s25, 4096  ;;  %s7287_s2 = scalar_lea.hbm %s8878_s8, 8192 }
 0x557   : > { %p7284_p13 = scmp.ne.s32.totalorder %s8816_s25, %s7283_s17  ;;  %p7288_p1 = scmp.lt.u32.totalorder %s8816_s25, %s8878_s8 }
 0x558   : > { %p7289_p11 = scmp.lt.u32.totalorder %s7287_s2, %s7283_s17  ;;  %p7291_p2 = scmp.lt.u32.totalorder %s7283_s17, %s8816_s25 }
 0x559   : > { %p7285_p8 = pnand %p7284_p13, %p8954_p6 }
 0x55a   : > { %p7290_p0 = por %p7289_p11, %p7288_p1 }
 0x55b   : > { %p7286_p12 = pneg %p7285_p8 }
 0x55c   : > { %p7292_p10 = por %p7291_p2, %p7290_p0 }
 0x55e   : > { %p7293_p3 = pnand %p7292_p10, %p7286_p12 }
 0x560   : > { %7296 = shalt.err (!%p7293_p3)
}
 0x561   : > { %s7375_s22 = smov 128   ;;  %s7376_s26 = smov 8  }
 0x562   : > { %6591 = dma.vmem_to_hbm [thread:$0]  (%p8954_p6), %s8818_s14, 4096, %s8816_s25, %s5600_s30, %s7375_s22, %s7375_s22, %s7376_s26  }
 0x563 PF: > { %s8955_s27 = sld [smem:[#allocation18_spill]]  ;;  %s8956_s0 = sld [smem:[#allocation20_spill]] }
 0x564   : > { %p8958_p9 = scmp.ge.s32.totalorder %s7363_s10, 2 }
 0x569   : > { %s5630_s24 = sand.u32 1, %s8955_s27   ;;  %p8957_p4 = scmp.ne.s32.totalorder %s8956_s0, 0 }
 0x56a   : > { %s5631_s23 = scalar_lea.sflag [#allocation6], %s5630_s24 }
 0x56b   : > { %p6608_p5 = pnand %p8958_p9, %p8957_p4 }
 0x56d   : > { %7338 = dma.done.wait (!%p6608_p5), %s5631_s23, 4096  }
 0x56e   : > { %7340 = vsyncadd (!%p6608_p5), %s5631_s23, 4294963200  ;;  %s28_s10 = sadd.s32 1, %s7363_s10   ;;  %s8959_s20 = sld [smem:[#allocation19_spill]] }
 0x56f   : > { %p25_p7 = scmp.ge.s32.totalorder %s28_s10, 4   ;;  %s8960_s29 = sld [smem:[#allocation22_spill]] }
 0x570   : > { %s8961_s18 = sld [smem:[#allocation21_spill]]  ;;  %s8962_s27 = smov %s7347_s28 }
 0x571   : > { %s8964_s30 = smov %s7359_s9  ;;  %27 = sbr.rel (!%p25_p7) target bundleno = 13 (0xd), region = 118 }
 0x574   : > { %s8963_s28 = smov %s8959_s20 }
 0x576   : > { %s8965_s9 = smov %s8961_s18 }
 0x578   :  { %5636 = vsyncpa [#allocation5], 1 }
 0x579   :  { %5638 = vsyncpa [#allocation5 + $0x1], 1 }
 0x57a   :  { %5639 = vsyncpa [#allocation8], 1 }
 0x57b   :  { %5641 = vsyncpa [#allocation8 + $0x1], 1 }
 0x57c   :  { %5642 = vsyncpa [#allocation11], 1 }
 0x57d   :  { %5643 = vsyncpa [#allocation6], 1 }
 0x57e   :  { %5645 = vsyncpa [#allocation6 + $0x1], 1 }

</bundles_post_ra>
